<compile_context>
chip_gen: v5e
topology: v5e:2x2
jax: 0.10.0
libtpu: 0.0.40
codegen_flags: <defaults>
</compile_context>

<pallas_src>
import jax
import jax.numpy as jnp
from jax.experimental import pallas as pl
from jax.experimental.pallas import tpu as pltpu

# ---- model hyper-parameters (from Config / PyTorch defaults) ----
D = 128            # hidden_size_transformer
NHEAD = 8          # nhead
DH = D // NHEAD    # per-head dim = 16
DFF = 2048         # nn.TransformerEncoderLayer default dim_feedforward
FF_TILE = 1024     # DFF tile for the fused feed-forward (2 accumulation passes)
NLAYERS = 3        # num_layer_transformer
EPS = 1e-5         # LayerNorm eps (PyTorch default)


def _layer_norm(x, w, b):
    mu = jnp.mean(x, axis=-1, keepdims=True)
    var = jnp.mean((x - mu) ** 2, axis=-1, keepdims=True)
    return (x - mu) * jax.lax.rsqrt(var + EPS) * w + b


def transformer_kernel(
    x_ref, fc1_w_ref, fc1_b_ref,
    inw_ref, inb_ref, outw_ref, outb_ref,
    f1w_ref, f1b_ref, f2w_ref, f2b_ref,
    ln1w_ref, ln1b_ref, ln2w_ref, ln2b_ref,
    fcw_ref, fcb_ref,
    o_ref,
    attn_scr,            # VMEM (TB, S, D) f32 scratch: per-head output slab
):
    TB, S, F_in = x_ref.shape
    M = TB * S  # rows fed to the MXU for every dense layer

    # ---- fc1 : LazyLinear(F_in -> D), bf16 matmul, f32 accumulate ----
    x = x_ref[...].reshape(M, F_in).astype(jnp.bfloat16)
    h = jnp.dot(x, fc1_w_ref[...], preferred_element_type=jnp.float32) + fc1_b_ref[...]

    scale = 1.0 / (DH ** 0.5)
    for l in range(NLAYERS):  # static unroll over encoder layers
        # ---- multi-head self attention (QKV projection over the full (M, D) tile) ----
        hb = h.astype(jnp.bfloat16)
        qkv = jnp.dot(hb, inw_ref[l], preferred_element_type=jnp.float32) + inb_ref[l]
        # fold 1/sqrt(dh) into q once; all attention matmul operands go to bf16
        q = (qkv[:, 0:D] * scale).reshape(TB, S, D).astype(jnp.bfloat16)
        k = qkv[:, D:2 * D].reshape(TB, S, D).astype(jnp.bfloat16)
        v = qkv[:, 2 * D:3 * D].reshape(TB, S, D).astype(jnp.bfloat16)

        for hh in range(NHEAD):  # static unroll over heads, batched over TB sequences
            sl = slice(hh * DH, (hh + 1) * DH)
            s = jnp.einsum('bqd,bkd->bqk', q[:, :, sl], k[:, :, sl],
                           preferred_element_type=jnp.float32)
            s = s - jnp.max(s, axis=-1, keepdims=True)
            p = jnp.exp(s)
            # deferred softmax normalization: EUP approx reciprocal, applied post-PV
            inv = pl.reciprocal(jnp.sum(p, axis=-1, keepdims=True), approx=True)
            o_h = jnp.einsum('bqk,bkd->bqd', p.astype(jnp.bfloat16), v[:, :, sl],
                             preferred_element_type=jnp.float32) * inv
            attn_scr[:, :, sl] = o_h   # straight to the VMEM slab (no 8-way lane concat)

        attn = attn_scr[...].reshape(M, D)
        attn = jnp.dot(attn.astype(jnp.bfloat16), outw_ref[l],
                       preferred_element_type=jnp.float32) + outb_ref[l]
        # post-norm residual 1 (f32)
        h = _layer_norm(h + attn, ln1w_ref[l], ln1b_ref[l])

        # ---- feed-forward, tiled along DFF: fused f1-matmul -> bias+ReLU -> f2-matmul ----
        hb = h.astype(jnp.bfloat16)
        ff = jnp.zeros((M, D), jnp.float32)
        for t in range(DFF // FF_TILE):
            lo, hi = t * FF_TILE, (t + 1) * FF_TILE
            a = jnp.dot(hb, f1w_ref[l, :, lo:hi],
                        preferred_element_type=jnp.float32) + f1b_ref[l, :, lo:hi]
            a = jnp.maximum(a, 0.0).astype(jnp.bfloat16)
            ff = ff + jnp.dot(a, f2w_ref[l, lo:hi, :],
                              preferred_element_type=jnp.float32)
        ff = ff + f2b_ref[l]
        # post-norm residual 2 (f32)
        h = _layer_norm(h + ff, ln2w_ref[l], ln2b_ref[l])

    # final fc : LazyLinear(D -> 1) as broadcast-mul + lane reduction; lane-dense store
    out = jnp.sum(h * fcw_ref[...], axis=-1).reshape(1, M) + fcb_ref[...]
    o_ref[...] = out.reshape(1, 1, M).astype(o_ref.dtype)


def init_params(key, f_in):
    ks = jax.random.split(key, 12)
    s = 0.02
    f32, bf16 = jnp.float32, jnp.bfloat16
    # matmul weights stored in bf16 (halves VMEM residency + DMA); everything else f32
    fc1_w = (s * jax.random.normal(ks[0], (f_in, D), f32)).astype(bf16)
    fc1_b = s * jax.random.normal(ks[1], (1, D), f32)
    inw   = (s * jax.random.normal(ks[2], (NLAYERS, D, 3 * D), f32)).astype(bf16)
    inb   = s * jax.random.normal(ks[3], (NLAYERS, 1, 3 * D), f32)
    outw  = (s * jax.random.normal(ks[4], (NLAYERS, D, D), f32)).astype(bf16)
    outb  = s * jax.random.normal(ks[5], (NLAYERS, 1, D), f32)
    f1w   = (s * jax.random.normal(ks[6], (NLAYERS, D, DFF), f32)).astype(bf16)
    f1b   = s * jax.random.normal(ks[7], (NLAYERS, 1, DFF), f32)
    f2w   = (s * jax.random.normal(ks[8], (NLAYERS, DFF, D), f32)).astype(bf16)
    f2b   = s * jax.random.normal(ks[9], (NLAYERS, 1, D), f32)
    ln1w  = jnp.ones((NLAYERS, 1, D), f32)
    ln1b  = jnp.zeros((NLAYERS, 1, D), f32)
    ln2w  = jnp.ones((NLAYERS, 1, D), f32)
    ln2b  = jnp.zeros((NLAYERS, 1, D), f32)
    fcw   = s * jax.random.normal(ks[10], (1, D), f32)   # fc weight, stored as (1, D)
    fcb   = s * jax.random.normal(ks[11], (1, 1), f32)
    return (fc1_w, fc1_b, inw, inb, outw, outb, f1w, f1b, f2w, f2b,
            ln1w, ln1b, ln2w, ln2b, fcw, fcb)


def _weight_spec(shape):
    """Full-array, grid-invariant weight block; single-buffered to save VMEM (v7x)."""
    rank = len(shape)
    idx = lambda b, _r=rank: (0,) * _r
    try:
        return pl.BlockSpec(shape, idx, pipeline_mode=pl.Buffered(1))
    except Exception:  # pipeline_mode unavailable -> fall back to default buffering
        return pl.BlockSpec(shape, idx)


def _choose_tb(batch, seq, target_rows=512):
    """Sequences per grid step.

    Targets ~512 MXU rows per step (amortizes weight pushes on the 256-wide v6e/v7x MXU;
    harmless on v5e) while guaranteeing at least 2 grid steps whenever batch >= 2 so both
    v7x TensorCores get work under dimension_semantics=("parallel",).
    """
    if batch <= 1:
        return 1
    cands = [tb for tb in range(1, batch // 2 + 1) if batch % tb == 0]
    return min(cands, key=lambda tb: (abs(tb * seq - target_rows), -tb))


def transformer_model_forward(x, mask, params):
    # mask is unused, exactly as in the PyTorch forward.
    del mask
    B, S, F_in = x.shape
    # NOTE: S should be a multiple of 8 (pad outside if not) so the in-kernel
    # (TB,S,.) <-> (TB*S,.) reshapes stay free of sublane-relayout copies.
    TB = _choose_tb(B, S)
    G = B // TB
    M = TB * S

    in_specs = [pl.BlockSpec((TB, S, F_in), lambda b: (b, 0, 0))]
    in_specs += [_weight_spec(p.shape) for p in params]

    out = pl.pallas_call(
        transformer_kernel,
        out_shape=jax.ShapeDtypeStruct((G, 1, M), jnp.float32),
        grid=(G,),
        in_specs=in_specs,
        # lane-dense output slab: last dim TB*S (unmasked full-width stores when it is a
        # multiple of 128); reshaped to (B, S) outside the kernel.
        out_specs=pl.BlockSpec((1, 1, M), lambda b: (b, 0, 0)),
        scratch_shapes=[pltpu.VMEM((TB, S, D), jnp.float32)],  # per-head output slab
        compiler_params=pltpu.CompilerParams(
            dimension_semantics=("parallel",),
            vmem_limit_bytes=48 * 1024 * 1024,  # < v7x 64 MiB physical, plenty on v5e/v6e
        ),
    )(x, *params)

    return out.reshape(B, S)  # (B, S), already squeezed


if __name__ == "__main__":
    key = jax.random.PRNGKey(0)
    kx, kp = jax.random.split(key)

    # small shapes consistent with forward: batch=2, seq=8, input feature dim=16
    B, S, F_IN = 2, 8, 16
    x = jax.random.normal(kx, (B, S, F_IN), jnp.float32)
    mask = jnp.zeros((B, S), jnp.bool_)  # unused by forward, mirrors the PyTorch signature

    params = init_params(kp, F_IN)

    y = transformer_model_forward(x, mask, params)
    y = jax.block_until_ready(y)
    assert y.shape == (B, S), y.shape
    print("KERNEL_OK")
</pallas_src>

<mosaic_0001>
module attributes {stable_mosaic.version = 11 : i64} {
  func.func @transformer_kernel(%arg0: i32, %arg1: memref<1x8x16xf32, #tpu.memory_space<vmem>>, %arg2: memref<16x128xbf16, #tpu.memory_space<vmem>>, %arg3: memref<1x128xf32, #tpu.memory_space<vmem>>, %arg4: memref<3x128x384xbf16, #tpu.memory_space<vmem>>, %arg5: memref<3x1x384xf32, #tpu.memory_space<vmem>>, %arg6: memref<3x128x128xbf16, #tpu.memory_space<vmem>>, %arg7: memref<3x1x128xf32, #tpu.memory_space<vmem>>, %arg8: memref<3x128x2048xbf16, #tpu.memory_space<vmem>>, %arg9: memref<3x1x2048xf32, #tpu.memory_space<vmem>>, %arg10: memref<3x2048x128xbf16, #tpu.memory_space<vmem>>, %arg11: memref<3x1x128xf32, #tpu.memory_space<vmem>>, %arg12: memref<3x1x128xf32, #tpu.memory_space<vmem>>, %arg13: memref<3x1x128xf32, #tpu.memory_space<vmem>>, %arg14: memref<3x1x128xf32, #tpu.memory_space<vmem>>, %arg15: memref<3x1x128xf32, #tpu.memory_space<vmem>>, %arg16: memref<1x128xf32, #tpu.memory_space<vmem>>, %arg17: memref<1x1xf32, #tpu.memory_space<vmem>>, %arg18: memref<1x1x8xf32, #tpu.memory_space<vmem>>, %arg19: memref<1x8x128xf32, #tpu.memory_space<vmem>>) attributes {dimension_semantics = [#tpu.dimension_semantics<parallel>], iteration_bounds = array<i64: 2>, scalar_prefetch = 0 : i64, scratch_operands = 1 : i64, tpu.core_type = #tpu.core_type<tc>, window_params = [{transform_indices = @transform_0, window_bounds = array<i64: 1, 8, 16>}, {pipeline_mode = #tpu.pipeline_mode<synchronous>, transform_indices = @transform_1, window_bounds = array<i64: 16, 128>}, {pipeline_mode = #tpu.pipeline_mode<synchronous>, transform_indices = @transform_2, window_bounds = array<i64: 1, 128>}, {pipeline_mode = #tpu.pipeline_mode<synchronous>, transform_indices = @transform_3, window_bounds = array<i64: 3, 128, 384>}, {pipeline_mode = #tpu.pipeline_mode<synchronous>, transform_indices = @transform_4, window_bounds = array<i64: 3, 1, 384>}, {pipeline_mode = #tpu.pipeline_mode<synchronous>, transform_indices = @transform_5, window_bounds = array<i64: 3, 128, 128>}, {pipeline_mode = #tpu.pipeline_mode<synchronous>, transform_indices = @transform_6, window_bounds = array<i64: 3, 1, 128>}, {pipeline_mode = #tpu.pipeline_mode<synchronous>, transform_indices = @transform_7, window_bounds = array<i64: 3, 128, 2048>}, {pipeline_mode = #tpu.pipeline_mode<synchronous>, transform_indices = @transform_8, window_bounds = array<i64: 3, 1, 2048>}, {pipeline_mode = #tpu.pipeline_mode<synchronous>, transform_indices = @transform_9, window_bounds = array<i64: 3, 2048, 128>}, {pipeline_mode = #tpu.pipeline_mode<synchronous>, transform_indices = @transform_10, window_bounds = array<i64: 3, 1, 128>}, {pipeline_mode = #tpu.pipeline_mode<synchronous>, transform_indices = @transform_11, window_bounds = array<i64: 3, 1, 128>}, {pipeline_mode = #tpu.pipeline_mode<synchronous>, transform_indices = @transform_12, window_bounds = array<i64: 3, 1, 128>}, {pipeline_mode = #tpu.pipeline_mode<synchronous>, transform_indices = @transform_13, window_bounds = array<i64: 3, 1, 128>}, {pipeline_mode = #tpu.pipeline_mode<synchronous>, transform_indices = @transform_14, window_bounds = array<i64: 3, 1, 128>}, {pipeline_mode = #tpu.pipeline_mode<synchronous>, transform_indices = @transform_15, window_bounds = array<i64: 1, 128>}, {pipeline_mode = #tpu.pipeline_mode<synchronous>, transform_indices = @transform_16, window_bounds = array<i64: 1, 1>}, {transform_indices = @transform_17, window_bounds = array<i64: 1, 1, 8>}]} {
    %c0 = arith.constant 0 : index
    %c0_0 = arith.constant 0 : index
    %c0_1 = arith.constant 0 : index
    %0 = vector.load %arg1[%c0, %c0_0, %c0_1] : memref<1x8x16xf32, #tpu.memory_space<vmem>>, vector<1x8x16xf32>
    %1 = vector.shape_cast %0 : vector<1x8x16xf32> to vector<8x16xf32>
    %2 = arith.truncf %1 : vector<8x16xf32> to vector<8x16xbf16>
    %c0_2 = arith.constant 0 : index
    %c0_3 = arith.constant 0 : index
    %3 = vector.load %arg2[%c0_2, %c0_3] : memref<16x128xbf16, #tpu.memory_space<vmem>>, vector<16x128xbf16>
    %cst = arith.constant dense<0.000000e+00> : vector<8x128xf32>
    %4 = tpu.matmul %2, %3, %cst {dimension_numbers = #tpu.dot_dimension_numbers<[1], [0], [0], [1], [0, 0, 1, 1], [], []>} : vector<8x16xbf16>, vector<16x128xbf16>, vector<8x128xf32> -> vector<8x128xf32>
    %c0_4 = arith.constant 0 : index
    %c0_5 = arith.constant 0 : index
    %5 = vector.load %arg3[%c0_4, %c0_5] : memref<1x128xf32, #tpu.memory_space<vmem>>, vector<1x128xf32>
    %6 = vector.broadcast %5 : vector<1x128xf32> to vector<8x128xf32>
    %7 = arith.addf %4, %6 : vector<8x128xf32>
    %8 = arith.truncf %7 : vector<8x128xf32> to vector<8x128xbf16>
    %c0_6 = arith.constant 0 : index
    %c0_7 = arith.constant 0 : index
    %c0_8 = arith.constant 0 : index
    %9 = vector.load %arg4[%c0_6, %c0_7, %c0_8] : memref<3x128x384xbf16, #tpu.memory_space<vmem>>, vector<1x128x384xbf16>
    %10 = vector.shape_cast %9 : vector<1x128x384xbf16> to vector<128x384xbf16>
    %cst_9 = arith.constant dense<0.000000e+00> : vector<8x384xf32>
    %11 = tpu.matmul %8, %10, %cst_9 {dimension_numbers = #tpu.dot_dimension_numbers<[1], [0], [0], [1], [0, 0, 1, 1], [], []>} : vector<8x128xbf16>, vector<128x384xbf16>, vector<8x384xf32> -> vector<8x384xf32>
    %c0_10 = arith.constant 0 : index
    %c0_11 = arith.constant 0 : index
    %c0_12 = arith.constant 0 : index
    %12 = vector.load %arg5[%c0_10, %c0_11, %c0_12] : memref<3x1x384xf32, #tpu.memory_space<vmem>>, vector<1x1x384xf32>
    %13 = vector.shape_cast %12 : vector<1x1x384xf32> to vector<1x384xf32>
    %14 = vector.broadcast %13 : vector<1x384xf32> to vector<8x384xf32>
    %15 = arith.addf %11, %14 : vector<8x384xf32>
    %16 = vector.extract_strided_slice %15 {offsets = [0, 0], sizes = [8, 128], strides = [1, 1]} : vector<8x384xf32> to vector<8x128xf32>
    %cst_13 = arith.constant 2.500000e-01 : f32
    %17 = vector.broadcast %cst_13 : f32 to vector<8x128xf32>
    %18 = arith.mulf %16, %17 : vector<8x128xf32>
    %19 = vector.shape_cast %18 : vector<8x128xf32> to vector<1x8x128xf32>
    %20 = arith.truncf %19 : vector<1x8x128xf32> to vector<1x8x128xbf16>
    %21 = vector.extract_strided_slice %15 {offsets = [0, 128], sizes = [8, 128], strides = [1, 1]} : vector<8x384xf32> to vector<8x128xf32>
    %22 = vector.shape_cast %21 : vector<8x128xf32> to vector<1x8x128xf32>
    %23 = arith.truncf %22 : vector<1x8x128xf32> to vector<1x8x128xbf16>
    %24 = vector.extract_strided_slice %15 {offsets = [0, 256], sizes = [8, 128], strides = [1, 1]} : vector<8x384xf32> to vector<8x128xf32>
    %25 = vector.shape_cast %24 : vector<8x128xf32> to vector<1x8x128xf32>
    %26 = arith.truncf %25 : vector<1x8x128xf32> to vector<1x8x128xbf16>
    %27 = vector.extract_strided_slice %20 {offsets = [0, 0, 0], sizes = [1, 8, 16], strides = [1, 1, 1]} : vector<1x8x128xbf16> to vector<1x8x16xbf16>
    %28 = vector.extract_strided_slice %23 {offsets = [0, 0, 0], sizes = [1, 8, 16], strides = [1, 1, 1]} : vector<1x8x128xbf16> to vector<1x8x16xbf16>
    "tpu.trace_start"() <{level = 10 : i32, message = "bqd,bkd->bqk"}> : () -> ()
    %cst_14 = arith.constant dense<0.000000e+00> : vector<1x8x8xf32>
    %29 = tpu.matmul %27, %28, %cst_14 {dimension_numbers = #tpu.dot_dimension_numbers<[2], [2], [1], [1], [0, 0, 0, 1, 1, 1], [0], [0]>} : vector<1x8x16xbf16>, vector<1x8x16xbf16>, vector<1x8x8xf32> -> vector<1x8x8xf32>
    "tpu.trace_stop"() : () -> ()
    %cst_15 = arith.constant dense<0xFF800000> : vector<1x8xf32>
    %30 = vector.multi_reduction <maximumf>, %29, %cst_15 [2] : vector<1x8x8xf32> to vector<1x8xf32>
    %31 = vector.shape_cast %30 : vector<1x8xf32> to vector<1x8x1xf32>
    %32 = vector.broadcast %31 : vector<1x8x1xf32> to vector<1x8x8xf32>
    %33 = arith.subf %29, %32 : vector<1x8x8xf32>
    %34 = math.exp %33 : vector<1x8x8xf32>
    %cst_16 = arith.constant dense<0.000000e+00> : vector<1x8xf32>
    %35 = vector.multi_reduction <add>, %34, %cst_16 [2] : vector<1x8x8xf32> to vector<1x8xf32>
    %36 = vector.shape_cast %35 : vector<1x8xf32> to vector<1x8x1xf32>
    %37 = tpu.reciprocal %36 {approx = true} : vector<1x8x1xf32> -> vector<1x8x1xf32>
    %38 = arith.truncf %34 : vector<1x8x8xf32> to vector<1x8x8xbf16>
    %39 = vector.extract_strided_slice %26 {offsets = [0, 0, 0], sizes = [1, 8, 16], strides = [1, 1, 1]} : vector<1x8x128xbf16> to vector<1x8x16xbf16>
    "tpu.trace_start"() <{level = 10 : i32, message = "bqk,bkd->bqd"}> : () -> ()
    %cst_17 = arith.constant dense<0.000000e+00> : vector<1x8x16xf32>
    %40 = tpu.matmul %38, %39, %cst_17 {dimension_numbers = #tpu.dot_dimension_numbers<[2], [1], [1], [2], [0, 0, 0, 1, 1, 2], [0], [0]>} : vector<1x8x8xbf16>, vector<1x8x16xbf16>, vector<1x8x16xf32> -> vector<1x8x16xf32>
    "tpu.trace_stop"() : () -> ()
    %41 = vector.broadcast %37 : vector<1x8x1xf32> to vector<1x8x16xf32>
    %42 = arith.mulf %40, %41 : vector<1x8x16xf32>
    %c0_18 = arith.constant 0 : index
    %c0_19 = arith.constant 0 : index
    %c0_20 = arith.constant 0 : index
    %43 = vector.load %arg19[%c0_18, %c0_19, %c0_20] : memref<1x8x128xf32, #tpu.memory_space<vmem>>, vector<1x8x16xf32>
    tpu.vector_store %arg19[%c0_18, %c0_19, %c0_20], %42 {strides = array<i32>} : memref<1x8x128xf32, #tpu.memory_space<vmem>>, vector<1x8x16xf32>,
    %44 = vector.extract_strided_slice %20 {offsets = [0, 0, 16], sizes = [1, 8, 16], strides = [1, 1, 1]} : vector<1x8x128xbf16> to vector<1x8x16xbf16>
    %45 = vector.extract_strided_slice %23 {offsets = [0, 0, 16], sizes = [1, 8, 16], strides = [1, 1, 1]} : vector<1x8x128xbf16> to vector<1x8x16xbf16>
    "tpu.trace_start"() <{level = 10 : i32, message = "bqd,bkd->bqk"}> : () -> ()
    %cst_21 = arith.constant dense<0.000000e+00> : vector<1x8x8xf32>
    %46 = tpu.matmul %44, %45, %cst_21 {dimension_numbers = #tpu.dot_dimension_numbers<[2], [2], [1], [1], [0, 0, 0, 1, 1, 1], [0], [0]>} : vector<1x8x16xbf16>, vector<1x8x16xbf16>, vector<1x8x8xf32> -> vector<1x8x8xf32>
    "tpu.trace_stop"() : () -> ()
    %cst_22 = arith.constant dense<0xFF800000> : vector<1x8xf32>
    %47 = vector.multi_reduction <maximumf>, %46, %cst_22 [2] : vector<1x8x8xf32> to vector<1x8xf32>
    %48 = vector.shape_cast %47 : vector<1x8xf32> to vector<1x8x1xf32>
    %49 = vector.broadcast %48 : vector<1x8x1xf32> to vector<1x8x8xf32>
    %50 = arith.subf %46, %49 : vector<1x8x8xf32>
    %51 = math.exp %50 : vector<1x8x8xf32>
    %cst_23 = arith.constant dense<0.000000e+00> : vector<1x8xf32>
    %52 = vector.multi_reduction <add>, %51, %cst_23 [2] : vector<1x8x8xf32> to vector<1x8xf32>
    %53 = vector.shape_cast %52 : vector<1x8xf32> to vector<1x8x1xf32>
    %54 = tpu.reciprocal %53 {approx = true} : vector<1x8x1xf32> -> vector<1x8x1xf32>
    %55 = arith.truncf %51 : vector<1x8x8xf32> to vector<1x8x8xbf16>
    %56 = vector.extract_strided_slice %26 {offsets = [0, 0, 16], sizes = [1, 8, 16], strides = [1, 1, 1]} : vector<1x8x128xbf16> to vector<1x8x16xbf16>
    "tpu.trace_start"() <{level = 10 : i32, message = "bqk,bkd->bqd"}> : () -> ()
    %cst_24 = arith.constant dense<0.000000e+00> : vector<1x8x16xf32>
    %57 = tpu.matmul %55, %56, %cst_24 {dimension_numbers = #tpu.dot_dimension_numbers<[2], [1], [1], [2], [0, 0, 0, 1, 1, 2], [0], [0]>} : vector<1x8x8xbf16>, vector<1x8x16xbf16>, vector<1x8x16xf32> -> vector<1x8x16xf32>
    "tpu.trace_stop"() : () -> ()
    %58 = vector.broadcast %54 : vector<1x8x1xf32> to vector<1x8x16xf32>
    %59 = arith.mulf %57, %58 : vector<1x8x16xf32>
    %c0_25 = arith.constant 0 : index
    %c0_26 = arith.constant 0 : index
    %c16 = arith.constant 16 : index
    %60 = vector.load %arg19[%c0_25, %c0_26, %c16] : memref<1x8x128xf32, #tpu.memory_space<vmem>>, vector<1x8x16xf32>
    tpu.vector_store %arg19[%c0_25, %c0_26, %c16], %59 {strides = array<i32>} : memref<1x8x128xf32, #tpu.memory_space<vmem>>, vector<1x8x16xf32>,
    %61 = vector.extract_strided_slice %20 {offsets = [0, 0, 32], sizes = [1, 8, 16], strides = [1, 1, 1]} : vector<1x8x128xbf16> to vector<1x8x16xbf16>
    %62 = vector.extract_strided_slice %23 {offsets = [0, 0, 32], sizes = [1, 8, 16], strides = [1, 1, 1]} : vector<1x8x128xbf16> to vector<1x8x16xbf16>
    "tpu.trace_start"() <{level = 10 : i32, message = "bqd,bkd->bqk"}> : () -> ()
    %cst_27 = arith.constant dense<0.000000e+00> : vector<1x8x8xf32>
    %63 = tpu.matmul %61, %62, %cst_27 {dimension_numbers = #tpu.dot_dimension_numbers<[2], [2], [1], [1], [0, 0, 0, 1, 1, 1], [0], [0]>} : vector<1x8x16xbf16>, vector<1x8x16xbf16>, vector<1x8x8xf32> -> vector<1x8x8xf32>
    "tpu.trace_stop"() : () -> ()
    %cst_28 = arith.constant dense<0xFF800000> : vector<1x8xf32>
    %64 = vector.multi_reduction <maximumf>, %63, %cst_28 [2] : vector<1x8x8xf32> to vector<1x8xf32>
    %65 = vector.shape_cast %64 : vector<1x8xf32> to vector<1x8x1xf32>
    %66 = vector.broadcast %65 : vector<1x8x1xf32> to vector<1x8x8xf32>
    %67 = arith.subf %63, %66 : vector<1x8x8xf32>
    %68 = math.exp %67 : vector<1x8x8xf32>
    %cst_29 = arith.constant dense<0.000000e+00> : vector<1x8xf32>
    %69 = vector.multi_reduction <add>, %68, %cst_29 [2] : vector<1x8x8xf32> to vector<1x8xf32>
    %70 = vector.shape_cast %69 : vector<1x8xf32> to vector<1x8x1xf32>
    %71 = tpu.reciprocal %70 {approx = true} : vector<1x8x1xf32> -> vector<1x8x1xf32>
    %72 = arith.truncf %68 : vector<1x8x8xf32> to vector<1x8x8xbf16>
    %73 = vector.extract_strided_slice %26 {offsets = [0, 0, 32], sizes = [1, 8, 16], strides = [1, 1, 1]} : vector<1x8x128xbf16> to vector<1x8x16xbf16>
    "tpu.trace_start"() <{level = 10 : i32, message = "bqk,bkd->bqd"}> : () -> ()
    %cst_30 = arith.constant dense<0.000000e+00> : vector<1x8x16xf32>
    %74 = tpu.matmul %72, %73, %cst_30 {dimension_numbers = #tpu.dot_dimension_numbers<[2], [1], [1], [2], [0, 0, 0, 1, 1, 2], [0], [0]>} : vector<1x8x8xbf16>, vector<1x8x16xbf16>, vector<1x8x16xf32> -> vector<1x8x16xf32>
    "tpu.trace_stop"() : () -> ()
    %75 = vector.broadcast %71 : vector<1x8x1xf32> to vector<1x8x16xf32>
    %76 = arith.mulf %74, %75 : vector<1x8x16xf32>
    %c0_31 = arith.constant 0 : index
    %c0_32 = arith.constant 0 : index
    %c32 = arith.constant 32 : index
    %77 = vector.load %arg19[%c0_31, %c0_32, %c32] : memref<1x8x128xf32, #tpu.memory_space<vmem>>, vector<1x8x16xf32>
    tpu.vector_store %arg19[%c0_31, %c0_32, %c32], %76 {strides = array<i32>} : memref<1x8x128xf32, #tpu.memory_space<vmem>>, vector<1x8x16xf32>,
    %78 = vector.extract_strided_slice %20 {offsets = [0, 0, 48], sizes = [1, 8, 16], strides = [1, 1, 1]} : vector<1x8x128xbf16> to vector<1x8x16xbf16>
    %79 = vector.extract_strided_slice %23 {offsets = [0, 0, 48], sizes = [1, 8, 16], strides = [1, 1, 1]} : vector<1x8x128xbf16> to vector<1x8x16xbf16>
    "tpu.trace_start"() <{level = 10 : i32, message = "bqd,bkd->bqk"}> : () -> ()
    %cst_33 = arith.constant dense<0.000000e+00> : vector<1x8x8xf32>
    %80 = tpu.matmul %78, %79, %cst_33 {dimension_numbers = #tpu.dot_dimension_numbers<[2], [2], [1], [1], [0, 0, 0, 1, 1, 1], [0], [0]>} : vector<1x8x16xbf16>, vector<1x8x16xbf16>, vector<1x8x8xf32> -> vector<1x8x8xf32>
    "tpu.trace_stop"() : () -> ()
    %cst_34 = arith.constant dense<0xFF800000> : vector<1x8xf32>
    %81 = vector.multi_reduction <maximumf>, %80, %cst_34 [2] : vector<1x8x8xf32> to vector<1x8xf32>
    %82 = vector.shape_cast %81 : vector<1x8xf32> to vector<1x8x1xf32>
    %83 = vector.broadcast %82 : vector<1x8x1xf32> to vector<1x8x8xf32>
    %84 = arith.subf %80, %83 : vector<1x8x8xf32>
    %85 = math.exp %84 : vector<1x8x8xf32>
    %cst_35 = arith.constant dense<0.000000e+00> : vector<1x8xf32>
    %86 = vector.multi_reduction <add>, %85, %cst_35 [2] : vector<1x8x8xf32> to vector<1x8xf32>
    %87 = vector.shape_cast %86 : vector<1x8xf32> to vector<1x8x1xf32>
    %88 = tpu.reciprocal %87 {approx = true} : vector<1x8x1xf32> -> vector<1x8x1xf32>
    %89 = arith.truncf %85 : vector<1x8x8xf32> to vector<1x8x8xbf16>
    %90 = vector.extract_strided_slice %26 {offsets = [0, 0, 48], sizes = [1, 8, 16], strides = [1, 1, 1]} : vector<1x8x128xbf16> to vector<1x8x16xbf16>
    "tpu.trace_start"() <{level = 10 : i32, message = "bqk,bkd->bqd"}> : () -> ()
    %cst_36 = arith.constant dense<0.000000e+00> : vector<1x8x16xf32>
    %91 = tpu.matmul %89, %90, %cst_36 {dimension_numbers = #tpu.dot_dimension_numbers<[2], [1], [1], [2], [0, 0, 0, 1, 1, 2], [0], [0]>} : vector<1x8x8xbf16>, vector<1x8x16xbf16>, vector<1x8x16xf32> -> vector<1x8x16xf32>
    "tpu.trace_stop"() : () -> ()
    %92 = vector.broadcast %88 : vector<1x8x1xf32> to vector<1x8x16xf32>
    %93 = arith.mulf %91, %92 : vector<1x8x16xf32>
    %c0_37 = arith.constant 0 : index
    %c0_38 = arith.constant 0 : index
    %c48 = arith.constant 48 : index
    %94 = vector.load %arg19[%c0_37, %c0_38, %c48] : memref<1x8x128xf32, #tpu.memory_space<vmem>>, vector<1x8x16xf32>
    tpu.vector_store %arg19[%c0_37, %c0_38, %c48], %93 {strides = array<i32>} : memref<1x8x128xf32, #tpu.memory_space<vmem>>, vector<1x8x16xf32>,
    %95 = vector.extract_strided_slice %20 {offsets = [0, 0, 64], sizes = [1, 8, 16], strides = [1, 1, 1]} : vector<1x8x128xbf16> to vector<1x8x16xbf16>
    %96 = vector.extract_strided_slice %23 {offsets = [0, 0, 64], sizes = [1, 8, 16], strides = [1, 1, 1]} : vector<1x8x128xbf16> to vector<1x8x16xbf16>
    "tpu.trace_start"() <{level = 10 : i32, message = "bqd,bkd->bqk"}> : () -> ()
    %cst_39 = arith.constant dense<0.000000e+00> : vector<1x8x8xf32>
    %97 = tpu.matmul %95, %96, %cst_39 {dimension_numbers = #tpu.dot_dimension_numbers<[2], [2], [1], [1], [0, 0, 0, 1, 1, 1], [0], [0]>} : vector<1x8x16xbf16>, vector<1x8x16xbf16>, vector<1x8x8xf32> -> vector<1x8x8xf32>
    "tpu.trace_stop"() : () -> ()
    %cst_40 = arith.constant dense<0xFF800000> : vector<1x8xf32>
    %98 = vector.multi_reduction <maximumf>, %97, %cst_40 [2] : vector<1x8x8xf32> to vector<1x8xf32>
    %99 = vector.shape_cast %98 : vector<1x8xf32> to vector<1x8x1xf32>
    %100 = vector.broadcast %99 : vector<1x8x1xf32> to vector<1x8x8xf32>
    %101 = arith.subf %97, %100 : vector<1x8x8xf32>
    %102 = math.exp %101 : vector<1x8x8xf32>
    %cst_41 = arith.constant dense<0.000000e+00> : vector<1x8xf32>
    %103 = vector.multi_reduction <add>, %102, %cst_41 [2] : vector<1x8x8xf32> to vector<1x8xf32>
    %104 = vector.shape_cast %103 : vector<1x8xf32> to vector<1x8x1xf32>
    %105 = tpu.reciprocal %104 {approx = true} : vector<1x8x1xf32> -> vector<1x8x1xf32>
    %106 = arith.truncf %102 : vector<1x8x8xf32> to vector<1x8x8xbf16>
    %107 = vector.extract_strided_slice %26 {offsets = [0, 0, 64], sizes = [1, 8, 16], strides = [1, 1, 1]} : vector<1x8x128xbf16> to vector<1x8x16xbf16>
    "tpu.trace_start"() <{level = 10 : i32, message = "bqk,bkd->bqd"}> : () -> ()
    %cst_42 = arith.constant dense<0.000000e+00> : vector<1x8x16xf32>
    %108 = tpu.matmul %106, %107, %cst_42 {dimension_numbers = #tpu.dot_dimension_numbers<[2], [1], [1], [2], [0, 0, 0, 1, 1, 2], [0], [0]>} : vector<1x8x8xbf16>, vector<1x8x16xbf16>, vector<1x8x16xf32> -> vector<1x8x16xf32>
    "tpu.trace_stop"() : () -> ()
    %109 = vector.broadcast %105 : vector<1x8x1xf32> to vector<1x8x16xf32>
    %110 = arith.mulf %108, %109 : vector<1x8x16xf32>
    %c0_43 = arith.constant 0 : index
    %c0_44 = arith.constant 0 : index
    %c64 = arith.constant 64 : index
    %111 = vector.load %arg19[%c0_43, %c0_44, %c64] : memref<1x8x128xf32, #tpu.memory_space<vmem>>, vector<1x8x16xf32>
    tpu.vector_store %arg19[%c0_43, %c0_44, %c64], %110 {strides = array<i32>} : memref<1x8x128xf32, #tpu.memory_space<vmem>>, vector<1x8x16xf32>,
    %112 = vector.extract_strided_slice %20 {offsets = [0, 0, 80], sizes = [1, 8, 16], strides = [1, 1, 1]} : vector<1x8x128xbf16> to vector<1x8x16xbf16>
    %113 = vector.extract_strided_slice %23 {offsets = [0, 0, 80], sizes = [1, 8, 16], strides = [1, 1, 1]} : vector<1x8x128xbf16> to vector<1x8x16xbf16>
    "tpu.trace_start"() <{level = 10 : i32, message = "bqd,bkd->bqk"}> : () -> ()
    %cst_45 = arith.constant dense<0.000000e+00> : vector<1x8x8xf32>
    %114 = tpu.matmul %112, %113, %cst_45 {dimension_numbers = #tpu.dot_dimension_numbers<[2], [2], [1], [1], [0, 0, 0, 1, 1, 1], [0], [0]>} : vector<1x8x16xbf16>, vector<1x8x16xbf16>, vector<1x8x8xf32> -> vector<1x8x8xf32>
    "tpu.trace_stop"() : () -> ()
    %cst_46 = arith.constant dense<0xFF800000> : vector<1x8xf32>
    %115 = vector.multi_reduction <maximumf>, %114, %cst_46 [2] : vector<1x8x8xf32> to vector<1x8xf32>
    %116 = vector.shape_cast %115 : vector<1x8xf32> to vector<1x8x1xf32>
    %117 = vector.broadcast %116 : vector<1x8x1xf32> to vector<1x8x8xf32>
    %118 = arith.subf %114, %117 : vector<1x8x8xf32>
    %119 = math.exp %118 : vector<1x8x8xf32>
    %cst_47 = arith.constant dense<0.000000e+00> : vector<1x8xf32>
    %120 = vector.multi_reduction <add>, %119, %cst_47 [2] : vector<1x8x8xf32> to vector<1x8xf32>
    %121 = vector.shape_cast %120 : vector<1x8xf32> to vector<1x8x1xf32>
    %122 = tpu.reciprocal %121 {approx = true} : vector<1x8x1xf32> -> vector<1x8x1xf32>
    %123 = arith.truncf %119 : vector<1x8x8xf32> to vector<1x8x8xbf16>
    %124 = vector.extract_strided_slice %26 {offsets = [0, 0, 80], sizes = [1, 8, 16], strides = [1, 1, 1]} : vector<1x8x128xbf16> to vector<1x8x16xbf16>
    "tpu.trace_start"() <{level = 10 : i32, message = "bqk,bkd->bqd"}> : () -> ()
    %cst_48 = arith.constant dense<0.000000e+00> : vector<1x8x16xf32>
    %125 = tpu.matmul %123, %124, %cst_48 {dimension_numbers = #tpu.dot_dimension_numbers<[2], [1], [1], [2], [0, 0, 0, 1, 1, 2], [0], [0]>} : vector<1x8x8xbf16>, vector<1x8x16xbf16>, vector<1x8x16xf32> -> vector<1x8x16xf32>
    "tpu.trace_stop"() : () -> ()
    %126 = vector.broadcast %122 : vector<1x8x1xf32> to vector<1x8x16xf32>
    %127 = arith.mulf %125, %126 : vector<1x8x16xf32>
    %c0_49 = arith.constant 0 : index
    %c0_50 = arith.constant 0 : index
    %c80 = arith.constant 80 : index
    %128 = vector.load %arg19[%c0_49, %c0_50, %c80] : memref<1x8x128xf32, #tpu.memory_space<vmem>>, vector<1x8x16xf32>
    tpu.vector_store %arg19[%c0_49, %c0_50, %c80], %127 {strides = array<i32>} : memref<1x8x128xf32, #tpu.memory_space<vmem>>, vector<1x8x16xf32>,
    %129 = vector.extract_strided_slice %20 {offsets = [0, 0, 96], sizes = [1, 8, 16], strides = [1, 1, 1]} : vector<1x8x128xbf16> to vector<1x8x16xbf16>
    %130 = vector.extract_strided_slice %23 {offsets = [0, 0, 96], sizes = [1, 8, 16], strides = [1, 1, 1]} : vector<1x8x128xbf16> to vector<1x8x16xbf16>
    "tpu.trace_start"() <{level = 10 : i32, message = "bqd,bkd->bqk"}> : () -> ()
    %cst_51 = arith.constant dense<0.000000e+00> : vector<1x8x8xf32>
    %131 = tpu.matmul %129, %130, %cst_51 {dimension_numbers = #tpu.dot_dimension_numbers<[2], [2], [1], [1], [0, 0, 0, 1, 1, 1], [0], [0]>} : vector<1x8x16xbf16>, vector<1x8x16xbf16>, vector<1x8x8xf32> -> vector<1x8x8xf32>
    "tpu.trace_stop"() : () -> ()
    %cst_52 = arith.constant dense<0xFF800000> : vector<1x8xf32>
    %132 = vector.multi_reduction <maximumf>, %131, %cst_52 [2] : vector<1x8x8xf32> to vector<1x8xf32>
    %133 = vector.shape_cast %132 : vector<1x8xf32> to vector<1x8x1xf32>
    %134 = vector.broadcast %133 : vector<1x8x1xf32> to vector<1x8x8xf32>
    %135 = arith.subf %131, %134 : vector<1x8x8xf32>
    %136 = math.exp %135 : vector<1x8x8xf32>
    %cst_53 = arith.constant dense<0.000000e+00> : vector<1x8xf32>
    %137 = vector.multi_reduction <add>, %136, %cst_53 [2] : vector<1x8x8xf32> to vector<1x8xf32>
    %138 = vector.shape_cast %137 : vector<1x8xf32> to vector<1x8x1xf32>
    %139 = tpu.reciprocal %138 {approx = true} : vector<1x8x1xf32> -> vector<1x8x1xf32>
    %140 = arith.truncf %136 : vector<1x8x8xf32> to vector<1x8x8xbf16>
    %141 = vector.extract_strided_slice %26 {offsets = [0, 0, 96], sizes = [1, 8, 16], strides = [1, 1, 1]} : vector<1x8x128xbf16> to vector<1x8x16xbf16>
    "tpu.trace_start"() <{level = 10 : i32, message = "bqk,bkd->bqd"}> : () -> ()
    %cst_54 = arith.constant dense<0.000000e+00> : vector<1x8x16xf32>
    %142 = tpu.matmul %140, %141, %cst_54 {dimension_numbers = #tpu.dot_dimension_numbers<[2], [1], [1], [2], [0, 0, 0, 1, 1, 2], [0], [0]>} : vector<1x8x8xbf16>, vector<1x8x16xbf16>, vector<1x8x16xf32> -> vector<1x8x16xf32>
    "tpu.trace_stop"() : () -> ()
    %143 = vector.broadcast %139 : vector<1x8x1xf32> to vector<1x8x16xf32>
    %144 = arith.mulf %142, %143 : vector<1x8x16xf32>
    %c0_55 = arith.constant 0 : index
    %c0_56 = arith.constant 0 : index
    %c96 = arith.constant 96 : index
    %145 = vector.load %arg19[%c0_55, %c0_56, %c96] : memref<1x8x128xf32, #tpu.memory_space<vmem>>, vector<1x8x16xf32>
    tpu.vector_store %arg19[%c0_55, %c0_56, %c96], %144 {strides = array<i32>} : memref<1x8x128xf32, #tpu.memory_space<vmem>>, vector<1x8x16xf32>,
    %146 = vector.extract_strided_slice %20 {offsets = [0, 0, 112], sizes = [1, 8, 16], strides = [1, 1, 1]} : vector<1x8x128xbf16> to vector<1x8x16xbf16>
    %147 = vector.extract_strided_slice %23 {offsets = [0, 0, 112], sizes = [1, 8, 16], strides = [1, 1, 1]} : vector<1x8x128xbf16> to vector<1x8x16xbf16>
    "tpu.trace_start"() <{level = 10 : i32, message = "bqd,bkd->bqk"}> : () -> ()
    %cst_57 = arith.constant dense<0.000000e+00> : vector<1x8x8xf32>
    %148 = tpu.matmul %146, %147, %cst_57 {dimension_numbers = #tpu.dot_dimension_numbers<[2], [2], [1], [1], [0, 0, 0, 1, 1, 1], [0], [0]>} : vector<1x8x16xbf16>, vector<1x8x16xbf16>, vector<1x8x8xf32> -> vector<1x8x8xf32>
    "tpu.trace_stop"() : () -> ()
    %cst_58 = arith.constant dense<0xFF800000> : vector<1x8xf32>
    %149 = vector.multi_reduction <maximumf>, %148, %cst_58 [2] : vector<1x8x8xf32> to vector<1x8xf32>
    %150 = vector.shape_cast %149 : vector<1x8xf32> to vector<1x8x1xf32>
    %151 = vector.broadcast %150 : vector<1x8x1xf32> to vector<1x8x8xf32>
    %152 = arith.subf %148, %151 : vector<1x8x8xf32>
    %153 = math.exp %152 : vector<1x8x8xf32>
    %cst_59 = arith.constant dense<0.000000e+00> : vector<1x8xf32>
    %154 = vector.multi_reduction <add>, %153, %cst_59 [2] : vector<1x8x8xf32> to vector<1x8xf32>
    %155 = vector.shape_cast %154 : vector<1x8xf32> to vector<1x8x1xf32>
    %156 = tpu.reciprocal %155 {approx = true} : vector<1x8x1xf32> -> vector<1x8x1xf32>
    %157 = arith.truncf %153 : vector<1x8x8xf32> to vector<1x8x8xbf16>
    %158 = vector.extract_strided_slice %26 {offsets = [0, 0, 112], sizes = [1, 8, 16], strides = [1, 1, 1]} : vector<1x8x128xbf16> to vector<1x8x16xbf16>
    "tpu.trace_start"() <{level = 10 : i32, message = "bqk,bkd->bqd"}> : () -> ()
    %cst_60 = arith.constant dense<0.000000e+00> : vector<1x8x16xf32>
    %159 = tpu.matmul %157, %158, %cst_60 {dimension_numbers = #tpu.dot_dimension_numbers<[2], [1], [1], [2], [0, 0, 0, 1, 1, 2], [0], [0]>} : vector<1x8x8xbf16>, vector<1x8x16xbf16>, vector<1x8x16xf32> -> vector<1x8x16xf32>
    "tpu.trace_stop"() : () -> ()
    %160 = vector.broadcast %156 : vector<1x8x1xf32> to vector<1x8x16xf32>
    %161 = arith.mulf %159, %160 : vector<1x8x16xf32>
    %c0_61 = arith.constant 0 : index
    %c0_62 = arith.constant 0 : index
    %c112 = arith.constant 112 : index
    %162 = vector.load %arg19[%c0_61, %c0_62, %c112] : memref<1x8x128xf32, #tpu.memory_space<vmem>>, vector<1x8x16xf32>
    tpu.vector_store %arg19[%c0_61, %c0_62, %c112], %161 {strides = array<i32>} : memref<1x8x128xf32, #tpu.memory_space<vmem>>, vector<1x8x16xf32>,
    %c0_63 = arith.constant 0 : index
    %c0_64 = arith.constant 0 : index
    %c0_65 = arith.constant 0 : index
    %163 = vector.load %arg19[%c0_63, %c0_64, %c0_65] : memref<1x8x128xf32, #tpu.memory_space<vmem>>, vector<1x8x128xf32>
    %164 = vector.shape_cast %163 : vector<1x8x128xf32> to vector<8x128xf32>
    %165 = arith.truncf %164 : vector<8x128xf32> to vector<8x128xbf16>
    %c0_66 = arith.constant 0 : index
    %c0_67 = arith.constant 0 : index
    %c0_68 = arith.constant 0 : index
    %166 = vector.load %arg6[%c0_66, %c0_67, %c0_68] : memref<3x128x128xbf16, #tpu.memory_space<vmem>>, vector<1x128x128xbf16>
    %167 = vector.shape_cast %166 : vector<1x128x128xbf16> to vector<128x128xbf16>
    %cst_69 = arith.constant dense<0.000000e+00> : vector<8x128xf32>
    %168 = tpu.matmul %165, %167, %cst_69 {dimension_numbers = #tpu.dot_dimension_numbers<[1], [0], [0], [1], [0, 0, 1, 1], [], []>} : vector<8x128xbf16>, vector<128x128xbf16>, vector<8x128xf32> -> vector<8x128xf32>
    %c0_70 = arith.constant 0 : index
    %c0_71 = arith.constant 0 : index
    %c0_72 = arith.constant 0 : index
    %169 = vector.load %arg7[%c0_70, %c0_71, %c0_72] : memref<3x1x128xf32, #tpu.memory_space<vmem>>, vector<1x1x128xf32>
    %170 = vector.shape_cast %169 : vector<1x1x128xf32> to vector<1x128xf32>
    %171 = vector.broadcast %170 : vector<1x128xf32> to vector<8x128xf32>
    %172 = arith.addf %168, %171 : vector<8x128xf32>
    %173 = arith.addf %7, %172 : vector<8x128xf32>
    %c0_73 = arith.constant 0 : index
    %c0_74 = arith.constant 0 : index
    %c0_75 = arith.constant 0 : index
    %174 = vector.load %arg12[%c0_73, %c0_74, %c0_75] : memref<3x1x128xf32, #tpu.memory_space<vmem>>, vector<1x1x128xf32>
    %175 = vector.shape_cast %174 : vector<1x1x128xf32> to vector<1x128xf32>
    %c0_76 = arith.constant 0 : index
    %c0_77 = arith.constant 0 : index
    %c0_78 = arith.constant 0 : index
    %176 = vector.load %arg13[%c0_76, %c0_77, %c0_78] : memref<3x1x128xf32, #tpu.memory_space<vmem>>, vector<1x1x128xf32>
    %177 = vector.shape_cast %176 : vector<1x1x128xf32> to vector<1x128xf32>
    %cst_79 = arith.constant dense<0.000000e+00> : vector<8xf32>
    %178 = vector.multi_reduction <add>, %173, %cst_79 [1] : vector<8x128xf32> to vector<8xf32>
    %179 = vector.shape_cast %178 : vector<8xf32> to vector<8x1xf32>
    %cst_80 = arith.constant 1.280000e+02 : f32
    %180 = vector.broadcast %cst_80 : f32 to vector<8x1xf32>
    %181 = arith.divf %179, %180 : vector<8x1xf32>
    %182 = vector.broadcast %181 : vector<8x1xf32> to vector<8x128xf32>
    %183 = arith.subf %173, %182 : vector<8x128xf32>
    %184 = arith.mulf %183, %183 : vector<8x128xf32>
    %cst_81 = arith.constant dense<0.000000e+00> : vector<8xf32>
    %185 = vector.multi_reduction <add>, %184, %cst_81 [1] : vector<8x128xf32> to vector<8xf32>
    %186 = vector.shape_cast %185 : vector<8xf32> to vector<8x1xf32>
    %cst_82 = arith.constant 1.280000e+02 : f32
    %187 = vector.broadcast %cst_82 : f32 to vector<8x1xf32>
    %188 = arith.divf %186, %187 : vector<8x1xf32>
    %189 = vector.broadcast %181 : vector<8x1xf32> to vector<8x128xf32>
    %190 = arith.subf %173, %189 : vector<8x128xf32>
    %cst_83 = arith.constant 9.99999974E-6 : f32
    %191 = vector.broadcast %cst_83 : f32 to vector<8x1xf32>
    %192 = arith.addf %188, %191 : vector<8x1xf32>
    %193 = math.rsqrt %192 : vector<8x1xf32>
    %194 = vector.broadcast %193 : vector<8x1xf32> to vector<8x128xf32>
    %195 = arith.mulf %190, %194 : vector<8x128xf32>
    %196 = vector.broadcast %175 : vector<1x128xf32> to vector<8x128xf32>
    %197 = arith.mulf %195, %196 : vector<8x128xf32>
    %198 = vector.broadcast %177 : vector<1x128xf32> to vector<8x128xf32>
    %199 = arith.addf %197, %198 : vector<8x128xf32>
    %200 = arith.truncf %199 : vector<8x128xf32> to vector<8x128xbf16>
    %cst_84 = arith.constant 0.000000e+00 : f32
    %201 = vector.broadcast %cst_84 : f32 to vector<8x128xf32>
    %c0_85 = arith.constant 0 : index
    %c0_86 = arith.constant 0 : index
    %c0_87 = arith.constant 0 : index
    %202 = vector.load %arg8[%c0_85, %c0_86, %c0_87] : memref<3x128x2048xbf16, #tpu.memory_space<vmem>>, vector<1x128x1024xbf16>
    %203 = vector.shape_cast %202 : vector<1x128x1024xbf16> to vector<128x1024xbf16>
    %cst_88 = arith.constant dense<0.000000e+00> : vector<8x1024xf32>
    %204 = tpu.matmul %200, %203, %cst_88 {dimension_numbers = #tpu.dot_dimension_numbers<[1], [0], [0], [1], [0, 0, 1, 1], [], []>} : vector<8x128xbf16>, vector<128x1024xbf16>, vector<8x1024xf32> -> vector<8x1024xf32>
    %c0_89 = arith.constant 0 : index
    %c0_90 = arith.constant 0 : index
    %c0_91 = arith.constant 0 : index
    %205 = vector.load %arg9[%c0_89, %c0_90, %c0_91] : memref<3x1x2048xf32, #tpu.memory_space<vmem>>, vector<1x1x1024xf32>
    %206 = vector.shape_cast %205 : vector<1x1x1024xf32> to vector<1x1024xf32>
    %207 = vector.broadcast %206 : vector<1x1024xf32> to vector<8x1024xf32>
    %208 = arith.addf %204, %207 : vector<8x1024xf32>
    %cst_92 = arith.constant 0.000000e+00 : f32
    %209 = vector.broadcast %cst_92 : f32 to vector<8x1024xf32>
    %210 = arith.maximumf %208, %209 : vector<8x1024xf32>
    %211 = arith.truncf %210 : vector<8x1024xf32> to vector<8x1024xbf16>
    %c0_93 = arith.constant 0 : index
    %c0_94 = arith.constant 0 : index
    %c0_95 = arith.constant 0 : index
    %212 = vector.load %arg10[%c0_93, %c0_94, %c0_95] : memref<3x2048x128xbf16, #tpu.memory_space<vmem>>, vector<1x1024x128xbf16>
    %213 = vector.shape_cast %212 : vector<1x1024x128xbf16> to vector<1024x128xbf16>
    %cst_96 = arith.constant dense<0.000000e+00> : vector<8x128xf32>
    %214 = tpu.matmul %211, %213, %cst_96 {dimension_numbers = #tpu.dot_dimension_numbers<[1], [0], [0], [1], [0, 0, 1, 1], [], []>} : vector<8x1024xbf16>, vector<1024x128xbf16>, vector<8x128xf32> -> vector<8x128xf32>
    %215 = arith.addf %201, %214 : vector<8x128xf32>
    %c0_97 = arith.constant 0 : index
    %c0_98 = arith.constant 0 : index
    %c1024 = arith.constant 1024 : index
    %216 = vector.load %arg8[%c0_97, %c0_98, %c1024] : memref<3x128x2048xbf16, #tpu.memory_space<vmem>>, vector<1x128x1024xbf16>
    %217 = vector.shape_cast %216 : vector<1x128x1024xbf16> to vector<128x1024xbf16>
    %cst_99 = arith.constant dense<0.000000e+00> : vector<8x1024xf32>
    %218 = tpu.matmul %200, %217, %cst_99 {dimension_numbers = #tpu.dot_dimension_numbers<[1], [0], [0], [1], [0, 0, 1, 1], [], []>} : vector<8x128xbf16>, vector<128x1024xbf16>, vector<8x1024xf32> -> vector<8x1024xf32>
    %c0_100 = arith.constant 0 : index
    %c0_101 = arith.constant 0 : index
    %c1024_102 = arith.constant 1024 : index
    %219 = vector.load %arg9[%c0_100, %c0_101, %c1024_102] : memref<3x1x2048xf32, #tpu.memory_space<vmem>>, vector<1x1x1024xf32>
    %220 = vector.shape_cast %219 : vector<1x1x1024xf32> to vector<1x1024xf32>
    %221 = vector.broadcast %220 : vector<1x1024xf32> to vector<8x1024xf32>
    %222 = arith.addf %218, %221 : vector<8x1024xf32>
    %cst_103 = arith.constant 0.000000e+00 : f32
    %223 = vector.broadcast %cst_103 : f32 to vector<8x1024xf32>
    %224 = arith.maximumf %222, %223 : vector<8x1024xf32>
    %225 = arith.truncf %224 : vector<8x1024xf32> to vector<8x1024xbf16>
    %c0_104 = arith.constant 0 : index
    %c1024_105 = arith.constant 1024 : index
    %c0_106 = arith.constant 0 : index
    %226 = vector.load %arg10[%c0_104, %c1024_105, %c0_106] : memref<3x2048x128xbf16, #tpu.memory_space<vmem>>, vector<1x1024x128xbf16>
    %227 = vector.shape_cast %226 : vector<1x1024x128xbf16> to vector<1024x128xbf16>
    %cst_107 = arith.constant dense<0.000000e+00> : vector<8x128xf32>
    %228 = tpu.matmul %225, %227, %cst_107 {dimension_numbers = #tpu.dot_dimension_numbers<[1], [0], [0], [1], [0, 0, 1, 1], [], []>} : vector<8x1024xbf16>, vector<1024x128xbf16>, vector<8x128xf32> -> vector<8x128xf32>
    %229 = arith.addf %215, %228 : vector<8x128xf32>
    %c0_108 = arith.constant 0 : index
    %c0_109 = arith.constant 0 : index
    %c0_110 = arith.constant 0 : index
    %230 = vector.load %arg11[%c0_108, %c0_109, %c0_110] : memref<3x1x128xf32, #tpu.memory_space<vmem>>, vector<1x1x128xf32>
    %231 = vector.shape_cast %230 : vector<1x1x128xf32> to vector<1x128xf32>
    %232 = vector.broadcast %231 : vector<1x128xf32> to vector<8x128xf32>
    %233 = arith.addf %229, %232 : vector<8x128xf32>
    %234 = arith.addf %199, %233 : vector<8x128xf32>
    %c0_111 = arith.constant 0 : index
    %c0_112 = arith.constant 0 : index
    %c0_113 = arith.constant 0 : index
    %235 = vector.load %arg14[%c0_111, %c0_112, %c0_113] : memref<3x1x128xf32, #tpu.memory_space<vmem>>, vector<1x1x128xf32>
    %236 = vector.shape_cast %235 : vector<1x1x128xf32> to vector<1x128xf32>
    %c0_114 = arith.constant 0 : index
    %c0_115 = arith.constant 0 : index
    %c0_116 = arith.constant 0 : index
    %237 = vector.load %arg15[%c0_114, %c0_115, %c0_116] : memref<3x1x128xf32, #tpu.memory_space<vmem>>, vector<1x1x128xf32>
    %238 = vector.shape_cast %237 : vector<1x1x128xf32> to vector<1x128xf32>
    %cst_117 = arith.constant dense<0.000000e+00> : vector<8xf32>
    %239 = vector.multi_reduction <add>, %234, %cst_117 [1] : vector<8x128xf32> to vector<8xf32>
    %240 = vector.shape_cast %239 : vector<8xf32> to vector<8x1xf32>
    %cst_118 = arith.constant 1.280000e+02 : f32
    %241 = vector.broadcast %cst_118 : f32 to vector<8x1xf32>
    %242 = arith.divf %240, %241 : vector<8x1xf32>
    %243 = vector.broadcast %242 : vector<8x1xf32> to vector<8x128xf32>
    %244 = arith.subf %234, %243 : vector<8x128xf32>
    %245 = arith.mulf %244, %244 : vector<8x128xf32>
    %cst_119 = arith.constant dense<0.000000e+00> : vector<8xf32>
    %246 = vector.multi_reduction <add>, %245, %cst_119 [1] : vector<8x128xf32> to vector<8xf32>
    %247 = vector.shape_cast %246 : vector<8xf32> to vector<8x1xf32>
    %cst_120 = arith.constant 1.280000e+02 : f32
    %248 = vector.broadcast %cst_120 : f32 to vector<8x1xf32>
    %249 = arith.divf %247, %248 : vector<8x1xf32>
    %250 = vector.broadcast %242 : vector<8x1xf32> to vector<8x128xf32>
    %251 = arith.subf %234, %250 : vector<8x128xf32>
    %cst_121 = arith.constant 9.99999974E-6 : f32
    %252 = vector.broadcast %cst_121 : f32 to vector<8x1xf32>
    %253 = arith.addf %249, %252 : vector<8x1xf32>
    %254 = math.rsqrt %253 : vector<8x1xf32>
    %255 = vector.broadcast %254 : vector<8x1xf32> to vector<8x128xf32>
    %256 = arith.mulf %251, %255 : vector<8x128xf32>
    %257 = vector.broadcast %236 : vector<1x128xf32> to vector<8x128xf32>
    %258 = arith.mulf %256, %257 : vector<8x128xf32>
    %259 = vector.broadcast %238 : vector<1x128xf32> to vector<8x128xf32>
    %260 = arith.addf %258, %259 : vector<8x128xf32>
    %261 = arith.truncf %260 : vector<8x128xf32> to vector<8x128xbf16>
    %c1 = arith.constant 1 : index
    %c0_122 = arith.constant 0 : index
    %c0_123 = arith.constant 0 : index
    %262 = vector.load %arg4[%c1, %c0_122, %c0_123] : memref<3x128x384xbf16, #tpu.memory_space<vmem>>, vector<1x128x384xbf16>
    %263 = vector.shape_cast %262 : vector<1x128x384xbf16> to vector<128x384xbf16>
    %cst_124 = arith.constant dense<0.000000e+00> : vector<8x384xf32>
    %264 = tpu.matmul %261, %263, %cst_124 {dimension_numbers = #tpu.dot_dimension_numbers<[1], [0], [0], [1], [0, 0, 1, 1], [], []>} : vector<8x128xbf16>, vector<128x384xbf16>, vector<8x384xf32> -> vector<8x384xf32>
    %c1_125 = arith.constant 1 : index
    %c0_126 = arith.constant 0 : index
    %c0_127 = arith.constant 0 : index
    %265 = vector.load %arg5[%c1_125, %c0_126, %c0_127] : memref<3x1x384xf32, #tpu.memory_space<vmem>>, vector<1x1x384xf32>
    %266 = vector.shape_cast %265 : vector<1x1x384xf32> to vector<1x384xf32>
    %267 = vector.broadcast %266 : vector<1x384xf32> to vector<8x384xf32>
    %268 = arith.addf %264, %267 : vector<8x384xf32>
    %269 = vector.extract_strided_slice %268 {offsets = [0, 0], sizes = [8, 128], strides = [1, 1]} : vector<8x384xf32> to vector<8x128xf32>
    %cst_128 = arith.constant 2.500000e-01 : f32
    %270 = vector.broadcast %cst_128 : f32 to vector<8x128xf32>
    %271 = arith.mulf %269, %270 : vector<8x128xf32>
    %272 = vector.shape_cast %271 : vector<8x128xf32> to vector<1x8x128xf32>
    %273 = arith.truncf %272 : vector<1x8x128xf32> to vector<1x8x128xbf16>
    %274 = vector.extract_strided_slice %268 {offsets = [0, 128], sizes = [8, 128], strides = [1, 1]} : vector<8x384xf32> to vector<8x128xf32>
    %275 = vector.shape_cast %274 : vector<8x128xf32> to vector<1x8x128xf32>
    %276 = arith.truncf %275 : vector<1x8x128xf32> to vector<1x8x128xbf16>
    %277 = vector.extract_strided_slice %268 {offsets = [0, 256], sizes = [8, 128], strides = [1, 1]} : vector<8x384xf32> to vector<8x128xf32>
    %278 = vector.shape_cast %277 : vector<8x128xf32> to vector<1x8x128xf32>
    %279 = arith.truncf %278 : vector<1x8x128xf32> to vector<1x8x128xbf16>
    %280 = vector.extract_strided_slice %273 {offsets = [0, 0, 0], sizes = [1, 8, 16], strides = [1, 1, 1]} : vector<1x8x128xbf16> to vector<1x8x16xbf16>
    %281 = vector.extract_strided_slice %276 {offsets = [0, 0, 0], sizes = [1, 8, 16], strides = [1, 1, 1]} : vector<1x8x128xbf16> to vector<1x8x16xbf16>
    "tpu.trace_start"() <{level = 10 : i32, message = "bqd,bkd->bqk"}> : () -> ()
    %cst_129 = arith.constant dense<0.000000e+00> : vector<1x8x8xf32>
    %282 = tpu.matmul %280, %281, %cst_129 {dimension_numbers = #tpu.dot_dimension_numbers<[2], [2], [1], [1], [0, 0, 0, 1, 1, 1], [0], [0]>} : vector<1x8x16xbf16>, vector<1x8x16xbf16>, vector<1x8x8xf32> -> vector<1x8x8xf32>
    "tpu.trace_stop"() : () -> ()
    %cst_130 = arith.constant dense<0xFF800000> : vector<1x8xf32>
    %283 = vector.multi_reduction <maximumf>, %282, %cst_130 [2] : vector<1x8x8xf32> to vector<1x8xf32>
    %284 = vector.shape_cast %283 : vector<1x8xf32> to vector<1x8x1xf32>
    %285 = vector.broadcast %284 : vector<1x8x1xf32> to vector<1x8x8xf32>
    %286 = arith.subf %282, %285 : vector<1x8x8xf32>
    %287 = math.exp %286 : vector<1x8x8xf32>
    %cst_131 = arith.constant dense<0.000000e+00> : vector<1x8xf32>
    %288 = vector.multi_reduction <add>, %287, %cst_131 [2] : vector<1x8x8xf32> to vector<1x8xf32>
    %289 = vector.shape_cast %288 : vector<1x8xf32> to vector<1x8x1xf32>
    %290 = tpu.reciprocal %289 {approx = true} : vector<1x8x1xf32> -> vector<1x8x1xf32>
    %291 = arith.truncf %287 : vector<1x8x8xf32> to vector<1x8x8xbf16>
    %292 = vector.extract_strided_slice %279 {offsets = [0, 0, 0], sizes = [1, 8, 16], strides = [1, 1, 1]} : vector<1x8x128xbf16> to vector<1x8x16xbf16>
    "tpu.trace_start"() <{level = 10 : i32, message = "bqk,bkd->bqd"}> : () -> ()
    %cst_132 = arith.constant dense<0.000000e+00> : vector<1x8x16xf32>
    %293 = tpu.matmul %291, %292, %cst_132 {dimension_numbers = #tpu.dot_dimension_numbers<[2], [1], [1], [2], [0, 0, 0, 1, 1, 2], [0], [0]>} : vector<1x8x8xbf16>, vector<1x8x16xbf16>, vector<1x8x16xf32> -> vector<1x8x16xf32>
    "tpu.trace_stop"() : () -> ()
    %294 = vector.broadcast %290 : vector<1x8x1xf32> to vector<1x8x16xf32>
    %295 = arith.mulf %293, %294 : vector<1x8x16xf32>
    %c0_133 = arith.constant 0 : index
    %c0_134 = arith.constant 0 : index
    %c0_135 = arith.constant 0 : index
    %296 = vector.load %arg19[%c0_133, %c0_134, %c0_135] : memref<1x8x128xf32, #tpu.memory_space<vmem>>, vector<1x8x16xf32>
    tpu.vector_store %arg19[%c0_133, %c0_134, %c0_135], %295 {strides = array<i32>} : memref<1x8x128xf32, #tpu.memory_space<vmem>>, vector<1x8x16xf32>,
    %297 = vector.extract_strided_slice %273 {offsets = [0, 0, 16], sizes = [1, 8, 16], strides = [1, 1, 1]} : vector<1x8x128xbf16> to vector<1x8x16xbf16>
    %298 = vector.extract_strided_slice %276 {offsets = [0, 0, 16], sizes = [1, 8, 16], strides = [1, 1, 1]} : vector<1x8x128xbf16> to vector<1x8x16xbf16>
    "tpu.trace_start"() <{level = 10 : i32, message = "bqd,bkd->bqk"}> : () -> ()
    %cst_136 = arith.constant dense<0.000000e+00> : vector<1x8x8xf32>
    %299 = tpu.matmul %297, %298, %cst_136 {dimension_numbers = #tpu.dot_dimension_numbers<[2], [2], [1], [1], [0, 0, 0, 1, 1, 1], [0], [0]>} : vector<1x8x16xbf16>, vector<1x8x16xbf16>, vector<1x8x8xf32> -> vector<1x8x8xf32>
    "tpu.trace_stop"() : () -> ()
    %cst_137 = arith.constant dense<0xFF800000> : vector<1x8xf32>
    %300 = vector.multi_reduction <maximumf>, %299, %cst_137 [2] : vector<1x8x8xf32> to vector<1x8xf32>
    %301 = vector.shape_cast %300 : vector<1x8xf32> to vector<1x8x1xf32>
    %302 = vector.broadcast %301 : vector<1x8x1xf32> to vector<1x8x8xf32>
    %303 = arith.subf %299, %302 : vector<1x8x8xf32>
    %304 = math.exp %303 : vector<1x8x8xf32>
    %cst_138 = arith.constant dense<0.000000e+00> : vector<1x8xf32>
    %305 = vector.multi_reduction <add>, %304, %cst_138 [2] : vector<1x8x8xf32> to vector<1x8xf32>
    %306 = vector.shape_cast %305 : vector<1x8xf32> to vector<1x8x1xf32>
    %307 = tpu.reciprocal %306 {approx = true} : vector<1x8x1xf32> -> vector<1x8x1xf32>
    %308 = arith.truncf %304 : vector<1x8x8xf32> to vector<1x8x8xbf16>
    %309 = vector.extract_strided_slice %279 {offsets = [0, 0, 16], sizes = [1, 8, 16], strides = [1, 1, 1]} : vector<1x8x128xbf16> to vector<1x8x16xbf16>
    "tpu.trace_start"() <{level = 10 : i32, message = "bqk,bkd->bqd"}> : () -> ()
    %cst_139 = arith.constant dense<0.000000e+00> : vector<1x8x16xf32>
    %310 = tpu.matmul %308, %309, %cst_139 {dimension_numbers = #tpu.dot_dimension_numbers<[2], [1], [1], [2], [0, 0, 0, 1, 1, 2], [0], [0]>} : vector<1x8x8xbf16>, vector<1x8x16xbf16>, vector<1x8x16xf32> -> vector<1x8x16xf32>
    "tpu.trace_stop"() : () -> ()
    %311 = vector.broadcast %307 : vector<1x8x1xf32> to vector<1x8x16xf32>
    %312 = arith.mulf %310, %311 : vector<1x8x16xf32>
    %c0_140 = arith.constant 0 : index
    %c0_141 = arith.constant 0 : index
    %c16_142 = arith.constant 16 : index
    %313 = vector.load %arg19[%c0_140, %c0_141, %c16_142] : memref<1x8x128xf32, #tpu.memory_space<vmem>>, vector<1x8x16xf32>
    tpu.vector_store %arg19[%c0_140, %c0_141, %c16_142], %312 {strides = array<i32>} : memref<1x8x128xf32, #tpu.memory_space<vmem>>, vector<1x8x16xf32>,
    %314 = vector.extract_strided_slice %273 {offsets = [0, 0, 32], sizes = [1, 8, 16], strides = [1, 1, 1]} : vector<1x8x128xbf16> to vector<1x8x16xbf16>
    %315 = vector.extract_strided_slice %276 {offsets = [0, 0, 32], sizes = [1, 8, 16], strides = [1, 1, 1]} : vector<1x8x128xbf16> to vector<1x8x16xbf16>
    "tpu.trace_start"() <{level = 10 : i32, message = "bqd,bkd->bqk"}> : () -> ()
    %cst_143 = arith.constant dense<0.000000e+00> : vector<1x8x8xf32>
    %316 = tpu.matmul %314, %315, %cst_143 {dimension_numbers = #tpu.dot_dimension_numbers<[2], [2], [1], [1], [0, 0, 0, 1, 1, 1], [0], [0]>} : vector<1x8x16xbf16>, vector<1x8x16xbf16>, vector<1x8x8xf32> -> vector<1x8x8xf32>
    "tpu.trace_stop"() : () -> ()
    %cst_144 = arith.constant dense<0xFF800000> : vector<1x8xf32>
    %317 = vector.multi_reduction <maximumf>, %316, %cst_144 [2] : vector<1x8x8xf32> to vector<1x8xf32>
    %318 = vector.shape_cast %317 : vector<1x8xf32> to vector<1x8x1xf32>
    %319 = vector.broadcast %318 : vector<1x8x1xf32> to vector<1x8x8xf32>
    %320 = arith.subf %316, %319 : vector<1x8x8xf32>
    %321 = math.exp %320 : vector<1x8x8xf32>
    %cst_145 = arith.constant dense<0.000000e+00> : vector<1x8xf32>
    %322 = vector.multi_reduction <add>, %321, %cst_145 [2] : vector<1x8x8xf32> to vector<1x8xf32>
    %323 = vector.shape_cast %322 : vector<1x8xf32> to vector<1x8x1xf32>
    %324 = tpu.reciprocal %323 {approx = true} : vector<1x8x1xf32> -> vector<1x8x1xf32>
    %325 = arith.truncf %321 : vector<1x8x8xf32> to vector<1x8x8xbf16>
    %326 = vector.extract_strided_slice %279 {offsets = [0, 0, 32], sizes = [1, 8, 16], strides = [1, 1, 1]} : vector<1x8x128xbf16> to vector<1x8x16xbf16>
    "tpu.trace_start"() <{level = 10 : i32, message = "bqk,bkd->bqd"}> : () -> ()
    %cst_146 = arith.constant dense<0.000000e+00> : vector<1x8x16xf32>
    %327 = tpu.matmul %325, %326, %cst_146 {dimension_numbers = #tpu.dot_dimension_numbers<[2], [1], [1], [2], [0, 0, 0, 1, 1, 2], [0], [0]>} : vector<1x8x8xbf16>, vector<1x8x16xbf16>, vector<1x8x16xf32> -> vector<1x8x16xf32>
    "tpu.trace_stop"() : () -> ()
    %328 = vector.broadcast %324 : vector<1x8x1xf32> to vector<1x8x16xf32>
    %329 = arith.mulf %327, %328 : vector<1x8x16xf32>
    %c0_147 = arith.constant 0 : index
    %c0_148 = arith.constant 0 : index
    %c32_149 = arith.constant 32 : index
    %330 = vector.load %arg19[%c0_147, %c0_148, %c32_149] : memref<1x8x128xf32, #tpu.memory_space<vmem>>, vector<1x8x16xf32>
    tpu.vector_store %arg19[%c0_147, %c0_148, %c32_149], %329 {strides = array<i32>} : memref<1x8x128xf32, #tpu.memory_space<vmem>>, vector<1x8x16xf32>,
    %331 = vector.extract_strided_slice %273 {offsets = [0, 0, 48], sizes = [1, 8, 16], strides = [1, 1, 1]} : vector<1x8x128xbf16> to vector<1x8x16xbf16>
    %332 = vector.extract_strided_slice %276 {offsets = [0, 0, 48], sizes = [1, 8, 16], strides = [1, 1, 1]} : vector<1x8x128xbf16> to vector<1x8x16xbf16>
    "tpu.trace_start"() <{level = 10 : i32, message = "bqd,bkd->bqk"}> : () -> ()
    %cst_150 = arith.constant dense<0.000000e+00> : vector<1x8x8xf32>
    %333 = tpu.matmul %331, %332, %cst_150 {dimension_numbers = #tpu.dot_dimension_numbers<[2], [2], [1], [1], [0, 0, 0, 1, 1, 1], [0], [0]>} : vector<1x8x16xbf16>, vector<1x8x16xbf16>, vector<1x8x8xf32> -> vector<1x8x8xf32>
    "tpu.trace_stop"() : () -> ()
    %cst_151 = arith.constant dense<0xFF800000> : vector<1x8xf32>
    %334 = vector.multi_reduction <maximumf>, %333, %cst_151 [2] : vector<1x8x8xf32> to vector<1x8xf32>
    %335 = vector.shape_cast %334 : vector<1x8xf32> to vector<1x8x1xf32>
    %336 = vector.broadcast %335 : vector<1x8x1xf32> to vector<1x8x8xf32>
    %337 = arith.subf %333, %336 : vector<1x8x8xf32>
    %338 = math.exp %337 : vector<1x8x8xf32>
    %cst_152 = arith.constant dense<0.000000e+00> : vector<1x8xf32>
    %339 = vector.multi_reduction <add>, %338, %cst_152 [2] : vector<1x8x8xf32> to vector<1x8xf32>
    %340 = vector.shape_cast %339 : vector<1x8xf32> to vector<1x8x1xf32>
    %341 = tpu.reciprocal %340 {approx = true} : vector<1x8x1xf32> -> vector<1x8x1xf32>
    %342 = arith.truncf %338 : vector<1x8x8xf32> to vector<1x8x8xbf16>
    %343 = vector.extract_strided_slice %279 {offsets = [0, 0, 48], sizes = [1, 8, 16], strides = [1, 1, 1]} : vector<1x8x128xbf16> to vector<1x8x16xbf16>
    "tpu.trace_start"() <{level = 10 : i32, message = "bqk,bkd->bqd"}> : () -> ()
    %cst_153 = arith.constant dense<0.000000e+00> : vector<1x8x16xf32>
    %344 = tpu.matmul %342, %343, %cst_153 {dimension_numbers = #tpu.dot_dimension_numbers<[2], [1], [1], [2], [0, 0, 0, 1, 1, 2], [0], [0]>} : vector<1x8x8xbf16>, vector<1x8x16xbf16>, vector<1x8x16xf32> -> vector<1x8x16xf32>
    "tpu.trace_stop"() : () -> ()
    %345 = vector.broadcast %341 : vector<1x8x1xf32> to vector<1x8x16xf32>
    %346 = arith.mulf %344, %345 : vector<1x8x16xf32>
    %c0_154 = arith.constant 0 : index
    %c0_155 = arith.constant 0 : index
    %c48_156 = arith.constant 48 : index
    %347 = vector.load %arg19[%c0_154, %c0_155, %c48_156] : memref<1x8x128xf32, #tpu.memory_space<vmem>>, vector<1x8x16xf32>
    tpu.vector_store %arg19[%c0_154, %c0_155, %c48_156], %346 {strides = array<i32>} : memref<1x8x128xf32, #tpu.memory_space<vmem>>, vector<1x8x16xf32>,
    %348 = vector.extract_strided_slice %273 {offsets = [0, 0, 64], sizes = [1, 8, 16], strides = [1, 1, 1]} : vector<1x8x128xbf16> to vector<1x8x16xbf16>
    %349 = vector.extract_strided_slice %276 {offsets = [0, 0, 64], sizes = [1, 8, 16], strides = [1, 1, 1]} : vector<1x8x128xbf16> to vector<1x8x16xbf16>
    "tpu.trace_start"() <{level = 10 : i32, message = "bqd,bkd->bqk"}> : () -> ()
    %cst_157 = arith.constant dense<0.000000e+00> : vector<1x8x8xf32>
    %350 = tpu.matmul %348, %349, %cst_157 {dimension_numbers = #tpu.dot_dimension_numbers<[2], [2], [1], [1], [0, 0, 0, 1, 1, 1], [0], [0]>} : vector<1x8x16xbf16>, vector<1x8x16xbf16>, vector<1x8x8xf32> -> vector<1x8x8xf32>
    "tpu.trace_stop"() : () -> ()
    %cst_158 = arith.constant dense<0xFF800000> : vector<1x8xf32>
    %351 = vector.multi_reduction <maximumf>, %350, %cst_158 [2] : vector<1x8x8xf32> to vector<1x8xf32>
    %352 = vector.shape_cast %351 : vector<1x8xf32> to vector<1x8x1xf32>
    %353 = vector.broadcast %352 : vector<1x8x1xf32> to vector<1x8x8xf32>
    %354 = arith.subf %350, %353 : vector<1x8x8xf32>
    %355 = math.exp %354 : vector<1x8x8xf32>
    %cst_159 = arith.constant dense<0.000000e+00> : vector<1x8xf32>
    %356 = vector.multi_reduction <add>, %355, %cst_159 [2] : vector<1x8x8xf32> to vector<1x8xf32>
    %357 = vector.shape_cast %356 : vector<1x8xf32> to vector<1x8x1xf32>
    %358 = tpu.reciprocal %357 {approx = true} : vector<1x8x1xf32> -> vector<1x8x1xf32>
    %359 = arith.truncf %355 : vector<1x8x8xf32> to vector<1x8x8xbf16>
    %360 = vector.extract_strided_slice %279 {offsets = [0, 0, 64], sizes = [1, 8, 16], strides = [1, 1, 1]} : vector<1x8x128xbf16> to vector<1x8x16xbf16>
    "tpu.trace_start"() <{level = 10 : i32, message = "bqk,bkd->bqd"}> : () -> ()
    %cst_160 = arith.constant dense<0.000000e+00> : vector<1x8x16xf32>
    %361 = tpu.matmul %359, %360, %cst_160 {dimension_numbers = #tpu.dot_dimension_numbers<[2], [1], [1], [2], [0, 0, 0, 1, 1, 2], [0], [0]>} : vector<1x8x8xbf16>, vector<1x8x16xbf16>, vector<1x8x16xf32> -> vector<1x8x16xf32>
    "tpu.trace_stop"() : () -> ()
    %362 = vector.broadcast %358 : vector<1x8x1xf32> to vector<1x8x16xf32>
    %363 = arith.mulf %361, %362 : vector<1x8x16xf32>
    %c0_161 = arith.constant 0 : index
    %c0_162 = arith.constant 0 : index
    %c64_163 = arith.constant 64 : index
    %364 = vector.load %arg19[%c0_161, %c0_162, %c64_163] : memref<1x8x128xf32, #tpu.memory_space<vmem>>, vector<1x8x16xf32>
    tpu.vector_store %arg19[%c0_161, %c0_162, %c64_163], %363 {strides = array<i32>} : memref<1x8x128xf32, #tpu.memory_space<vmem>>, vector<1x8x16xf32>,
    %365 = vector.extract_strided_slice %273 {offsets = [0, 0, 80], sizes = [1, 8, 16], strides = [1, 1, 1]} : vector<1x8x128xbf16> to vector<1x8x16xbf16>
    %366 = vector.extract_strided_slice %276 {offsets = [0, 0, 80], sizes = [1, 8, 16], strides = [1, 1, 1]} : vector<1x8x128xbf16> to vector<1x8x16xbf16>
    "tpu.trace_start"() <{level = 10 : i32, message = "bqd,bkd->bqk"}> : () -> ()
    %cst_164 = arith.constant dense<0.000000e+00> : vector<1x8x8xf32>
    %367 = tpu.matmul %365, %366, %cst_164 {dimension_numbers = #tpu.dot_dimension_numbers<[2], [2], [1], [1], [0, 0, 0, 1, 1, 1], [0], [0]>} : vector<1x8x16xbf16>, vector<1x8x16xbf16>, vector<1x8x8xf32> -> vector<1x8x8xf32>
    "tpu.trace_stop"() : () -> ()
    %cst_165 = arith.constant dense<0xFF800000> : vector<1x8xf32>
    %368 = vector.multi_reduction <maximumf>, %367, %cst_165 [2] : vector<1x8x8xf32> to vector<1x8xf32>
    %369 = vector.shape_cast %368 : vector<1x8xf32> to vector<1x8x1xf32>
    %370 = vector.broadcast %369 : vector<1x8x1xf32> to vector<1x8x8xf32>
    %371 = arith.subf %367, %370 : vector<1x8x8xf32>
    %372 = math.exp %371 : vector<1x8x8xf32>
    %cst_166 = arith.constant dense<0.000000e+00> : vector<1x8xf32>
    %373 = vector.multi_reduction <add>, %372, %cst_166 [2] : vector<1x8x8xf32> to vector<1x8xf32>
    %374 = vector.shape_cast %373 : vector<1x8xf32> to vector<1x8x1xf32>
    %375 = tpu.reciprocal %374 {approx = true} : vector<1x8x1xf32> -> vector<1x8x1xf32>
    %376 = arith.truncf %372 : vector<1x8x8xf32> to vector<1x8x8xbf16>
    %377 = vector.extract_strided_slice %279 {offsets = [0, 0, 80], sizes = [1, 8, 16], strides = [1, 1, 1]} : vector<1x8x128xbf16> to vector<1x8x16xbf16>
    "tpu.trace_start"() <{level = 10 : i32, message = "bqk,bkd->bqd"}> : () -> ()
    %cst_167 = arith.constant dense<0.000000e+00> : vector<1x8x16xf32>
    %378 = tpu.matmul %376, %377, %cst_167 {dimension_numbers = #tpu.dot_dimension_numbers<[2], [1], [1], [2], [0, 0, 0, 1, 1, 2], [0], [0]>} : vector<1x8x8xbf16>, vector<1x8x16xbf16>, vector<1x8x16xf32> -> vector<1x8x16xf32>
    "tpu.trace_stop"() : () -> ()
    %379 = vector.broadcast %375 : vector<1x8x1xf32> to vector<1x8x16xf32>
    %380 = arith.mulf %378, %379 : vector<1x8x16xf32>
    %c0_168 = arith.constant 0 : index
    %c0_169 = arith.constant 0 : index
    %c80_170 = arith.constant 80 : index
    %381 = vector.load %arg19[%c0_168, %c0_169, %c80_170] : memref<1x8x128xf32, #tpu.memory_space<vmem>>, vector<1x8x16xf32>
    tpu.vector_store %arg19[%c0_168, %c0_169, %c80_170], %380 {strides = array<i32>} : memref<1x8x128xf32, #tpu.memory_space<vmem>>, vector<1x8x16xf32>,
    %382 = vector.extract_strided_slice %273 {offsets = [0, 0, 96], sizes = [1, 8, 16], strides = [1, 1, 1]} : vector<1x8x128xbf16> to vector<1x8x16xbf16>
    %383 = vector.extract_strided_slice %276 {offsets = [0, 0, 96], sizes = [1, 8, 16], strides = [1, 1, 1]} : vector<1x8x128xbf16> to vector<1x8x16xbf16>
    "tpu.trace_start"() <{level = 10 : i32, message = "bqd,bkd->bqk"}> : () -> ()
    %cst_171 = arith.constant dense<0.000000e+00> : vector<1x8x8xf32>
    %384 = tpu.matmul %382, %383, %cst_171 {dimension_numbers = #tpu.dot_dimension_numbers<[2], [2], [1], [1], [0, 0, 0, 1, 1, 1], [0], [0]>} : vector<1x8x16xbf16>, vector<1x8x16xbf16>, vector<1x8x8xf32> -> vector<1x8x8xf32>
    "tpu.trace_stop"() : () -> ()
    %cst_172 = arith.constant dense<0xFF800000> : vector<1x8xf32>
    %385 = vector.multi_reduction <maximumf>, %384, %cst_172 [2] : vector<1x8x8xf32> to vector<1x8xf32>
    %386 = vector.shape_cast %385 : vector<1x8xf32> to vector<1x8x1xf32>
    %387 = vector.broadcast %386 : vector<1x8x1xf32> to vector<1x8x8xf32>
    %388 = arith.subf %384, %387 : vector<1x8x8xf32>
    %389 = math.exp %388 : vector<1x8x8xf32>
    %cst_173 = arith.constant dense<0.000000e+00> : vector<1x8xf32>
    %390 = vector.multi_reduction <add>, %389, %cst_173 [2] : vector<1x8x8xf32> to vector<1x8xf32>
    %391 = vector.shape_cast %390 : vector<1x8xf32> to vector<1x8x1xf32>
    %392 = tpu.reciprocal %391 {approx = true} : vector<1x8x1xf32> -> vector<1x8x1xf32>
    %393 = arith.truncf %389 : vector<1x8x8xf32> to vector<1x8x8xbf16>
    %394 = vector.extract_strided_slice %279 {offsets = [0, 0, 96], sizes = [1, 8, 16], strides = [1, 1, 1]} : vector<1x8x128xbf16> to vector<1x8x16xbf16>
    "tpu.trace_start"() <{level = 10 : i32, message = "bqk,bkd->bqd"}> : () -> ()
    %cst_174 = arith.constant dense<0.000000e+00> : vector<1x8x16xf32>
    %395 = tpu.matmul %393, %394, %cst_174 {dimension_numbers = #tpu.dot_dimension_numbers<[2], [1], [1], [2], [0, 0, 0, 1, 1, 2], [0], [0]>} : vector<1x8x8xbf16>, vector<1x8x16xbf16>, vector<1x8x16xf32> -> vector<1x8x16xf32>
    "tpu.trace_stop"() : () -> ()
    %396 = vector.broadcast %392 : vector<1x8x1xf32> to vector<1x8x16xf32>
    %397 = arith.mulf %395, %396 : vector<1x8x16xf32>
    %c0_175 = arith.constant 0 : index
    %c0_176 = arith.constant 0 : index
    %c96_177 = arith.constant 96 : index
    %398 = vector.load %arg19[%c0_175, %c0_176, %c96_177] : memref<1x8x128xf32, #tpu.memory_space<vmem>>, vector<1x8x16xf32>
    tpu.vector_store %arg19[%c0_175, %c0_176, %c96_177], %397 {strides = array<i32>} : memref<1x8x128xf32, #tpu.memory_space<vmem>>, vector<1x8x16xf32>,
    %399 = vector.extract_strided_slice %273 {offsets = [0, 0, 112], sizes = [1, 8, 16], strides = [1, 1, 1]} : vector<1x8x128xbf16> to vector<1x8x16xbf16>
    %400 = vector.extract_strided_slice %276 {offsets = [0, 0, 112], sizes = [1, 8, 16], strides = [1, 1, 1]} : vector<1x8x128xbf16> to vector<1x8x16xbf16>
    "tpu.trace_start"() <{level = 10 : i32, message = "bqd,bkd->bqk"}> : () -> ()
    %cst_178 = arith.constant dense<0.000000e+00> : vector<1x8x8xf32>
    %401 = tpu.matmul %399, %400, %cst_178 {dimension_numbers = #tpu.dot_dimension_numbers<[2], [2], [1], [1], [0, 0, 0, 1, 1, 1], [0], [0]>} : vector<1x8x16xbf16>, vector<1x8x16xbf16>, vector<1x8x8xf32> -> vector<1x8x8xf32>
    "tpu.trace_stop"() : () -> ()
    %cst_179 = arith.constant dense<0xFF800000> : vector<1x8xf32>
    %402 = vector.multi_reduction <maximumf>, %401, %cst_179 [2] : vector<1x8x8xf32> to vector<1x8xf32>
    %403 = vector.shape_cast %402 : vector<1x8xf32> to vector<1x8x1xf32>
    %404 = vector.broadcast %403 : vector<1x8x1xf32> to vector<1x8x8xf32>
    %405 = arith.subf %401, %404 : vector<1x8x8xf32>
    %406 = math.exp %405 : vector<1x8x8xf32>
    %cst_180 = arith.constant dense<0.000000e+00> : vector<1x8xf32>
    %407 = vector.multi_reduction <add>, %406, %cst_180 [2] : vector<1x8x8xf32> to vector<1x8xf32>
    %408 = vector.shape_cast %407 : vector<1x8xf32> to vector<1x8x1xf32>
    %409 = tpu.reciprocal %408 {approx = true} : vector<1x8x1xf32> -> vector<1x8x1xf32>
    %410 = arith.truncf %406 : vector<1x8x8xf32> to vector<1x8x8xbf16>
    %411 = vector.extract_strided_slice %279 {offsets = [0, 0, 112], sizes = [1, 8, 16], strides = [1, 1, 1]} : vector<1x8x128xbf16> to vector<1x8x16xbf16>
    "tpu.trace_start"() <{level = 10 : i32, message = "bqk,bkd->bqd"}> : () -> ()
    %cst_181 = arith.constant dense<0.000000e+00> : vector<1x8x16xf32>
    %412 = tpu.matmul %410, %411, %cst_181 {dimension_numbers = #tpu.dot_dimension_numbers<[2], [1], [1], [2], [0, 0, 0, 1, 1, 2], [0], [0]>} : vector<1x8x8xbf16>, vector<1x8x16xbf16>, vector<1x8x16xf32> -> vector<1x8x16xf32>
    "tpu.trace_stop"() : () -> ()
    %413 = vector.broadcast %409 : vector<1x8x1xf32> to vector<1x8x16xf32>
    %414 = arith.mulf %412, %413 : vector<1x8x16xf32>
    %c0_182 = arith.constant 0 : index
    %c0_183 = arith.constant 0 : index
    %c112_184 = arith.constant 112 : index
    %415 = vector.load %arg19[%c0_182, %c0_183, %c112_184] : memref<1x8x128xf32, #tpu.memory_space<vmem>>, vector<1x8x16xf32>
    tpu.vector_store %arg19[%c0_182, %c0_183, %c112_184], %414 {strides = array<i32>} : memref<1x8x128xf32, #tpu.memory_space<vmem>>, vector<1x8x16xf32>,
    %c0_185 = arith.constant 0 : index
    %c0_186 = arith.constant 0 : index
    %c0_187 = arith.constant 0 : index
    %416 = vector.load %arg19[%c0_185, %c0_186, %c0_187] : memref<1x8x128xf32, #tpu.memory_space<vmem>>, vector<1x8x128xf32>
    %417 = vector.shape_cast %416 : vector<1x8x128xf32> to vector<8x128xf32>
    %418 = arith.truncf %417 : vector<8x128xf32> to vector<8x128xbf16>
    %c1_188 = arith.constant 1 : index
    %c0_189 = arith.constant 0 : index
    %c0_190 = arith.constant 0 : index
    %419 = vector.load %arg6[%c1_188, %c0_189, %c0_190] : memref<3x128x128xbf16, #tpu.memory_space<vmem>>, vector<1x128x128xbf16>
    %420 = vector.shape_cast %419 : vector<1x128x128xbf16> to vector<128x128xbf16>
    %cst_191 = arith.constant dense<0.000000e+00> : vector<8x128xf32>
    %421 = tpu.matmul %418, %420, %cst_191 {dimension_numbers = #tpu.dot_dimension_numbers<[1], [0], [0], [1], [0, 0, 1, 1], [], []>} : vector<8x128xbf16>, vector<128x128xbf16>, vector<8x128xf32> -> vector<8x128xf32>
    %c1_192 = arith.constant 1 : index
    %c0_193 = arith.constant 0 : index
    %c0_194 = arith.constant 0 : index
    %422 = vector.load %arg7[%c1_192, %c0_193, %c0_194] : memref<3x1x128xf32, #tpu.memory_space<vmem>>, vector<1x1x128xf32>
    %423 = vector.shape_cast %422 : vector<1x1x128xf32> to vector<1x128xf32>
    %424 = vector.broadcast %423 : vector<1x128xf32> to vector<8x128xf32>
    %425 = arith.addf %421, %424 : vector<8x128xf32>
    %426 = arith.addf %260, %425 : vector<8x128xf32>
    %c1_195 = arith.constant 1 : index
    %c0_196 = arith.constant 0 : index
    %c0_197 = arith.constant 0 : index
    %427 = vector.load %arg12[%c1_195, %c0_196, %c0_197] : memref<3x1x128xf32, #tpu.memory_space<vmem>>, vector<1x1x128xf32>
    %428 = vector.shape_cast %427 : vector<1x1x128xf32> to vector<1x128xf32>
    %c1_198 = arith.constant 1 : index
    %c0_199 = arith.constant 0 : index
    %c0_200 = arith.constant 0 : index
    %429 = vector.load %arg13[%c1_198, %c0_199, %c0_200] : memref<3x1x128xf32, #tpu.memory_space<vmem>>, vector<1x1x128xf32>
    %430 = vector.shape_cast %429 : vector<1x1x128xf32> to vector<1x128xf32>
    %cst_201 = arith.constant dense<0.000000e+00> : vector<8xf32>
    %431 = vector.multi_reduction <add>, %426, %cst_201 [1] : vector<8x128xf32> to vector<8xf32>
    %432 = vector.shape_cast %431 : vector<8xf32> to vector<8x1xf32>
    %cst_202 = arith.constant 1.280000e+02 : f32
    %433 = vector.broadcast %cst_202 : f32 to vector<8x1xf32>
    %434 = arith.divf %432, %433 : vector<8x1xf32>
    %435 = vector.broadcast %434 : vector<8x1xf32> to vector<8x128xf32>
    %436 = arith.subf %426, %435 : vector<8x128xf32>
    %437 = arith.mulf %436, %436 : vector<8x128xf32>
    %cst_203 = arith.constant dense<0.000000e+00> : vector<8xf32>
    %438 = vector.multi_reduction <add>, %437, %cst_203 [1] : vector<8x128xf32> to vector<8xf32>
    %439 = vector.shape_cast %438 : vector<8xf32> to vector<8x1xf32>
    %cst_204 = arith.constant 1.280000e+02 : f32
    %440 = vector.broadcast %cst_204 : f32 to vector<8x1xf32>
    %441 = arith.divf %439, %440 : vector<8x1xf32>
    %442 = vector.broadcast %434 : vector<8x1xf32> to vector<8x128xf32>
    %443 = arith.subf %426, %442 : vector<8x128xf32>
    %cst_205 = arith.constant 9.99999974E-6 : f32
    %444 = vector.broadcast %cst_205 : f32 to vector<8x1xf32>
    %445 = arith.addf %441, %444 : vector<8x1xf32>
    %446 = math.rsqrt %445 : vector<8x1xf32>
    %447 = vector.broadcast %446 : vector<8x1xf32> to vector<8x128xf32>
    %448 = arith.mulf %443, %447 : vector<8x128xf32>
    %449 = vector.broadcast %428 : vector<1x128xf32> to vector<8x128xf32>
    %450 = arith.mulf %448, %449 : vector<8x128xf32>
    %451 = vector.broadcast %430 : vector<1x128xf32> to vector<8x128xf32>
    %452 = arith.addf %450, %451 : vector<8x128xf32>
    %453 = arith.truncf %452 : vector<8x128xf32> to vector<8x128xbf16>
    %cst_206 = arith.constant 0.000000e+00 : f32
    %454 = vector.broadcast %cst_206 : f32 to vector<8x128xf32>
    %c1_207 = arith.constant 1 : index
    %c0_208 = arith.constant 0 : index
    %c0_209 = arith.constant 0 : index
    %455 = vector.load %arg8[%c1_207, %c0_208, %c0_209] : memref<3x128x2048xbf16, #tpu.memory_space<vmem>>, vector<1x128x1024xbf16>
    %456 = vector.shape_cast %455 : vector<1x128x1024xbf16> to vector<128x1024xbf16>
    %cst_210 = arith.constant dense<0.000000e+00> : vector<8x1024xf32>
    %457 = tpu.matmul %453, %456, %cst_210 {dimension_numbers = #tpu.dot_dimension_numbers<[1], [0], [0], [1], [0, 0, 1, 1], [], []>} : vector<8x128xbf16>, vector<128x1024xbf16>, vector<8x1024xf32> -> vector<8x1024xf32>
    %c1_211 = arith.constant 1 : index
    %c0_212 = arith.constant 0 : index
    %c0_213 = arith.constant 0 : index
    %458 = vector.load %arg9[%c1_211, %c0_212, %c0_213] : memref<3x1x2048xf32, #tpu.memory_space<vmem>>, vector<1x1x1024xf32>
    %459 = vector.shape_cast %458 : vector<1x1x1024xf32> to vector<1x1024xf32>
    %460 = vector.broadcast %459 : vector<1x1024xf32> to vector<8x1024xf32>
    %461 = arith.addf %457, %460 : vector<8x1024xf32>
    %cst_214 = arith.constant 0.000000e+00 : f32
    %462 = vector.broadcast %cst_214 : f32 to vector<8x1024xf32>
    %463 = arith.maximumf %461, %462 : vector<8x1024xf32>
    %464 = arith.truncf %463 : vector<8x1024xf32> to vector<8x1024xbf16>
    %c1_215 = arith.constant 1 : index
    %c0_216 = arith.constant 0 : index
    %c0_217 = arith.constant 0 : index
    %465 = vector.load %arg10[%c1_215, %c0_216, %c0_217] : memref<3x2048x128xbf16, #tpu.memory_space<vmem>>, vector<1x1024x128xbf16>
    %466 = vector.shape_cast %465 : vector<1x1024x128xbf16> to vector<1024x128xbf16>
    %cst_218 = arith.constant dense<0.000000e+00> : vector<8x128xf32>
    %467 = tpu.matmul %464, %466, %cst_218 {dimension_numbers = #tpu.dot_dimension_numbers<[1], [0], [0], [1], [0, 0, 1, 1], [], []>} : vector<8x1024xbf16>, vector<1024x128xbf16>, vector<8x128xf32> -> vector<8x128xf32>
    %468 = arith.addf %454, %467 : vector<8x128xf32>
    %c1_219 = arith.constant 1 : index
    %c0_220 = arith.constant 0 : index
    %c1024_221 = arith.constant 1024 : index
    %469 = vector.load %arg8[%c1_219, %c0_220, %c1024_221] : memref<3x128x2048xbf16, #tpu.memory_space<vmem>>, vector<1x128x1024xbf16>
    %470 = vector.shape_cast %469 : vector<1x128x1024xbf16> to vector<128x1024xbf16>
    %cst_222 = arith.constant dense<0.000000e+00> : vector<8x1024xf32>
    %471 = tpu.matmul %453, %470, %cst_222 {dimension_numbers = #tpu.dot_dimension_numbers<[1], [0], [0], [1], [0, 0, 1, 1], [], []>} : vector<8x128xbf16>, vector<128x1024xbf16>, vector<8x1024xf32> -> vector<8x1024xf32>
    %c1_223 = arith.constant 1 : index
    %c0_224 = arith.constant 0 : index
    %c1024_225 = arith.constant 1024 : index
    %472 = vector.load %arg9[%c1_223, %c0_224, %c1024_225] : memref<3x1x2048xf32, #tpu.memory_space<vmem>>, vector<1x1x1024xf32>
    %473 = vector.shape_cast %472 : vector<1x1x1024xf32> to vector<1x1024xf32>
    %474 = vector.broadcast %473 : vector<1x1024xf32> to vector<8x1024xf32>
    %475 = arith.addf %471, %474 : vector<8x1024xf32>
    %cst_226 = arith.constant 0.000000e+00 : f32
    %476 = vector.broadcast %cst_226 : f32 to vector<8x1024xf32>
    %477 = arith.maximumf %475, %476 : vector<8x1024xf32>
    %478 = arith.truncf %477 : vector<8x1024xf32> to vector<8x1024xbf16>
    %c1_227 = arith.constant 1 : index
    %c1024_228 = arith.constant 1024 : index
    %c0_229 = arith.constant 0 : index
    %479 = vector.load %arg10[%c1_227, %c1024_228, %c0_229] : memref<3x2048x128xbf16, #tpu.memory_space<vmem>>, vector<1x1024x128xbf16>
    %480 = vector.shape_cast %479 : vector<1x1024x128xbf16> to vector<1024x128xbf16>
    %cst_230 = arith.constant dense<0.000000e+00> : vector<8x128xf32>
    %481 = tpu.matmul %478, %480, %cst_230 {dimension_numbers = #tpu.dot_dimension_numbers<[1], [0], [0], [1], [0, 0, 1, 1], [], []>} : vector<8x1024xbf16>, vector<1024x128xbf16>, vector<8x128xf32> -> vector<8x128xf32>
    %482 = arith.addf %468, %481 : vector<8x128xf32>
    %c1_231 = arith.constant 1 : index
    %c0_232 = arith.constant 0 : index
    %c0_233 = arith.constant 0 : index
    %483 = vector.load %arg11[%c1_231, %c0_232, %c0_233] : memref<3x1x128xf32, #tpu.memory_space<vmem>>, vector<1x1x128xf32>
    %484 = vector.shape_cast %483 : vector<1x1x128xf32> to vector<1x128xf32>
    %485 = vector.broadcast %484 : vector<1x128xf32> to vector<8x128xf32>
    %486 = arith.addf %482, %485 : vector<8x128xf32>
    %487 = arith.addf %452, %486 : vector<8x128xf32>
    %c1_234 = arith.constant 1 : index
    %c0_235 = arith.constant 0 : index
    %c0_236 = arith.constant 0 : index
    %488 = vector.load %arg14[%c1_234, %c0_235, %c0_236] : memref<3x1x128xf32, #tpu.memory_space<vmem>>, vector<1x1x128xf32>
    %489 = vector.shape_cast %488 : vector<1x1x128xf32> to vector<1x128xf32>
    %c1_237 = arith.constant 1 : index
    %c0_238 = arith.constant 0 : index
    %c0_239 = arith.constant 0 : index
    %490 = vector.load %arg15[%c1_237, %c0_238, %c0_239] : memref<3x1x128xf32, #tpu.memory_space<vmem>>, vector<1x1x128xf32>
    %491 = vector.shape_cast %490 : vector<1x1x128xf32> to vector<1x128xf32>
    %cst_240 = arith.constant dense<0.000000e+00> : vector<8xf32>
    %492 = vector.multi_reduction <add>, %487, %cst_240 [1] : vector<8x128xf32> to vector<8xf32>
    %493 = vector.shape_cast %492 : vector<8xf32> to vector<8x1xf32>
    %cst_241 = arith.constant 1.280000e+02 : f32
    %494 = vector.broadcast %cst_241 : f32 to vector<8x1xf32>
    %495 = arith.divf %493, %494 : vector<8x1xf32>
    %496 = vector.broadcast %495 : vector<8x1xf32> to vector<8x128xf32>
    %497 = arith.subf %487, %496 : vector<8x128xf32>
    %498 = arith.mulf %497, %497 : vector<8x128xf32>
    %cst_242 = arith.constant dense<0.000000e+00> : vector<8xf32>
    %499 = vector.multi_reduction <add>, %498, %cst_242 [1] : vector<8x128xf32> to vector<8xf32>
    %500 = vector.shape_cast %499 : vector<8xf32> to vector<8x1xf32>
    %cst_243 = arith.constant 1.280000e+02 : f32
    %501 = vector.broadcast %cst_243 : f32 to vector<8x1xf32>
    %502 = arith.divf %500, %501 : vector<8x1xf32>
    %503 = vector.broadcast %495 : vector<8x1xf32> to vector<8x128xf32>
    %504 = arith.subf %487, %503 : vector<8x128xf32>
    %cst_244 = arith.constant 9.99999974E-6 : f32
    %505 = vector.broadcast %cst_244 : f32 to vector<8x1xf32>
    %506 = arith.addf %502, %505 : vector<8x1xf32>
    %507 = math.rsqrt %506 : vector<8x1xf32>
    %508 = vector.broadcast %507 : vector<8x1xf32> to vector<8x128xf32>
    %509 = arith.mulf %504, %508 : vector<8x128xf32>
    %510 = vector.broadcast %489 : vector<1x128xf32> to vector<8x128xf32>
    %511 = arith.mulf %509, %510 : vector<8x128xf32>
    %512 = vector.broadcast %491 : vector<1x128xf32> to vector<8x128xf32>
    %513 = arith.addf %511, %512 : vector<8x128xf32>
    %514 = arith.truncf %513 : vector<8x128xf32> to vector<8x128xbf16>
    %c2 = arith.constant 2 : index
    %c0_245 = arith.constant 0 : index
    %c0_246 = arith.constant 0 : index
    %515 = vector.load %arg4[%c2, %c0_245, %c0_246] : memref<3x128x384xbf16, #tpu.memory_space<vmem>>, vector<1x128x384xbf16>
    %516 = vector.shape_cast %515 : vector<1x128x384xbf16> to vector<128x384xbf16>
    %cst_247 = arith.constant dense<0.000000e+00> : vector<8x384xf32>
    %517 = tpu.matmul %514, %516, %cst_247 {dimension_numbers = #tpu.dot_dimension_numbers<[1], [0], [0], [1], [0, 0, 1, 1], [], []>} : vector<8x128xbf16>, vector<128x384xbf16>, vector<8x384xf32> -> vector<8x384xf32>
    %c2_248 = arith.constant 2 : index
    %c0_249 = arith.constant 0 : index
    %c0_250 = arith.constant 0 : index
    %518 = vector.load %arg5[%c2_248, %c0_249, %c0_250] : memref<3x1x384xf32, #tpu.memory_space<vmem>>, vector<1x1x384xf32>
    %519 = vector.shape_cast %518 : vector<1x1x384xf32> to vector<1x384xf32>
    %520 = vector.broadcast %519 : vector<1x384xf32> to vector<8x384xf32>
    %521 = arith.addf %517, %520 : vector<8x384xf32>
    %522 = vector.extract_strided_slice %521 {offsets = [0, 0], sizes = [8, 128], strides = [1, 1]} : vector<8x384xf32> to vector<8x128xf32>
    %cst_251 = arith.constant 2.500000e-01 : f32
    %523 = vector.broadcast %cst_251 : f32 to vector<8x128xf32>
    %524 = arith.mulf %522, %523 : vector<8x128xf32>
    %525 = vector.shape_cast %524 : vector<8x128xf32> to vector<1x8x128xf32>
    %526 = arith.truncf %525 : vector<1x8x128xf32> to vector<1x8x128xbf16>
    %527 = vector.extract_strided_slice %521 {offsets = [0, 128], sizes = [8, 128], strides = [1, 1]} : vector<8x384xf32> to vector<8x128xf32>
    %528 = vector.shape_cast %527 : vector<8x128xf32> to vector<1x8x128xf32>
    %529 = arith.truncf %528 : vector<1x8x128xf32> to vector<1x8x128xbf16>
    %530 = vector.extract_strided_slice %521 {offsets = [0, 256], sizes = [8, 128], strides = [1, 1]} : vector<8x384xf32> to vector<8x128xf32>
    %531 = vector.shape_cast %530 : vector<8x128xf32> to vector<1x8x128xf32>
    %532 = arith.truncf %531 : vector<1x8x128xf32> to vector<1x8x128xbf16>
    %533 = vector.extract_strided_slice %526 {offsets = [0, 0, 0], sizes = [1, 8, 16], strides = [1, 1, 1]} : vector<1x8x128xbf16> to vector<1x8x16xbf16>
    %534 = vector.extract_strided_slice %529 {offsets = [0, 0, 0], sizes = [1, 8, 16], strides = [1, 1, 1]} : vector<1x8x128xbf16> to vector<1x8x16xbf16>
    "tpu.trace_start"() <{level = 10 : i32, message = "bqd,bkd->bqk"}> : () -> ()
    %cst_252 = arith.constant dense<0.000000e+00> : vector<1x8x8xf32>
    %535 = tpu.matmul %533, %534, %cst_252 {dimension_numbers = #tpu.dot_dimension_numbers<[2], [2], [1], [1], [0, 0, 0, 1, 1, 1], [0], [0]>} : vector<1x8x16xbf16>, vector<1x8x16xbf16>, vector<1x8x8xf32> -> vector<1x8x8xf32>
    "tpu.trace_stop"() : () -> ()
    %cst_253 = arith.constant dense<0xFF800000> : vector<1x8xf32>
    %536 = vector.multi_reduction <maximumf>, %535, %cst_253 [2] : vector<1x8x8xf32> to vector<1x8xf32>
    %537 = vector.shape_cast %536 : vector<1x8xf32> to vector<1x8x1xf32>
    %538 = vector.broadcast %537 : vector<1x8x1xf32> to vector<1x8x8xf32>
    %539 = arith.subf %535, %538 : vector<1x8x8xf32>
    %540 = math.exp %539 : vector<1x8x8xf32>
    %cst_254 = arith.constant dense<0.000000e+00> : vector<1x8xf32>
    %541 = vector.multi_reduction <add>, %540, %cst_254 [2] : vector<1x8x8xf32> to vector<1x8xf32>
    %542 = vector.shape_cast %541 : vector<1x8xf32> to vector<1x8x1xf32>
    %543 = tpu.reciprocal %542 {approx = true} : vector<1x8x1xf32> -> vector<1x8x1xf32>
    %544 = arith.truncf %540 : vector<1x8x8xf32> to vector<1x8x8xbf16>
    %545 = vector.extract_strided_slice %532 {offsets = [0, 0, 0], sizes = [1, 8, 16], strides = [1, 1, 1]} : vector<1x8x128xbf16> to vector<1x8x16xbf16>
    "tpu.trace_start"() <{level = 10 : i32, message = "bqk,bkd->bqd"}> : () -> ()
    %cst_255 = arith.constant dense<0.000000e+00> : vector<1x8x16xf32>
    %546 = tpu.matmul %544, %545, %cst_255 {dimension_numbers = #tpu.dot_dimension_numbers<[2], [1], [1], [2], [0, 0, 0, 1, 1, 2], [0], [0]>} : vector<1x8x8xbf16>, vector<1x8x16xbf16>, vector<1x8x16xf32> -> vector<1x8x16xf32>
    "tpu.trace_stop"() : () -> ()
    %547 = vector.broadcast %543 : vector<1x8x1xf32> to vector<1x8x16xf32>
    %548 = arith.mulf %546, %547 : vector<1x8x16xf32>
    %c0_256 = arith.constant 0 : index
    %c0_257 = arith.constant 0 : index
    %c0_258 = arith.constant 0 : index
    %549 = vector.load %arg19[%c0_256, %c0_257, %c0_258] : memref<1x8x128xf32, #tpu.memory_space<vmem>>, vector<1x8x16xf32>
    tpu.vector_store %arg19[%c0_256, %c0_257, %c0_258], %548 {strides = array<i32>} : memref<1x8x128xf32, #tpu.memory_space<vmem>>, vector<1x8x16xf32>,
    %550 = vector.extract_strided_slice %526 {offsets = [0, 0, 16], sizes = [1, 8, 16], strides = [1, 1, 1]} : vector<1x8x128xbf16> to vector<1x8x16xbf16>
    %551 = vector.extract_strided_slice %529 {offsets = [0, 0, 16], sizes = [1, 8, 16], strides = [1, 1, 1]} : vector<1x8x128xbf16> to vector<1x8x16xbf16>
    "tpu.trace_start"() <{level = 10 : i32, message = "bqd,bkd->bqk"}> : () -> ()
    %cst_259 = arith.constant dense<0.000000e+00> : vector<1x8x8xf32>
    %552 = tpu.matmul %550, %551, %cst_259 {dimension_numbers = #tpu.dot_dimension_numbers<[2], [2], [1], [1], [0, 0, 0, 1, 1, 1], [0], [0]>} : vector<1x8x16xbf16>, vector<1x8x16xbf16>, vector<1x8x8xf32> -> vector<1x8x8xf32>
    "tpu.trace_stop"() : () -> ()
    %cst_260 = arith.constant dense<0xFF800000> : vector<1x8xf32>
    %553 = vector.multi_reduction <maximumf>, %552, %cst_260 [2] : vector<1x8x8xf32> to vector<1x8xf32>
    %554 = vector.shape_cast %553 : vector<1x8xf32> to vector<1x8x1xf32>
    %555 = vector.broadcast %554 : vector<1x8x1xf32> to vector<1x8x8xf32>
    %556 = arith.subf %552, %555 : vector<1x8x8xf32>
    %557 = math.exp %556 : vector<1x8x8xf32>
    %cst_261 = arith.constant dense<0.000000e+00> : vector<1x8xf32>
    %558 = vector.multi_reduction <add>, %557, %cst_261 [2] : vector<1x8x8xf32> to vector<1x8xf32>
    %559 = vector.shape_cast %558 : vector<1x8xf32> to vector<1x8x1xf32>
    %560 = tpu.reciprocal %559 {approx = true} : vector<1x8x1xf32> -> vector<1x8x1xf32>
    %561 = arith.truncf %557 : vector<1x8x8xf32> to vector<1x8x8xbf16>
    %562 = vector.extract_strided_slice %532 {offsets = [0, 0, 16], sizes = [1, 8, 16], strides = [1, 1, 1]} : vector<1x8x128xbf16> to vector<1x8x16xbf16>
    "tpu.trace_start"() <{level = 10 : i32, message = "bqk,bkd->bqd"}> : () -> ()
    %cst_262 = arith.constant dense<0.000000e+00> : vector<1x8x16xf32>
    %563 = tpu.matmul %561, %562, %cst_262 {dimension_numbers = #tpu.dot_dimension_numbers<[2], [1], [1], [2], [0, 0, 0, 1, 1, 2], [0], [0]>} : vector<1x8x8xbf16>, vector<1x8x16xbf16>, vector<1x8x16xf32> -> vector<1x8x16xf32>
    "tpu.trace_stop"() : () -> ()
    %564 = vector.broadcast %560 : vector<1x8x1xf32> to vector<1x8x16xf32>
    %565 = arith.mulf %563, %564 : vector<1x8x16xf32>
    %c0_263 = arith.constant 0 : index
    %c0_264 = arith.constant 0 : index
    %c16_265 = arith.constant 16 : index
    %566 = vector.load %arg19[%c0_263, %c0_264, %c16_265] : memref<1x8x128xf32, #tpu.memory_space<vmem>>, vector<1x8x16xf32>
    tpu.vector_store %arg19[%c0_263, %c0_264, %c16_265], %565 {strides = array<i32>} : memref<1x8x128xf32, #tpu.memory_space<vmem>>, vector<1x8x16xf32>,
    %567 = vector.extract_strided_slice %526 {offsets = [0, 0, 32], sizes = [1, 8, 16], strides = [1, 1, 1]} : vector<1x8x128xbf16> to vector<1x8x16xbf16>
    %568 = vector.extract_strided_slice %529 {offsets = [0, 0, 32], sizes = [1, 8, 16], strides = [1, 1, 1]} : vector<1x8x128xbf16> to vector<1x8x16xbf16>
    "tpu.trace_start"() <{level = 10 : i32, message = "bqd,bkd->bqk"}> : () -> ()
    %cst_266 = arith.constant dense<0.000000e+00> : vector<1x8x8xf32>
    %569 = tpu.matmul %567, %568, %cst_266 {dimension_numbers = #tpu.dot_dimension_numbers<[2], [2], [1], [1], [0, 0, 0, 1, 1, 1], [0], [0]>} : vector<1x8x16xbf16>, vector<1x8x16xbf16>, vector<1x8x8xf32> -> vector<1x8x8xf32>
    "tpu.trace_stop"() : () -> ()
    %cst_267 = arith.constant dense<0xFF800000> : vector<1x8xf32>
    %570 = vector.multi_reduction <maximumf>, %569, %cst_267 [2] : vector<1x8x8xf32> to vector<1x8xf32>
    %571 = vector.shape_cast %570 : vector<1x8xf32> to vector<1x8x1xf32>
    %572 = vector.broadcast %571 : vector<1x8x1xf32> to vector<1x8x8xf32>
    %573 = arith.subf %569, %572 : vector<1x8x8xf32>
    %574 = math.exp %573 : vector<1x8x8xf32>
    %cst_268 = arith.constant dense<0.000000e+00> : vector<1x8xf32>
    %575 = vector.multi_reduction <add>, %574, %cst_268 [2] : vector<1x8x8xf32> to vector<1x8xf32>
    %576 = vector.shape_cast %575 : vector<1x8xf32> to vector<1x8x1xf32>
    %577 = tpu.reciprocal %576 {approx = true} : vector<1x8x1xf32> -> vector<1x8x1xf32>
    %578 = arith.truncf %574 : vector<1x8x8xf32> to vector<1x8x8xbf16>
    %579 = vector.extract_strided_slice %532 {offsets = [0, 0, 32], sizes = [1, 8, 16], strides = [1, 1, 1]} : vector<1x8x128xbf16> to vector<1x8x16xbf16>
    "tpu.trace_start"() <{level = 10 : i32, message = "bqk,bkd->bqd"}> : () -> ()
    %cst_269 = arith.constant dense<0.000000e+00> : vector<1x8x16xf32>
    %580 = tpu.matmul %578, %579, %cst_269 {dimension_numbers = #tpu.dot_dimension_numbers<[2], [1], [1], [2], [0, 0, 0, 1, 1, 2], [0], [0]>} : vector<1x8x8xbf16>, vector<1x8x16xbf16>, vector<1x8x16xf32> -> vector<1x8x16xf32>
    "tpu.trace_stop"() : () -> ()
    %581 = vector.broadcast %577 : vector<1x8x1xf32> to vector<1x8x16xf32>
    %582 = arith.mulf %580, %581 : vector<1x8x16xf32>
    %c0_270 = arith.constant 0 : index
    %c0_271 = arith.constant 0 : index
    %c32_272 = arith.constant 32 : index
    %583 = vector.load %arg19[%c0_270, %c0_271, %c32_272] : memref<1x8x128xf32, #tpu.memory_space<vmem>>, vector<1x8x16xf32>
    tpu.vector_store %arg19[%c0_270, %c0_271, %c32_272], %582 {strides = array<i32>} : memref<1x8x128xf32, #tpu.memory_space<vmem>>, vector<1x8x16xf32>,
    %584 = vector.extract_strided_slice %526 {offsets = [0, 0, 48], sizes = [1, 8, 16], strides = [1, 1, 1]} : vector<1x8x128xbf16> to vector<1x8x16xbf16>
    %585 = vector.extract_strided_slice %529 {offsets = [0, 0, 48], sizes = [1, 8, 16], strides = [1, 1, 1]} : vector<1x8x128xbf16> to vector<1x8x16xbf16>
    "tpu.trace_start"() <{level = 10 : i32, message = "bqd,bkd->bqk"}> : () -> ()
    %cst_273 = arith.constant dense<0.000000e+00> : vector<1x8x8xf32>
    %586 = tpu.matmul %584, %585, %cst_273 {dimension_numbers = #tpu.dot_dimension_numbers<[2], [2], [1], [1], [0, 0, 0, 1, 1, 1], [0], [0]>} : vector<1x8x16xbf16>, vector<1x8x16xbf16>, vector<1x8x8xf32> -> vector<1x8x8xf32>
    "tpu.trace_stop"() : () -> ()
    %cst_274 = arith.constant dense<0xFF800000> : vector<1x8xf32>
    %587 = vector.multi_reduction <maximumf>, %586, %cst_274 [2] : vector<1x8x8xf32> to vector<1x8xf32>
    %588 = vector.shape_cast %587 : vector<1x8xf32> to vector<1x8x1xf32>
    %589 = vector.broadcast %588 : vector<1x8x1xf32> to vector<1x8x8xf32>
    %590 = arith.subf %586, %589 : vector<1x8x8xf32>
    %591 = math.exp %590 : vector<1x8x8xf32>
    %cst_275 = arith.constant dense<0.000000e+00> : vector<1x8xf32>
    %592 = vector.multi_reduction <add>, %591, %cst_275 [2] : vector<1x8x8xf32> to vector<1x8xf32>
    %593 = vector.shape_cast %592 : vector<1x8xf32> to vector<1x8x1xf32>
    %594 = tpu.reciprocal %593 {approx = true} : vector<1x8x1xf32> -> vector<1x8x1xf32>
    %595 = arith.truncf %591 : vector<1x8x8xf32> to vector<1x8x8xbf16>
    %596 = vector.extract_strided_slice %532 {offsets = [0, 0, 48], sizes = [1, 8, 16], strides = [1, 1, 1]} : vector<1x8x128xbf16> to vector<1x8x16xbf16>
    "tpu.trace_start"() <{level = 10 : i32, message = "bqk,bkd->bqd"}> : () -> ()
    %cst_276 = arith.constant dense<0.000000e+00> : vector<1x8x16xf32>
    %597 = tpu.matmul %595, %596, %cst_276 {dimension_numbers = #tpu.dot_dimension_numbers<[2], [1], [1], [2], [0, 0, 0, 1, 1, 2], [0], [0]>} : vector<1x8x8xbf16>, vector<1x8x16xbf16>, vector<1x8x16xf32> -> vector<1x8x16xf32>
    "tpu.trace_stop"() : () -> ()
    %598 = vector.broadcast %594 : vector<1x8x1xf32> to vector<1x8x16xf32>
    %599 = arith.mulf %597, %598 : vector<1x8x16xf32>
    %c0_277 = arith.constant 0 : index
    %c0_278 = arith.constant 0 : index
    %c48_279 = arith.constant 48 : index
    %600 = vector.load %arg19[%c0_277, %c0_278, %c48_279] : memref<1x8x128xf32, #tpu.memory_space<vmem>>, vector<1x8x16xf32>
    tpu.vector_store %arg19[%c0_277, %c0_278, %c48_279], %599 {strides = array<i32>} : memref<1x8x128xf32, #tpu.memory_space<vmem>>, vector<1x8x16xf32>,
    %601 = vector.extract_strided_slice %526 {offsets = [0, 0, 64], sizes = [1, 8, 16], strides = [1, 1, 1]} : vector<1x8x128xbf16> to vector<1x8x16xbf16>
    %602 = vector.extract_strided_slice %529 {offsets = [0, 0, 64], sizes = [1, 8, 16], strides = [1, 1, 1]} : vector<1x8x128xbf16> to vector<1x8x16xbf16>
    "tpu.trace_start"() <{level = 10 : i32, message = "bqd,bkd->bqk"}> : () -> ()
    %cst_280 = arith.constant dense<0.000000e+00> : vector<1x8x8xf32>
    %603 = tpu.matmul %601, %602, %cst_280 {dimension_numbers = #tpu.dot_dimension_numbers<[2], [2], [1], [1], [0, 0, 0, 1, 1, 1], [0], [0]>} : vector<1x8x16xbf16>, vector<1x8x16xbf16>, vector<1x8x8xf32> -> vector<1x8x8xf32>
    "tpu.trace_stop"() : () -> ()
    %cst_281 = arith.constant dense<0xFF800000> : vector<1x8xf32>
    %604 = vector.multi_reduction <maximumf>, %603, %cst_281 [2] : vector<1x8x8xf32> to vector<1x8xf32>
    %605 = vector.shape_cast %604 : vector<1x8xf32> to vector<1x8x1xf32>
    %606 = vector.broadcast %605 : vector<1x8x1xf32> to vector<1x8x8xf32>
    %607 = arith.subf %603, %606 : vector<1x8x8xf32>
    %608 = math.exp %607 : vector<1x8x8xf32>
    %cst_282 = arith.constant dense<0.000000e+00> : vector<1x8xf32>
    %609 = vector.multi_reduction <add>, %608, %cst_282 [2] : vector<1x8x8xf32> to vector<1x8xf32>
    %610 = vector.shape_cast %609 : vector<1x8xf32> to vector<1x8x1xf32>
    %611 = tpu.reciprocal %610 {approx = true} : vector<1x8x1xf32> -> vector<1x8x1xf32>
    %612 = arith.truncf %608 : vector<1x8x8xf32> to vector<1x8x8xbf16>
    %613 = vector.extract_strided_slice %532 {offsets = [0, 0, 64], sizes = [1, 8, 16], strides = [1, 1, 1]} : vector<1x8x128xbf16> to vector<1x8x16xbf16>
    "tpu.trace_start"() <{level = 10 : i32, message = "bqk,bkd->bqd"}> : () -> ()
    %cst_283 = arith.constant dense<0.000000e+00> : vector<1x8x16xf32>
    %614 = tpu.matmul %612, %613, %cst_283 {dimension_numbers = #tpu.dot_dimension_numbers<[2], [1], [1], [2], [0, 0, 0, 1, 1, 2], [0], [0]>} : vector<1x8x8xbf16>, vector<1x8x16xbf16>, vector<1x8x16xf32> -> vector<1x8x16xf32>
    "tpu.trace_stop"() : () -> ()
    %615 = vector.broadcast %611 : vector<1x8x1xf32> to vector<1x8x16xf32>
    %616 = arith.mulf %614, %615 : vector<1x8x16xf32>
    %c0_284 = arith.constant 0 : index
    %c0_285 = arith.constant 0 : index
    %c64_286 = arith.constant 64 : index
    %617 = vector.load %arg19[%c0_284, %c0_285, %c64_286] : memref<1x8x128xf32, #tpu.memory_space<vmem>>, vector<1x8x16xf32>
    tpu.vector_store %arg19[%c0_284, %c0_285, %c64_286], %616 {strides = array<i32>} : memref<1x8x128xf32, #tpu.memory_space<vmem>>, vector<1x8x16xf32>,
    %618 = vector.extract_strided_slice %526 {offsets = [0, 0, 80], sizes = [1, 8, 16], strides = [1, 1, 1]} : vector<1x8x128xbf16> to vector<1x8x16xbf16>
    %619 = vector.extract_strided_slice %529 {offsets = [0, 0, 80], sizes = [1, 8, 16], strides = [1, 1, 1]} : vector<1x8x128xbf16> to vector<1x8x16xbf16>
    "tpu.trace_start"() <{level = 10 : i32, message = "bqd,bkd->bqk"}> : () -> ()
    %cst_287 = arith.constant dense<0.000000e+00> : vector<1x8x8xf32>
    %620 = tpu.matmul %618, %619, %cst_287 {dimension_numbers = #tpu.dot_dimension_numbers<[2], [2], [1], [1], [0, 0, 0, 1, 1, 1], [0], [0]>} : vector<1x8x16xbf16>, vector<1x8x16xbf16>, vector<1x8x8xf32> -> vector<1x8x8xf32>
    "tpu.trace_stop"() : () -> ()
    %cst_288 = arith.constant dense<0xFF800000> : vector<1x8xf32>
    %621 = vector.multi_reduction <maximumf>, %620, %cst_288 [2] : vector<1x8x8xf32> to vector<1x8xf32>
    %622 = vector.shape_cast %621 : vector<1x8xf32> to vector<1x8x1xf32>
    %623 = vector.broadcast %622 : vector<1x8x1xf32> to vector<1x8x8xf32>
    %624 = arith.subf %620, %623 : vector<1x8x8xf32>
    %625 = math.exp %624 : vector<1x8x8xf32>
    %cst_289 = arith.constant dense<0.000000e+00> : vector<1x8xf32>
    %626 = vector.multi_reduction <add>, %625, %cst_289 [2] : vector<1x8x8xf32> to vector<1x8xf32>
    %627 = vector.shape_cast %626 : vector<1x8xf32> to vector<1x8x1xf32>
    %628 = tpu.reciprocal %627 {approx = true} : vector<1x8x1xf32> -> vector<1x8x1xf32>
    %629 = arith.truncf %625 : vector<1x8x8xf32> to vector<1x8x8xbf16>
    %630 = vector.extract_strided_slice %532 {offsets = [0, 0, 80], sizes = [1, 8, 16], strides = [1, 1, 1]} : vector<1x8x128xbf16> to vector<1x8x16xbf16>
    "tpu.trace_start"() <{level = 10 : i32, message = "bqk,bkd->bqd"}> : () -> ()
    %cst_290 = arith.constant dense<0.000000e+00> : vector<1x8x16xf32>
    %631 = tpu.matmul %629, %630, %cst_290 {dimension_numbers = #tpu.dot_dimension_numbers<[2], [1], [1], [2], [0, 0, 0, 1, 1, 2], [0], [0]>} : vector<1x8x8xbf16>, vector<1x8x16xbf16>, vector<1x8x16xf32> -> vector<1x8x16xf32>
    "tpu.trace_stop"() : () -> ()
    %632 = vector.broadcast %628 : vector<1x8x1xf32> to vector<1x8x16xf32>
    %633 = arith.mulf %631, %632 : vector<1x8x16xf32>
    %c0_291 = arith.constant 0 : index
    %c0_292 = arith.constant 0 : index
    %c80_293 = arith.constant 80 : index
    %634 = vector.load %arg19[%c0_291, %c0_292, %c80_293] : memref<1x8x128xf32, #tpu.memory_space<vmem>>, vector<1x8x16xf32>
    tpu.vector_store %arg19[%c0_291, %c0_292, %c80_293], %633 {strides = array<i32>} : memref<1x8x128xf32, #tpu.memory_space<vmem>>, vector<1x8x16xf32>,
    %635 = vector.extract_strided_slice %526 {offsets = [0, 0, 96], sizes = [1, 8, 16], strides = [1, 1, 1]} : vector<1x8x128xbf16> to vector<1x8x16xbf16>
    %636 = vector.extract_strided_slice %529 {offsets = [0, 0, 96], sizes = [1, 8, 16], strides = [1, 1, 1]} : vector<1x8x128xbf16> to vector<1x8x16xbf16>
    "tpu.trace_start"() <{level = 10 : i32, message = "bqd,bkd->bqk"}> : () -> ()
    %cst_294 = arith.constant dense<0.000000e+00> : vector<1x8x8xf32>
    %637 = tpu.matmul %635, %636, %cst_294 {dimension_numbers = #tpu.dot_dimension_numbers<[2], [2], [1], [1], [0, 0, 0, 1, 1, 1], [0], [0]>} : vector<1x8x16xbf16>, vector<1x8x16xbf16>, vector<1x8x8xf32> -> vector<1x8x8xf32>
    "tpu.trace_stop"() : () -> ()
    %cst_295 = arith.constant dense<0xFF800000> : vector<1x8xf32>
    %638 = vector.multi_reduction <maximumf>, %637, %cst_295 [2] : vector<1x8x8xf32> to vector<1x8xf32>
    %639 = vector.shape_cast %638 : vector<1x8xf32> to vector<1x8x1xf32>
    %640 = vector.broadcast %639 : vector<1x8x1xf32> to vector<1x8x8xf32>
    %641 = arith.subf %637, %640 : vector<1x8x8xf32>
    %642 = math.exp %641 : vector<1x8x8xf32>
    %cst_296 = arith.constant dense<0.000000e+00> : vector<1x8xf32>
    %643 = vector.multi_reduction <add>, %642, %cst_296 [2] : vector<1x8x8xf32> to vector<1x8xf32>
    %644 = vector.shape_cast %643 : vector<1x8xf32> to vector<1x8x1xf32>
    %645 = tpu.reciprocal %644 {approx = true} : vector<1x8x1xf32> -> vector<1x8x1xf32>
    %646 = arith.truncf %642 : vector<1x8x8xf32> to vector<1x8x8xbf16>
    %647 = vector.extract_strided_slice %532 {offsets = [0, 0, 96], sizes = [1, 8, 16], strides = [1, 1, 1]} : vector<1x8x128xbf16> to vector<1x8x16xbf16>
    "tpu.trace_start"() <{level = 10 : i32, message = "bqk,bkd->bqd"}> : () -> ()
    %cst_297 = arith.constant dense<0.000000e+00> : vector<1x8x16xf32>
    %648 = tpu.matmul %646, %647, %cst_297 {dimension_numbers = #tpu.dot_dimension_numbers<[2], [1], [1], [2], [0, 0, 0, 1, 1, 2], [0], [0]>} : vector<1x8x8xbf16>, vector<1x8x16xbf16>, vector<1x8x16xf32> -> vector<1x8x16xf32>
    "tpu.trace_stop"() : () -> ()
    %649 = vector.broadcast %645 : vector<1x8x1xf32> to vector<1x8x16xf32>
    %650 = arith.mulf %648, %649 : vector<1x8x16xf32>
    %c0_298 = arith.constant 0 : index
    %c0_299 = arith.constant 0 : index
    %c96_300 = arith.constant 96 : index
    %651 = vector.load %arg19[%c0_298, %c0_299, %c96_300] : memref<1x8x128xf32, #tpu.memory_space<vmem>>, vector<1x8x16xf32>
    tpu.vector_store %arg19[%c0_298, %c0_299, %c96_300], %650 {strides = array<i32>} : memref<1x8x128xf32, #tpu.memory_space<vmem>>, vector<1x8x16xf32>,
    %652 = vector.extract_strided_slice %526 {offsets = [0, 0, 112], sizes = [1, 8, 16], strides = [1, 1, 1]} : vector<1x8x128xbf16> to vector<1x8x16xbf16>
    %653 = vector.extract_strided_slice %529 {offsets = [0, 0, 112], sizes = [1, 8, 16], strides = [1, 1, 1]} : vector<1x8x128xbf16> to vector<1x8x16xbf16>
    "tpu.trace_start"() <{level = 10 : i32, message = "bqd,bkd->bqk"}> : () -> ()
    %cst_301 = arith.constant dense<0.000000e+00> : vector<1x8x8xf32>
    %654 = tpu.matmul %652, %653, %cst_301 {dimension_numbers = #tpu.dot_dimension_numbers<[2], [2], [1], [1], [0, 0, 0, 1, 1, 1], [0], [0]>} : vector<1x8x16xbf16>, vector<1x8x16xbf16>, vector<1x8x8xf32> -> vector<1x8x8xf32>
    "tpu.trace_stop"() : () -> ()
    %cst_302 = arith.constant dense<0xFF800000> : vector<1x8xf32>
    %655 = vector.multi_reduction <maximumf>, %654, %cst_302 [2] : vector<1x8x8xf32> to vector<1x8xf32>
    %656 = vector.shape_cast %655 : vector<1x8xf32> to vector<1x8x1xf32>
    %657 = vector.broadcast %656 : vector<1x8x1xf32> to vector<1x8x8xf32>
    %658 = arith.subf %654, %657 : vector<1x8x8xf32>
    %659 = math.exp %658 : vector<1x8x8xf32>
    %cst_303 = arith.constant dense<0.000000e+00> : vector<1x8xf32>
    %660 = vector.multi_reduction <add>, %659, %cst_303 [2] : vector<1x8x8xf32> to vector<1x8xf32>
    %661 = vector.shape_cast %660 : vector<1x8xf32> to vector<1x8x1xf32>
    %662 = tpu.reciprocal %661 {approx = true} : vector<1x8x1xf32> -> vector<1x8x1xf32>
    %663 = arith.truncf %659 : vector<1x8x8xf32> to vector<1x8x8xbf16>
    %664 = vector.extract_strided_slice %532 {offsets = [0, 0, 112], sizes = [1, 8, 16], strides = [1, 1, 1]} : vector<1x8x128xbf16> to vector<1x8x16xbf16>
    "tpu.trace_start"() <{level = 10 : i32, message = "bqk,bkd->bqd"}> : () -> ()
    %cst_304 = arith.constant dense<0.000000e+00> : vector<1x8x16xf32>
    %665 = tpu.matmul %663, %664, %cst_304 {dimension_numbers = #tpu.dot_dimension_numbers<[2], [1], [1], [2], [0, 0, 0, 1, 1, 2], [0], [0]>} : vector<1x8x8xbf16>, vector<1x8x16xbf16>, vector<1x8x16xf32> -> vector<1x8x16xf32>
    "tpu.trace_stop"() : () -> ()
    %666 = vector.broadcast %662 : vector<1x8x1xf32> to vector<1x8x16xf32>
    %667 = arith.mulf %665, %666 : vector<1x8x16xf32>
    %c0_305 = arith.constant 0 : index
    %c0_306 = arith.constant 0 : index
    %c112_307 = arith.constant 112 : index
    %668 = vector.load %arg19[%c0_305, %c0_306, %c112_307] : memref<1x8x128xf32, #tpu.memory_space<vmem>>, vector<1x8x16xf32>
    tpu.vector_store %arg19[%c0_305, %c0_306, %c112_307], %667 {strides = array<i32>} : memref<1x8x128xf32, #tpu.memory_space<vmem>>, vector<1x8x16xf32>,
    %c0_308 = arith.constant 0 : index
    %c0_309 = arith.constant 0 : index
    %c0_310 = arith.constant 0 : index
    %669 = vector.load %arg19[%c0_308, %c0_309, %c0_310] : memref<1x8x128xf32, #tpu.memory_space<vmem>>, vector<1x8x128xf32>
    %670 = vector.shape_cast %669 : vector<1x8x128xf32> to vector<8x128xf32>
    %671 = arith.truncf %670 : vector<8x128xf32> to vector<8x128xbf16>
    %c2_311 = arith.constant 2 : index
    %c0_312 = arith.constant 0 : index
    %c0_313 = arith.constant 0 : index
    %672 = vector.load %arg6[%c2_311, %c0_312, %c0_313] : memref<3x128x128xbf16, #tpu.memory_space<vmem>>, vector<1x128x128xbf16>
    %673 = vector.shape_cast %672 : vector<1x128x128xbf16> to vector<128x128xbf16>
    %cst_314 = arith.constant dense<0.000000e+00> : vector<8x128xf32>
    %674 = tpu.matmul %671, %673, %cst_314 {dimension_numbers = #tpu.dot_dimension_numbers<[1], [0], [0], [1], [0, 0, 1, 1], [], []>} : vector<8x128xbf16>, vector<128x128xbf16>, vector<8x128xf32> -> vector<8x128xf32>
    %c2_315 = arith.constant 2 : index
    %c0_316 = arith.constant 0 : index
    %c0_317 = arith.constant 0 : index
    %675 = vector.load %arg7[%c2_315, %c0_316, %c0_317] : memref<3x1x128xf32, #tpu.memory_space<vmem>>, vector<1x1x128xf32>
    %676 = vector.shape_cast %675 : vector<1x1x128xf32> to vector<1x128xf32>
    %677 = vector.broadcast %676 : vector<1x128xf32> to vector<8x128xf32>
    %678 = arith.addf %674, %677 : vector<8x128xf32>
    %679 = arith.addf %513, %678 : vector<8x128xf32>
    %c2_318 = arith.constant 2 : index
    %c0_319 = arith.constant 0 : index
    %c0_320 = arith.constant 0 : index
    %680 = vector.load %arg12[%c2_318, %c0_319, %c0_320] : memref<3x1x128xf32, #tpu.memory_space<vmem>>, vector<1x1x128xf32>
    %681 = vector.shape_cast %680 : vector<1x1x128xf32> to vector<1x128xf32>
    %c2_321 = arith.constant 2 : index
    %c0_322 = arith.constant 0 : index
    %c0_323 = arith.constant 0 : index
    %682 = vector.load %arg13[%c2_321, %c0_322, %c0_323] : memref<3x1x128xf32, #tpu.memory_space<vmem>>, vector<1x1x128xf32>
    %683 = vector.shape_cast %682 : vector<1x1x128xf32> to vector<1x128xf32>
    %cst_324 = arith.constant dense<0.000000e+00> : vector<8xf32>
    %684 = vector.multi_reduction <add>, %679, %cst_324 [1] : vector<8x128xf32> to vector<8xf32>
    %685 = vector.shape_cast %684 : vector<8xf32> to vector<8x1xf32>
    %cst_325 = arith.constant 1.280000e+02 : f32
    %686 = vector.broadcast %cst_325 : f32 to vector<8x1xf32>
    %687 = arith.divf %685, %686 : vector<8x1xf32>
    %688 = vector.broadcast %687 : vector<8x1xf32> to vector<8x128xf32>
    %689 = arith.subf %679, %688 : vector<8x128xf32>
    %690 = arith.mulf %689, %689 : vector<8x128xf32>
    %cst_326 = arith.constant dense<0.000000e+00> : vector<8xf32>
    %691 = vector.multi_reduction <add>, %690, %cst_326 [1] : vector<8x128xf32> to vector<8xf32>
    %692 = vector.shape_cast %691 : vector<8xf32> to vector<8x1xf32>
    %cst_327 = arith.constant 1.280000e+02 : f32
    %693 = vector.broadcast %cst_327 : f32 to vector<8x1xf32>
    %694 = arith.divf %692, %693 : vector<8x1xf32>
    %695 = vector.broadcast %687 : vector<8x1xf32> to vector<8x128xf32>
    %696 = arith.subf %679, %695 : vector<8x128xf32>
    %cst_328 = arith.constant 9.99999974E-6 : f32
    %697 = vector.broadcast %cst_328 : f32 to vector<8x1xf32>
    %698 = arith.addf %694, %697 : vector<8x1xf32>
    %699 = math.rsqrt %698 : vector<8x1xf32>
    %700 = vector.broadcast %699 : vector<8x1xf32> to vector<8x128xf32>
    %701 = arith.mulf %696, %700 : vector<8x128xf32>
    %702 = vector.broadcast %681 : vector<1x128xf32> to vector<8x128xf32>
    %703 = arith.mulf %701, %702 : vector<8x128xf32>
    %704 = vector.broadcast %683 : vector<1x128xf32> to vector<8x128xf32>
    %705 = arith.addf %703, %704 : vector<8x128xf32>
    %706 = arith.truncf %705 : vector<8x128xf32> to vector<8x128xbf16>
    %cst_329 = arith.constant 0.000000e+00 : f32
    %707 = vector.broadcast %cst_329 : f32 to vector<8x128xf32>
    %c2_330 = arith.constant 2 : index
    %c0_331 = arith.constant 0 : index
    %c0_332 = arith.constant 0 : index
    %708 = vector.load %arg8[%c2_330, %c0_331, %c0_332] : memref<3x128x2048xbf16, #tpu.memory_space<vmem>>, vector<1x128x1024xbf16>
    %709 = vector.shape_cast %708 : vector<1x128x1024xbf16> to vector<128x1024xbf16>
    %cst_333 = arith.constant dense<0.000000e+00> : vector<8x1024xf32>
    %710 = tpu.matmul %706, %709, %cst_333 {dimension_numbers = #tpu.dot_dimension_numbers<[1], [0], [0], [1], [0, 0, 1, 1], [], []>} : vector<8x128xbf16>, vector<128x1024xbf16>, vector<8x1024xf32> -> vector<8x1024xf32>
    %c2_334 = arith.constant 2 : index
    %c0_335 = arith.constant 0 : index
    %c0_336 = arith.constant 0 : index
    %711 = vector.load %arg9[%c2_334, %c0_335, %c0_336] : memref<3x1x2048xf32, #tpu.memory_space<vmem>>, vector<1x1x1024xf32>
    %712 = vector.shape_cast %711 : vector<1x1x1024xf32> to vector<1x1024xf32>
    %713 = vector.broadcast %712 : vector<1x1024xf32> to vector<8x1024xf32>
    %714 = arith.addf %710, %713 : vector<8x1024xf32>
    %cst_337 = arith.constant 0.000000e+00 : f32
    %715 = vector.broadcast %cst_337 : f32 to vector<8x1024xf32>
    %716 = arith.maximumf %714, %715 : vector<8x1024xf32>
    %717 = arith.truncf %716 : vector<8x1024xf32> to vector<8x1024xbf16>
    %c2_338 = arith.constant 2 : index
    %c0_339 = arith.constant 0 : index
    %c0_340 = arith.constant 0 : index
    %718 = vector.load %arg10[%c2_338, %c0_339, %c0_340] : memref<3x2048x128xbf16, #tpu.memory_space<vmem>>, vector<1x1024x128xbf16>
    %719 = vector.shape_cast %718 : vector<1x1024x128xbf16> to vector<1024x128xbf16>
    %cst_341 = arith.constant dense<0.000000e+00> : vector<8x128xf32>
    %720 = tpu.matmul %717, %719, %cst_341 {dimension_numbers = #tpu.dot_dimension_numbers<[1], [0], [0], [1], [0, 0, 1, 1], [], []>} : vector<8x1024xbf16>, vector<1024x128xbf16>, vector<8x128xf32> -> vector<8x128xf32>
    %721 = arith.addf %707, %720 : vector<8x128xf32>
    %c2_342 = arith.constant 2 : index
    %c0_343 = arith.constant 0 : index
    %c1024_344 = arith.constant 1024 : index
    %722 = vector.load %arg8[%c2_342, %c0_343, %c1024_344] : memref<3x128x2048xbf16, #tpu.memory_space<vmem>>, vector<1x128x1024xbf16>
    %723 = vector.shape_cast %722 : vector<1x128x1024xbf16> to vector<128x1024xbf16>
    %cst_345 = arith.constant dense<0.000000e+00> : vector<8x1024xf32>
    %724 = tpu.matmul %706, %723, %cst_345 {dimension_numbers = #tpu.dot_dimension_numbers<[1], [0], [0], [1], [0, 0, 1, 1], [], []>} : vector<8x128xbf16>, vector<128x1024xbf16>, vector<8x1024xf32> -> vector<8x1024xf32>
    %c2_346 = arith.constant 2 : index
    %c0_347 = arith.constant 0 : index
    %c1024_348 = arith.constant 1024 : index
    %725 = vector.load %arg9[%c2_346, %c0_347, %c1024_348] : memref<3x1x2048xf32, #tpu.memory_space<vmem>>, vector<1x1x1024xf32>
    %726 = vector.shape_cast %725 : vector<1x1x1024xf32> to vector<1x1024xf32>
    %727 = vector.broadcast %726 : vector<1x1024xf32> to vector<8x1024xf32>
    %728 = arith.addf %724, %727 : vector<8x1024xf32>
    %cst_349 = arith.constant 0.000000e+00 : f32
    %729 = vector.broadcast %cst_349 : f32 to vector<8x1024xf32>
    %730 = arith.maximumf %728, %729 : vector<8x1024xf32>
    %731 = arith.truncf %730 : vector<8x1024xf32> to vector<8x1024xbf16>
    %c2_350 = arith.constant 2 : index
    %c1024_351 = arith.constant 1024 : index
    %c0_352 = arith.constant 0 : index
    %732 = vector.load %arg10[%c2_350, %c1024_351, %c0_352] : memref<3x2048x128xbf16, #tpu.memory_space<vmem>>, vector<1x1024x128xbf16>
    %733 = vector.shape_cast %732 : vector<1x1024x128xbf16> to vector<1024x128xbf16>
    %cst_353 = arith.constant dense<0.000000e+00> : vector<8x128xf32>
    %734 = tpu.matmul %731, %733, %cst_353 {dimension_numbers = #tpu.dot_dimension_numbers<[1], [0], [0], [1], [0, 0, 1, 1], [], []>} : vector<8x1024xbf16>, vector<1024x128xbf16>, vector<8x128xf32> -> vector<8x128xf32>
    %735 = arith.addf %721, %734 : vector<8x128xf32>
    %c2_354 = arith.constant 2 : index
    %c0_355 = arith.constant 0 : index
    %c0_356 = arith.constant 0 : index
    %736 = vector.load %arg11[%c2_354, %c0_355, %c0_356] : memref<3x1x128xf32, #tpu.memory_space<vmem>>, vector<1x1x128xf32>
    %737 = vector.shape_cast %736 : vector<1x1x128xf32> to vector<1x128xf32>
    %738 = vector.broadcast %737 : vector<1x128xf32> to vector<8x128xf32>
    %739 = arith.addf %735, %738 : vector<8x128xf32>
    %740 = arith.addf %705, %739 : vector<8x128xf32>
    %c2_357 = arith.constant 2 : index
    %c0_358 = arith.constant 0 : index
    %c0_359 = arith.constant 0 : index
    %741 = vector.load %arg14[%c2_357, %c0_358, %c0_359] : memref<3x1x128xf32, #tpu.memory_space<vmem>>, vector<1x1x128xf32>
    %742 = vector.shape_cast %741 : vector<1x1x128xf32> to vector<1x128xf32>
    %c2_360 = arith.constant 2 : index
    %c0_361 = arith.constant 0 : index
    %c0_362 = arith.constant 0 : index
    %743 = vector.load %arg15[%c2_360, %c0_361, %c0_362] : memref<3x1x128xf32, #tpu.memory_space<vmem>>, vector<1x1x128xf32>
    %744 = vector.shape_cast %743 : vector<1x1x128xf32> to vector<1x128xf32>
    %cst_363 = arith.constant dense<0.000000e+00> : vector<8xf32>
    %745 = vector.multi_reduction <add>, %740, %cst_363 [1] : vector<8x128xf32> to vector<8xf32>
    %746 = vector.shape_cast %745 : vector<8xf32> to vector<8x1xf32>
    %cst_364 = arith.constant 1.280000e+02 : f32
    %747 = vector.broadcast %cst_364 : f32 to vector<8x1xf32>
    %748 = arith.divf %746, %747 : vector<8x1xf32>
    %749 = vector.broadcast %748 : vector<8x1xf32> to vector<8x128xf32>
    %750 = arith.subf %740, %749 : vector<8x128xf32>
    %751 = arith.mulf %750, %750 : vector<8x128xf32>
    %cst_365 = arith.constant dense<0.000000e+00> : vector<8xf32>
    %752 = vector.multi_reduction <add>, %751, %cst_365 [1] : vector<8x128xf32> to vector<8xf32>
    %753 = vector.shape_cast %752 : vector<8xf32> to vector<8x1xf32>
    %cst_366 = arith.constant 1.280000e+02 : f32
    %754 = vector.broadcast %cst_366 : f32 to vector<8x1xf32>
    %755 = arith.divf %753, %754 : vector<8x1xf32>
    %756 = vector.broadcast %748 : vector<8x1xf32> to vector<8x128xf32>
    %757 = arith.subf %740, %756 : vector<8x128xf32>
    %cst_367 = arith.constant 9.99999974E-6 : f32
    %758 = vector.broadcast %cst_367 : f32 to vector<8x1xf32>
    %759 = arith.addf %755, %758 : vector<8x1xf32>
    %760 = math.rsqrt %759 : vector<8x1xf32>
    %761 = vector.broadcast %760 : vector<8x1xf32> to vector<8x128xf32>
    %762 = arith.mulf %757, %761 : vector<8x128xf32>
    %763 = vector.broadcast %742 : vector<1x128xf32> to vector<8x128xf32>
    %764 = arith.mulf %762, %763 : vector<8x128xf32>
    %765 = vector.broadcast %744 : vector<1x128xf32> to vector<8x128xf32>
    %766 = arith.addf %764, %765 : vector<8x128xf32>
    %c0_368 = arith.constant 0 : index
    %c0_369 = arith.constant 0 : index
    %767 = vector.load %arg16[%c0_368, %c0_369] : memref<1x128xf32, #tpu.memory_space<vmem>>, vector<1x128xf32>
    %768 = vector.broadcast %767 : vector<1x128xf32> to vector<8x128xf32>
    %769 = arith.mulf %766, %768 : vector<8x128xf32>
    %cst_370 = arith.constant dense<0.000000e+00> : vector<8xf32>
    %770 = vector.multi_reduction <add>, %769, %cst_370 [1] : vector<8x128xf32> to vector<8xf32>
    %771 = vector.shape_cast %770 : vector<8xf32> to vector<1x8xf32>
    %c0_371 = arith.constant 0 : index
    %c0_372 = arith.constant 0 : index
    %772 = vector.load %arg17[%c0_371, %c0_372] : memref<1x1xf32, #tpu.memory_space<vmem>>, vector<1x1xf32>
    %773 = vector.broadcast %772 : vector<1x1xf32> to vector<1x8xf32>
    %774 = arith.addf %771, %773 : vector<1x8xf32>
    %775 = vector.shape_cast %774 : vector<1x8xf32> to vector<1x1x8xf32>
    %c0_373 = arith.constant 0 : index
    %c0_374 = arith.constant 0 : index
    %c0_375 = arith.constant 0 : index
    %776 = vector.load %arg18[%c0_373, %c0_374, %c0_375] : memref<1x1x8xf32, #tpu.memory_space<vmem>>, vector<1x1x8xf32>
    tpu.vector_store %arg18[%c0_373, %c0_374, %c0_375], %775 {strides = array<i32>} : memref<1x1x8xf32, #tpu.memory_space<vmem>>, vector<1x1x8xf32>,
    return
  }
  func.func @transform_0(%arg0: i32) -> (i32, i32, i32) {
    %c0_i32 = arith.constant 0 : i32
    %c0_i32_0 = arith.constant 0 : i32
    %c0_i32_1 = arith.constant 0 : i32
    return %arg0, %c0_i32, %c0_i32_0 : i32, i32, i32
  }
  func.func @transform_1(%arg0: i32) -> (i32, i32) {
    %c0_i32 = arith.constant 0 : i32
    %c0_i32_0 = arith.constant 0 : i32
    %c0_i32_1 = arith.constant 0 : i32
    return %c0_i32, %c0_i32_0 : i32, i32
  }
  func.func @transform_2(%arg0: i32) -> (i32, i32) {
    %c0_i32 = arith.constant 0 : i32
    %c0_i32_0 = arith.constant 0 : i32
    %c0_i32_1 = arith.constant 0 : i32
    return %c0_i32, %c0_i32_0 : i32, i32
  }
  func.func @transform_3(%arg0: i32) -> (i32, i32, i32) {
    %c0_i32 = arith.constant 0 : i32
    %c0_i32_0 = arith.constant 0 : i32
    %c0_i32_1 = arith.constant 0 : i32
    %c0_i32_2 = arith.constant 0 : i32
    return %c0_i32, %c0_i32_0, %c0_i32_1 : i32, i32, i32
  }
  func.func @transform_4(%arg0: i32) -> (i32, i32, i32) {
    %c0_i32 = arith.constant 0 : i32
    %c0_i32_0 = arith.constant 0 : i32
    %c0_i32_1 = arith.constant 0 : i32
    %c0_i32_2 = arith.constant 0 : i32
    return %c0_i32, %c0_i32_0, %c0_i32_1 : i32, i32, i32
  }
  func.func @transform_5(%arg0: i32) -> (i32, i32, i32) {
    %c0_i32 = arith.constant 0 : i32
    %c0_i32_0 = arith.constant 0 : i32
    %c0_i32_1 = arith.constant 0 : i32
    %c0_i32_2 = arith.constant 0 : i32
    return %c0_i32, %c0_i32_0, %c0_i32_1 : i32, i32, i32
  }
  func.func @transform_6(%arg0: i32) -> (i32, i32, i32) {
    %c0_i32 = arith.constant 0 : i32
    %c0_i32_0 = arith.constant 0 : i32
    %c0_i32_1 = arith.constant 0 : i32
    %c0_i32_2 = arith.constant 0 : i32
    return %c0_i32, %c0_i32_0, %c0_i32_1 : i32, i32, i32
  }
  func.func @transform_7(%arg0: i32) -> (i32, i32, i32) {
    %c0_i32 = arith.constant 0 : i32
    %c0_i32_0 = arith.constant 0 : i32
    %c0_i32_1 = arith.constant 0 : i32
    %c0_i32_2 = arith.constant 0 : i32
    return %c0_i32, %c0_i32_0, %c0_i32_1 : i32, i32, i32
  }
  func.func @transform_8(%arg0: i32) -> (i32, i32, i32) {
    %c0_i32 = arith.constant 0 : i32
    %c0_i32_0 = arith.constant 0 : i32
    %c0_i32_1 = arith.constant 0 : i32
    %c0_i32_2 = arith.constant 0 : i32
    return %c0_i32, %c0_i32_0, %c0_i32_1 : i32, i32, i32
  }
  func.func @transform_9(%arg0: i32) -> (i32, i32, i32) {
    %c0_i32 = arith.constant 0 : i32
    %c0_i32_0 = arith.constant 0 : i32
    %c0_i32_1 = arith.constant 0 : i32
    %c0_i32_2 = arith.constant 0 : i32
    return %c0_i32, %c0_i32_0, %c0_i32_1 : i32, i32, i32
  }
  func.func @transform_10(%arg0: i32) -> (i32, i32, i32) {
    %c0_i32 = arith.constant 0 : i32
    %c0_i32_0 = arith.constant 0 : i32
    %c0_i32_1 = arith.constant 0 : i32
    %c0_i32_2 = arith.constant 0 : i32
    return %c0_i32, %c0_i32_0, %c0_i32_1 : i32, i32, i32
  }
  func.func @transform_11(%arg0: i32) -> (i32, i32, i32) {
    %c0_i32 = arith.constant 0 : i32
    %c0_i32_0 = arith.constant 0 : i32
    %c0_i32_1 = arith.constant 0 : i32
    %c0_i32_2 = arith.constant 0 : i32
    return %c0_i32, %c0_i32_0, %c0_i32_1 : i32, i32, i32
  }
  func.func @transform_12(%arg0: i32) -> (i32, i32, i32) {
    %c0_i32 = arith.constant 0 : i32
    %c0_i32_0 = arith.constant 0 : i32
    %c0_i32_1 = arith.constant 0 : i32
    %c0_i32_2 = arith.constant 0 : i32
    return %c0_i32, %c0_i32_0, %c0_i32_1 : i32, i32, i32
  }
  func.func @transform_13(%arg0: i32) -> (i32, i32, i32) {
    %c0_i32 = arith.constant 0 : i32
    %c0_i32_0 = arith.constant 0 : i32
    %c0_i32_1 = arith.constant 0 : i32
    %c0_i32_2 = arith.constant 0 : i32
    return %c0_i32, %c0_i32_0, %c0_i32_1 : i32, i32, i32
  }
  func.func @transform_14(%arg0: i32) -> (i32, i32, i32) {
    %c0_i32 = arith.constant 0 : i32
    %c0_i32_0 = arith.constant 0 : i32
    %c0_i32_1 = arith.constant 0 : i32
    %c0_i32_2 = arith.constant 0 : i32
    return %c0_i32, %c0_i32_0, %c0_i32_1 : i32, i32, i32
  }
  func.func @transform_15(%arg0: i32) -> (i32, i32) {
    %c0_i32 = arith.constant 0 : i32
    %c0_i32_0 = arith.constant 0 : i32
    %c0_i32_1 = arith.constant 0 : i32
    return %c0_i32, %c0_i32_0 : i32, i32
  }
  func.func @transform_16(%arg0: i32) -> (i32, i32) {
    %c0_i32 = arith.constant 0 : i32
    %c0_i32_0 = arith.constant 0 : i32
    %c0_i32_1 = arith.constant 0 : i32
    return %c0_i32, %c0_i32_0 : i32, i32
  }
  func.func @transform_17(%arg0: i32) -> (i32, i32, i32) {
    %c0_i32 = arith.constant 0 : i32
    %c0_i32_0 = arith.constant 0 : i32
    %c0_i32_1 = arith.constant 0 : i32
    return %arg0, %c0_i32, %c0_i32_0 : i32, i32, i32
  }
}

</mosaic_0001>

<bundles_post_ra>
// kernel: tpu_custom_call.1
= control target key start
LH: loop header
LB: loop body
LE: loop exit
PB: predicated region body
PF: predicated region fallthrough
CT: control target
= control target key end

     0   :  { %s16832_s0 = inlined_call_operand.hbm [shape: f32[2,8,16], index: 0, kind: input, shape index: {}]   ;;  %s16833_s1 = inlined_call_operand.hbm [shape: bf16[16,128], index: 1, kind: input, shape index: {}]   ;;  %s16834_s2 = inlined_call_operand.hbm [shape: f32[1,128], index: 2, kind: input, shape index: {}]   ;;  %s16835_s3 = inlined_call_operand.hbm [shape: bf16[3,128,384], index: 3, kind: input, shape index: {}]   ;;  %s16836_s4 = inlined_call_operand.hbm [shape: f32[3,1,384], index: 4, kind: input, shape index: {}]   ;;  %s16837_s5 = inlined_call_operand.hbm [shape: bf16[3,128,128], index: 5, kind: input, shape index: {}]   ;;  %s16838_s6 = inlined_call_operand.hbm [shape: f32[3,1,128], index: 6, kind: input, shape index: {}]   ;;  %s16839_s7 = inlined_call_operand.hbm [shape: bf16[3,128,2048], index: 7, kind: input, shape index: {}]   ;;  %s16840_s8 = inlined_call_operand.hbm [shape: f32[3,1,2048], index: 8, kind: input, shape index: {}]   ;;  %s16841_s9 = inlined_call_operand.hbm [shape: bf16[3,2048,128], index: 9, kind: input, shape index: {}]   ;;  %s16842_s10 = inlined_call_operand.hbm [shape: f32[3,1,128], index: 10, kind: input, shape index: {}]   ;;  %s16843_s11 = inlined_call_operand.hbm [shape: f32[3,1,128], index: 11, kind: input, shape index: {}]   ;;  %s16844_s12 = inlined_call_operand.hbm [shape: f32[3,1,128], index: 12, kind: input, shape index: {}]   ;;  %s16845_s13 = inlined_call_operand.hbm [shape: f32[3,1,128], index: 13, kind: input, shape index: {}]   ;;  %s16846_s14 = inlined_call_operand.hbm [shape: f32[3,1,128], index: 14, kind: input, shape index: {}]   ;;  %s16847_s15 = inlined_call_operand.hbm [shape: f32[1,128], index: 15, kind: input, shape index: {}]   ;;  %s16848_s16 = inlined_call_operand.<no memory space> [shape: f32[1,1], index: 16, kind: input, shape index: {}]   ;;  %s16849_s17 = inlined_call_operand.hbm [shape: f32[2,1,8], index: 17, kind: output, shape index: {}]  }
   0x1   :  { %16857 = sst [smem:[#allocation45_spill]] %s16832_s0  ;;  %v22_v0 = vstv %s16848_s16 }
   0x2   :  { %16858 = sst [smem:[#allocation46_spill]] %s16833_s1  ;;  %23 = vst [vmem:[#allocation3] sm:$0x1] %v22_v0 }
   0x3   :  { %16859 = sst [smem:[#allocation47_spill]] %s16834_s2 }
   0x4   :  { %16860 = sst [smem:[#allocation48_spill]] %s16835_s3 }
   0x5   :  { %16861 = sst [smem:[#allocation49_spill]] %s16836_s4 }
   0x6   :  { %16862 = sst [smem:[#allocation50_spill]] %s16837_s5 }
   0x7   :  { %16863 = sst [smem:[#allocation51_spill]] %s16847_s15 }
   0x8   :  { %16864 = sst [smem:[#allocation52_spill]] %s16849_s17 }
   0x9   :  { %24 = vsyncpa [#allocation5], 0 }
   0xa   :  { %26 = vsyncpa [#allocation5 + $0x1], 0 }
   0xb   :  { %27 = vsyncpa [#allocation8], 0 }
   0xc   :  { %28 = vsyncpa [#allocation11], 0 }
   0xd   :  { %29 = vsyncpa [#allocation14], 0 }
   0xe   :  { %30 = vsyncpa [#allocation17], 0 }
   0xf   :  { %31 = vsyncpa [#allocation20], 0 }
  0x10   :  { %32 = vsyncpa [#allocation23], 0 }
  0x11   :  { %33 = vsyncpa [#allocation26], 0 }
  0x12   :  { %34 = vsyncpa [#allocation29], 0 }
  0x13   :  { %35 = vsyncpa [#allocation6], 0 }
  0x14   :  { %37 = vsyncpa [#allocation6 + $0x1], 0  ;;  %s15973_s26 = smov 0   ;;  %s15975_s27 = smov 0  }
  0x15   :  { %s15977_s28 = smov 0   ;;  %s15979_s16 = smov 0  }
  0x16 LB: > { %16865 = sst [smem:[#allocation41_spill]] %s15832_s26  ;;  %s15997_s19 = sadd.s32 4294967295, %s15844_s16   ;;  %s15844_s16 = sphi %s15979_s16, %s16895_s16   ;;  %s15840_s28 = sphi %s15977_s28, %s16894_s28   ;;  %s15836_s27 = sphi %s15975_s27, %s16893_s27   ;;  %s15832_s26 = sphi %s15973_s26, %s16891_s26  }
  0x17   : > { %16866 = sst [smem:[#allocation42_spill]] %s15836_s27  ;;  %p10506_p0 = scmp.ge.s32.totalorder %s15844_s16, 1 }
  0x18   : > { %s16867_s30 = sld [smem:[#allocation46_spill]]  ;;  %p64_p1 = scmp.eq.s32.totalorder %s15997_s19, 0 }
  0x19   : > { %16868 = sst [smem:[#allocation43_spill]] %s15997_s19  ;;  %p436_p2 = scmp.lt.s32.totalorder %s15844_s16, 3 }
  0x1a   : > { %s15846_s20 = smov [#allocation7]   ;;  %s16871_s3 = sld [smem:[#allocation48_spill]] }
  0x1b   : > { %p16002_p3 = pnand %p10506_p0, %p436_p2  ;;  %s449_s21 = sshll.u32 %s15846_s20, 4  ;;  %s450_s21 = int_to_ptr.vmem [resolvable:$true] %s449_s21 }
  0x1c   : > { %s15847_s29 = smov [#allocation10]   ;;  %s15849_s20 = smov 4  }
  0x1d   : > { %s16869_s1 = scalar_select %p16002_p3, 1, 0 }
  0x1e   : > { %s447_s18 = sshll.u32 %s16867_s30, 4  ;;  %p14982_p4 = pneg %p16002_p3  ;;  %s448_s18 = int_to_ptr.hbm [resolvable:$true] %s447_s18 }
  0x1f   : > { %16870 = sst [smem:[#allocation44_spill]] %s16869_s1  ;;  %s475_s0 = sshll.u32 %s15847_s29, 4  ;;  %s476_s0 = int_to_ptr.vmem [resolvable:$true] %s475_s0 }
  0x20   : > { %s473_s24 = sshll.u32 %s16871_s3, 4  ;;  %p16014_p6 = pnand %p14982_p4, %p64_p1  ;;  %s474_s24 = int_to_ptr.hbm [resolvable:$true] %s473_s24 }
  0x21   : > { %s15848_s30 = smov 64   ;;  %s15850_s17 = smov 192  }
  0x22   : > { %14985 = dma.hbm_to_vmem [thread:$0]  (!%p16014_p6), %s448_s18, 128, %s450_s21, [#allocation8], %s15848_s30, %s15848_s30, %s15849_s20  }
  0x23   : > { %s15851_s22 = smov 12   ;;  %s16873_s5 = sld [smem:[#allocation50_spill]] }
  0x24   : > { %14991 = dma.hbm_to_vmem [thread:$0]  (!%p16014_p6), %s474_s24, 9216, %s476_s0, [#allocation11], %s15850_s17, %s15850_s17, %s15851_s22  }
  0x25   : > { %s15852_s19 = smov [#allocation13]   ;;  %s529_s27 = sshll.u32 %s16839_s7, 4  ;;  %s530_s27 = int_to_ptr.hbm [resolvable:$true] %s529_s27 }
  0x26   : > { %s503_s26 = sshll.u32 %s15852_s19, 4  ;;  %s15853_s18 = smov [#allocation16]   ;;  %s504_s26 = int_to_ptr.vmem [resolvable:$true] %s503_s26 }
  0x27   : > { %s531_s21 = sshll.u32 %s15853_s18, 4  ;;  %s557_s3 = sshll.u32 %s16841_s9, 4  ;;  %s532_s21 = int_to_ptr.vmem [resolvable:$true] %s531_s21  ;;  %s558_s3 = int_to_ptr.hbm [resolvable:$true] %s557_s3 }
  0x28   : > { %s15854_s0 = smov 1024   ;;  %s15855_s19 = smov [#allocation19]  }
  0x29   : > { %s501_s1 = sshll.u32 %s16873_s5, 4  ;;  %s559_s22 = sshll.u32 %s15855_s19, 4  ;;  %s502_s1 = int_to_ptr.hbm [resolvable:$true] %s501_s1  ;;  %s560_s22 = int_to_ptr.vmem [resolvable:$true] %s559_s22 }
  0x2a   : > { %14997 = dma.hbm_to_vmem [thread:$0]  (!%p16014_p6), %s502_s1, 3072, %s504_s26, [#allocation14], %s15848_s30, %s15848_s30, %s15849_s20  }
  0x2b   : > { %15003 = dma.hbm_to_vmem [thread:$0]  (!%p16014_p6), %s530_s27, 49152, %s532_s21, [#allocation17], %s15854_s0, %s15854_s0, %s15848_s30  }
  0x2c   : > { %15009 = dma.hbm_to_vmem [thread:$0]  (!%p16014_p6), %s558_s3, 49152, %s560_s22, [#allocation20], %s15848_s30, %s15848_s30, %s15849_s20  }
  0x2d   : > { %s585_s1 = sshll.u32 %s16843_s11, 4  ;;  %s15856_s23 = smov [#allocation22]   ;;  %s586_s1 = int_to_ptr.hbm [resolvable:$true] %s585_s1 }
  0x2e   : > { %s587_s29 = sshll.u32 %s15856_s23, 4  ;;  %s613_s24 = sshll.u32 %s16845_s13, 4  ;;  %s588_s29 = int_to_ptr.vmem [resolvable:$true] %s587_s29  ;;  %s614_s24 = int_to_ptr.hbm [resolvable:$true] %s613_s24 }
  0x2f   : > { %s15857_s27 = smov 16   ;;  %s15858_s21 = smov 1  }
  0x30   : > { %15015 = dma.hbm_to_vmem [thread:$0]  (!%p16014_p6), %s586_s1, 48, %s588_s29, [#allocation23], %s15857_s27, %s15857_s27, %s15858_s21  }
  0x31   : > { %s15859_s30 = smov [#allocation25]   ;;  %s16874_s2 = sld [smem:[#allocation47_spill]] }
  0x32   : > { %s615_s20 = sshll.u32 %s15859_s30, 4  ;;  %s16875_s4 = sld [smem:[#allocation49_spill]]  ;;  %s616_s20 = int_to_ptr.vmem [resolvable:$true] %s615_s20 }
  0x33   : > { %15021 = dma.hbm_to_vmem [thread:$0]  (!%p16014_p6), %s614_s24, 48, %s616_s20, [#allocation26], %s15857_s27, %s15857_s27, %s15858_s21  }
  0x34   : > { %s15860_s1 = smov [#allocation9]   ;;  %s15861_s29 = smov [#allocation12]  }
  0x35   : > { %s464_s23 = sshll.u32 %s15860_s1, 4  ;;  %s489_s18 = sshll.u32 %s15861_s29, 4  ;;  %s465_s23 = int_to_ptr.vmem [resolvable:$true] %s464_s23  ;;  %s490_s18 = int_to_ptr.vmem [resolvable:$true] %s489_s18 }
  0x36   : > { %s15862_s17 = smov 48   ;;  %s15863_s30 = smov 3  }
  0x37   : > { %s462_s19 = sshll.u32 %s16874_s2, 4  ;;  %s515_s3 = sshll.u32 %s16838_s6, 4  ;;  %s463_s19 = int_to_ptr.hbm [resolvable:$true] %s462_s19  ;;  %s516_s3 = int_to_ptr.hbm [resolvable:$true] %s515_s3 }
  0x38   : > { %s487_s26 = sshll.u32 %s16875_s4, 4  ;;  %s15864_s0 = smov [#allocation15]   ;;  %s488_s26 = int_to_ptr.hbm [resolvable:$true] %s487_s26 }
  0x39   : > { %14988 = dma.hbm_to_vmem [thread:$0]  (!%p16014_p6), %s463_s19, 16, %s465_s23, [#allocation8]  }
  0x3a   : > { %14994 = dma.hbm_to_vmem [thread:$0]  (!%p16014_p6), %s488_s26, 144, %s490_s18, [#allocation11], %s15862_s17, %s15862_s17, %s15863_s30  }
  0x3b   : > { %s517_s22 = sshll.u32 %s15864_s0, 4  ;;  %s543_s19 = sshll.u32 %s16840_s8, 4  ;;  %s518_s22 = int_to_ptr.vmem [resolvable:$true] %s517_s22  ;;  %s544_s19 = int_to_ptr.hbm [resolvable:$true] %s543_s19 }
  0x3c   : > { %15000 = dma.hbm_to_vmem [thread:$0]  (!%p16014_p6), %s516_s3, 48, %s518_s22, [#allocation14], %s15857_s27, %s15857_s27, %s15858_s21  }
  0x3d   : > { %s15865_s26 = smov [#allocation18]   ;;  %s571_s17 = sshll.u32 %s16842_s10, 4  ;;  %s572_s17 = int_to_ptr.hbm [resolvable:$true] %s571_s17 }
  0x3e   : > { %s545_s23 = sshll.u32 %s15865_s26, 4  ;;  %s15866_s30 = smov 256   ;;  %s546_s23 = int_to_ptr.vmem [resolvable:$true] %s545_s23 }
  0x3f   : > { %15006 = dma.hbm_to_vmem [thread:$0]  (!%p16014_p6), %s544_s19, 768, %s546_s23, [#allocation17], %s15866_s30, %s15866_s30, %s15857_s27  }
  0x40   : > { %s15867_s24 = smov [#allocation21]   ;;  %s599_s3 = sshll.u32 %s16844_s12, 4  ;;  %s600_s3 = int_to_ptr.hbm [resolvable:$true] %s599_s3 }
  0x41   : > { %s573_s20 = sshll.u32 %s15867_s24, 4  ;;  %s627_s19 = sshll.u32 %s16846_s14, 4  ;;  %s574_s20 = int_to_ptr.vmem [resolvable:$true] %s573_s20  ;;  %s628_s19 = int_to_ptr.hbm [resolvable:$true] %s627_s19 }
  0x42   : > { %15012 = dma.hbm_to_vmem [thread:$0]  (!%p16014_p6), %s572_s17, 48, %s574_s20, [#allocation20], %s15857_s27, %s15857_s27, %s15858_s21  }
  0x43   : > { %s15868_s26 = smov [#allocation24]   ;;  %s16876_s29 = sld [smem:[#allocation42_spill]] }
  0x44   : > { %s601_s23 = sshll.u32 %s15868_s26, 4  ;;  %s15869_s18 = smov [#allocation27]   ;;  %s602_s23 = int_to_ptr.vmem [resolvable:$true] %s601_s23 }
  0x45   : > { %15018 = dma.hbm_to_vmem [thread:$0]  (!%p16014_p6), %s600_s3, 48, %s602_s23, [#allocation23], %s15857_s27, %s15857_s27, %s15858_s21  }
  0x46   : > { %s629_s17 = sshll.u32 %s15869_s18, 4  ;;  %s16877_s20 = sld [smem:[#allocation51_spill]]  ;;  %s630_s17 = int_to_ptr.vmem [resolvable:$true] %s629_s17 }
  0x47   : > { %s16878_s0 = sld [smem:[#allocation41_spill]]  ;;  %s15870_s3 = smov [#allocation28]  }
  0x48   : > { %s16879_s22 = sld [smem:[#allocation43_spill]]  ;;  %s644_s1 = sshll.u32 %s15870_s3, 4  ;;  %s645_s1 = int_to_ptr.vmem [resolvable:$true] %s644_s1 }
  0x49   : > { %15024 = dma.hbm_to_vmem [thread:$0]  (!%p16014_p6), %s628_s19, 48, %s630_s17, [#allocation26], %s15857_s27, %s15857_s27, %s15858_s21  }
  0x4a   : > { %s10505_s26 = sadd.s32 4294967294, %s15844_s16   ;;  %s16108_s23 = sadd.s32 1, %s15844_s16  }
  0x4b   : > { %s50_s18 = sadd.s32 1, %s15840_s28  ;;  %s47_s30 = ssub.s32 %s15844_s16, %s16108_s23 }
  0x4c   : > { %s642_s15 = sshll.u32 %s16877_s20, 4  ;;  %p57_p7 = scmp.ne.s32.totalorder %s15840_s28, %s16876_s29  ;;  %s643_s15 = int_to_ptr.hbm [resolvable:$true] %s642_s15 }
  0x4d   : > { %15027 = dma.hbm_to_vmem [thread:$0]  (!%p16014_p6), %s643_s15, 16, %s645_s1, [#allocation29]  }
  0x4e   : > { %p48_p8 = scmp.eq.s32.totalorder %s47_s30, 0  ;;  %p58_p9 = scmp.eq.s32.totalorder %s15844_s16, 0 }
  0x4f   : > { %p63_p10 = scmp.ne.s32.totalorder %s16876_s29, %s16878_s0  ;;  %p423_p11 = scmp.eq.s32.totalorder %s16879_s22, 1 }
  0x50   : > { %s16120_s27 = scalar_select %p48_p8, %s15840_s28, %s50_s18  }
  0x51   : > { %p16124_p12 = por %p64_p1, %p63_p10  ;;  %p16128_p13 = por %p423_p11, %p57_p7 }
  0x52   : > { %p429_p0 = scmp.eq.s32.totalorder %s10505_s26, 1  ;;  %p59_p2 = por %p58_p9, %p57_p7 }
  0x53   : > { %s658_s19 = sand.u32 1, %s15840_s28   ;;  %p15051_p6 = scmp.lt.s32.totalorder %s15844_s16, 2 }
  0x54   : > { %p16133_p4 = por %p429_p0, %p63_p10  ;;  %s10523_s29 = sshll.u32 %s658_s19, 3 }
  0x55   : > { %s10524_s24 = sshll.u32 %s15844_s16, 3  ;;  %s16883_s15 = sld [smem:[#allocation45_spill]] }
  0x56   : > { %s662_s1 = scalar_lea.vmem [#allocation4], %s10523_s29  ;;  %p16142_p8 = pnand %p15051_p6, %p59_p2 }
  0x57   : > { %s670_s18 = sshll.u32 %s662_s1, 4  ;;  %s659_s30 = scalar_lea.sflag [#allocation5], %s658_s19  ;;  %s671_s18 = int_to_ptr.vmem [resolvable:$true] %s670_s18 }
  0x58   : > { %p15720_p9 = pneg %p16142_p8 }
  0x5b   : > { %s666_s22 = scalar_lea.hbm %s16883_s15, %s10524_s24  ;;  %s15723_s29 = scalar_lea.hbm %s16883_s15, 16 }
  0x5c   : > { %s668_s3 = sshll.u32 %s666_s22, 4  ;;  %s669_s3 = int_to_ptr.hbm [resolvable:$true] %s668_s3 }
  0x5d   : > { %s15716_s2 = sshra.s32 %s669_s3, 4  ;;  %s15717_s2 = int_to_ptr.hbm [resolvable:$true] %s15716_s2 }
  0x5e   : > { %s15718_s4 = scalar_lea.hbm %s15717_s2, 8  ;;  %p15724_p0 = scmp.lt.s32.totalorder %s15717_s2, %s16883_s15 }
  0x5f   : > { %p15719_p7 = scmp.ne.s32.totalorder %s15717_s2, %s15718_s4  ;;  %p15725_p2 = scmp.lt.s32.totalorder %s15723_s29, %s15718_s4 }
  0x61   : > { %p15721_p10 = pnand %p15720_p9, %p15719_p7  ;;  %p15726_p6 = por %p15725_p2, %p15724_p0 }
  0x63   : > { %p15722_p11 = pneg %p15721_p10 }
  0x65   : > { %p15727_p5 = pnand %p15726_p6, %p15722_p11 }
  0x67   : > { %15730 = shalt.err (!%p15727_p5)
}
  0x68   : > { %15031 = dma.hbm_to_vmem [thread:$0]  (!%p16142_p8), %s669_s3, 128, %s671_s18, %s659_s30  }
  0x69   : > { %679 = sbr.rel (%p16002_p3) target bundleno = 6205 (0x183d), region = 88  ;;  %s16886_s1 = sld [smem:[#allocation42_spill]] (!%p16002_p3) }
  0x6f   : > { %s16159_s5 = sand.u32 1, %s16886_s1  }
  0x70   : > { %s10526_s24 = sshll.u32 %s16159_s5, 3  ;;  %s682_s20 = scalar_lea.sflag [#allocation5], %s16159_s5 }
  0x71   : > { %s685_s0 = scalar_lea.vmem [#allocation4], %s10526_s24 }
  0x72   : > { %15791 = dma.done.wait (%p16124_p12), %s682_s20, 128  }
  0x73   : > { %15793 = vsyncadd (%p16124_p12), %s682_s20, 4294967168  ;;  %s16887_s2 = sld [smem:[#allocation43_spill]] }
  0x74   : > { %15795 = dma.done.wait (%p64_p1), [#allocation8], 144  }
  0x75   : > { %15797 = vsyncadd (%p64_p1), [#allocation8], 4294967152 }
  0x76   : > { %15799 = dma.done.wait (%p64_p1), [#allocation11], 9360  }
  0x77   : > { %15801 = vsyncadd (%p64_p1), [#allocation11], 4294957936 }
  0x78   : > { %15803 = dma.done.wait (%p64_p1), [#allocation14], 3120  }
  0x79   : > { %15805 = vsyncadd (%p64_p1), [#allocation14], 4294964176 }
  0x7a   : > { %15807 = dma.done.wait (%p64_p1), [#allocation17], 49920  }
  0x7b   : > { %15809 = vsyncadd (%p64_p1), [#allocation17], 4294917376 }
  0x7c   : > { %15811 = dma.done.wait (%p64_p1), [#allocation20], 49200  }
  0x7d   : > { %15813 = vsyncadd (%p64_p1), [#allocation20], 4294918096 }
  0x7e   : > { %15815 = dma.done.wait (%p64_p1), [#allocation23], 96  }
  0x7f   : > { %15817 = vsyncadd (%p64_p1), [#allocation23], 4294967200 }
  0x80   : > { %15819 = dma.done.wait (%p64_p1), [#allocation26], 96  }
  0x81   : > { %15821 = vsyncadd (%p64_p1), [#allocation26], 4294967200 }
  0x82   : > { %15823 = dma.done.wait (%p64_p1), [#allocation29], 16  }
  0x83   : > { %15825 = vsyncadd (%p64_p1), [#allocation29], 4294967280  ;;  %v14053_v1 = vld [vmem:[#allocation7] sm:$0xff]  ;;  %v812_v2 = vld [vmem:[%s685_s0] sm:$0xff]  ;;  %vm826_vm0 = vcmask 130048   ;;  %vm1089_vm1 = vcmask 1043456  }
  0x84   : > { %v10633_v3 = vld [vmem:[#allocation10 + $0xa8] sm:$0xf]  ;;  %v813_v4 = vpack.c.bf16 %v812_v2, %v812_v2  ;;  %v14076_v5 = vld [vmem:[#allocation10 + $0xb0] sm:$0xf0]  ;;  %v14075_v6 = vld [vmem:[#allocation10 + $0xac] sm:$0xf]  ;;  %837 = vmatpush.bf16.msra.mxu0 %v14053_v1 }
  0x85   : > { %v10635_v7 = vld [vmem:[#allocation10 + $0xb4] sm:$0xf0]  ;;  %v10634_v8 = vor.u32 %v14076_v5, %v10633_v3  ;;  %v10641_v10 = vld [vmem:[#allocation10 + $0xb0] sm:$0xf]  ;;  %v14077_v11 = vld [vmem:[#allocation10 + $0xb8] sm:$0xf0] }
  0x86   : > { %v10638_v9 = vor.u32 %v14075_v6, %v10635_v7  ;;  %v10621_v12 = vld [vmem:[#allocation10 + $0x90] sm:$0xf]  ;;  %v10642_v13 = vor.u32 %v14077_v11, %v10641_v10  ;;  %v14073_v14 = vld [vmem:[#allocation10 + $0x98] sm:$0xf0]  ;;  %v14072_v15 = vld [vmem:[#allocation10 + $0x94] sm:$0xf] }
  0x87   : > { %v10623_v16 = vld [vmem:[#allocation10 + $0x9c] sm:$0xf0]  ;;  %1012 = vmatpush.bf16.msra.mxu1 %v10634_v8  ;;  %v10622_v17 = vor.u32 %v14073_v14, %v10621_v12  ;;  %v10629_v19 = vld [vmem:[#allocation10 + $0x98] sm:$0xf]  ;;  %v14074_v20 = vld [vmem:[#allocation10 + $0xa0] sm:$0xf0]  ;;  %10546 = vmatmul.msk.bf16.vlgmr.msra.gmra.mxu0 %vm826_vm0, %v813_v4 }
  0x88   : > { %1025 = vmatpush.bf16.msra.mxu2 %v10638_v9  ;;  %v10626_v18 = vor.u32 %v14072_v15, %v10623_v16  ;;  %v10609_v21 = vld [vmem:[#allocation10 + $0x78] sm:$0xf]  ;;  %1038 = vmatpush.bf16.msra.mxu3 %v10642_v13  ;;  %v10630_v22 = vor.u32 %v14074_v20, %v10629_v19  ;;  %v14070_v23 = vld [vmem:[#allocation10 + $0x80] sm:$0xf0]  ;;  %v14069_v24 = vld [vmem:[#allocation10 + $0x7c] sm:$0xf] }
  0x89   : > { %v10611_v25 = vld [vmem:[#allocation10 + $0x84] sm:$0xf0]  ;;  %v10617_v26 = vld [vmem:[#allocation10 + $0x80] sm:$0xf]  ;;  %v14071_v27 = vld [vmem:[#allocation10 + $0x88] sm:$0xf0]  ;;  %v10610_v28 = vor.u32 %v14070_v23, %v10609_v21 }
  0x8a   : > { %v10614_v29 = vor.u32 %v14069_v24, %v10611_v25  ;;  %v10597_v30 = vld [vmem:[#allocation10 + $0x60] sm:$0xf]  ;;  %v10618_v31 = vor.u32 %v14071_v27, %v10617_v26  ;;  %v14067_v32 = vld [vmem:[#allocation10 + $0x68] sm:$0xf0]  ;;  %v14066_v33 = vld [vmem:[#allocation10 + $0x64] sm:$0xf] }
  0x8b   : > { %1013 = vmatpush.bf16.msra.mxu1 %v10622_v17  ;;  %v10599_v34 = vld [vmem:[#allocation10 + $0x6c] sm:$0xf0]  ;;  %v10605_v35 = vld [vmem:[#allocation10 + $0x68] sm:$0xf]  ;;  %v14068_v36 = vld [vmem:[#allocation10 + $0x70] sm:$0xf0]  ;;  %v10598_v37 = vor.u32 %v14067_v32, %v10597_v30 }
  0x8c   : > { %1026 = vmatpush.bf16.msra.mxu2 %v10626_v18  ;;  %1039 = vmatpush.bf16.msra.mxu3 %v10630_v22  ;;  %v10602_v38 = vor.u32 %v14066_v33, %v10599_v34  ;;  %v10585_v39 = vld [vmem:[#allocation10 + $0x48] sm:$0xf]  ;;  %v10606_v40 = vor.u32 %v14068_v36, %v10605_v35  ;;  %v14064_v41 = vld [vmem:[#allocation10 + $0x50] sm:$0xf0]  ;;  %v14063_v42 = vld [vmem:[#allocation10 + $0x4c] sm:$0xf] }
  0x8d   : > { %v10587_v43 = vld [vmem:[#allocation10 + $0x54] sm:$0xf0]  ;;  %v10593_v44 = vld [vmem:[#allocation10 + $0x50] sm:$0xf]  ;;  %v14065_v45 = vld [vmem:[#allocation10 + $0x58] sm:$0xf0]  ;;  %v10586_v50 = vor.u32 %v14064_v41, %v10585_v39 }
  0x8e   : > { %v10573_v46 = vld [vmem:[#allocation10 + $0x30] sm:$0xf]  ;;  %v14061_v47 = vld [vmem:[#allocation10 + $0x38] sm:$0xf0]  ;;  %v14060_v48 = vld [vmem:[#allocation10 + $0x34] sm:$0xf]  ;;  %v10590_v51 = vor.u32 %v14063_v42, %v10587_v43  ;;  %v10594_v54 = vor.u32 %v14065_v45, %v10593_v44 }
  0x8f   : > { %1014 = vmatpush.bf16.msra.mxu1 %v10610_v28  ;;  %v10575_v49 = vld [vmem:[#allocation10 + $0x3c] sm:$0xf0]  ;;  %v10581_v52 = vld [vmem:[#allocation10 + $0x38] sm:$0xf]  ;;  %v14062_v53 = vld [vmem:[#allocation10 + $0x40] sm:$0xf0]  ;;  %v10574_v58 = vor.u32 %v14061_v47, %v10573_v46 }
  0x90   : > { %1027 = vmatpush.bf16.msra.mxu2 %v10614_v29  ;;  %1040 = vmatpush.bf16.msra.mxu3 %v10618_v31  ;;  %v10561_v55 = vld [vmem:[#allocation10 + $0x18] sm:$0xf]  ;;  %v14058_v56 = vld [vmem:[#allocation10 + $0x20] sm:$0xf0]  ;;  %v14057_v57 = vld [vmem:[#allocation10 + $0x1c] sm:$0xf]  ;;  %v10578_v59 = vor.u32 %v14060_v48, %v10575_v49  ;;  %v10582_v60 = vor.u32 %v14062_v53, %v10581_v52 }
  0x91   : > { %v10563_v61 = vld [vmem:[#allocation10 + $0x24] sm:$0xf0]  ;;  %v10569_v62 = vld [vmem:[#allocation10 + $0x20] sm:$0xf]  ;;  %v14059_v63 = vld [vmem:[#allocation10 + $0x28] sm:$0xf0]  ;;  %v10562_v0 = vor.u32 %v14058_v56, %v10561_v55 }
  0x92   : > { %v10566_v1 = vor.u32 %v14057_v57, %v10563_v61  ;;  %v10570_v2 = vor.u32 %v14059_v63, %v10569_v62  ;;  %v10549_v3 = vld [vmem:[#allocation10] sm:$0xf]  ;;  %v14055_v4 = vld [vmem:[#allocation10 + $0x8] sm:$0xf0]  ;;  %v14054_v5 = vld [vmem:[#allocation10 + $0x4] sm:$0xf] }
  0x93   : > { %1015 = vmatpush.bf16.msra.mxu1 %v10598_v37  ;;  %v10550_v6 = vor.u32 %v14055_v4, %v10549_v3  ;;  %v10551_v7 = vld [vmem:[#allocation10 + $0xc] sm:$0xf0]  ;;  %v10557_v8 = vld [vmem:[#allocation10 + $0x8] sm:$0xf]  ;;  %v14056_v9 = vld [vmem:[#allocation10 + $0x10] sm:$0xf0] }
  0x94   : > { %1028 = vmatpush.bf16.msra.mxu2 %v10602_v38  ;;  %1041 = vmatpush.bf16.msra.mxu3 %v10606_v40  ;;  %v10554_v10 = vor.u32 %v14054_v5, %v10551_v7  ;;  %v10558_v11 = vor.u32 %v14056_v9, %v10557_v8  ;;  %v15136_v12 = vld [vmem:[#allocation9] ss:$0 sm:$0xff]  ;;  %v876_v17 = vld [vmem:[#allocation12] sm:$0x7]  ;;  %s15871_s4 = smov 112   ;;  %s15872_s25 = smov 96  }
  0x95   : > { %v878_v18 = vperm.slane %v876_v17, 0  ;;  %v879_v22 = vperm.slane %v876_v17, 1  ;;  %v880_v23 = vperm.slane %v876_v17, 2  ;;  %s15873_s3 = smov 80   ;;  %s15874_s18 = smov 64   ;;  %vm1074_vm2 = vcmask 64512  }
  0x96   : > { %s15875_s26 = smov 48   ;;  %s15876_s30 = smov 32   ;;  %vm1177_vm3 = vcmask 261248   ;;  %vm1239_vm4 = vcmask 392448   ;;  %vm1301_vm5 = vcmask 523648   ;;  %vm1363_vm6 = vcmask 654848  }
  0x97   : > { %1016 = vmatpush.bf16.msra.mxu1 %v10586_v50  ;;  %s15877_s29 = smov 16   ;;  %vm1425_vm7 = vcmask 786048   ;;  %vm1487_vm8 = vcmask 917248   ;;  %vm1549_vm9 = vcmask 1048448   ;;  %s16888_s1 = sld [smem:[#allocation52_spill]] }
  0x98   : > { %1029 = vmatpush.bf16.msra.mxu2 %v10590_v51  ;;  %1042 = vmatpush.bf16.msra.mxu3 %v10594_v54  ;;  %s810_s20 = scalar_lea.vmem [#allocation30], %s16159_s5 }
  0x99   : > { %s10294_s0 = sshll.u32 %s810_s20, 4  ;;  %s10295_s0 = int_to_ptr.vmem [resolvable:$true] %s10294_s0 }
  0x9b   : > { %1017 = vmatpush.bf16.msra.mxu1 %v10574_v58 }
  0x9c   : > { %1030 = vmatpush.bf16.msra.mxu2 %v10578_v59  ;;  %1043 = vmatpush.bf16.msra.mxu3 %v10582_v60 }
  0x9d   : > { %s10292_s24 = scalar_lea.hbm %s16888_s1, %s16887_s2 }
  0x9f   : > { %1018 = vmatpush.bf16.msra.mxu1 %v10562_v0 }
  0xa0   : > { %1031 = vmatpush.bf16.msra.mxu2 %v10566_v1  ;;  %1044 = vmatpush.bf16.msra.mxu3 %v10570_v2 }
  0xa3   : > { %1019 = vmatpush.bf16.msra.mxu1 %v10550_v6 }
  0xa4   : > { %1032 = vmatpush.bf16.msra.mxu2 %v10554_v10  ;;  %1045 = vmatpush.bf16.msra.mxu3 %v10558_v11 }
 0x104   : > { %v839_v13 = vpop.f32.mrf.mxu0 }
 0x105   : > { %v16200_v14 = vadd.f32 %v15136_v12, %v839_v13 }
 0x107   : > { %v843_v15 = vpack.c.bf16 %v16200_v14, %v16200_v14 }
 0x109   : > { %1020 = vmatmul.bf16.vlgmr.msra.gmra.mxu1 %v843_v15  ;;  %1033 = vmatmul.bf16.vlgmr.msra.gmra.mxu2 %v843_v15 }
 0x10a   : > { %1046 = vmatmul.bf16.vlgmr.msra.gmra.mxu3 %v843_v15 }
 0x10c   : > { %v841_v16 = vpop.f32.mrf.mxu0 }
 0x186   : > { %v1021_v19 = vpop.f32.mrf.mxu1 }
 0x187   : > { %v1022_v20 = vadd.f32 %v1021_v19, %v878_v18 }
 0x189   : > { %v1051_v21 = vmul.f32 0.25, %v1022_v20 }
 0x18b   : > { %v1052_v24 = vpack.c.bf16 %v1051_v21, %v1051_v21 }
 0x18c   : > { %v1034_v25 = vpop.f32.mrf.mxu2 }
 0x18d   : > { %v1109_v26 = vunpack.c.l.b16 %v1052_v24  ;;  %v1035_v27 = vadd.f32 %v1034_v25, %v879_v22  ;;  %v1047_v28 = vpop.f32.mrf.mxu3 }
 0x18e   : > { %v1048_v29 = vadd.f32 %v1047_v28, %v880_v23  ;;  %v1023_v30 = vpop.f32.mrf.mxu1 }
 0x18f   : > { %v16204_v31 = vpack.c.b16 %v1109_v26, %v1109_v26  ;;  %v1053_v32 = vpack.c.bf16 %v1035_v27, %v1035_v27 }
 0x190   : > { %v1054_v33 = vpack.c.bf16 %v1048_v29, %v1048_v29 }
 0x191   : > { %v1114_v34 = vunpack.c.l.b16 %v1053_v32  ;;  %1111 = vrot.lane.b32.xlu1 %v16204_v31, %s15871_s4  ;;  %v1059_v35 = vsel %vm826_vm0, %v1053_v32, 0 }
 0x192   : > { %v1091_v36 = vsel %vm1089_vm1, %v1054_v33, 0  ;;  %1068 = vmatpush.bf16.xpose.msrb.mxu0 %v1059_v35  ;;  %v1149_v40 = vunpack.c.l.b16 %v1054_v33 }
 0x193   : > { %v1115_v37 = vpack.c.b16 %v1114_v34, %v1114_v34 }
 0x194   : > { %v1036_v38 = vpop.f32.mrf.mxu2  ;;  %v16226_v41 = vpack.c.b16 %v1149_v40, %v1149_v40 }
 0x195   : > { %v1049_v39 = vpop.f32.mrf.mxu3  ;;  %1181 = vrot.lane.b32.xlu2 %v1115_v37, %s15872_s25  ;;  %1116 = vrot.lane.b32.xlu0 %v1115_v37, %s15871_s4 }
 0x199   : > { %1243 = vrot.lane.b32.xlu1 %v1115_v37, %s15873_s3  ;;  %10643 = vmatmul.msk.bf16.vlgmr.msrb.gmra.mxu0 %vm826_vm0, %v1052_v24 }
 0x19a   : > { %1100 = vmatpush.bf16.msra.mxu0 %v1091_v36 }
 0x19d   : > { %1241 = vrot.lane.b32.xlu2 %v16204_v31, %s15873_s3 }
 0x1a1   : > { %1179 = vrot.lane.b32.xlu1 %v16204_v31, %s15872_s25 }
 0x1a5   : > { %1305 = vrot.lane.b32.xlu2 %v1115_v37, %s15874_s18 }
 0x1a9   : > { %1367 = vrot.lane.b32.xlu1 %v1115_v37, %s15875_s26 }
 0x1ad   : > { %1303 = vrot.lane.b32.xlu2 %v16204_v31, %s15874_s18 }
 0x1b1   : > { %1429 = vrot.lane.b32.xlu1 %v1115_v37, %s15876_s30 }
 0x1b5   : > { %1491 = vrot.lane.b32.xlu2 %v1115_v37, %s15877_s29 }
 0x1b9   : > { %1489 = vrot.lane.b32.xlu1 %v16204_v31, %s15877_s29 }
 0x1bd   : > { %1275 = vrot.lane.b32.xlu2 %v16226_v41, %s15873_s3 }
 0x1ef   : > { %v1182_v42 = vpop.permute.xlu2 %1181 }
 0x1f0   : > { %v1187_v43 = vsel %vm826_vm0, %v1182_v42, 0 }
 0x1f1   : > { %1196 = vmatpush.bf16.xpose.msrb.mxu0 %v1187_v43 }
 0x1f7   : > { %v1242_v44 = vpop.permute.xlu2 %1241 }
 0x1ff   : > { %v1306_v45 = vpop.permute.xlu2 %1305 }
 0x200   : > { %v1311_v46 = vsel %vm826_vm0, %v1306_v45, 0 }
 0x201   : > { %1320 = vmatpush.bf16.xpose.msrb.mxu3 %v1311_v46 }
 0x203   : > { %v1112_v47 = vpop.permute.xlu1 %1111 }
 0x207   : > { %v1117_v48 = vpop.permute.xlu0 %1116  ;;  %v1304_v49 = vpop.permute.xlu2 %1303 }
 0x208   : > { %10651 = vmatmul.msk.bf16.vlgmr.msrb.gmra.mxu3 %vm826_vm0, %v1304_v49  ;;  %v1122_v50 = vsel %vm826_vm0, %v1117_v48, 0 }
 0x209   : > { %1131 = vmatpush.bf16.xpose.msrb.mxu1 %v1122_v50 }
 0x20b   : > { %v1244_v51 = vpop.permute.xlu1 %1243 }
 0x20c   : > { %v1249_v52 = vsel %vm826_vm0, %v1244_v51, 0 }
 0x20f   : > { %v1492_v58 = vpop.permute.xlu2 %1491 }
 0x210   : > { %10645 = vmatmul.msk.bf16.vlgmr.msrb.gmra.mxu1 %vm826_vm0, %v1112_v47  ;;  %v1497_v60 = vsel %vm826_vm0, %v1492_v58, 0 }
 0x211   : > { %1258 = vmatpush.bf16.xpose.msra.mxu1 %v1249_v52 }
 0x213   : > { %v1180_v53 = vpop.permute.xlu1 %1179 }
 0x216   : > { %v1070_v54 = vpop.f32.mrf.mxu0 }
 0x217   : > { %v1075_v55 = vsel %vm1074_vm2, %v1070_v54, -inf  ;;  %v1276_v16 = vpop.permute.xlu2 %1275 }
 0x218   : > { %1076 = vmax.xlane.f32.xlu0 %v1075_v55  ;;  %v1281_v20 = vsel %vm1089_vm1, %v1276_v16, 0 }
 0x21b   : > { %v1368_v56 = vpop.permute.xlu1 %1367 }
 0x21c   : > { %v1373_v57 = vsel %vm826_vm0, %v1368_v56, 0 }
 0x21d   : > { %1382 = vmatpush.bf16.xpose.msrb.mxu1 %v1373_v57 }
 0x21e   : > { %v1072_v59 = vpop.f32.mrf.mxu0 }
 0x220   : > { %10649 = vmatmul.msk.bf16.vlgmr.msra.gmra.mxu1 %vm826_vm0, %v1242_v44 }
 0x223   : > { %v1430_v61 = vpop.permute.xlu1 %1429 }
 0x224   : > { %v1435_v62 = vsel %vm826_vm0, %v1430_v61, 0 }
 0x225   : > { %1506 = vmatpush.bf16.xpose.msra.mxu1 %v1497_v60  ;;  %1444 = vmatpush.bf16.xpose.msra.mxu3 %v1435_v62 }
 0x22b   : > { %v1490_v17 = vpop.permute.xlu1 %1489 }
 0x22c   : > { %1365 = vrot.lane.b32.xlu0 %v16204_v31, %s15875_s26 }
 0x234   : > { %1427 = vrot.lane.b32.xlu0 %v16204_v31, %s15876_s30 }
 0x23c   : > { %1151 = vrot.lane.b32.xlu0 %v16226_v41, %s15871_s4 }
 0x28b   : > { %v1322_v63 = vpop.f32.mrf.mxu3  ;;  %v1077_v0 = vpop.xlane.xlu0 %1076 }
 0x28c   : > { %v1078_v1 = vsub.f32 %v1070_v54, %v1077_v0  ;;  %v1326_v2 = vsel %vm1074_vm2, %v1322_v63, -inf }
 0x28d   : > { %v1133_v3 = vpop.f32.mrf.mxu1  ;;  %1327 = vmax.xlane.f32.xlu0 %v1326_v2 }
 0x28e   : > { %v1079_v4 = vmul.f32 1.442695, %v1078_v1  ;;  %v1137_v5 = vsel %vm1074_vm2, %v1133_v3, -inf }
 0x28f   : > { %1138 = vmax.xlane.f32.xlu2 %v1137_v5 }
 0x290   : > { %15156 = vpow2.f32 %v1079_v4 }
 0x293   : > { %v1324_v6 = vpop.f32.mrf.mxu3 }
 0x295   : > { %v1135_v7 = vpop.f32.mrf.mxu1 }
 0x296   : > { %v16249_v8 = vpop.eup %15156 }
 0x297   : > { %v1085_v9 = vpack.c.bf16 %v16249_v8, %v16249_v8 }
 0x299   : > { %10644 = vmatmul.msk.bf16.vlgmr.msra.gmra.mxu0 %vm1074_vm2, %v1085_v9 }
 0x29d   : > { %v1260_v10 = vpop.f32.mrf.mxu1 }
 0x29e   : > { %v1366_v11 = vpop.permute.xlu0 %1365  ;;  %v1264_v12 = vsel %vm1074_vm2, %v1260_v10, -inf }
 0x29f   : > { %1265 = vmax.xlane.f32.xlu1 %v1264_v12  ;;  %10653 = vmatmul.msk.bf16.vlgmr.msrb.gmra.mxu1 %vm826_vm0, %v1366_v11 }
 0x2a1   : > { %1337 = vrot.lane.b32.xlu0 %v16226_v41, %s15874_s18 }
 0x2a5   : > { %v1262_v13 = vpop.f32.mrf.mxu1 }
 0x2a6   : > { %v1428_v15 = vpop.permute.xlu0 %1427 }
 0x2a7   : > { %1399 = vrot.lane.b32.xlu2 %v16226_v41, %s15875_s26  ;;  %10655 = vmatmul.msk.bf16.vlgmr.msra.gmra.mxu3 %vm826_vm0, %v1428_v15 }
 0x2a9   : > { %10647 = vmatmul.msk.bf16.vlgmr.msrb.gmra.mxu0 %vm826_vm0, %v1180_v53 }
 0x2ae   : > { %v1152_v18 = vpop.permute.xlu0 %1151 }
 0x2af   : > { %10657 = vmatmul.msk.bf16.vlgmr.msra.gmra.mxu1 %vm826_vm0, %v1490_v17  ;;  %v1157_v19 = vsel %vm1089_vm1, %v1152_v18, 0 }
 0x2b0   : > { %1166 = vmatpush.bf16.msrb.mxu2 %v1157_v19 }
 0x2b4   : > { %1290 = vmatpush.bf16.msra.mxu2 %v1281_v20 }
 0x2b8   : > { %1213 = vrot.lane.b32.xlu1 %v16226_v41, %s15872_s25 }
 0x300   : > { %v1328_v37 = vpop.xlane.xlu0 %1327 }
 0x301   : > { %v1329_v38 = vsub.f32 %v1322_v63, %v1328_v37 }
 0x302   : > { %v1139_v21 = vpop.xlane.xlu2 %1138 }
 0x303   : > { %v1140_v22 = vsub.f32 %v1133_v3, %v1139_v21  ;;  %v1330_v42 = vmul.f32 1.442695, %v1329_v38 }
 0x305   : > { %v1141_v23 = vmul.f32 1.442695, %v1140_v22 }
 0x307   : > { %15158 = vpow2.f32 %v1141_v23 }
 0x30a   : > { %v1400_v25 = vpop.permute.xlu2 %1399 }
 0x30b   : > { %v1405_v27 = vsel %vm1089_vm1, %v1400_v25, 0 }
 0x30d   : > { %v15159_v24 = vpop.eup %15158 }
 0x30e   : > { %v1147_v26 = vpack.c.bf16 %v15159_v24, %v15159_v24  ;;  %v1143_v62 = vsel %vm1074_vm2, %v15159_v24, 0.0 }
 0x310   : > { %10646 = vmatmul.msk.bf16.vlgmr.msrb.gmra.mxu2 %vm1074_vm2, %v1147_v26 }
 0x311   : > { %1414 = vmatpush.bf16.msrb.mxu2 %v1405_v27 }
 0x312   : > { %v1266_v28 = vpop.xlane.xlu1 %1265 }
 0x313   : > { %v1267_v29 = vsub.f32 %v1260_v10, %v1266_v28  ;;  %v1338_v43 = vpop.permute.xlu0 %1337 }
 0x314   : > { %v1343_v48 = vsel %vm1089_vm1, %v1338_v43, 0 }
 0x315   : > { %v1268_v30 = vmul.f32 1.442695, %v1267_v29 }
 0x316   : > { %v16269_v31 = vpop.f32.mrf.mxu0 }
 0x317   : > { %15160 = vpow2.f32 %v1268_v30  ;;  %v1081_v30 = vsel %vm1074_vm2, %v16249_v8, 0.0 }
 0x318   : > { %15162 = vpow2.f32 %v1330_v42 }
 0x31c   : > { %v1384_v32 = vpop.f32.mrf.mxu1 }
 0x31d   : > { %v15161_v33 = vpop.eup %15160  ;;  %v1388_v34 = vsel %vm1074_vm2, %v1384_v32, -inf }
 0x31e   : > { %v1274_v35 = vpack.c.bf16 %v15161_v33, %v15161_v33  ;;  %1389 = vmax.xlane.f32.xlu0 %v1388_v34  ;;  %v1104_v36 = vpop.f32.mrf.mxu0  ;;  %v16279_v52 = vpop.eup %15162  ;;  %v1270_v54 = vsel %vm1074_vm2, %v15161_v33, 0.0 }
 0x31f   : > { %v1332_v56 = vsel %vm1074_vm2, %v16279_v52, 0.0 }
 0x320   : > { %10650 = vmatmul.msk.bf16.vlgmr.msra.gmra.mxu2 %vm1074_vm2, %v1274_v35 }
 0x324   : > { %v1386_v39 = vpop.f32.mrf.mxu1 }
 0x326   : > { %v16273_v40 = vpop.f32.mrf.mxu0 }
 0x327   : > { %v1202_v57 = vsel %vm1074_vm2, %v16273_v40, -inf }
 0x32a   : > { %v1214_v44 = vpop.permute.xlu1 %1213  ;;  %v1446_v45 = vpop.f32.mrf.mxu3 }
 0x32b   : > { %v1219_v46 = vsel %vm1089_vm1, %v1214_v44, 0  ;;  %v1450_v47 = vsel %vm1074_vm2, %v1446_v45, -inf }
 0x32c   : > { %1228 = vmatpush.bf16.msra.mxu0 %v1219_v46  ;;  %v1508_v49 = vpop.f32.mrf.mxu1  ;;  %1451 = vmax.xlane.f32.xlu1 %v1450_v47 }
 0x32d   : > { %v1512_v50 = vsel %vm1074_vm2, %v1508_v49, -inf }
 0x32e   : > { %1513 = vmax.xlane.f32.xlu2 %v1512_v50  ;;  %v1200_v51 = vpop.f32.mrf.mxu0 }
 0x330   : > { %1352 = vmatpush.bf16.msrb.mxu0 %v1343_v48 }
 0x332   : > { %1523 = vrot.lane.b32.xlu0 %v16226_v41, %s15877_s29  ;;  %v1448_v53 = vpop.f32.mrf.mxu3 }
 0x334   : > { %v1510_v55 = vpop.f32.mrf.mxu1  ;;  %1271 = vadd.xlane.f32.xlu1 %v1270_v54 }
 0x336   : > { %1333 = vadd.xlane.f32.xlu2 %v1332_v56 }
 0x35c   : > { %1203 = vmax.xlane.f32.xlu0 %v1202_v57 }
 0x370   : > { %1461 = vrot.lane.b32.xlu0 %v16226_v41, %s15876_s30 }
 0x391   : > { %v1390_v58 = vpop.xlane.xlu0 %1389 }
 0x392   : > { %v1391_v59 = vsub.f32 %v1384_v32, %v1390_v58  ;;  %v1336_v32 = vpack.c.bf16 %v16279_v52, %v16279_v52 }
 0x393   : > { %v1168_v60 = vpop.f32.mrf.mxu2 }
 0x394   : > { %v1392_v61 = vmul.f32 1.442695, %v1391_v59 }
 0x396   : > { %15164 = vpow2.f32 %v1392_v61 }
 0x39a   : > { %1144 = vadd.xlane.f32.xlu0 %v1143_v62 }
 0x39b   : > { %v1170_v63 = vpop.f32.mrf.mxu2 }
 0x39c   : > { %v15165_v0 = vpop.eup %15164 }
 0x39d   : > { %v1398_v1 = vpack.c.bf16 %v15165_v0, %v15165_v0  ;;  %v1394_v2 = vsel %vm1074_vm2, %v15165_v0, 0.0 }
 0x39e   : > { %1395 = vadd.xlane.f32.xlu1 %v1394_v2  ;;  %v14084_v2 = vld [vmem:[#allocation13 + $0x30] sm:$0xff] }
 0x39f   : > { %v1452_v3 = vpop.xlane.xlu1 %1451  ;;  %10654 = vmatmul.msk.bf16.vlgmr.msrb.gmra.mxu2 %vm1074_vm2, %v1398_v1  ;;  %v14085_v1 = vld [vmem:[#allocation13 + $0x38] sm:$0xff] }
 0x3a0   : > { %v1453_v4 = vsub.f32 %v1446_v45, %v1452_v3  ;;  %1621 = vmatpush.bf16.msrb.mxu3 %v14085_v1  ;;  %v10829_v1 = vld [vmem:[#allocation16 + $0x208] sm:$0xf] }
 0x3a1   : > { %v1514_v5 = vpop.xlane.xlu2 %1513 }
 0x3a2   : > { %v1454_v41 = vmul.f32 1.442695, %v1453_v4  ;;  %v1515_v6 = vsub.f32 %v1508_v49, %v1514_v5  ;;  %v14083_v4 = vld [vmem:[#allocation13 + $0x28] sm:$0xff] }
 0x3a3   : > { %v1292_v7 = vpop.f32.mrf.mxu2 }
 0x3a4   : > { %15166 = vpow2.f32 %v1454_v41  ;;  %v1516_v9 = vmul.f32 1.442695, %v1515_v6  ;;  %v1524_v10 = vpop.permute.xlu0 %1523  ;;  %1622 = vmatpush.bf16.msrb.mxu3 %v14084_v2  ;;  %v14082_v41 = vld [vmem:[#allocation13 + $0x20] sm:$0xff]  ;;  %v14081_v6 = vld [vmem:[#allocation13 + $0x18] sm:$0xff]  ;;  %v14123_v2 = vld [vmem:[#allocation16 + $0x244] sm:$0xf0] }
 0x3a5   : > { %v1529_v11 = vsel %vm1089_vm1, %v1524_v10, 0  ;;  %v14078_v10 = vld [vmem:[#allocation13] sm:$0xff] }
 0x3a6   : > { %15168 = vpow2.f32 %v1516_v9  ;;  %1538 = vmatpush.bf16.msra.mxu2 %v1529_v11  ;;  %v14079_v9 = vld [vmem:[#allocation13 + $0x8] sm:$0xff] }
 0x3a7   : > { %v1272_v12 = vpop.xlane.xlu1 %1271 }
 0x3a8   : > { %15170 = vrcp.f32 %v1272_v12  ;;  %1623 = vmatpush.bf16.msrb.mxu3 %v14083_v4  ;;  %v10831_v4 = vld [vmem:[#allocation16 + $0x248] sm:$0xf0] }
 0x3a9   : > { %v1334_v44 = vpop.xlane.xlu2 %1333 }
 0x3aa   : > { %v15167_v13 = vpop.eup %15166 }
 0x3ab   : > { %v1294_v15 = vpop.f32.mrf.mxu2  ;;  %v1456_v16 = vsel %vm1074_vm2, %v15167_v13, 0.0  ;;  %v1460_v33 = vpack.c.bf16 %v15167_v13, %v15167_v13 }
 0x3ac   : > { %v15169_v17 = vpop.eup %15168  ;;  %1457 = vadd.xlane.f32.xlu2 %v1456_v16  ;;  %1624 = vmatpush.bf16.msrb.mxu3 %v14082_v41 }
 0x3ad   : > { %v1522_v18 = vpack.c.bf16 %v15169_v17, %v15169_v17  ;;  %v1518_v19 = vsel %vm1074_vm2, %v15169_v17, 0.0 }
 0x3ae   : > { %v15171_v20 = vpop.eup %15170  ;;  %1519 = vadd.xlane.f32.xlu1 %v1518_v19 }
 0x3af   : > { %10658 = vmatmul.msk.bf16.vlgmr.msra.gmra.mxu2 %vm1074_vm2, %v1522_v18  ;;  %v1296_v21 = vmul.f32 %v15171_v20, %v1292_v7  ;;  %v14080_v7 = vld [vmem:[#allocation13 + $0x10] sm:$0xff]  ;;  %v15137_v18 = vld [vmem:[#allocation15] ss:$0 sm:$0xff] }
 0x3b0   : > { %1625 = vmatpush.bf16.msrb.mxu3 %v14081_v6 }
 0x3b1   : > { %1298 = vrot.lane.b32.xlu0 %v1296_v21, %s15875_s26 }
 0x3b4   : > { %1626 = vmatpush.bf16.msrb.mxu3 %v14080_v7  ;;  %v10830_v7 = vor.u32 %v14123_v2, %v10829_v1  ;;  %v14148_v2 = vld [vmem:[#allocation16 + $0x3cc] sm:$0xf0] }
 0x3b8   : > { %1627 = vmatpush.bf16.msrb.mxu3 %v14079_v9  ;;  %v10789_v9 = vld [vmem:[#allocation16 + $0x180] sm:$0xf] }
 0x3bc   : > { %1628 = vmatpush.bf16.msrb.mxu3 %v14078_v10  ;;  %v14114_v10 = vld [vmem:[#allocation16 + $0x1bc] sm:$0xf0] }
 0x3cf   : > { %v1204_v22 = vpop.xlane.xlu0 %1203 }
 0x3d0   : > { %v1205_v23 = vsub.f32 %v16273_v40, %v1204_v22 }
 0x3d2   : > { %v1206_v24 = vmul.f32 1.442695, %v1205_v23  ;;  %v15878_v23 = vmov 128.0  }
 0x3d4   : > { %15172 = vpow2.f32 %v1206_v24 }
 0x3da   : > { %v15173_v25 = vpop.eup %15172 }
 0x3db   : > { %v1212_v26 = vpack.c.bf16 %v15173_v25, %v15173_v25  ;;  %v1208_v27 = vsel %vm1074_vm2, %v15173_v25, 0.0 }
 0x3dc   : > { %1209 = vadd.xlane.f32.xlu2 %v1208_v27  ;;  %v14146_v27 = vld [vmem:[#allocation16 + $0x3bc] sm:$0xf0] }
 0x3dd   : > { %10648 = vmatmul.msk.bf16.vlgmr.msra.gmra.mxu0 %vm1074_vm2, %v1212_v26  ;;  %v10917_v26 = vld [vmem:[#allocation16 + $0x380] sm:$0xf] }
 0x3e2   : > { %v1462_v28 = vpop.permute.xlu0 %1461 }
 0x3e3   : > { %v1467_v29 = vsel %vm1089_vm1, %v1462_v28, 0  ;;  %v14142_v28 = vld [vmem:[#allocation16 + $0x384] sm:$0xf] }
 0x3e4   : > { %1082 = vadd.xlane.f32.xlu2 %v1081_v30  ;;  %1476 = vmatpush.bf16.msra.mxu0 %v1467_v29  ;;  %v10918_v29 = vor.u32 %v14146_v27, %v10917_v26  ;;  %v10919_v30 = vld [vmem:[#allocation16 + $0x3c0] sm:$0xf0]  ;;  %v14106_v26 = vld [vmem:[#allocation16 + $0x13c] sm:$0xf0] }
 0x3e5   : > { %v14102_v27 = vld [vmem:[#allocation16 + $0x104] sm:$0xf] }
 0x3ed   : > { %10652 = vmatmul.msk.bf16.vlgmr.msrb.gmra.mxu0 %vm1074_vm2, %v1336_v32  ;;  %v10925_v32 = vld [vmem:[#allocation16 + $0x388] sm:$0xf] }
 0x3ee   : > { %2075 = vmatpush.bf16.msrb.mxu0 %v10918_v29  ;;  %v10759_v29 = vld [vmem:[#allocation16 + $0x140] sm:$0xf0] }
 0x3fd   : > { %10656 = vmatmul.msk.bf16.vlgmr.msra.gmra.mxu0 %vm1074_vm2, %v1460_v33  ;;  %v14147_v33 = vld [vmem:[#allocation16 + $0x3c4] sm:$0xf0] }
 0x40d   : > { %v1145_v34 = vpop.xlane.xlu0 %1144 }
 0x40e   : > { %15174 = vrcp.f32 %v1145_v34  ;;  %v10922_v34 = vor.u32 %v14142_v28, %v10919_v30  ;;  %v10765_v30 = vld [vmem:[#allocation16 + $0x108] sm:$0xf] }
 0x410   : > { %2088 = vmatpush.bf16.msrb.mxu1 %v10922_v34  ;;  %v10767_v34 = vld [vmem:[#allocation16 + $0x148] sm:$0xf0] }
 0x411   : > { %v1396_v37 = vpop.xlane.xlu1 %1395 }
 0x412   : > { %15176 = vrcp.f32 %v1396_v37  ;;  %v10885_v37 = vld [vmem:[#allocation16 + $0x300] sm:$0xf] }
 0x414   : > { %v15175_v35 = vpop.eup %15174 }
 0x415   : > { %v1172_v36 = vmul.f32 %v15175_v35, %v1168_v60  ;;  %v14143_v35 = vld [vmem:[#allocation16 + $0x38c] sm:$0xf] }
 0x417   : > { %1174 = vrot.lane.b32.xlu1 %v1172_v36, %s15877_s29  ;;  %v10927_v36 = vld [vmem:[#allocation16 + $0x3c8] sm:$0xf0] }
 0x418   : > { %v15177_v38 = vpop.eup %15176 }
 0x41f   : > { %v1458_v45 = vpop.xlane.xlu2 %1457 }
 0x421   : > { %v1520_v54 = vpop.xlane.xlu1 %1519 }
 0x422   : > { %v1416_v8 = vpop.f32.mrf.mxu2 }
 0x423   : > { %v1420_v39 = vmul.f32 %v15177_v38, %v1416_v8  ;;  %v1299_v5 = vpop.permute.xlu0 %1298  ;;  %v10930_v38 = vor.u32 %v14143_v35, %v10927_v36  ;;  %v14138_v8 = vld [vmem:[#allocation16 + $0x33c] sm:$0xf0]  ;;  %v10762_v36 = vor.u32 %v14102_v27, %v10759_v29  ;;  %v14132_v29 = vld [vmem:[#allocation16 + $0x2cc] sm:$0xf0] }
 0x425   : > { %1422 = vrot.lane.b32.xlu0 %v1420_v39, %s15873_s3  ;;  %v14134_v39 = vld [vmem:[#allocation16 + $0x304] sm:$0xf]  ;;  %2114 = vmatpush.bf16.msra.mxu3 %v10930_v38  ;;  %v10725_v38 = vld [vmem:[#allocation16 + $0x80] sm:$0xf] }
 0x42a   : > { %v1418_v40 = vpop.f32.mrf.mxu2 }
 0x42b   : > { %v10887_v40 = vld [vmem:[#allocation16 + $0x340] sm:$0xf0] }
 0x432   : > { %v1540_v42 = vpop.f32.mrf.mxu2 }
 0x43a   : > { %v1542_v43 = vpop.f32.mrf.mxu2 }
 0x43b   : > { %v10890_v43 = vor.u32 %v14134_v39, %v10887_v40  ;;  %v14094_v39 = vld [vmem:[#allocation16 + $0x84] sm:$0xf] }
 0x43d   : > { %2089 = vmatpush.bf16.msrb.mxu1 %v10890_v43  ;;  %v10733_v43 = vld [vmem:[#allocation16 + $0x88] sm:$0xf] }
 0x44f   : > { %v1210_v46 = vpop.xlane.xlu2 %1209 }
 0x450   : > { %15178 = vrcp.f32 %v1210_v46  ;;  %v14135_v46 = vld [vmem:[#allocation16 + $0x30c] sm:$0xf] }
 0x456   : > { %v15179_v48 = vpop.eup %15178 }
 0x457   : > { %v1083_v47 = vpop.xlane.xlu2 %1082 }
 0x458   : > { %15180 = vrcp.f32 %v1083_v47 }
 0x459   : > { %15182 = vrcp.f32 %v1334_v44  ;;  %v10893_v44 = vld [vmem:[#allocation16 + $0x308] sm:$0xf] }
 0x45a   : > { %v1230_v49 = vpop.f32.mrf.mxu0  ;;  %15184 = vrcp.f32 %v1520_v54  ;;  %v10861_v54 = vld [vmem:[#allocation16 + $0x288] sm:$0xf] }
 0x45b   : > { %v1234_v50 = vmul.f32 %v15179_v48, %v1230_v49  ;;  %15186 = vrcp.f32 %v1458_v45  ;;  %v14139_v45 = vld [vmem:[#allocation16 + $0x344] sm:$0xf0]  ;;  %v10895_v48 = vld [vmem:[#allocation16 + $0x348] sm:$0xf0]  ;;  %v10853_v49 = vld [vmem:[#allocation16 + $0x280] sm:$0xf] }
 0x45c   : > { %15188 = vrcp.f32 %v15878_v23  ;;  %v10894_v47 = vor.u32 %v14139_v45, %v10893_v44  ;;  %v14099_v44 = vld [vmem:[#allocation16 + $0xc4] sm:$0xf0]  ;;  %v14095_v45 = vld [vmem:[#allocation16 + $0x8c] sm:$0xf] }
 0x45d   : > { %1236 = vrot.lane.b32.xlu2 %v1234_v50, %s15876_s30  ;;  %v14130_v50 = vld [vmem:[#allocation16 + $0x2bc] sm:$0xf0] }
 0x45e   : > { %v15181_v51 = vpop.eup %15180 }
 0x45f   : > { %v1106_v52 = vmul.f32 %v15181_v51, %v16269_v31  ;;  %v15183_v55 = vpop.eup %15182  ;;  %v10898_v51 = vor.u32 %v14135_v46, %v10895_v48  ;;  %v10735_v46 = vld [vmem:[#allocation16 + $0xc8] sm:$0xf0] }
 0x460   : > { %v15185_v58 = vpop.eup %15184 }
 0x461   : > { %1107 = vst.msk [vmem:[#allocation2] sm:$0xff] %vm826_vm0, %v1106_v52  ;;  %v1544_v60 = vmul.f32 %v15185_v58, %v1540_v42  ;;  %v15187_v61 = vpop.eup %15186  ;;  %v10886_v42 = vor.u32 %v14138_v8, %v10885_v37  ;;  %v14126_v52 = vld [vmem:[#allocation16 + $0x284] sm:$0xf]  ;;  %v10863_v58 = vld [vmem:[#allocation16 + $0x2c8] sm:$0xf0]  ;;  %2115 = vmatpush.bf16.msra.mxu3 %v10898_v51 }
 0x462   : > { %v1232_v53 = vpop.f32.mrf.mxu0  ;;  %v16327_v24 = vpop.eup %15188  ;;  %v14098_v8 = vld [vmem:[#allocation16 + $0xbc] sm:$0xf0] }
 0x463   : > { %v16330_v25 = vmul.f32 128.0, %v16327_v24  ;;  %v10855_v53 = vld [vmem:[#allocation16 + $0x2c0] sm:$0xf0]  ;;  %2076 = vmatpush.bf16.msrb.mxu0 %v10886_v42  ;;  %vm1644_vm10 = vweird.f32 %v16327_v24  ;;  %v10726_v48 = vor.u32 %v14098_v8, %v10725_v38  ;;  %v10879_v38 = vld [vmem:[#allocation16 + $0x2d8] sm:$0xf0] }
 0x464   : > { %v10727_v42 = vld [vmem:[#allocation16 + $0xc0] sm:$0xf0] }
 0x46a   : > { %v1354_v56 = vpop.f32.mrf.mxu0 }
 0x46b   : > { %v1358_v57 = vmul.f32 %v15183_v55, %v1354_v56  ;;  %v10854_v55 = vor.u32 %v14130_v50, %v10853_v49  ;;  %v14131_v56 = vld [vmem:[#allocation16 + $0x2c4] sm:$0xf0]  ;;  %v10730_v49 = vor.u32 %v14094_v39, %v10727_v42  ;;  %v10734_v50 = vor.u32 %v14099_v44, %v10733_v43  ;;  %v10837_v39 = vld [vmem:[#allocation16 + $0x210] sm:$0xf]  ;;  %v14120_v42 = vld [vmem:[#allocation16 + $0x214] sm:$0xf] }
 0x46c   : > { %v10839_v44 = vld [vmem:[#allocation16 + $0x250] sm:$0xf0] }
 0x46d   : > { %1360 = vrot.lane.b32.xlu1 %v1358_v57, %s15874_s18  ;;  %v14127_v57 = vld [vmem:[#allocation16 + $0x28c] sm:$0xf]  ;;  %2077 = vmatpush.bf16.msrb.mxu0 %v10854_v55  ;;  %v10693_v55 = vld [vmem:[#allocation16] sm:$0xf] }
 0x472   : > { %v1356_v59 = vpop.f32.mrf.mxu0 }
 0x473   : > { %v10858_v59 = vor.u32 %v14126_v52, %v10855_v53  ;;  %v10738_v52 = vor.u32 %v14095_v45, %v10735_v46  ;;  %v10845_v45 = vld [vmem:[#allocation16 + $0x218] sm:$0xf] }
 0x474   : > { %v14125_v46 = vld [vmem:[#allocation16 + $0x254] sm:$0xf0] }
 0x475   : > { %1546 = vrot.lane.b32.xlu1 %v1544_v60, %s15871_s4  ;;  %v10862_v60 = vor.u32 %v14131_v56, %v10861_v54  ;;  %2090 = vmatpush.bf16.msrb.mxu1 %v10858_v59  ;;  %v14090_v56 = vld [vmem:[#allocation16 + $0x3c] sm:$0xf0]  ;;  %v10695_v59 = vld [vmem:[#allocation16 + $0x40] sm:$0xf0] }
 0x47a   : > { %v1478_v62 = vpop.f32.mrf.mxu0 }
 0x47b   : > { %v1482_v31 = vmul.f32 %v15187_v61, %v1478_v62  ;;  %v10821_v61 = vld [vmem:[#allocation16 + $0x200] sm:$0xf] }
 0x47c   : > { %v14122_v62 = vld [vmem:[#allocation16 + $0x23c] sm:$0xf0] }
 0x47d   : > { %1484 = vrot.lane.b32.xlu2 %v1482_v31, %s15872_s25  ;;  %v14118_v31 = vld [vmem:[#allocation16 + $0x204] sm:$0xf]  ;;  %v10822_v41 = vor.u32 %v14122_v62, %v10821_v61  ;;  %v14091_v61 = vld [vmem:[#allocation16 + $0x44] sm:$0xf0] }
 0x47f   : > { %2078 = vmatpush.bf16.msrb.mxu0 %v10822_v41 }
 0x482   : > { %v1480_v63 = vpop.f32.mrf.mxu0 }
 0x483   : > { %v10866_v63 = vor.u32 %v14127_v57, %v10863_v58  ;;  %v14086_v57 = vld [vmem:[#allocation16 + $0x4] sm:$0xf]  ;;  %v10694_v58 = vor.u32 %v14090_v56, %v10693_v55  ;;  %v14112_v55 = vld [vmem:[#allocation16 + $0x194] sm:$0xf] }
 0x484   : > { %v10698_v62 = vor.u32 %v14086_v57, %v10695_v59  ;;  %v10807_v57 = vld [vmem:[#allocation16 + $0x1d0] sm:$0xf0]  ;;  %v14117_v59 = vld [vmem:[#allocation16 + $0x1d4] sm:$0xf0] }
 0x485   : > { %2116 = vmatpush.bf16.msra.mxu3 %v10866_v63  ;;  %v14087_v63 = vld [vmem:[#allocation16 + $0xc] sm:$0xf] }
 0x489   : > { %v1175_v0 = vpop.permute.xlu1 %1174 }
 0x48a   : > { %1178 = vst.msk [vmem:[#allocation2] sm:$0xff] %vm1177_vm3, %v1175_v0  ;;  %v10823_v0 = vld [vmem:[#allocation16 + $0x240] sm:$0xf0] }
 0x48b   : > { %v10826_v6 = vor.u32 %v14118_v31, %v10823_v0  ;;  %v10703_v0 = vld [vmem:[#allocation16 + $0x48] sm:$0xf0] }
 0x48c   : > { %v10706_v1 = vor.u32 %v14087_v63, %v10703_v0  ;;  %v10773_v0 = vld [vmem:[#allocation16 + $0x110] sm:$0xf] }
 0x48d   : > { %2091 = vmatpush.bf16.msrb.mxu1 %v10826_v6  ;;  %v10941_v6 = vld [vmem:[#allocation16 + $0x398] sm:$0xf] }
 0x497   : > { %v1423_v12 = vpop.permute.xlu0 %1422 }
 0x4b7   : > { %v1237_v3 = vpop.permute.xlu2 %1236 }
 0x4b8   : > { %1240 = vst.msk [vmem:[#allocation2] sm:$0xff] %vm1239_vm4, %v1237_v3  ;;  %v14119_v3 = vld [vmem:[#allocation16 + $0x20c] sm:$0xf] }
 0x4b9   : > { %1302 = vst.msk [vmem:[#allocation2] sm:$0xff] %vm1301_vm5, %v1299_v5  ;;  %v1641_v5 = vsub.f32 1.0, %v16330_v25  ;;  %v10757_v25 = vld [vmem:[#allocation16 + $0x100] sm:$0xf] }
 0x4ba   : > { %v10758_v35 = vor.u32 %v14106_v26, %v10757_v25  ;;  %v10911_v25 = vld [vmem:[#allocation16 + $0x358] sm:$0xf0] }
 0x4d7   : > { %v1485_v13 = vpop.permute.xlu2 %1484 }
 0x4df   : > { %v1361_v11 = vpop.permute.xlu1 %1360 }
 0x4e0   : > { %1364 = vst.msk [vmem:[#allocation2] sm:$0xff] %vm1363_vm6, %v1361_v11  ;;  %v14110_v11 = vld [vmem:[#allocation16 + $0x184] sm:$0xf] }
 0x4e1   : > { %1426 = vst.msk [vmem:[#allocation2] sm:$0xff] %vm1425_vm7, %v1423_v12  ;;  %v10834_v12 = vor.u32 %v14119_v3, %v10831_v4  ;;  %v14144_v3 = vld [vmem:[#allocation16 + $0x394] sm:$0xf] }
 0x4e2   : > { %1488 = vst.msk [vmem:[#allocation2] sm:$0xff] %vm1487_vm8, %v1485_v13  ;;  %v10791_v13 = vld [vmem:[#allocation16 + $0x1c0] sm:$0xf0]  ;;  %v10935_v4 = vld [vmem:[#allocation16 + $0x3d0] sm:$0xf0] }
 0x4e3   : > { %2117 = vmatpush.bf16.msra.mxu3 %v10834_v12  ;;  %v10938_v41 = vor.u32 %v14144_v3, %v10935_v4  ;;  %v10901_v12 = vld [vmem:[#allocation16 + $0x310] sm:$0xf]  ;;  %v10775_v3 = vld [vmem:[#allocation16 + $0x150] sm:$0xf0]  ;;  %v10781_v4 = vld [vmem:[#allocation16 + $0x118] sm:$0xf] }
 0x4e7   : > { %v1547_v15 = vpop.permute.xlu1 %1546 }
 0x4e8   : > { %1550 = vst.msk [vmem:[#allocation2] sm:$0xff] %vm1549_vm9, %v1547_v15  ;;  %v10797_v15 = vld [vmem:[#allocation16 + $0x188] sm:$0xf] }
 0x4ef   : > { %v1551_v16 = vld [vmem:[#allocation2] sm:$0xff] }
 0x4f0   : > { %v1552_v17 = vpack.c.bf16 %v1551_v16, %v1551_v16  ;;  %v14115_v16 = vld [vmem:[#allocation16 + $0x1c4] sm:$0xf0] }
 0x4f1   : > { %v10798_v23 = vor.u32 %v14115_v16, %v10797_v15 }
 0x4f2   : > { %1629 = vmatmul.bf16.vlgmr.msrb.gmra.mxu3 %v1552_v17  ;;  %v14111_v17 = vld [vmem:[#allocation16 + $0x18c] sm:$0xf] }
 0x575   : > { %v1630_v19 = vpop.f32.mrf.mxu3 }
 0x576   : > { %v1631_v20 = vadd.f32 %v15137_v18, %v1630_v19  ;;  %v10799_v18 = vld [vmem:[#allocation16 + $0x1c8] sm:$0xf0]  ;;  %v1642_v19 = vmul.f32 %v16327_v24, %v1641_v5 }
 0x577   : > { %v10802_v28 = vor.u32 %v14111_v17, %v10799_v18  ;;  %v14136_v17 = vld [vmem:[#allocation16 + $0x314] sm:$0xf] }
 0x578   : > { %v16324_v21 = vadd.f32 %v1631_v20, %v16200_v14  ;;  %v10926_v14 = vor.u32 %v14147_v33, %v10925_v32  ;;  %v10790_v20 = vor.u32 %v14114_v10, %v10789_v9  ;;  %v14107_v32 = vld [vmem:[#allocation16 + $0x144] sm:$0xf0]  ;;  %v14103_v33 = vld [vmem:[#allocation16 + $0x10c] sm:$0xf]  ;;  %v14145_v9 = vld [vmem:[#allocation16 + $0x39c] sm:$0xf] }
 0x579   : > { %v10766_v37 = vor.u32 %v14107_v32, %v10765_v30  ;;  %2118 = vmatpush.bf16.msra.mxu3 %v10802_v28  ;;  %v10770_v40 = vor.u32 %v14103_v33, %v10767_v34  ;;  %v10903_v18 = vld [vmem:[#allocation16 + $0x350] sm:$0xf0]  ;;  %v10869_v28 = vld [vmem:[#allocation16 + $0x290] sm:$0xf]  ;;  %v10877_v34 = vld [vmem:[#allocation16 + $0x298] sm:$0xf] }
 0x57a   : > { %1637 = vadd.xlane.f32.xlu0 %v16324_v21  ;;  %2101 = vmatpush.bf16.msrb.mxu2 %v10926_v14  ;;  %v1643_v14 = vadd.f32 %v16327_v24, %v1642_v19  ;;  %v10909_v19 = vld [vmem:[#allocation16 + $0x318] sm:$0xf]  ;;  %v14128_v30 = vld [vmem:[#allocation16 + $0x294] sm:$0xf]  ;;  %v10870_v32 = vor.u32 %v14132_v29, %v10869_v28 }
 0x57b   : > { %2079 = vmatpush.bf16.msrb.mxu0 %v10790_v20  ;;  %v10906_v20 = vor.u32 %v14136_v17, %v10903_v18  ;;  %v10871_v33 = vld [vmem:[#allocation16 + $0x2d0] sm:$0xf0]  ;;  %v10749_v17 = vld [vmem:[#allocation16 + $0x98] sm:$0xf] }
 0x57c   : > { %v14101_v18 = vld [vmem:[#allocation16 + $0xd4] sm:$0xf0]  ;;  %v14088_v28 = vld [vmem:[#allocation16 + $0x14] sm:$0xf] }
 0x57d   : > { %v1632_v22 = vpop.f32.mrf.mxu3  ;;  %2119 = vmatpush.bf16.msra.mxu3 %v10770_v40  ;;  %v14124_v40 = vld [vmem:[#allocation16 + $0x24c] sm:$0xf0] }
 0x57e   : > { %2102 = vmatpush.bf16.msrb.mxu2 %v10894_v47  ;;  %v10794_v22 = vor.u32 %v14110_v11, %v10791_v13  ;;  %v16337_v47 = vsel %vm1644_vm10, %v16327_v24, %v1643_v14  ;;  %v10943_v11 = vld [vmem:[#allocation16 + $0x3d8] sm:$0xf0]  ;;  %v14140_v13 = vld [vmem:[#allocation16 + $0x34c] sm:$0xf0]  ;;  %v14133_v14 = vld [vmem:[#allocation16 + $0x2d4] sm:$0xf0]  ;;  %v10838_v43 = vor.u32 %v14124_v40, %v10837_v39 }
 0x57f   : > { %2080 = vmatpush.bf16.msrb.mxu0 %v10758_v35  ;;  %v10946_v15 = vor.u32 %v14145_v9, %v10943_v11  ;;  %v10902_v16 = vor.u32 %v14140_v13, %v10901_v12  ;;  %v10874_v35 = vor.u32 %v14128_v30, %v10871_v33  ;;  %v10783_v9 = vld [vmem:[#allocation16 + $0x158] sm:$0xf0]  ;;  %v10741_v11 = vld [vmem:[#allocation16 + $0x90] sm:$0xf]  ;;  %v14096_v13 = vld [vmem:[#allocation16 + $0x94] sm:$0xf] }
 0x580   : > { %2092 = vmatpush.bf16.msrb.mxu1 %v10794_v22  ;;  %v14141_v22 = vld [vmem:[#allocation16 + $0x354] sm:$0xf0]  ;;  %v14100_v12 = vld [vmem:[#allocation16 + $0xcc] sm:$0xf0]  ;;  %v10711_v30 = vld [vmem:[#allocation16 + $0x50] sm:$0xf0] }
 0x581   : > { %2120 = vmatpush.bf16.msra.mxu3 %v10738_v52  ;;  %v10910_v26 = vor.u32 %v14141_v22, %v10909_v19  ;;  %v14097_v22 = vld [vmem:[#allocation16 + $0x9c] sm:$0xf]  ;;  %v14093_v33 = vld [vmem:[#allocation16 + $0x54] sm:$0xf0] }
 0x582   : > { %2103 = vmatpush.bf16.msrb.mxu2 %v10862_v60  ;;  %v10701_v60 = vld [vmem:[#allocation16 + $0x8] sm:$0xf] }
 0x583   : > { %2081 = vmatpush.bf16.msrb.mxu0 %v10726_v48  ;;  %v10702_v31 = vor.u32 %v14091_v61, %v10701_v60  ;;  %v10842_v48 = vor.u32 %v14120_v42, %v10839_v44  ;;  %v10810_v60 = vor.u32 %v14112_v55, %v10807_v57  ;;  %v14270_v55 = vld [vmem:[#allocation16 + $0x3a4] sm:$0xf]  ;;  %v11181_v57 = vld [vmem:[#allocation16 + $0x3a8] sm:$0xf] }
 0x584   : > { %2093 = vmatpush.bf16.msrb.mxu1 %v10762_v36  ;;  %v10878_v36 = vor.u32 %v14133_v14, %v10877_v34  ;;  %v10714_v34 = vor.u32 %v14088_v28, %v10711_v30  ;;  %v11079_v30 = vld [vmem:[#allocation16 + $0x260] sm:$0xf0] }
 0x585   : > { %2121 = vmatpush.bf16.msra.mxu3 %v10706_v1  ;;  %v14104_v1 = vld [vmem:[#allocation16 + $0x114] sm:$0xf] }
 0x586   : > { %2104 = vmatpush.bf16.msrb.mxu2 %v10830_v7  ;;  %v14149_v7 = vld [vmem:[#allocation16 + $0x3d4] sm:$0xf0] }
 0x587   : > { %2082 = vmatpush.bf16.msrb.mxu0 %v10694_v58  ;;  %v10942_v10 = vor.u32 %v14149_v7, %v10941_v6  ;;  %v10813_v58 = vld [vmem:[#allocation16 + $0x198] sm:$0xf]  ;;  %v14105_v7 = vld [vmem:[#allocation16 + $0x11c] sm:$0xf] }
 0x588   : > { %2094 = vmatpush.bf16.msrb.mxu1 %v10730_v49  ;;  %v10846_v49 = vor.u32 %v14125_v46, %v10845_v45  ;;  %v10814_v61 = vor.u32 %v14117_v59, %v10813_v58  ;;  %v14275_v59 = vld [vmem:[#allocation16 + $0x3e4] sm:$0xf0] }
 0x589   : > { %2166 = vmatpush.bf16.msrb.mxu3 %v10946_v15  ;;  %v10742_v15 = vor.u32 %v14100_v12, %v10741_v11  ;;  %v14258_v11 = vld [vmem:[#allocation16 + $0x2dc] sm:$0xf0] }
 0x58a   : > { %2105 = vmatpush.bf16.msrb.mxu2 %v10798_v23  ;;  %v14137_v23 = vld [vmem:[#allocation16 + $0x31c] sm:$0xf] }
 0x58b   : > { %v10914_v27 = vor.u32 %v14137_v23, %v10911_v25  ;;  %v10751_v23 = vld [vmem:[#allocation16 + $0xd8] sm:$0xf0] }
 0x58c   : > { %2095 = vmatpush.bf16.msrb.mxu1 %v10698_v62  ;;  %v14113_v62 = vld [vmem:[#allocation16 + $0x19c] sm:$0xf]  ;;  %v10754_v25 = vor.u32 %v14097_v22, %v10751_v23 }
 0x58d   : > { %2167 = vmatpush.bf16.msrb.mxu3 %v10914_v27  ;;  %v14092_v27 = vld [vmem:[#allocation16 + $0x4c] sm:$0xf0] }
 0x58e   : > { %2106 = vmatpush.bf16.msrb.mxu2 %v10766_v37  ;;  %v14129_v37 = vld [vmem:[#allocation16 + $0x29c] sm:$0xf] }
 0x58f   : > { %v10882_v8 = vor.u32 %v14129_v37, %v10879_v38 }
 0x590   : > { %2140 = vmatpush.bf16.msra.mxu1 %v10938_v41  ;;  %v10778_v41 = vor.u32 %v14104_v1, %v10775_v3  ;;  %v11143_v3 = vld [vmem:[#allocation16 + $0x360] sm:$0xf0] }
 0x591   : > { %2168 = vmatpush.bf16.msrb.mxu3 %v10882_v8 }
 0x592   : > { %2107 = vmatpush.bf16.msrb.mxu2 %v10734_v50  ;;  %v14121_v50 = vld [vmem:[#allocation16 + $0x21c] sm:$0xf] }
 0x594   : > { %2141 = vmatpush.bf16.msra.mxu1 %v10906_v20  ;;  %v10750_v20 = vor.u32 %v14101_v18, %v10749_v17  ;;  %v11117_v17 = vld [vmem:[#allocation16 + $0x2a8] sm:$0xf] }
 0x595   : > { %v14259_v18 = vld [vmem:[#allocation16 + $0x2e4] sm:$0xf0] }
 0x596   : > { %2108 = vmatpush.bf16.msrb.mxu2 %v10702_v31  ;;  %v10815_v31 = vld [vmem:[#allocation16 + $0x1d8] sm:$0xf0] }
 0x597   : > { %v10818_v63 = vor.u32 %v14113_v62, %v10815_v31 }
 0x598   : > { %2142 = vmatpush.bf16.msra.mxu1 %v10874_v35  ;;  %v14089_v35 = vld [vmem:[#allocation16 + $0x1c] sm:$0xf] }
 0x59a   : > { %2153 = vmatpush.bf16.msra.mxu2 %v10942_v10  ;;  %v10786_v10 = vor.u32 %v14105_v7, %v10783_v9 }
 0x59c   : > { %2143 = vmatpush.bf16.msra.mxu1 %v10842_v48  ;;  %v15138_v48 = vld [vmem:[#allocation22] ss:$0 sm:$0xff] }
 0x59e   : > { %2154 = vmatpush.bf16.msra.mxu2 %v10910_v26  ;;  %v10709_v26 = vld [vmem:[#allocation16 + $0x10] sm:$0xf] }
 0x59f   : > { %v10710_v29 = vor.u32 %v14092_v27, %v10709_v26  ;;  %v14250_v26 = vld [vmem:[#allocation16 + $0x25c] sm:$0xf0]  ;;  %v11118_v27 = vor.u32 %v14259_v18, %v11117_v17  ;;  %v14219_v17 = vld [vmem:[#allocation16 + $0x64] sm:$0xf0]  ;;  %v14215_v18 = vld [vmem:[#allocation16 + $0x2c] sm:$0xf] }
 0x5a0   : > { %2144 = vmatpush.bf16.msra.mxu1 %v10810_v60  ;;  %v14271_v60 = vld [vmem:[#allocation16 + $0x3ac] sm:$0xf] }
 0x5a2   : > { %2155 = vmatpush.bf16.msra.mxu2 %v10878_v36  ;;  %v10719_v36 = vld [vmem:[#allocation16 + $0x58] sm:$0xf0] }
 0x5a3   : > { %v10722_v37 = vor.u32 %v14089_v35, %v10719_v36 }
 0x5a4   : > { %2145 = vmatpush.bf16.msra.mxu1 %v10778_v41  ;;  %v14263_v41 = vld [vmem:[#allocation16 + $0x32c] sm:$0xf] }
 0x5a6   : > { %2156 = vmatpush.bf16.msra.mxu2 %v10846_v49 }
 0x5aa   : > { %2157 = vmatpush.bf16.msra.mxu2 %v10814_v61  ;;  %v11183_v61 = vld [vmem:[#allocation16 + $0x3e8] sm:$0xf0] }
 0x5ab   : > { %v11186_v1 = vor.u32 %v14271_v60, %v11183_v61  ;;  %v11023_v60 = vld [vmem:[#allocation16 + $0x168] sm:$0xf0] }
 0x5ed   : > { %v1638_v51 = vpop.xlane.xlu0 %1637 }
 0x5ee   : > { %v1646_v53 = vmul.f32 %v16337_v47, %v1638_v51  ;;  %v10847_v51 = vld [vmem:[#allocation16 + $0x258] sm:$0xf0] }
 0x5ef   : > { %v10850_v52 = vor.u32 %v14121_v50, %v10847_v51  ;;  %v15139_v50 = vld [vmem:[#allocation24] ss:$0 sm:$0xff] }
 0x5f0   : > { %v16341_v54 = vsub.f32 %v16324_v21, %v1646_v53  ;;  %v10933_v21 = vld [vmem:[#allocation16 + $0x390] sm:$0xf] }
 0x5f1   : > { %v10934_v5 = vor.u32 %v14148_v2, %v10933_v21  ;;  %v10805_v53 = vld [vmem:[#allocation16 + $0x190] sm:$0xf]  ;;  %2169 = vmatpush.bf16.msrb.mxu3 %v10850_v52 }
 0x5f2   : > { %v1648_v24 = vmul.f32 %v16341_v54, %v16341_v54  ;;  %v14108_v21 = vld [vmem:[#allocation16 + $0x14c] sm:$0xf0] }
 0x5f3   : > { %2127 = vmatpush.bf16.msra.mxu0 %v10934_v5  ;;  %v10774_v2 = vor.u32 %v14108_v21, %v10773_v0  ;;  %v14109_v5 = vld [vmem:[#allocation16 + $0x154] sm:$0xf0]  ;;  %v11141_v0 = vld [vmem:[#allocation16 + $0x320] sm:$0xf] }
 0x5f4   : > { %1649 = vadd.xlane.f32.xlu2 %v1648_v24  ;;  %v14116_v24 = vld [vmem:[#allocation16 + $0x1cc] sm:$0xf0]  ;;  %v10782_v6 = vor.u32 %v14109_v5, %v10781_v4  ;;  %v14266_v21 = vld [vmem:[#allocation16 + $0x35c] sm:$0xf0]  ;;  %v11149_v4 = vld [vmem:[#allocation16 + $0x328] sm:$0xf] }
 0x5f5   : > { %v10806_v56 = vor.u32 %v14116_v24, %v10805_v53  ;;  %2170 = vmatpush.bf16.msrb.mxu3 %v10818_v63  ;;  %v11173_v53 = vld [vmem:[#allocation16 + $0x3a0] sm:$0xf]  ;;  %v14267_v5 = vld [vmem:[#allocation16 + $0x364] sm:$0xf0]  ;;  %v11142_v7 = vor.u32 %v14266_v21, %v11141_v0 }
 0x5f6   : > { %2158 = vmatpush.bf16.msra.mxu2 %v10782_v6  ;;  %v14274_v24 = vld [vmem:[#allocation16 + $0x3dc] sm:$0xf0]  ;;  %v11151_v6 = vld [vmem:[#allocation16 + $0x368] sm:$0xf0]  ;;  %v11150_v12 = vor.u32 %v14267_v5, %v11149_v4  ;;  %v14227_v4 = vld [vmem:[#allocation16 + $0xe4] sm:$0xf0] }
 0x5f7   : > { %2128 = vmatpush.bf16.msra.mxu0 %v10902_v16  ;;  %v10743_v16 = vld [vmem:[#allocation16 + $0xd0] sm:$0xf0]  ;;  %v11174_v31 = vor.u32 %v14274_v24, %v11173_v53  ;;  %v14230_v24 = vld [vmem:[#allocation16 + $0x124] sm:$0xf]  ;;  %v14226_v0 = vld [vmem:[#allocation16 + $0xdc] sm:$0xf0] }
 0x5f8   : > { %v10746_v19 = vor.u32 %v14096_v13, %v10743_v16  ;;  %v11154_v13 = vor.u32 %v14263_v41, %v11151_v6  ;;  %v11111_v16 = vld [vmem:[#allocation16 + $0x2e0] sm:$0xf0]  ;;  %v14223_v5 = vld [vmem:[#allocation16 + $0xac] sm:$0xf]  ;;  %v10949_v6 = vld [vmem:[#allocation16 + $0x20] sm:$0xf] }
 0x5f9   : > { %2171 = vmatpush.bf16.msrb.mxu3 %v10786_v10  ;;  %v11109_v10 = vld [vmem:[#allocation16 + $0x2a0] sm:$0xf]  ;;  %v10991_v41 = vld [vmem:[#allocation16 + $0xe8] sm:$0xf0] }
 0x5fa   : > { %2146 = vmatpush.bf16.msra.mxu1 %v10746_v19  ;;  %2159 = vmatpush.bf16.msra.mxu2 %v10750_v20  ;;  %v14255_v19 = vld [vmem:[#allocation16 + $0x2ac] sm:$0xf]  ;;  %v11110_v22 = vor.u32 %v14258_v11, %v11109_v10  ;;  %v14218_v10 = vld [vmem:[#allocation16 + $0x5c] sm:$0xf0]  ;;  %v14214_v11 = vld [vmem:[#allocation16 + $0x24] sm:$0xf] }
 0x5fb   : > { %2129 = vmatpush.bf16.msra.mxu0 %v10870_v32  ;;  %v10717_v32 = vld [vmem:[#allocation16 + $0x18] sm:$0xf]  ;;  %v11119_v20 = vld [vmem:[#allocation16 + $0x2e8] sm:$0xf0] }
 0x5fc   : > { %v10718_v14 = vor.u32 %v14093_v33, %v10717_v32  ;;  %v11122_v28 = vor.u32 %v14255_v19, %v11119_v20  ;;  %v11085_v32 = vld [vmem:[#allocation16 + $0x228] sm:$0xf]  ;;  %v10959_v19 = vld [vmem:[#allocation16 + $0x68] sm:$0xf0]  ;;  %v11189_v20 = vld [vmem:[#allocation16 + $0x3b0] sm:$0xf] }
 0x5fd   : > { %2172 = vmatpush.bf16.msrb.mxu3 %v10754_v25  ;;  %v11077_v25 = vld [vmem:[#allocation16 + $0x220] sm:$0xf]  ;;  %v14251_v33 = vld [vmem:[#allocation16 + $0x264] sm:$0xf0] }
 0x5fe   : > { %2147 = vmatpush.bf16.msra.mxu1 %v10714_v34  ;;  %2160 = vmatpush.bf16.msra.mxu2 %v10718_v14  ;;  %v14247_v34 = vld [vmem:[#allocation16 + $0x22c] sm:$0xf]  ;;  %v11078_v35 = vor.u32 %v14250_v26, %v11077_v25  ;;  %v11191_v25 = vld [vmem:[#allocation16 + $0x3f0] sm:$0xf0]  ;;  %v11197_v26 = vld [vmem:[#allocation16 + $0x3b8] sm:$0xf] }
 0x5ff   : > { %2130 = vmatpush.bf16.msra.mxu0 %v10838_v43  ;;  %v11087_v14 = vld [vmem:[#allocation16 + $0x268] sm:$0xf0] }
 0x601   : > { %2173 = vmatpush.bf16.msrb.mxu3 %v10722_v37  ;;  %v11045_v37 = vld [vmem:[#allocation16 + $0x1a0] sm:$0xf] }
 0x603   : > { %2131 = vmatpush.bf16.msra.mxu0 %v10806_v56  ;;  %v11175_v56 = vld [vmem:[#allocation16 + $0x3e0] sm:$0xf0] }
 0x604   : > { %v11178_v63 = vor.u32 %v14270_v55, %v11175_v56  ;;  %v11015_v55 = vld [vmem:[#allocation16 + $0x160] sm:$0xf0]  ;;  %v11021_v56 = vld [vmem:[#allocation16 + $0x128] sm:$0xf] }
 0x607   : > { %2132 = vmatpush.bf16.msra.mxu0 %v10774_v2  ;;  %v14262_v2 = vld [vmem:[#allocation16 + $0x324] sm:$0xf] }
 0x608   : > { %v11146_v9 = vor.u32 %v14262_v2, %v11143_v3  ;;  %v10983_v2 = vld [vmem:[#allocation16 + $0xe0] sm:$0xf0]  ;;  %v10989_v3 = vld [vmem:[#allocation16 + $0xa8] sm:$0xf] }
 0x60b   : > { %2133 = vmatpush.bf16.msra.mxu0 %v10742_v15  ;;  %v14254_v15 = vld [vmem:[#allocation16 + $0x2a4] sm:$0xf] }
 0x60c   : > { %v11114_v23 = vor.u32 %v14254_v15, %v11111_v16  ;;  %v10994_v15 = vor.u32 %v14223_v5, %v10991_v41  ;;  %v10957_v16 = vld [vmem:[#allocation16 + $0x28] sm:$0xf]  ;;  %v11103_v5 = vld [vmem:[#allocation16 + $0x278] sm:$0xf0] }
 0x60f   : > { %2134 = vmatpush.bf16.msra.mxu0 %v10710_v29  ;;  %v14246_v29 = vld [vmem:[#allocation16 + $0x224] sm:$0xf] }
 0x610   : > { %v11082_v36 = vor.u32 %v14246_v29, %v11079_v30  ;;  %v14277_v29 = vld [vmem:[#allocation16 + $0x3f4] sm:$0xf0]  ;;  %v14273_v30 = vld [vmem:[#allocation16 + $0x3bc] sm:$0xf] }
 0x667   : > { %v1650_v38 = vpop.xlane.xlu2 %1649 }
 0x668   : > { %v1651_v8 = vmul.f32 %v1650_v38, %v16337_v47  ;;  %v14242_v38 = vld [vmem:[#allocation16 + $0x1dc] sm:$0xf0] }
 0x66a   : > { %v1652_v39 = vadd.f32 1e-05, %v1651_v8  ;;  %v11086_v8 = vor.u32 %v14251_v33, %v11085_v32  ;;  %v11199_v32 = vld [vmem:[#allocation16 + $0x3f8] sm:$0xf0]  ;;  %v10958_v33 = vor.u32 %v14219_v17, %v10957_v16  ;;  %v14245_v16 = vld [vmem:[#allocation16 + $0x1f4] sm:$0xf0] }
 0x66b   : > { %v14241_v17 = vld [vmem:[#allocation16 + $0x1bc] sm:$0xf] }
 0x66c   : > { %15190 = vrsqrt.f32 %v1652_v39  ;;  %vm1659_vm12 = vweird.f32 %v1652_v39 }
 0x672   : > { %v15191_v40 = vpop.eup %15190 }
 0x673   : > { %v1654_v42 = vmul.f32 %v15191_v40, %v1652_v39  ;;  %vm1660_vm11 = vweird.f32 %v15191_v40  ;;  %v11090_v39 = vor.u32 %v14247_v34, %v11087_v14  ;;  %v10962_v34 = vor.u32 %v14215_v18, %v10959_v19  ;;  %v11071_v18 = vld [vmem:[#allocation16 + $0x1f8] sm:$0xf0] }
 0x674   : > { %vm1661_vm13 = vmor %vm1659_vm12, %vm1660_vm11 }
 0x675   : > { %v1655_v43 = vmul.f32 %v15191_v40, %v1654_v42  ;;  %v11047_v42 = vld [vmem:[#allocation16 + $0x1e0] sm:$0xf0] }
 0x677   : > { %v1656_v44 = vmul.f32 0.5, %v1655_v43  ;;  %v11053_v43 = vld [vmem:[#allocation16 + $0x1a8] sm:$0xf] }
 0x679   : > { %v1657_v45 = vsub.f32 1.5, %v1656_v44  ;;  %v14243_v44 = vld [vmem:[#allocation16 + $0x1e4] sm:$0xf0] }
 0x67b   : > { %v1658_v46 = vmul.f32 %v15191_v40, %v1657_v45  ;;  %v14239_v45 = vld [vmem:[#allocation16 + $0x1ac] sm:$0xf] }
 0x67d   : > { %v1662_v49 = vsel %vm1661_vm13, %v15191_v40, %v1658_v46  ;;  %v14238_v40 = vld [vmem:[#allocation16 + $0x1a4] sm:$0xf]  ;;  %v11055_v46 = vld [vmem:[#allocation16 + $0x1e8] sm:$0xf0] }
 0x67e   : > { %v1663_v51 = vmul.f32 %v1662_v49, %v16341_v54  ;;  %v11182_v54 = vor.u32 %v14275_v59, %v11181_v57  ;;  %v11050_v49 = vor.u32 %v14238_v40, %v11047_v42  ;;  %v11058_v53 = vor.u32 %v14239_v45, %v11055_v46  ;;  %v14235_v57 = vld [vmem:[#allocation16 + $0x164] sm:$0xf0]  ;;  %v14231_v59 = vld [vmem:[#allocation16 + $0x12c] sm:$0xf]  ;;  %v11159_v40 = vld [vmem:[#allocation16 + $0x370] sm:$0xf0] }
 0x67f   : > { %v11022_v21 = vor.u32 %v14235_v57, %v11021_v56  ;;  %v11165_v42 = vld [vmem:[#allocation16 + $0x338] sm:$0xf]  ;;  %v11167_v45 = vld [vmem:[#allocation16 + $0x378] sm:$0xf0] }
 0x680   : > { %v1667_v52 = vmul.f32 %v15138_v48, %v1663_v51  ;;  %v11046_v48 = vor.u32 %v14242_v38, %v11045_v37  ;;  %v14234_v51 = vld [vmem:[#allocation16 + $0x15c] sm:$0xf0]  ;;  %v14268_v37 = vld [vmem:[#allocation16 + $0x36c] sm:$0xf0]  ;;  %v11198_v38 = vor.u32 %v14277_v29, %v11197_v26  ;;  %v14261_v56 = vld [vmem:[#allocation16 + $0x2f4] sm:$0xf0]  ;;  %v11074_v26 = vor.u32 %v14241_v17, %v11071_v18 }
 0x681   : > { %v14257_v57 = vld [vmem:[#allocation16 + $0x2bc] sm:$0xf]  ;;  %v11037_v29 = vld [vmem:[#allocation16 + $0x138] sm:$0xf]  ;;  %v14297_v17 = vld [vmem:[#allocation19 + $0x298] sm:$0xff] }
 0x682   : > { %v16347_v58 = vadd.f32 %v15139_v50, %v1667_v52  ;;  %v11013_v50 = vld [vmem:[#allocation16 + $0x120] sm:$0xf]  ;;  %v11054_v52 = vor.u32 %v14243_v44, %v11053_v43  ;;  %v14269_v43 = vld [vmem:[#allocation16 + $0x374] sm:$0xf0]  ;;  %v14265_v44 = vld [vmem:[#allocation16 + $0x33c] sm:$0xf] }
 0x683   : > { %v11014_v61 = vor.u32 %v14234_v51, %v11013_v50  ;;  %v14260_v50 = vld [vmem:[#allocation16 + $0x2ec] sm:$0xf0]  ;;  %v11166_v51 = vor.u32 %v14269_v43, %v11165_v42  ;;  %v14229_v42 = vld [vmem:[#allocation16 + $0xf4] sm:$0xf0]  ;;  %v14225_v43 = vld [vmem:[#allocation16 + $0xbc] sm:$0xf] }
 0x684   : > { %v16351_v62 = vpack.c.bf16 %v16347_v58, %v16347_v58  ;;  %v14305_v18 = vld [vmem:[#allocation19 + $0x2d8] sm:$0xff] }
 0x686   : > { %2083 = vmatmul.bf16.vlgmr.msrb.gmra.mxu0 %v16351_v62  ;;  %2096 = vmatmul.bf16.vlgmr.msrb.gmra.mxu1 %v16351_v62 }
 0x687   : > { %2109 = vmatmul.bf16.vlgmr.msrb.gmra.mxu2 %v16351_v62  ;;  %2122 = vmatmul.bf16.vlgmr.msra.gmra.mxu3 %v16351_v62 }
 0x688   : > { %2725 = vmatpush.bf16.msrb.mxu0 %v11174_v31  ;;  %2738 = vmatpush.bf16.msrb.mxu1 %v11178_v63  ;;  %v11018_v31 = vor.u32 %v14230_v24, %v11015_v55  ;;  %v10981_v63 = vld [vmem:[#allocation16 + $0xa0] sm:$0xf]  ;;  %v11127_v24 = vld [vmem:[#allocation16 + $0x2f0] sm:$0xf0]  ;;  %v11133_v55 = vld [vmem:[#allocation16 + $0x2b8] sm:$0xf] }
 0x689   : > { %2751 = vmatpush.bf16.msrb.mxu2 %v11182_v54  ;;  %2764 = vmatpush.bf16.msra.mxu3 %v11186_v1  ;;  %v11026_v54 = vor.u32 %v14231_v59, %v11023_v60  ;;  %v14222_v1 = vld [vmem:[#allocation16 + $0xa4] sm:$0xf]  ;;  %v11135_v59 = vld [vmem:[#allocation16 + $0x2f8] sm:$0xf0] }
 0x68c   : > { %2726 = vmatpush.bf16.msrb.mxu0 %v11142_v7  ;;  %2739 = vmatpush.bf16.msrb.mxu1 %v11146_v9  ;;  %v10982_v7 = vor.u32 %v14226_v0, %v10981_v63  ;;  %v10986_v9 = vor.u32 %v14222_v1, %v10983_v2  ;;  %v14252_v63 = vld [vmem:[#allocation16 + $0x26c] sm:$0xf0]  ;;  %v11134_v0 = vor.u32 %v14261_v56, %v11133_v55  ;;  %v11095_v1 = vld [vmem:[#allocation16 + $0x270] sm:$0xf0]  ;;  %v11101_v2 = vld [vmem:[#allocation16 + $0x238] sm:$0xf] }
 0x68d   : > { %2752 = vmatpush.bf16.msrb.mxu2 %v11150_v12  ;;  %2765 = vmatpush.bf16.msra.mxu3 %v11154_v13  ;;  %v10951_v12 = vld [vmem:[#allocation16 + $0x60] sm:$0xf0]  ;;  %v10990_v13 = vor.u32 %v14227_v4, %v10989_v3  ;;  %v14253_v3 = vld [vmem:[#allocation16 + $0x274] sm:$0xf0]  ;;  %v14249_v4 = vld [vmem:[#allocation16 + $0x23c] sm:$0xf] }
 0x68e   : > { %v14221_v55 = vld [vmem:[#allocation16 + $0x74] sm:$0xf0]  ;;  %v14217_v56 = vld [vmem:[#allocation16 + $0x3c] sm:$0xf] }
 0x690   : > { %2727 = vmatpush.bf16.msrb.mxu0 %v11110_v22  ;;  %2740 = vmatpush.bf16.msrb.mxu1 %v11114_v23  ;;  %v14276_v22 = vld [vmem:[#allocation16 + $0x3ec] sm:$0xf0]  ;;  %v14272_v23 = vld [vmem:[#allocation16 + $0x3b4] sm:$0xf] }
 0x691   : > { %2753 = vmatpush.bf16.msrb.mxu2 %v11118_v27  ;;  %2766 = vmatpush.bf16.msra.mxu3 %v11122_v28  ;;  %v10950_v27 = vor.u32 %v14218_v10, %v10949_v6  ;;  %v10954_v28 = vor.u32 %v14214_v11, %v10951_v12  ;;  %v11190_v14 = vor.u32 %v14276_v22, %v11189_v20  ;;  %v14240_v12 = vld [vmem:[#allocation16 + $0x1b4] sm:$0xf]  ;;  %v11029_v22 = vld [vmem:[#allocation16 + $0x130] sm:$0xf] }
 0x692   : > { %v11102_v10 = vor.u32 %v14253_v3, %v11101_v2  ;;  %v11106_v11 = vor.u32 %v14249_v4, %v11103_v5  ;;  %v14292_v2 = vld [vmem:[#allocation19 + $0x270] sm:$0xff]  ;;  %v14283_v5 = vld [vmem:[#allocation19 + $0x228] sm:$0xff] }
 0x693   : > { %v14300_v3 = vld [vmem:[#allocation19 + $0x2b0] sm:$0xff] }
 0x694   : > { %2728 = vmatpush.bf16.msrb.mxu0 %v11078_v35  ;;  %2741 = vmatpush.bf16.msrb.mxu1 %v11082_v36  ;;  %v11194_v35 = vor.u32 %v14272_v23, %v11191_v25  ;;  %v11157_v36 = vld [vmem:[#allocation16 + $0x330] sm:$0xf]  ;;  %v14308_v4 = vld [vmem:[#allocation19 + $0x2f0] sm:$0xff] }
 0x695   : > { %2754 = vmatpush.bf16.msrb.mxu2 %v11086_v8  ;;  %2767 = vmatpush.bf16.msra.mxu3 %v11090_v39  ;;  %v11202_v8 = vor.u32 %v14273_v30, %v11199_v32  ;;  %v14264_v39 = vld [vmem:[#allocation16 + $0x334] sm:$0xf]  ;;  %v11158_v46 = vor.u32 %v14268_v37, %v11157_v36  ;;  %v14236_v23 = vld [vmem:[#allocation16 + $0x16c] sm:$0xf0]  ;;  %v14237_v30 = vld [vmem:[#allocation16 + $0x174] sm:$0xf0] }
 0x696   : > { %2135 = vmatmul.bf16.vlgmr.msra.gmra.mxu0 %v16351_v62  ;;  %2148 = vmatmul.bf16.vlgmr.msra.gmra.mxu1 %v16351_v62  ;;  %v14233_v32 = vld [vmem:[#allocation16 + $0x13c] sm:$0xf]  ;;  %v14228_v36 = vld [vmem:[#allocation16 + $0xec] sm:$0xf0]  ;;  %v11038_v37 = vor.u32 %v14237_v30, %v11037_v29 }
 0x697   : > { %2161 = vmatmul.bf16.vlgmr.msra.gmra.mxu2 %v16351_v62  ;;  %2174 = vmatmul.bf16.vlgmr.msrb.gmra.mxu3 %v16351_v62  ;;  %v14295_v29 = vld [vmem:[#allocation19 + $0x288] sm:$0xff] }
 0x698   : > { %2729 = vmatpush.bf16.msrb.mxu0 %v11046_v48  ;;  %2742 = vmatpush.bf16.msrb.mxu1 %v11050_v49  ;;  %v11162_v48 = vor.u32 %v14264_v39, %v11159_v40  ;;  %v11125_v49 = vld [vmem:[#allocation16 + $0x2b0] sm:$0xf]  ;;  %v10999_v39 = vld [vmem:[#allocation16 + $0xf0] sm:$0xf0]  ;;  %v11005_v40 = vld [vmem:[#allocation16 + $0xb8] sm:$0xf] }
 0x699   : > { %2755 = vmatpush.bf16.msrb.mxu2 %v11054_v52  ;;  %2768 = vmatpush.bf16.msra.mxu3 %v11058_v53  ;;  %v11170_v52 = vor.u32 %v14265_v44, %v11167_v45  ;;  %v14256_v53 = vld [vmem:[#allocation16 + $0x2b4] sm:$0xf]  ;;  %v11126_v60 = vor.u32 %v14260_v50, %v11125_v49  ;;  %v11007_v44 = vld [vmem:[#allocation16 + $0xf8] sm:$0xf0]  ;;  %v14220_v49 = vld [vmem:[#allocation16 + $0x6c] sm:$0xf0]  ;;  %v11006_v50 = vor.u32 %v14229_v42, %v11005_v40 }
 0x69a   : > { %v14303_v30 = vld [vmem:[#allocation19 + $0x2c8] sm:$0xff]  ;;  %v14314_v40 = vld [vmem:[#allocation19 + $0x320] sm:$0xff] }
 0x69b   : > { %v14322_v42 = vld [vmem:[#allocation19 + $0x360] sm:$0xff] }
 0x69c   : > { %2730 = vmatpush.bf16.msrb.mxu0 %v11014_v61  ;;  %2743 = vmatpush.bf16.msrb.mxu1 %v11018_v31  ;;  %v11130_v61 = vor.u32 %v14256_v53, %v11127_v24  ;;  %v11093_v31 = vld [vmem:[#allocation16 + $0x230] sm:$0xf]  ;;  %v10967_v53 = vld [vmem:[#allocation16 + $0x70] sm:$0xf0]  ;;  %v10973_v24 = vld [vmem:[#allocation16 + $0x38] sm:$0xf] }
 0x69d   : > { %2756 = vmatpush.bf16.msrb.mxu2 %v11022_v21  ;;  %2769 = vmatpush.bf16.msra.mxu3 %v11026_v54  ;;  %v11138_v21 = vor.u32 %v14257_v57, %v11135_v59  ;;  %v14248_v54 = vld [vmem:[#allocation16 + $0x234] sm:$0xf]  ;;  %v11094_v41 = vor.u32 %v14252_v63, %v11093_v31  ;;  %v10975_v57 = vld [vmem:[#allocation16 + $0x78] sm:$0xf0]  ;;  %v14285_v63 = vld [vmem:[#allocation19 + $0x238] sm:$0xff] }
 0x69e   : > { %v11098_v6 = vor.u32 %v14248_v54, %v11095_v1  ;;  %v10978_v31 = vor.u32 %v14217_v56, %v10975_v57  ;;  %v14309_v54 = vld [vmem:[#allocation19 + $0x2f8] sm:$0xff]  ;;  %v14284_v1 = vld [vmem:[#allocation19 + $0x230] sm:$0xff]  ;;  %v14311_v56 = vld [vmem:[#allocation19 + $0x308] sm:$0xff] }
 0x69f   : > { %v14319_v57 = vld [vmem:[#allocation19 + $0x348] sm:$0xff] }
 0x6a0   : > { %2731 = vmatpush.bf16.msrb.mxu0 %v10982_v7  ;;  %2744 = vmatpush.bf16.msrb.mxu1 %v10986_v9  ;;  %v11061_v7 = vld [vmem:[#allocation16 + $0x1b0] sm:$0xf] }
 0x6a1   : > { %2757 = vmatpush.bf16.msrb.mxu2 %v10990_v13  ;;  %2770 = vmatpush.bf16.msra.mxu3 %v10994_v15  ;;  %v14244_v9 = vld [vmem:[#allocation16 + $0x1ec] sm:$0xf0]  ;;  %v11063_v13 = vld [vmem:[#allocation16 + $0x1f0] sm:$0xf0]  ;;  %v11069_v15 = vld [vmem:[#allocation16 + $0x1b8] sm:$0xf] }
 0x6a2   : > { %v11062_v19 = vor.u32 %v14244_v9, %v11061_v7  ;;  %v11066_v20 = vor.u32 %v14240_v12, %v11063_v13  ;;  %v11070_v25 = vor.u32 %v14245_v16, %v11069_v15  ;;  %v14307_v7 = vld [vmem:[#allocation19 + $0x2e8] sm:$0xff]  ;;  %v14282_v9 = vld [vmem:[#allocation19 + $0x220] sm:$0xff]  ;;  %v14281_v12 = vld [vmem:[#allocation19 + $0x218] sm:$0xff] }
 0x6a3   : > { %v14289_v13 = vld [vmem:[#allocation19 + $0x258] sm:$0xff]  ;;  %v14280_v15 = vld [vmem:[#allocation19 + $0x210] sm:$0xff] }
 0x6a4   : > { %2732 = vmatpush.bf16.msrb.mxu0 %v10950_v27  ;;  %2745 = vmatpush.bf16.msrb.mxu1 %v10954_v28  ;;  %v14232_v27 = vld [vmem:[#allocation16 + $0x134] sm:$0xf]  ;;  %v14288_v16 = vld [vmem:[#allocation19 + $0x250] sm:$0xff] }
 0x6a5   : > { %2758 = vmatpush.bf16.msrb.mxu2 %v10958_v33  ;;  %2771 = vmatpush.bf16.msra.mxu3 %v10962_v34  ;;  %v11031_v28 = vld [vmem:[#allocation16 + $0x170] sm:$0xf0]  ;;  %v11039_v33 = vld [vmem:[#allocation16 + $0x178] sm:$0xf0]  ;;  %v11030_v34 = vor.u32 %v14236_v23, %v11029_v22  ;;  %v14296_v22 = vld [vmem:[#allocation19 + $0x290] sm:$0xff] }
 0x6a6   : > { %v14304_v23 = vld [vmem:[#allocation19 + $0x2d0] sm:$0xff] }
 0x6a7   : > { %2733 = vmatmul.bf16.vlgmr.msrb.gmra.mxu0 %v16351_v62  ;;  %2746 = vmatmul.bf16.vlgmr.msrb.gmra.mxu1 %v16351_v62 }
 0x6a8   : > { %2777 = vmatpush.bf16.msra.mxu0 %v11190_v14  ;;  %2790 = vmatpush.bf16.msra.mxu1 %v11194_v35  ;;  %v11034_v14 = vor.u32 %v14232_v27, %v11031_v28  ;;  %v10997_v35 = vld [vmem:[#allocation16 + $0xb0] sm:$0xf]  ;;  %v14317_v27 = vld [vmem:[#allocation19 + $0x338] sm:$0xff] }
 0x6a9   : > { %2803 = vmatpush.bf16.msra.mxu2 %v11198_v38  ;;  %2816 = vmatpush.bf16.msrb.mxu3 %v11202_v8  ;;  %v11042_v38 = vor.u32 %v14233_v32, %v11039_v33  ;;  %v14224_v8 = vld [vmem:[#allocation16 + $0xb4] sm:$0xf]  ;;  %v10998_v45 = vor.u32 %v14228_v36, %v10997_v35  ;;  %v14325_v28 = vld [vmem:[#allocation19 + $0x378] sm:$0xff]  ;;  %v14316_v32 = vld [vmem:[#allocation19 + $0x330] sm:$0xff] }
 0x6aa   : > { %2759 = vmatmul.bf16.vlgmr.msrb.gmra.mxu2 %v16351_v62  ;;  %2772 = vmatmul.bf16.vlgmr.msra.gmra.mxu3 %v16351_v62  ;;  %v14324_v33 = vld [vmem:[#allocation19 + $0x370] sm:$0xff]  ;;  %v14333_v35 = vld [vmem:[#allocation19 + $0x3b8] sm:$0xff] }
 0x6ab   : > { %v14341_v36 = vld [vmem:[#allocation19 + $0x3f8] sm:$0xff] }
 0x6ac   : > { %2778 = vmatpush.bf16.msra.mxu0 %v11158_v46  ;;  %2791 = vmatpush.bf16.msra.mxu1 %v11162_v48  ;;  %v11002_v46 = vor.u32 %v14224_v8, %v10999_v39  ;;  %v10965_v48 = vld [vmem:[#allocation16 + $0x30] sm:$0xf]  ;;  %v14332_v8 = vld [vmem:[#allocation19 + $0x3b0] sm:$0xff] }
 0x6ad   : > { %2804 = vmatpush.bf16.msra.mxu2 %v11166_v51  ;;  %2817 = vmatpush.bf16.msrb.mxu3 %v11170_v52  ;;  %v11010_v51 = vor.u32 %v14225_v43, %v11007_v44  ;;  %v14216_v52 = vld [vmem:[#allocation16 + $0x34] sm:$0xf]  ;;  %v10966_v59 = vor.u32 %v14220_v49, %v10965_v48  ;;  %v14340_v39 = vld [vmem:[#allocation19 + $0x3f0] sm:$0xff]  ;;  %v14331_v43 = vld [vmem:[#allocation19 + $0x3a8] sm:$0xff] }
 0x6ae   : > { %v14339_v44 = vld [vmem:[#allocation19 + $0x3e8] sm:$0xff]  ;;  %v14330_v48 = vld [vmem:[#allocation19 + $0x3a0] sm:$0xff] }
 0x6af   : > { %v14338_v49 = vld [vmem:[#allocation19 + $0x3e0] sm:$0xff] }
 0x6b0   : > { %2779 = vmatpush.bf16.msra.mxu0 %v11126_v60  ;;  %2792 = vmatpush.bf16.msra.mxu1 %v11130_v61  ;;  %v10970_v60 = vor.u32 %v14216_v52, %v10967_v53  ;;  %v10974_v61 = vor.u32 %v14221_v55, %v10973_v24  ;;  %v14329_v24 = vld [vmem:[#allocation19 + $0x398] sm:$0xff] }
 0x6b1   : > { %2805 = vmatpush.bf16.msra.mxu2 %v11134_v0  ;;  %2818 = vmatpush.bf16.msrb.mxu3 %v11138_v21  ;;  %v14293_v0 = vld [vmem:[#allocation19 + $0x278] sm:$0xff] }
 0x6b2   : > { %v14301_v21 = vld [vmem:[#allocation19 + $0x2b8] sm:$0xff] }
 0x6b3   : > { %v14337_v55 = vld [vmem:[#allocation19 + $0x3d8] sm:$0xff] }
 0x6b4   : > { %2780 = vmatpush.bf16.msra.mxu0 %v11094_v41  ;;  %2793 = vmatpush.bf16.msra.mxu1 %v11098_v6  ;;  %v14291_v41 = vld [vmem:[#allocation19 + $0x268] sm:$0xff] }
 0x6b5   : > { %2806 = vmatpush.bf16.msra.mxu2 %v11102_v10  ;;  %2819 = vmatpush.bf16.msrb.mxu3 %v11106_v11  ;;  %v14299_v6 = vld [vmem:[#allocation19 + $0x2a8] sm:$0xff]  ;;  %v14290_v10 = vld [vmem:[#allocation19 + $0x260] sm:$0xff] }
 0x6b6   : > { %v14298_v11 = vld [vmem:[#allocation19 + $0x2a0] sm:$0xff] }
 0x6b8   : > { %2781 = vmatpush.bf16.msra.mxu0 %v11062_v19  ;;  %2794 = vmatpush.bf16.msra.mxu1 %v11066_v20  ;;  %v14279_v19 = vld [vmem:[#allocation19 + $0x208] sm:$0xff] }
 0x6b9   : > { %2807 = vmatpush.bf16.msra.mxu2 %v11070_v25  ;;  %2820 = vmatpush.bf16.msrb.mxu3 %v11074_v26  ;;  %v14287_v20 = vld [vmem:[#allocation19 + $0x248] sm:$0xff]  ;;  %v14278_v25 = vld [vmem:[#allocation19 + $0x200] sm:$0xff] }
 0x6ba   : > { %v14286_v26 = vld [vmem:[#allocation19 + $0x240] sm:$0xff] }
 0x6bc   : > { %2782 = vmatpush.bf16.msra.mxu0 %v11030_v34  ;;  %2795 = vmatpush.bf16.msra.mxu1 %v11034_v14  ;;  %v14294_v34 = vld [vmem:[#allocation19 + $0x280] sm:$0xff] }
 0x6bd   : > { %2808 = vmatpush.bf16.msra.mxu2 %v11038_v37  ;;  %2821 = vmatpush.bf16.msrb.mxu3 %v11042_v38  ;;  %v14302_v14 = vld [vmem:[#allocation19 + $0x2c0] sm:$0xff]  ;;  %v14315_v37 = vld [vmem:[#allocation19 + $0x328] sm:$0xff] }
 0x6be   : > { %v14323_v38 = vld [vmem:[#allocation19 + $0x368] sm:$0xff] }
 0x6c0   : > { %2783 = vmatpush.bf16.msra.mxu0 %v10998_v45  ;;  %2796 = vmatpush.bf16.msra.mxu1 %v11002_v46  ;;  %v14313_v45 = vld [vmem:[#allocation19 + $0x318] sm:$0xff] }
 0x6c1   : > { %2809 = vmatpush.bf16.msra.mxu2 %v11006_v50  ;;  %2822 = vmatpush.bf16.msrb.mxu3 %v11010_v51  ;;  %v14321_v46 = vld [vmem:[#allocation19 + $0x358] sm:$0xff]  ;;  %v14312_v50 = vld [vmem:[#allocation19 + $0x310] sm:$0xff] }
 0x6c2   : > { %v14320_v51 = vld [vmem:[#allocation19 + $0x350] sm:$0xff] }
 0x6c4   : > { %2784 = vmatpush.bf16.msra.mxu0 %v10966_v59  ;;  %2797 = vmatpush.bf16.msra.mxu1 %v10970_v60  ;;  %v14328_v59 = vld [vmem:[#allocation19 + $0x390] sm:$0xff] }
 0x6c5   : > { %2810 = vmatpush.bf16.msra.mxu2 %v10974_v61  ;;  %2823 = vmatpush.bf16.msrb.mxu3 %v10978_v31  ;;  %v14336_v60 = vld [vmem:[#allocation19 + $0x3d0] sm:$0xff] }
 0x6c7   : > { %2785 = vmatmul.bf16.vlgmr.msra.gmra.mxu0 %v16351_v62  ;;  %2798 = vmatmul.bf16.vlgmr.msra.gmra.mxu1 %v16351_v62 }
 0x6c8   : > { %3357 = vmatpush.bf16.msrb.mxu0 %v14285_v63  ;;  %3370 = vmatpush.bf16.msrb.mxu1 %v14293_v0 }
 0x6c9   : > { %2811 = vmatmul.bf16.vlgmr.msra.gmra.mxu2 %v16351_v62  ;;  %2824 = vmatmul.bf16.vlgmr.msrb.gmra.mxu3 %v16351_v62  ;;  %v14306_v62 = vld [vmem:[#allocation19 + $0x2e0] sm:$0xff] }
 0x6ca   : > { %3383 = vmatpush.bf16.msrb.mxu2 %v14301_v21  ;;  %3396 = vmatpush.bf16.msra.mxu3 %v14309_v54  ;;  %v14310_v21 = vld [vmem:[#allocation19 + $0x300] sm:$0xff] }
 0x6cb   : > { %v14318_v54 = vld [vmem:[#allocation19 + $0x340] sm:$0xff] }
 0x6cc   : > { %3358 = vmatpush.bf16.msrb.mxu0 %v14284_v1  ;;  %3371 = vmatpush.bf16.msrb.mxu1 %v14292_v2  ;;  %v14327_v1 = vld [vmem:[#allocation19 + $0x388] sm:$0xff] }
 0x6cd   : > { %v14335_v2 = vld [vmem:[#allocation19 + $0x3c8] sm:$0xff] }
 0x6ce   : > { %3384 = vmatpush.bf16.msrb.mxu2 %v14300_v3  ;;  %3397 = vmatpush.bf16.msra.mxu3 %v14308_v4  ;;  %v14326_v3 = vld [vmem:[#allocation19 + $0x380] sm:$0xff] }
 0x6cf   : > { %v14334_v4 = vld [vmem:[#allocation19 + $0x3c0] sm:$0xff] }
 0x6d0   : > { %3359 = vmatpush.bf16.msrb.mxu0 %v14283_v5  ;;  %3372 = vmatpush.bf16.msrb.mxu1 %v14291_v41 }
 0x6d2   : > { %3385 = vmatpush.bf16.msrb.mxu2 %v14299_v6  ;;  %3398 = vmatpush.bf16.msra.mxu3 %v14307_v7 }
 0x6d4   : > { %3360 = vmatpush.bf16.msrb.mxu0 %v14282_v9  ;;  %3373 = vmatpush.bf16.msrb.mxu1 %v14290_v10 }
 0x6d6   : > { %3386 = vmatpush.bf16.msrb.mxu2 %v14298_v11  ;;  %3399 = vmatpush.bf16.msra.mxu3 %v14306_v62 }
 0x6d8   : > { %3361 = vmatpush.bf16.msrb.mxu0 %v14281_v12  ;;  %3374 = vmatpush.bf16.msrb.mxu1 %v14289_v13  ;;  %v16385_v12 = vld [vmem:[#allocation18 + $0x8] sm:$0xff] }
 0x6da   : > { %3387 = vmatpush.bf16.msrb.mxu2 %v14297_v17  ;;  %3400 = vmatpush.bf16.msra.mxu3 %v14305_v18  ;;  %v2390_v17 = vperm.slane %v16385_v12, 1 }
 0x6dc   : > { %3362 = vmatpush.bf16.msrb.mxu0 %v14280_v15  ;;  %3375 = vmatpush.bf16.msrb.mxu1 %v14288_v16  ;;  %v2389_v16 = vperm.slane %v16385_v12, 0 }
 0x6de   : > { %3388 = vmatpush.bf16.msrb.mxu2 %v14296_v22  ;;  %3401 = vmatpush.bf16.msra.mxu3 %v14304_v23 }
 0x6e0   : > { %3363 = vmatpush.bf16.msrb.mxu0 %v14279_v19  ;;  %3376 = vmatpush.bf16.msrb.mxu1 %v14287_v20 }
 0x6e2   : > { %3389 = vmatpush.bf16.msrb.mxu2 %v14295_v29  ;;  %3402 = vmatpush.bf16.msra.mxu3 %v14303_v30  ;;  %v14165_v29 = vld [vmem:[#allocation19 + $0x78] sm:$0xff] }
 0x6e4   : > { %3364 = vmatpush.bf16.msrb.mxu0 %v14278_v25  ;;  %3377 = vmatpush.bf16.msrb.mxu1 %v14286_v26  ;;  %v2391_v26 = vperm.slane %v16385_v12, 2 }
 0x6e6   : > { %3390 = vmatpush.bf16.msrb.mxu2 %v14294_v34  ;;  %3403 = vmatpush.bf16.msra.mxu3 %v14302_v14 }
 0x6e8   : > { %3409 = vmatpush.bf16.msra.mxu0 %v14317_v27  ;;  %3422 = vmatpush.bf16.msra.mxu1 %v14325_v28  ;;  %v2392_v27 = vperm.slane %v16385_v12, 3  ;;  %v14157_v28 = vld [vmem:[#allocation19 + $0x38] sm:$0xff] }
 0x6ea   : > { %3435 = vmatpush.bf16.msra.mxu2 %v14333_v35  ;;  %3448 = vmatpush.bf16.msrb.mxu3 %v14341_v36 }
 0x6ec   : > { %3410 = vmatpush.bf16.msra.mxu0 %v14316_v32  ;;  %3423 = vmatpush.bf16.msra.mxu1 %v14324_v33 }
 0x6ee   : > { %3436 = vmatpush.bf16.msra.mxu2 %v14332_v8  ;;  %3449 = vmatpush.bf16.msrb.mxu3 %v14340_v39  ;;  %v14164_v8 = vld [vmem:[#allocation19 + $0x70] sm:$0xff] }
 0x6f0   : > { %3411 = vmatpush.bf16.msra.mxu0 %v14315_v37  ;;  %3424 = vmatpush.bf16.msra.mxu1 %v14323_v38  ;;  %v14156_v38 = vld [vmem:[#allocation19 + $0x30] sm:$0xff] }
 0x6f2   : > { %3437 = vmatpush.bf16.msra.mxu2 %v14331_v43  ;;  %3450 = vmatpush.bf16.msrb.mxu3 %v14339_v44  ;;  %v14181_v43 = vld [vmem:[#allocation19 + $0xf8] sm:$0xff] }
 0x6f4   : > { %3412 = vmatpush.bf16.msra.mxu0 %v14314_v40  ;;  %3425 = vmatpush.bf16.msra.mxu1 %v14322_v42  ;;  %v14173_v42 = vld [vmem:[#allocation19 + $0xb8] sm:$0xff] }
 0x6f6   : > { %3438 = vmatpush.bf16.msra.mxu2 %v14330_v48  ;;  %3451 = vmatpush.bf16.msrb.mxu3 %v14338_v49  ;;  %v14163_v48 = vld [vmem:[#allocation19 + $0x68] sm:$0xff] }
 0x6f8   : > { %3413 = vmatpush.bf16.msra.mxu0 %v14313_v45  ;;  %3426 = vmatpush.bf16.msra.mxu1 %v14321_v46  ;;  %v14155_v46 = vld [vmem:[#allocation19 + $0x28] sm:$0xff] }
 0x6fa   : > { %3439 = vmatpush.bf16.msra.mxu2 %v14329_v24  ;;  %3452 = vmatpush.bf16.msrb.mxu3 %v14337_v55  ;;  %v14180_v24 = vld [vmem:[#allocation19 + $0xf0] sm:$0xff]  ;;  %v14154_v55 = vld [vmem:[#allocation19 + $0x20] sm:$0xff] }
 0x6fc   : > { %3414 = vmatpush.bf16.msra.mxu0 %v14312_v50  ;;  %3427 = vmatpush.bf16.msra.mxu1 %v14320_v51  ;;  %v14172_v51 = vld [vmem:[#allocation19 + $0xb0] sm:$0xff] }
 0x6fe   : > { %3440 = vmatpush.bf16.msra.mxu2 %v14328_v59  ;;  %3453 = vmatpush.bf16.msrb.mxu3 %v14336_v60  ;;  %v14179_v59 = vld [vmem:[#allocation19 + $0xe8] sm:$0xff]  ;;  %v14153_v60 = vld [vmem:[#allocation19 + $0x18] sm:$0xff] }
 0x700   : > { %3415 = vmatpush.bf16.msra.mxu0 %v14311_v56  ;;  %3428 = vmatpush.bf16.msra.mxu1 %v14319_v57  ;;  %v14162_v56 = vld [vmem:[#allocation19 + $0x60] sm:$0xff]  ;;  %v14171_v57 = vld [vmem:[#allocation19 + $0xa8] sm:$0xff] }
 0x702   : > { %3441 = vmatpush.bf16.msra.mxu2 %v14327_v1  ;;  %3454 = vmatpush.bf16.msrb.mxu3 %v14335_v2  ;;  %v14160_v1 = vld [vmem:[#allocation19 + $0x50] sm:$0xff]  ;;  %v2393_v2 = vperm.slane %v16385_v12, 4 }
 0x703   : > { %v16369_v52 = vpop.f32.mrf.mxu0  ;;  %v16371_v53 = vpop.f32.mrf.mxu1 }
 0x704   : > { %3416 = vmatpush.bf16.msra.mxu0 %v14310_v21  ;;  %3429 = vmatpush.bf16.msra.mxu1 %v14318_v54  ;;  %v14178_v21 = vld [vmem:[#allocation19 + $0xe0] sm:$0xff]  ;;  %v14152_v54 = vld [vmem:[#allocation19 + $0x10] sm:$0xff] }
 0x706   : > { %3442 = vmatpush.bf16.msra.mxu2 %v14326_v3  ;;  %3455 = vmatpush.bf16.msrb.mxu3 %v14334_v4  ;;  %v2394_v3 = vperm.slane %v16385_v12, 5  ;;  %v14169_v4 = vld [vmem:[#allocation19 + $0x98] sm:$0xff] }
 0x70a   : > { %v16373_v61 = vpop.f32.mrf.mxu2  ;;  %v16375_v31 = vpop.f32.mrf.mxu3 }
 0x70b   : > { %v2086_v63 = vpop.f32.mrf.mxu0  ;;  %v2099_v0 = vpop.f32.mrf.mxu1 }
 0x70c   : > { %v14161_v63 = vld [vmem:[#allocation19 + $0x58] sm:$0xff]  ;;  %v14170_v0 = vld [vmem:[#allocation19 + $0xa0] sm:$0xff] }
 0x712   : > { %v2112_v5 = vpop.f32.mrf.mxu2  ;;  %v2125_v41 = vpop.f32.mrf.mxu3 }
 0x713   : > { %v16377_v6 = vpop.f32.mrf.mxu0  ;;  %v16379_v7 = vpop.f32.mrf.mxu1  ;;  %v14177_v5 = vld [vmem:[#allocation19 + $0xd8] sm:$0xff]  ;;  %v14151_v41 = vld [vmem:[#allocation19 + $0x8] sm:$0xff] }
 0x71a   : > { %v16381_v9 = vpop.f32.mrf.mxu2  ;;  %v16383_v10 = vpop.f32.mrf.mxu3 }
 0x71b   : > { %v2138_v11 = vpop.f32.mrf.mxu0  ;;  %v2151_v62 = vpop.f32.mrf.mxu1 }
 0x71c   : > { %v14159_v11 = vld [vmem:[#allocation19 + $0x48] sm:$0xff] }
 0x722   : > { %v2164_v13 = vpop.f32.mrf.mxu2  ;;  %v2177_v15 = vpop.f32.mrf.mxu3 }
 0x724   : > { %v2734_v18 = vpop.f32.mrf.mxu0  ;;  %v2747_v19 = vpop.f32.mrf.mxu1 }
 0x725   : > { %v2735_v20 = vadd.f32 %v2734_v18, %v2389_v16  ;;  %v2748_v22 = vadd.f32 %v2747_v19, %v2390_v17  ;;  %v14168_v17 = vld [vmem:[#allocation19 + $0x90] sm:$0xff] }
 0x726   : > { %v14176_v18 = vld [vmem:[#allocation19 + $0xd0] sm:$0xff] }
 0x727   : > { %v2829_v23 = vmax.f32 %v2735_v20, 0.0  ;;  %v2830_v25 = vmax.f32 %v2748_v22, 0.0  ;;  %v2395_v22 = vperm.slane %v16385_v12, 6 }
 0x729   : > { %v2837_v30 = vpack.c.bf16 %v2829_v23, %v2829_v23  ;;  %v2838_v32 = vpack.c.bf16 %v2830_v25, %v2830_v25  ;;  %v2396_v23 = vperm.slane %v16385_v12, 7  ;;  %v14150_v25 = vld [vmem:[#allocation19] sm:$0xff] }
 0x72b   : > { %3365 = vmatmul.bf16.vlgmr.msrb.gmra.mxu0 %v2837_v30  ;;  %3378 = vmatmul.bf16.vlgmr.msrb.gmra.mxu1 %v2838_v32  ;;  %v14197_v30 = vld [vmem:[#allocation19 + $0x178] sm:$0xff]  ;;  %v16395_v32 = vld [vmem:[#allocation18] sm:$0xff] }
 0x72c   : > { %3845 = vmatpush.bf16.msrb.mxu0 %v14157_v28  ;;  %3858 = vmatpush.bf16.msrb.mxu1 %v14165_v29  ;;  %v2736_v36 = vpop.f32.mrf.mxu0  ;;  %v2749_v37 = vpop.f32.mrf.mxu1  ;;  %v14189_v29 = vld [vmem:[#allocation19 + $0x138] sm:$0xff] }
 0x72d   : > { %v2760_v33 = vpop.f32.mrf.mxu2  ;;  %v2773_v34 = vpop.f32.mrf.mxu3 }
 0x72e   : > { %v2761_v14 = vadd.f32 %v2760_v33, %v2391_v26  ;;  %v2774_v35 = vadd.f32 %v2773_v34, %v2392_v27  ;;  %v14158_v26 = vld [vmem:[#allocation19 + $0x40] sm:$0xff]  ;;  %v14167_v33 = vld [vmem:[#allocation19 + $0x88] sm:$0xff] }
 0x72f   : > { %v14175_v34 = vld [vmem:[#allocation19 + $0xc8] sm:$0xff] }
 0x730   : > { %v2831_v39 = vmax.f32 %v2761_v14, 0.0  ;;  %v2832_v40 = vmax.f32 %v2774_v35, 0.0  ;;  %3846 = vmatpush.bf16.msrb.mxu0 %v14156_v38  ;;  %3859 = vmatpush.bf16.msrb.mxu1 %v14164_v8  ;;  %v1739_v8 = vperm.slane %v16395_v32, 0 }
 0x732   : > { %v2839_v44 = vpack.c.bf16 %v2831_v39, %v2831_v39  ;;  %v2840_v45 = vpack.c.bf16 %v2832_v40, %v2832_v40  ;;  %v1740_v39 = vperm.slane %v16395_v32, 1  ;;  %v14188_v40 = vld [vmem:[#allocation19 + $0x130] sm:$0xff] }
 0x734   : > { %3391 = vmatmul.bf16.vlgmr.msrb.gmra.mxu2 %v2839_v44  ;;  %3404 = vmatmul.bf16.vlgmr.msra.gmra.mxu3 %v2840_v45  ;;  %v14166_v45 = vld [vmem:[#allocation19 + $0x80] sm:$0xff] }
 0x735   : > { %3871 = vmatpush.bf16.msrb.mxu2 %v14173_v42  ;;  %3884 = vmatpush.bf16.msra.mxu3 %v14181_v43  ;;  %v2762_v49 = vpop.f32.mrf.mxu2  ;;  %v2775_v50 = vpop.f32.mrf.mxu3  ;;  %v14196_v42 = vld [vmem:[#allocation19 + $0x170] sm:$0xff] }
 0x736   : > { %3847 = vmatpush.bf16.msrb.mxu0 %v14155_v46  ;;  %3860 = vmatpush.bf16.msrb.mxu1 %v14163_v48  ;;  %v14174_v46 = vld [vmem:[#allocation19 + $0xc0] sm:$0xff]  ;;  %v14205_v50 = vld [vmem:[#allocation19 + $0x1b8] sm:$0xff] }
 0x739   : > { %3872 = vmatpush.bf16.msrb.mxu2 %v14172_v51  ;;  %3885 = vmatpush.bf16.msra.mxu3 %v14180_v24  ;;  %v14213_v51 = vld [vmem:[#allocation19 + $0x1f8] sm:$0xff]  ;;  %v2085_v24 = vadd.f32 %v16369_v52, %v1739_v8  ;;  %v14212_v52 = vld [vmem:[#allocation19 + $0x1f0] sm:$0xff] }
 0x73a   : > { %3848 = vmatpush.bf16.msrb.mxu0 %v14154_v55  ;;  %3861 = vmatpush.bf16.msrb.mxu1 %v14162_v56  ;;  %v2098_v55 = vadd.f32 %v16371_v53, %v1740_v39  ;;  %v14187_v56 = vld [vmem:[#allocation19 + $0x128] sm:$0xff] }
 0x73b   : > { %v14199_v39 = vld [vmem:[#allocation19 + $0x188] sm:$0xff] }
 0x73c   : > { %v2180_v53 = vmax.f32 %v2098_v55, 0.0 }
 0x73d   : > { %3873 = vmatpush.bf16.msrb.mxu2 %v14171_v57  ;;  %3886 = vmatpush.bf16.msra.mxu3 %v14179_v59  ;;  %v14195_v57 = vld [vmem:[#allocation19 + $0x168] sm:$0xff] }
 0x73e   : > { %3849 = vmatpush.bf16.msrb.mxu0 %v14153_v60  ;;  %3862 = vmatpush.bf16.msrb.mxu1 %v14161_v63  ;;  %v1741_v63 = vperm.slane %v16395_v32, 2 }
 0x741   : > { %3874 = vmatpush.bf16.msrb.mxu2 %v14170_v0  ;;  %3887 = vmatpush.bf16.msra.mxu3 %v14178_v21  ;;  %v1742_v0 = vperm.slane %v16395_v32, 3  ;;  %v14204_v21 = vld [vmem:[#allocation19 + $0x1b0] sm:$0xff] }
 0x742   : > { %3850 = vmatpush.bf16.msrb.mxu0 %v14152_v54  ;;  %3863 = vmatpush.bf16.msrb.mxu1 %v14160_v1  ;;  %v2179_v54 = vmax.f32 %v2085_v24, 0.0  ;;  %v14186_v1 = vld [vmem:[#allocation19 + $0x120] sm:$0xff] }
 0x744   : > { %v2786_v62 = vpop.f32.mrf.mxu0  ;;  %v2799_v13 = vpop.f32.mrf.mxu1 }
 0x745   : > { %v2787_v15 = vadd.f32 %v2786_v62, %v2393_v2  ;;  %v2800_v16 = vadd.f32 %v2799_v13, %v2394_v3  ;;  %3875 = vmatpush.bf16.msrb.mxu2 %v14169_v4  ;;  %3888 = vmatpush.bf16.msra.mxu3 %v14177_v5  ;;  %v14194_v2 = vld [vmem:[#allocation19 + $0x160] sm:$0xff]  ;;  %v2111_v3 = vadd.f32 %v16373_v61, %v1741_v63  ;;  %v14203_v5 = vld [vmem:[#allocation19 + $0x1a8] sm:$0xff]  ;;  %v14185_v13 = vld [vmem:[#allocation19 + $0x118] sm:$0xff] }
 0x746   : > { %3851 = vmatpush.bf16.msrb.mxu0 %v14151_v41  ;;  %3864 = vmatpush.bf16.msrb.mxu1 %v14159_v11  ;;  %v2124_v4 = vadd.f32 %v16375_v31, %v1742_v0  ;;  %v14211_v41 = vld [vmem:[#allocation19 + $0x1e8] sm:$0xff]  ;;  %v2187_v11 = vpack.c.bf16 %v2179_v54, %v2179_v54  ;;  %v2188_v62 = vpack.c.bf16 %v2180_v53, %v2180_v53  ;;  %v14210_v61 = vld [vmem:[#allocation19 + $0x1e0] sm:$0xff]  ;;  %v14184_v31 = vld [vmem:[#allocation19 + $0x110] sm:$0xff] }
 0x747   : > { %v2833_v19 = vmax.f32 %v2787_v15, 0.0  ;;  %v2834_v20 = vmax.f32 %v2800_v16, 0.0  ;;  %v14193_v15 = vld [vmem:[#allocation19 + $0x158] sm:$0xff]  ;;  %v2181_v16 = vmax.f32 %v2111_v3, 0.0 }
 0x749   : > { %v2841_v27 = vpack.c.bf16 %v2833_v19, %v2833_v19  ;;  %v2842_v28 = vpack.c.bf16 %v2834_v20, %v2834_v20  ;;  %3876 = vmatpush.bf16.msrb.mxu2 %v14168_v17  ;;  %3889 = vmatpush.bf16.msra.mxu3 %v14176_v18  ;;  %v2182_v17 = vmax.f32 %v2124_v4, 0.0  ;;  %v14202_v18 = vld [vmem:[#allocation19 + $0x1a0] sm:$0xff]  ;;  %v14192_v19 = vld [vmem:[#allocation19 + $0x150] sm:$0xff]  ;;  %v1743_v20 = vperm.slane %v16395_v32, 4 }
 0x74a   : > { %3852 = vmatpush.bf16.msrb.mxu0 %v14150_v25  ;;  %3865 = vmatpush.bf16.msrb.mxu1 %v14158_v26  ;;  %v14201_v26 = vld [vmem:[#allocation19 + $0x198] sm:$0xff] }
 0x74b   : > { %3417 = vmatmul.bf16.vlgmr.msra.gmra.mxu0 %v2841_v27  ;;  %3430 = vmatmul.bf16.vlgmr.msra.gmra.mxu1 %v2842_v28  ;;  %v2190_v25 = vpack.c.bf16 %v2182_v17, %v2182_v17  ;;  %v14209_v27 = vld [vmem:[#allocation19 + $0x1d8] sm:$0xff]  ;;  %v14183_v28 = vld [vmem:[#allocation19 + $0x108] sm:$0xff] }
 0x74c   : > { %v2812_v14 = vpop.f32.mrf.mxu2  ;;  %v2825_v35 = vpop.f32.mrf.mxu3 }
 0x74d   : > { %v2813_v36 = vadd.f32 %v2812_v14, %v2395_v22  ;;  %v2826_v37 = vadd.f32 %v2825_v35, %v2396_v23  ;;  %v2788_v12 = vpop.f32.mrf.mxu0  ;;  %v2801_v38 = vpop.f32.mrf.mxu1  ;;  %3877 = vmatpush.bf16.msrb.mxu2 %v14167_v33  ;;  %3890 = vmatpush.bf16.msra.mxu3 %v14175_v34  ;;  %v1744_v22 = vperm.slane %v16395_v32, 5  ;;  %v2189_v23 = vpack.c.bf16 %v2181_v16, %v2181_v16  ;;  %v14200_v34 = vld [vmem:[#allocation19 + $0x190] sm:$0xff] }
 0x74e   : > { %3897 = vmatpush.bf16.msra.mxu0 %v14189_v29  ;;  %3910 = vmatpush.bf16.msra.mxu1 %v14197_v30  ;;  %v14191_v29 = vld [vmem:[#allocation19 + $0x148] sm:$0xff]  ;;  %v2137_v30 = vadd.f32 %v16377_v6, %v1743_v20  ;;  %v14208_v14 = vld [vmem:[#allocation19 + $0x1d0] sm:$0xff]  ;;  %v1745_v35 = vperm.slane %v16395_v32, 6  ;;  %v14190_v12 = vld [vmem:[#allocation19 + $0x140] sm:$0xff] }
 0x74f   : > { %v2835_v43 = vmax.f32 %v2813_v36, 0.0  ;;  %v2836_v44 = vmax.f32 %v2826_v37, 0.0  ;;  %v2150_v33 = vadd.f32 %v16379_v7, %v1744_v22  ;;  %v1746_v36 = vperm.slane %v16395_v32, 7  ;;  %v14182_v37 = vld [vmem:[#allocation19 + $0x100] sm:$0xff]  ;;  %v14207_v6 = vld [vmem:[#allocation19 + $0x1c8] sm:$0xff] }
 0x750   : > { %v2183_v38 = vmax.f32 %v2137_v30, 0.0  ;;  %v2163_v7 = vadd.f32 %v16381_v9, %v1745_v35  ;;  %v14198_v32 = vld [vmem:[#allocation19 + $0x180] sm:$0xff] }
 0x751   : > { %v2843_v48 = vpack.c.bf16 %v2835_v43, %v2835_v43  ;;  %v2844_v49 = vpack.c.bf16 %v2836_v44, %v2836_v44  ;;  %3878 = vmatpush.bf16.msrb.mxu2 %v14166_v45  ;;  %3891 = vmatpush.bf16.msra.mxu3 %v14174_v46  ;;  %v2184_v8 = vmax.f32 %v2150_v33, 0.0  ;;  %v14206_v44 = vld [vmem:[#allocation19 + $0x1c0] sm:$0xff] }
 0x752   : > { %3898 = vmatpush.bf16.msra.mxu0 %v14188_v40  ;;  %3911 = vmatpush.bf16.msra.mxu1 %v14196_v42  ;;  %v2176_v40 = vadd.f32 %v16383_v10, %v1746_v36  ;;  %v2191_v42 = vpack.c.bf16 %v2183_v38, %v2183_v38  ;;  %v2185_v45 = vmax.f32 %v2163_v7, 0.0  ;;  %v15140_v35 = vld [vmem:[#allocation21] ss:$0 sm:$0xff]  ;;  %v14363_v7 = vld [vmem:[#allocation10 + $0x16c] sm:$0xf] }
 0x753   : > { %3443 = vmatmul.bf16.vlgmr.msra.gmra.mxu2 %v2843_v48  ;;  %3456 = vmatmul.bf16.vlgmr.msrb.gmra.mxu3 %v2844_v49  ;;  %v2192_v43 = vpack.c.bf16 %v2184_v8, %v2184_v8 }
 0x754   : > { %v2814_v59 = vpop.f32.mrf.mxu2  ;;  %v2827_v60 = vpop.f32.mrf.mxu3  ;;  %v2186_v46 = vmax.f32 %v2176_v40, 0.0  ;;  %v2193_v48 = vpack.c.bf16 %v2185_v45, %v2185_v45 }
 0x755   : > { %3923 = vmatpush.bf16.msra.mxu2 %v14205_v50  ;;  %3936 = vmatpush.bf16.msrb.mxu3 %v14213_v51 }
 0x756   : > { %3899 = vmatpush.bf16.msra.mxu0 %v14187_v56  ;;  %3912 = vmatpush.bf16.msra.mxu1 %v14195_v57  ;;  %v2194_v49 = vpack.c.bf16 %v2186_v46, %v2186_v46 }
 0x759   : > { %3924 = vmatpush.bf16.msra.mxu2 %v14204_v21  ;;  %3937 = vmatpush.bf16.msrb.mxu3 %v14212_v52 }
 0x75a   : > { %3900 = vmatpush.bf16.msra.mxu0 %v14186_v1  ;;  %3913 = vmatpush.bf16.msra.mxu1 %v14194_v2 }
 0x75b   : > { %3853 = vmatmul.bf16.vlgmr.msrb.gmra.mxu0 %v2187_v11  ;;  %3866 = vmatmul.bf16.vlgmr.msrb.gmra.mxu1 %v2188_v62 }
 0x75d   : > { %3925 = vmatpush.bf16.msra.mxu2 %v14203_v5  ;;  %3938 = vmatpush.bf16.msrb.mxu3 %v14211_v41 }
 0x75e   : > { %3901 = vmatpush.bf16.msra.mxu0 %v14185_v13  ;;  %3914 = vmatpush.bf16.msra.mxu1 %v14193_v15 }
 0x761   : > { %3926 = vmatpush.bf16.msra.mxu2 %v14202_v18  ;;  %3939 = vmatpush.bf16.msrb.mxu3 %v14210_v61 }
 0x762   : > { %3902 = vmatpush.bf16.msra.mxu0 %v14184_v31  ;;  %3915 = vmatpush.bf16.msra.mxu1 %v14192_v19 }
 0x763   : > { %3879 = vmatmul.bf16.vlgmr.msrb.gmra.mxu2 %v2189_v23  ;;  %3892 = vmatmul.bf16.vlgmr.msra.gmra.mxu3 %v2190_v25 }
 0x765   : > { %3927 = vmatpush.bf16.msra.mxu2 %v14201_v26  ;;  %3940 = vmatpush.bf16.msrb.mxu3 %v14209_v27 }
 0x766   : > { %3903 = vmatpush.bf16.msra.mxu0 %v14183_v28  ;;  %3916 = vmatpush.bf16.msra.mxu1 %v14191_v29 }
 0x769   : > { %3928 = vmatpush.bf16.msra.mxu2 %v14200_v34  ;;  %3941 = vmatpush.bf16.msrb.mxu3 %v14208_v14 }
 0x76a   : > { %3904 = vmatpush.bf16.msra.mxu0 %v14182_v37  ;;  %3917 = vmatpush.bf16.msra.mxu1 %v14190_v12 }
 0x76d   : > { %3929 = vmatpush.bf16.msra.mxu2 %v14199_v39  ;;  %3942 = vmatpush.bf16.msrb.mxu3 %v14207_v6  ;;  %v11801_v39 = vld [vmem:[#allocation10 + $0x168] sm:$0xf]  ;;  %v14364_v6 = vld [vmem:[#allocation10 + $0x170] sm:$0xf0] }
 0x76e   : > { %3905 = vmatmul.bf16.vlgmr.msra.gmra.mxu0 %v2191_v42  ;;  %3918 = vmatmul.bf16.vlgmr.msra.gmra.mxu1 %v2192_v43  ;;  %v11802_v40 = vor.u32 %v14364_v6, %v11801_v39  ;;  %v11803_v42 = vld [vmem:[#allocation10 + $0x174] sm:$0xf0]  ;;  %v11809_v43 = vld [vmem:[#allocation10 + $0x170] sm:$0xf]  ;;  %v11737_v39 = vld [vmem:[#allocation10 + $0xe0] sm:$0xf] }
 0x76f   : > { %v14347_v6 = vld [vmem:[#allocation10 + $0xe8] sm:$0xf0] }
 0x770   : > { %4156 = vmatpush.bf16.msrb.mxu0 %v11802_v40  ;;  %v11738_v40 = vor.u32 %v14347_v6, %v11737_v39 }
 0x771   : > { %3930 = vmatpush.bf16.msra.mxu2 %v14198_v32  ;;  %3943 = vmatpush.bf16.msrb.mxu3 %v14206_v44  ;;  %v14365_v32 = vld [vmem:[#allocation10 + $0x178] sm:$0xf0]  ;;  %v11806_v44 = vor.u32 %v14363_v7, %v11803_v42  ;;  %v11717_v42 = vld [vmem:[#allocation10 + $0xc0] sm:$0xf] }
 0x772   : > { %v11810_v45 = vor.u32 %v14365_v32, %v11809_v43  ;;  %v14343_v43 = vld [vmem:[#allocation10 + $0xc8] sm:$0xf0]  ;;  %v14342_v32 = vld [vmem:[#allocation10 + $0xc4] sm:$0xf] }
 0x773   : > { %4169 = vmatpush.bf16.msrb.mxu1 %v11806_v44  ;;  %v11718_v44 = vor.u32 %v14343_v43, %v11717_v42 }
 0x774   : > { %3931 = vmatmul.bf16.vlgmr.msra.gmra.mxu2 %v2193_v48  ;;  %3944 = vmatmul.bf16.vlgmr.msrb.gmra.mxu3 %v2194_v49 }
 0x775   : > { %4182 = vmatpush.bf16.msrb.mxu2 %v11810_v45  ;;  %v11719_v45 = vld [vmem:[#allocation10 + $0xcc] sm:$0xf0] }
 0x7a8   : > { %v3366_v9 = vpop.f32.mrf.mxu0  ;;  %v3379_v10 = vpop.f32.mrf.mxu1 }
 0x7a9   : > { %v3380_v63 = vadd.f32 %v3379_v10, %v3366_v9  ;;  %v11789_v9 = vld [vmem:[#allocation10 + $0x150] sm:$0xf]  ;;  %v14361_v10 = vld [vmem:[#allocation10 + $0x158] sm:$0xf0] }
 0x7b0   : > { %v3368_v50 = vpop.f32.mrf.mxu0  ;;  %v3381_v51 = vpop.f32.mrf.mxu1 }
 0x7b1   : > { %v14360_v50 = vld [vmem:[#allocation10 + $0x154] sm:$0xf]  ;;  %v11790_v51 = vor.u32 %v14361_v10, %v11789_v9 }
 0x7b3   : > { %4157 = vmatpush.bf16.msrb.mxu0 %v11790_v51 }
 0x7b7   : > { %v3392_v24 = vpop.f32.mrf.mxu2  ;;  %v3405_v55 = vpop.f32.mrf.mxu3 }
 0x7b8   : > { %v3393_v0 = vadd.f32 %v3392_v24, %v3380_v63  ;;  %v11791_v24 = vld [vmem:[#allocation10 + $0x15c] sm:$0xf0]  ;;  %v14358_v63 = vld [vmem:[#allocation10 + $0x140] sm:$0xf0] }
 0x7ba   : > { %v3406_v54 = vadd.f32 %v3405_v55, %v3393_v0  ;;  %v11797_v55 = vld [vmem:[#allocation10 + $0x158] sm:$0xf]  ;;  %v14357_v0 = vld [vmem:[#allocation10 + $0x13c] sm:$0xf] }
 0x7bf   : > { %v3394_v56 = vpop.f32.mrf.mxu2  ;;  %v3407_v57 = vpop.f32.mrf.mxu3 }
 0x7c0   : > { %v14362_v56 = vld [vmem:[#allocation10 + $0x160] sm:$0xf0]  ;;  %v11794_v57 = vor.u32 %v14360_v50, %v11791_v24 }
 0x7c2   : > { %4170 = vmatpush.bf16.msrb.mxu1 %v11794_v57 }
 0x7c8   : > { %v3418_v59 = vpop.f32.mrf.mxu0  ;;  %v3431_v60 = vpop.f32.mrf.mxu1 }
 0x7c9   : > { %v3419_v53 = vadd.f32 %v3418_v59, %v3406_v54  ;;  %v11798_v59 = vor.u32 %v14362_v56, %v11797_v55  ;;  %v11785_v54 = vld [vmem:[#allocation10 + $0x140] sm:$0xf] }
 0x7cb   : > { %v3432_v5 = vadd.f32 %v3431_v60, %v3419_v53  ;;  %4183 = vmatpush.bf16.msrb.mxu2 %v11798_v59  ;;  %v11777_v60 = vld [vmem:[#allocation10 + $0x138] sm:$0xf]  ;;  %v14359_v53 = vld [vmem:[#allocation10 + $0x148] sm:$0xf0] }
 0x7d0   : > { %v3420_v21 = vpop.f32.mrf.mxu0  ;;  %v3433_v52 = vpop.f32.mrf.mxu1 }
 0x7d1   : > { %v11778_v21 = vor.u32 %v14358_v63, %v11777_v60  ;;  %v11779_v52 = vld [vmem:[#allocation10 + $0x144] sm:$0xf0] }
 0x7d2   : > { %v15141_v63 = vld [vmem:[#allocation25] ss:$0 sm:$0xff] }
 0x7d3   : > { %4158 = vmatpush.bf16.msrb.mxu0 %v11778_v21  ;;  %v15142_v21 = vld [vmem:[#allocation27] ss:$0 sm:$0xff] }
 0x7d6   : > { %v3444_v1 = vpop.f32.mrf.mxu2  ;;  %v3457_v2 = vpop.f32.mrf.mxu3 }
 0x7d7   : > { %v3445_v41 = vadd.f32 %v3444_v1, %v3432_v5  ;;  %v11782_v1 = vor.u32 %v14357_v0, %v11779_v52  ;;  %v14354_v5 = vld [vmem:[#allocation10 + $0x124] sm:$0xf] }
 0x7d8   : > { %v3854_v3 = vpop.f32.mrf.mxu0  ;;  %v3867_v4 = vpop.f32.mrf.mxu1 }
 0x7d9   : > { %v3458_v13 = vadd.f32 %v3457_v2, %v3445_v41  ;;  %v11786_v2 = vor.u32 %v14359_v53, %v11785_v54  ;;  %4171 = vmatpush.bf16.msrb.mxu1 %v11782_v1 }
 0x7db   : > { %v3855_v17 = vadd.f32 %v3854_v3, %v3458_v13  ;;  %4184 = vmatpush.bf16.msrb.mxu2 %v11786_v2  ;;  %v11765_v3 = vld [vmem:[#allocation10 + $0x120] sm:$0xf]  ;;  %v14356_v13 = vld [vmem:[#allocation10 + $0x130] sm:$0xf0] }
 0x7dc   : > { %v4020_v2 = vld [vmem:[#allocation12 + $0x3] sm:$0x7] }
 0x7dd   : > { %v3868_v31 = vadd.f32 %v3867_v4, %v3855_v17  ;;  %v14355_v4 = vld [vmem:[#allocation10 + $0x128] sm:$0xf0]  ;;  %v11753_v17 = vld [vmem:[#allocation10 + $0x108] sm:$0xf] }
 0x7de   : > { %v3446_v11 = vpop.f32.mrf.mxu2  ;;  %v3459_v62 = vpop.f32.mrf.mxu3  ;;  %v11766_v41 = vor.u32 %v14355_v4, %v11765_v3  ;;  %v4022_v3 = vperm.slane %v4020_v2, 0  ;;  %v4023_v4 = vperm.slane %v4020_v2, 1 }
 0x7df   : > { %v11767_v11 = vld [vmem:[#allocation10 + $0x12c] sm:$0xf0]  ;;  %v11773_v62 = vld [vmem:[#allocation10 + $0x128] sm:$0xf] }
 0x7e0   : > { %v3856_v15 = vpop.f32.mrf.mxu0  ;;  %v3869_v16 = vpop.f32.mrf.mxu1  ;;  %4159 = vmatpush.bf16.msrb.mxu0 %v11766_v41 }
 0x7e1   : > { %v11770_v15 = vor.u32 %v14354_v5, %v11767_v11  ;;  %v11774_v16 = vor.u32 %v14356_v13, %v11773_v62 }
 0x7e3   : > { %4172 = vmatpush.bf16.msrb.mxu1 %v11770_v15  ;;  %4185 = vmatpush.bf16.msrb.mxu2 %v11774_v16  ;;  %v4024_v16 = vperm.slane %v4020_v2, 2 }
 0x7e6   : > { %v3880_v18 = vpop.f32.mrf.mxu2  ;;  %v3893_v61 = vpop.f32.mrf.mxu3 }
 0x7e7   : > { %v3881_v19 = vadd.f32 %v3880_v18, %v3868_v31  ;;  %v14352_v18 = vld [vmem:[#allocation10 + $0x110] sm:$0xf0] }
 0x7e8   : > { %v11754_v31 = vor.u32 %v14352_v18, %v11753_v17 }
 0x7e9   : > { %v3894_v23 = vadd.f32 %v3893_v61, %v3881_v19  ;;  %v14351_v61 = vld [vmem:[#allocation10 + $0x10c] sm:$0xf]  ;;  %v11755_v19 = vld [vmem:[#allocation10 + $0x114] sm:$0xf0] }
 0x7ea   : > { %4160 = vmatpush.bf16.msrb.mxu0 %v11754_v31 }
 0x7eb   : > { %v3906_v20 = vpop.f32.mrf.mxu0  ;;  %v3919_v22 = vpop.f32.mrf.mxu1 }
 0x7ec   : > { %v3907_v27 = vadd.f32 %v3906_v20, %v3894_v23  ;;  %v11761_v20 = vld [vmem:[#allocation10 + $0x110] sm:$0xf]  ;;  %v11758_v23 = vor.u32 %v14351_v61, %v11755_v19 }
 0x7ee   : > { %v3882_v25 = vpop.f32.mrf.mxu2  ;;  %v3895_v26 = vpop.f32.mrf.mxu3  ;;  %v3920_v30 = vadd.f32 %v3919_v22, %v3907_v27  ;;  %v14353_v22 = vld [vmem:[#allocation10 + $0x118] sm:$0xf0]  ;;  %4173 = vmatpush.bf16.msrb.mxu1 %v11758_v23 }
 0x7ef   : > { %v11762_v25 = vor.u32 %v14353_v22, %v11761_v20  ;;  %v11741_v26 = vld [vmem:[#allocation10 + $0xf0] sm:$0xf]  ;;  %v14349_v27 = vld [vmem:[#allocation10 + $0xf8] sm:$0xf0] }
 0x7f1   : > { %4186 = vmatpush.bf16.msrb.mxu2 %v11762_v25 }
 0x7f3   : > { %v3908_v28 = vpop.f32.mrf.mxu0  ;;  %v3921_v29 = vpop.f32.mrf.mxu1 }
 0x7f4   : > { %v14348_v28 = vld [vmem:[#allocation10 + $0xf4] sm:$0xf]  ;;  %v11742_v29 = vor.u32 %v14349_v27, %v11741_v26 }
 0x7f6   : > { %4161 = vmatpush.bf16.msrb.mxu0 %v11742_v29 }
 0x7f7   : > { %v3932_v33 = vpop.f32.mrf.mxu2  ;;  %v3945_v34 = vpop.f32.mrf.mxu3 }
 0x7f8   : > { %v3933_v14 = vadd.f32 %v3932_v33, %v3920_v30  ;;  %v11743_v30 = vld [vmem:[#allocation10 + $0xfc] sm:$0xf0]  ;;  %v11749_v33 = vld [vmem:[#allocation10 + $0xf8] sm:$0xf] }
 0x7fa   : > { %v3946_v36 = vadd.f32 %v3945_v34, %v3933_v14  ;;  %v14350_v34 = vld [vmem:[#allocation10 + $0x100] sm:$0xf0]  ;;  %v11746_v14 = vor.u32 %v14348_v28, %v11743_v30 }
 0x7fc   : > { %v3953_v37 = vadd.f32 %v15140_v35, %v3946_v36  ;;  %v11750_v35 = vor.u32 %v14350_v34, %v11749_v33  ;;  %4174 = vmatpush.bf16.msrb.mxu1 %v11746_v14  ;;  %v11729_v36 = vld [vmem:[#allocation10 + $0xd8] sm:$0xf] }
 0x7fe   : > { %v3954_v12 = vadd.f32 %v3953_v37, %v16347_v58  ;;  %4187 = vmatpush.bf16.msrb.mxu2 %v11750_v35  ;;  %v14346_v37 = vld [vmem:[#allocation10 + $0xe0] sm:$0xf0] }
 0x7ff   : > { %v3934_v38 = vpop.f32.mrf.mxu2  ;;  %v3947_v8 = vpop.f32.mrf.mxu3 }
 0x800   : > { %3957 = vadd.xlane.f32.xlu1 %v3954_v12  ;;  %v11730_v38 = vor.u32 %v14346_v37, %v11729_v36  ;;  %v11731_v8 = vld [vmem:[#allocation10 + $0xe4] sm:$0xf0] }
 0x802   : > { %4162 = vmatpush.bf16.msrb.mxu0 %v11730_v38  ;;  %4188 = vmatpush.bf16.msrb.mxu2 %v11738_v40 }
 0x806   : > { %4163 = vmatpush.bf16.msrb.mxu0 %v11718_v44 }
 0x873   : > { %v3958_v46 = vpop.xlane.xlu1 %3957 }
 0x874   : > { %v3959_v48 = vmul.f32 %v3958_v46, %v16337_v47  ;;  %v11725_v46 = vld [vmem:[#allocation10 + $0xc8] sm:$0xf] }
 0x876   : > { %v16415_v49 = vsub.f32 %v3954_v12, %v3959_v48  ;;  %v14345_v12 = vld [vmem:[#allocation10 + $0xdc] sm:$0xf]  ;;  %v14344_v48 = vld [vmem:[#allocation10 + $0xd0] sm:$0xf0] }
 0x877   : > { %v11734_v7 = vor.u32 %v14345_v12, %v11731_v8  ;;  %v11726_v9 = vor.u32 %v14344_v48, %v11725_v46 }
 0x878   : > { %v3961_v58 = vmul.f32 %v16415_v49, %v16415_v49 }
 0x879   : > { %4175 = vmatpush.bf16.msrb.mxu1 %v11734_v7  ;;  %4189 = vmatpush.bf16.msrb.mxu2 %v11726_v9 }
 0x87a   : > { %3962 = vadd.xlane.f32.xlu0 %v3961_v58  ;;  %v11722_v58 = vor.u32 %v14342_v32, %v11719_v45 }
 0x87d   : > { %4176 = vmatpush.bf16.msrb.mxu1 %v11722_v58 }
 0x8ed   : > { %v3963_v10 = vpop.xlane.xlu0 %3962 }
 0x8ee   : > { %v3964_v50 = vmul.f32 %v3963_v10, %v16337_v47 }
 0x8f0   : > { %v3965_v51 = vadd.f32 1e-05, %v3964_v50 }
 0x8f2   : > { %15192 = vrsqrt.f32 %v3965_v51  ;;  %vm3972_vm15 = vweird.f32 %v3965_v51 }
 0x8f8   : > { %v15193_v24 = vpop.eup %15192 }
 0x8f9   : > { %v3967_v55 = vmul.f32 %v15193_v24, %v3965_v51  ;;  %vm3973_vm14 = vweird.f32 %v15193_v24 }
 0x8fa   : > { %vm3974_vm10 = vmor %vm3972_vm15, %vm3973_vm14 }
 0x8fb   : > { %v3968_v56 = vmul.f32 %v15193_v24, %v3967_v55 }
 0x8fd   : > { %v3969_v57 = vmul.f32 0.5, %v3968_v56 }
 0x8ff   : > { %v3970_v59 = vsub.f32 1.5, %v3969_v57 }
 0x901   : > { %v3971_v60 = vmul.f32 %v15193_v24, %v3970_v59 }
 0x903   : > { %v3975_v0 = vsel %vm3974_vm10, %v15193_v24, %v3971_v60 }
 0x904   : > { %v3976_v52 = vmul.f32 %v3975_v0, %v16415_v49 }
 0x906   : > { %v3980_v54 = vmul.f32 %v15141_v63, %v3976_v52 }
 0x908   : > { %v16421_v53 = vadd.f32 %v15142_v21, %v3980_v54 }
 0x90a   : > { %v3985_v1 = vpack.c.bf16 %v16421_v53, %v16421_v53 }
 0x90c   : > { %4164 = vmatmul.bf16.vlgmr.msrb.gmra.mxu0 %v3985_v1  ;;  %4177 = vmatmul.bf16.vlgmr.msrb.gmra.mxu1 %v3985_v1 }
 0x90d   : > { %4190 = vmatmul.bf16.vlgmr.msrb.gmra.mxu2 %v3985_v1 }
 0x989   : > { %v4165_v5 = vpop.f32.mrf.mxu0  ;;  %v4178_v41 = vpop.f32.mrf.mxu1 }
 0x98a   : > { %v4166_v11 = vadd.f32 %v4165_v5, %v4022_v3  ;;  %v4179_v62 = vadd.f32 %v4178_v41, %v4023_v4 }
 0x98c   : > { %v4195_v13 = vmul.f32 0.25, %v4166_v11  ;;  %v4197_v15 = vpack.c.bf16 %v4179_v62, %v4179_v62 }
 0x98e   : > { %v4196_v49 = vpack.c.bf16 %v4195_v13, %v4195_v13  ;;  %v4203_v17 = vsel %vm826_vm0, %v4197_v15, 0  ;;  %v4256_v18 = vunpack.c.l.b16 %v4197_v15 }
 0x98f   : > { %4212 = vmatpush.bf16.xpose.msra.mxu3 %v4203_v17 }
 0x990   : > { %v4251_v61 = vunpack.c.l.b16 %v4196_v49  ;;  %v4257_v31 = vpack.c.b16 %v4256_v18, %v4256_v18  ;;  %v4191_v19 = vpop.f32.mrf.mxu2 }
 0x991   : > { %v4192_v20 = vadd.f32 %v4191_v19, %v4024_v16  ;;  %v4167_v22 = vpop.f32.mrf.mxu0  ;;  %v4180_v23 = vpop.f32.mrf.mxu1 }
 0x992   : > { %v4252_v25 = vpack.c.b16 %v4251_v61, %v4251_v61  ;;  %4322 = vrot.lane.b32.xlu0 %v4257_v31, %s15872_s25  ;;  %4258 = vrot.lane.b32.xlu2 %v4257_v31, %s15871_s4 }
 0x993   : > { %v4198_v26 = vpack.c.bf16 %v4192_v20, %v4192_v20 }
 0x994   : > { %4253 = vrot.lane.b32.xlu1 %v4252_v25, %s15871_s4 }
 0x995   : > { %v4233_v27 = vsel %vm1089_vm1, %v4198_v26, 0  ;;  %v4291_v29 = vunpack.c.l.b16 %v4198_v26 }
 0x996   : > { %4242 = vmatpush.bf16.msra.mxu0 %v4233_v27  ;;  %11811 = vmatmul.msk.bf16.vlgmr.msra.gmra.mxu3 %vm826_vm0, %v4196_v49 }
 0x997   : > { %v16442_v30 = vpack.c.b16 %v4291_v29, %v4291_v29 }
 0x998   : > { %v4193_v28 = vpop.f32.mrf.mxu2 }
 0x99a   : > { %4383 = vrot.lane.b32.xlu2 %v4257_v31, %s15873_s3  ;;  %4320 = vrot.lane.b32.xlu0 %v4252_v25, %s15872_s25 }
 0x99c   : > { %4381 = vrot.lane.b32.xlu1 %v4252_v25, %s15873_s3 }
 0x9a2   : > { %4444 = vrot.lane.b32.xlu2 %v4257_v31, %s15874_s18  ;;  %4505 = vrot.lane.b32.xlu0 %v4257_v31, %s15875_s26 }
 0x9a4   : > { %4442 = vrot.lane.b32.xlu1 %v4252_v25, %s15874_s18 }
 0x9aa   : > { %4503 = vrot.lane.b32.xlu2 %v4252_v25, %s15875_s26  ;;  %4566 = vrot.lane.b32.xlu0 %v4257_v31, %s15876_s30 }
 0x9ac   : > { %4627 = vrot.lane.b32.xlu1 %v4257_v31, %s15877_s29 }
 0x9b2   : > { %4564 = vrot.lane.b32.xlu2 %v4252_v25, %s15876_s30  ;;  %4625 = vrot.lane.b32.xlu0 %v4252_v25, %s15877_s29 }
 0x9ba   : > { %4415 = vrot.lane.b32.xlu2 %v16442_v30, %s15873_s3  ;;  %4293 = vrot.lane.b32.xlu0 %v16442_v30, %s15871_s4 }
 0x9c2   : > { %4476 = vrot.lane.b32.xlu0 %v16442_v30, %s15874_s18 }
 0x9ec   : > { %v4259_v33 = vpop.permute.xlu2 %4258 }
 0x9ed   : > { %v4264_v34 = vsel %vm826_vm0, %v4259_v33, 0 }
 0x9ee   : > { %4273 = vmatpush.bf16.xpose.msra.mxu1 %v4264_v34 }
 0x9f4   : > { %v4384_v14 = vpop.permute.xlu2 %4383 }
 0x9f5   : > { %v4389_v35 = vsel %vm826_vm0, %v4384_v14, 0 }
 0x9f6   : > { %4398 = vmatpush.bf16.xpose.msrb.mxu1 %v4389_v35 }
 0x9fc   : > { %v4445_v36 = vpop.permute.xlu2 %4444 }
 0x9fd   : > { %v4450_v38 = vsel %vm826_vm0, %v4445_v36, 0 }
 0xa04   : > { %v4323_v37 = vpop.permute.xlu0 %4322  ;;  %v4504_v43 = vpop.permute.xlu2 %4503 }
 0xa05   : > { %v4328_v12 = vsel %vm826_vm0, %v4323_v37, 0 }
 0xa06   : > { %4337 = vmatpush.bf16.xpose.msrb.mxu3 %v4328_v12  ;;  %v4254_v8 = vpop.permute.xlu1 %4253 }
 0xa07   : > { %11813 = vmatmul.msk.bf16.vlgmr.msra.gmra.mxu1 %vm826_vm0, %v4254_v8 }
 0xa0c   : > { %v4321_v39 = vpop.permute.xlu0 %4320  ;;  %v4565_v9 = vpop.permute.xlu2 %4564 }
 0xa0d   : > { %11815 = vmatmul.msk.bf16.vlgmr.msrb.gmra.mxu3 %vm826_vm0, %v4321_v39 }
 0xa0e   : > { %4459 = vmatpush.bf16.xpose.msra.mxu3 %v4450_v38  ;;  %v4382_v6 = vpop.permute.xlu1 %4381 }
 0xa14   : > { %v4506_v7 = vpop.permute.xlu0 %4505  ;;  %v4416_v51 = vpop.permute.xlu2 %4415 }
 0xa15   : > { %v4511_v40 = vsel %vm826_vm0, %v4506_v7, 0  ;;  %v4421_v56 = vsel %vm1089_vm1, %v4416_v51, 0 }
 0xa16   : > { %4520 = vmatpush.bf16.xpose.msra.mxu1 %v4511_v40  ;;  %v4443_v42 = vpop.permute.xlu1 %4442 }
 0xa17   : > { %11817 = vmatmul.msk.bf16.vlgmr.msrb.gmra.mxu1 %vm826_vm0, %v4382_v6 }
 0xa19   : > { %v4214_v32 = vpop.f32.mrf.mxu3 }
 0xa1a   : > { %v4218_v44 = vsel %vm1074_vm2, %v4214_v32, -inf }
 0xa1b   : > { %4219 = vmax.xlane.f32.xlu2 %v4218_v44 }
 0xa1c   : > { %v4567_v45 = vpop.permute.xlu0 %4566 }
 0xa1d   : > { %v4572_v46 = vsel %vm826_vm0, %v4567_v45, 0  ;;  %11819 = vmatmul.msk.bf16.vlgmr.msra.gmra.mxu3 %vm826_vm0, %v4443_v42 }
 0xa1e   : > { %v4628_v48 = vpop.permute.xlu1 %4627  ;;  %4581 = vmatpush.bf16.xpose.msrb.mxu3 %v4572_v46 }
 0xa1f   : > { %v4633_v58 = vsel %vm826_vm0, %v4628_v48, 0 }
 0xa20   : > { %4642 = vmatpush.bf16.xpose.msrb.mxu1 %v4633_v58 }
 0xa21   : > { %v4216_v10 = vpop.f32.mrf.mxu3 }
 0xa24   : > { %v4626_v50 = vpop.permute.xlu0 %4625 }
 0xa27   : > { %11821 = vmatmul.msk.bf16.vlgmr.msra.gmra.mxu1 %vm826_vm0, %v4504_v43 }
 0xa2c   : > { %v4294_v24 = vpop.permute.xlu0 %4293 }
 0xa2d   : > { %v4299_v55 = vsel %vm1089_vm1, %v4294_v24, 0  ;;  %11823 = vmatmul.msk.bf16.vlgmr.msrb.gmra.mxu3 %vm826_vm0, %v4565_v9 }
 0xa2e   : > { %4308 = vmatpush.bf16.msra.mxu2 %v4299_v55 }
 0xa32   : > { %4430 = vmatpush.bf16.msrb.mxu2 %v4421_v56 }
 0xa33   : > { %4537 = vrot.lane.b32.xlu2 %v16442_v30, %s15875_s26 }
 0xa34   : > { %v4477_v27 = vpop.permute.xlu0 %4476 }
 0xa35   : > { %v4482_v9 = vsel %vm1089_vm1, %v4477_v27, 0 }
 0xa37   : > { %11825 = vmatmul.msk.bf16.vlgmr.msrb.gmra.mxu1 %vm826_vm0, %v4626_v50 }
 0xa84   : > { %v4275_v57 = vpop.f32.mrf.mxu1 }
 0xa85   : > { %v4279_v59 = vsel %vm1074_vm2, %v4275_v57, -inf }
 0xa86   : > { %4280 = vmax.xlane.f32.xlu1 %v4279_v59 }
 0xa8c   : > { %v4277_v60 = vpop.f32.mrf.mxu1 }
 0xa8e   : > { %v4220_v63 = vpop.xlane.xlu2 %4219 }
 0xa8f   : > { %v4221_v0 = vsub.f32 %v4214_v32, %v4220_v63 }
 0xa90   : > { %v4339_v21 = vpop.f32.mrf.mxu3 }
 0xa91   : > { %v4222_v52 = vmul.f32 1.442695, %v4221_v0  ;;  %v4343_v54 = vsel %vm1074_vm2, %v4339_v21, -inf }
 0xa92   : > { %4344 = vmax.xlane.f32.xlu1 %v4343_v54 }
 0xa93   : > { %15194 = vpow2.f32 %v4222_v52 }
 0xa94   : > { %v4400_v1 = vpop.f32.mrf.mxu1 }
 0xa95   : > { %v4404_v2 = vsel %vm1074_vm2, %v4400_v1, -inf }
 0xa96   : > { %4405 = vmax.xlane.f32.xlu0 %v4404_v2  ;;  %v4538_v29 = vpop.permute.xlu2 %4537 }
 0xa97   : > { %v4543_v36 = vsel %vm1089_vm1, %v4538_v29, 0 }
 0xa98   : > { %v4341_v3 = vpop.f32.mrf.mxu3 }
 0xa99   : > { %v15195_v4 = vpop.eup %15194 }
 0xa9a   : > { %v4228_v5 = vpack.c.bf16 %v15195_v4, %v15195_v4  ;;  %v4224_v19 = vsel %vm1074_vm2, %v15195_v4, 0.0 }
 0xa9c   : > { %11812 = vmatmul.msk.bf16.vlgmr.msra.gmra.mxu0 %vm1074_vm2, %v4228_v5  ;;  %v4402_v41 = vpop.f32.mrf.mxu1 }
 0xaa0   : > { %v4461_v11 = vpop.f32.mrf.mxu3 }
 0xaa1   : > { %v4465_v62 = vsel %vm1074_vm2, %v4461_v11, -inf }
 0xaa2   : > { %4466 = vmax.xlane.f32.xlu0 %v4465_v62 }
 0xaa4   : > { %v4522_v13 = vpop.f32.mrf.mxu1 }
 0xaa5   : > { %v4526_v16 = vsel %vm1074_vm2, %v4522_v13, -inf }
 0xaa8   : > { %v4463_v15 = vpop.f32.mrf.mxu3 }
 0xaaa   : > { %4527 = vmax.xlane.f32.xlu0 %v4526_v16 }
 0xaab   : > { %4354 = vrot.lane.b32.xlu1 %v16442_v30, %s15872_s25 }
 0xaac   : > { %v4524_v49 = vpop.f32.mrf.mxu1 }
 0xab0   : > { %v16477_v17 = vpop.f32.mrf.mxu3 }
 0xab1   : > { %v4587_v18 = vsel %vm1074_vm2, %v16477_v17, -inf }
 0xab2   : > { %4588 = vmax.xlane.f32.xlu2 %v4587_v18 }
 0xab4   : > { %v16481_v61 = vpop.f32.mrf.mxu1 }
 0xab5   : > { %v4648_v22 = vsel %vm1074_vm2, %v16481_v61, -inf }
 0xab8   : > { %v4585_v31 = vpop.f32.mrf.mxu3 }
 0xaba   : > { %4225 = vadd.xlane.f32.xlu2 %v4224_v19 }
 0xabc   : > { %v4646_v20 = vpop.f32.mrf.mxu1 }
 0xabe   : > { %4659 = vrot.lane.b32.xlu0 %v16442_v30, %s15877_s29 }
 0xac6   : > { %4598 = vrot.lane.b32.xlu0 %v16442_v30, %s15876_s30 }
 0xad5   : > { %4649 = vmax.xlane.f32.xlu1 %v4648_v22 }
 0xaf9   : > { %v4281_v23 = vpop.xlane.xlu1 %4280 }
 0xafa   : > { %v4282_v25 = vsub.f32 %v4275_v57, %v4281_v23 }
 0xafc   : > { %v4283_v26 = vmul.f32 1.442695, %v4282_v25 }
 0xafe   : > { %15196 = vpow2.f32 %v4283_v26 }
 0xb04   : > { %v15197_v28 = vpop.eup %15196 }
 0xb05   : > { %v4289_v33 = vpack.c.bf16 %v15197_v28, %v15197_v28  ;;  %v4345_v34 = vpop.xlane.xlu1 %4344  ;;  %v4285_v14 = vsel %vm1074_vm2, %v15197_v28, 0.0 }
 0xb06   : > { %v4346_v35 = vsub.f32 %v4339_v21, %v4345_v34  ;;  %4286 = vadd.xlane.f32.xlu0 %v4285_v14 }
 0xb07   : > { %11814 = vmatmul.msk.bf16.vlgmr.msra.gmra.mxu2 %vm1074_vm2, %v4289_v33 }
 0xb08   : > { %v4347_v30 = vmul.f32 1.442695, %v4346_v35  ;;  %4552 = vmatpush.bf16.msra.mxu2 %v4543_v36 }
 0xb09   : > { %v4406_v37 = vpop.xlane.xlu0 %4405 }
 0xb0a   : > { %15198 = vpow2.f32 %v4347_v30  ;;  %v4407_v12 = vsub.f32 %v4400_v1, %v4406_v37 }
 0xb0c   : > { %v4408_v38 = vmul.f32 1.442695, %v4407_v12 }
 0xb0e   : > { %15200 = vpow2.f32 %v4408_v38 }
 0xb10   : > { %v15199_v8 = vpop.eup %15198 }
 0xb11   : > { %v4349_v39 = vsel %vm1074_vm2, %v15199_v8, 0.0  ;;  %v4353_v50 = vpack.c.bf16 %v15199_v8, %v15199_v8 }
 0xb12   : > { %4350 = vadd.xlane.f32.xlu2 %v4349_v39 }
 0xb14   : > { %v15201_v6 = vpop.eup %15200 }
 0xb15   : > { %v4414_v7 = vpack.c.bf16 %v15201_v6, %v15201_v6  ;;  %v4467_v40 = vpop.xlane.xlu0 %4466  ;;  %v4410_v42 = vsel %vm1074_vm2, %v15201_v6, 0.0 }
 0xb16   : > { %v4468_v43 = vsub.f32 %v4461_v11, %v4467_v40  ;;  %4411 = vadd.xlane.f32.xlu1 %v4410_v42 }
 0xb17   : > { %11818 = vmatmul.msk.bf16.vlgmr.msrb.gmra.mxu2 %vm1074_vm2, %v4414_v7 }
 0xb18   : > { %v4469_v32 = vmul.f32 1.442695, %v4468_v43 }
 0xb19   : > { %v4244_v44 = vpop.f32.mrf.mxu0 }
 0xb1a   : > { %15202 = vpow2.f32 %v4469_v32 }
 0xb1d   : > { %v4355_v45 = vpop.permute.xlu1 %4354  ;;  %v4528_v46 = vpop.xlane.xlu0 %4527 }
 0xb1e   : > { %v4360_v48 = vsel %vm1089_vm1, %v4355_v45, 0  ;;  %v4529_v58 = vsub.f32 %v4522_v13, %v4528_v46 }
 0xb1f   : > { %4369 = vmatpush.bf16.msrb.mxu0 %v4360_v48 }
 0xb20   : > { %v15203_v10 = vpop.eup %15202  ;;  %v4530_v51 = vmul.f32 1.442695, %v4529_v58 }
 0xb21   : > { %v4246_v24 = vpop.f32.mrf.mxu0  ;;  %v4471_v55 = vsel %vm1074_vm2, %v15203_v10, 0.0  ;;  %v4475_v54 = vpack.c.bf16 %v15203_v10, %v15203_v10 }
 0xb22   : > { %15204 = vpow2.f32 %v4530_v51  ;;  %11816 = vmatmul.msk.bf16.vlgmr.msrb.gmra.mxu0 %vm1074_vm2, %v4353_v50  ;;  %4472 = vadd.xlane.f32.xlu2 %v4471_v55  ;;  %v14373_v24 = vld [vmem:[#allocation13 + $0x78] sm:$0xff]  ;;  %v14372_v55 = vld [vmem:[#allocation13 + $0x70] sm:$0xff] }
 0xb23   : > { %4491 = vmatpush.bf16.msra.mxu0 %v4482_v9  ;;  %4758 = vmatpush.bf16.msra.mxu3 %v14373_v24  ;;  %v11999_v24 = vld [vmem:[#allocation16 + $0x648] sm:$0xf0] }
 0xb25   : > { %v4589_v56 = vpop.xlane.xlu2 %4588 }
 0xb26   : > { %v4590_v57 = vsub.f32 %v16477_v17, %v4589_v56  ;;  %v14371_v56 = vld [vmem:[#allocation13 + $0x68] sm:$0xff] }
 0xb27   : > { %4759 = vmatpush.bf16.msra.mxu3 %v14372_v55 }
 0xb28   : > { %v15205_v59 = vpop.eup %15204  ;;  %v4591_v60 = vmul.f32 1.442695, %v4590_v57 }
 0xb29   : > { %v4536_v63 = vpack.c.bf16 %v15205_v59, %v15205_v59  ;;  %v4532_v0 = vsel %vm1074_vm2, %v15205_v59, 0.0  ;;  %v14370_v59 = vld [vmem:[#allocation13 + $0x60] sm:$0xff] }
 0xb2a   : > { %15206 = vpow2.f32 %v4591_v60  ;;  %4533 = vadd.xlane.f32.xlu1 %v4532_v0  ;;  %v14369_v60 = vld [vmem:[#allocation13 + $0x58] sm:$0xff] }
 0xb2b   : > { %11822 = vmatmul.msk.bf16.vlgmr.msra.gmra.mxu2 %vm1074_vm2, %v4536_v63  ;;  %4760 = vmatpush.bf16.msra.mxu3 %v14371_v56  ;;  %v14368_v63 = vld [vmem:[#allocation13 + $0x50] sm:$0xff] }
 0xb2d   : > { %v4226_v21 = vpop.xlane.xlu2 %4225 }
 0xb2e   : > { %15208 = vrcp.f32 %v4226_v21 }
 0xb2f   : > { %4761 = vmatpush.bf16.msra.mxu3 %v14370_v59  ;;  %v11957_v59 = vld [vmem:[#allocation16 + $0x580] sm:$0xf] }
 0xb30   : > { %v15207_v52 = vpop.eup %15206  ;;  %v4660_v1 = vpop.permute.xlu0 %4659 }
 0xb31   : > { %v4665_v2 = vsel %vm1089_vm1, %v4660_v1, 0  ;;  %v4593_v3 = vsel %vm1074_vm2, %v15207_v52, 0.0  ;;  %v4597_v62 = vpack.c.bf16 %v15207_v52, %v15207_v52  ;;  %v14366_v1 = vld [vmem:[#allocation13 + $0x40] sm:$0xff] }
 0xb32   : > { %11820 = vmatmul.msk.bf16.vlgmr.msra.gmra.mxu0 %vm1074_vm2, %v4475_v54  ;;  %4674 = vmatpush.bf16.msrb.mxu2 %v4665_v2  ;;  %v14367_v54 = vld [vmem:[#allocation13 + $0x48] sm:$0xff] }
 0xb33   : > { %4594 = vadd.xlane.f32.xlu2 %v4593_v3  ;;  %4762 = vmatpush.bf16.msra.mxu3 %v14369_v60  ;;  %v14402_v60 = vld [vmem:[#allocation16 + $0x5bc] sm:$0xf0] }
 0xb34   : > { %v15209_v4 = vpop.eup %15208 }
 0xb35   : > { %v4248_v5 = vmul.f32 %v15209_v4, %v4244_v44 }
 0xb37   : > { %4249 = vst.msk [vmem:[#allocation2] sm:$0xff] %vm826_vm0, %v4248_v5  ;;  %4763 = vmatpush.bf16.msra.mxu3 %v14368_v63  ;;  %v15143_v5 = vld [vmem:[#allocation15 + $0x1] ss:$0 sm:$0xff]  ;;  %v14398_v63 = vld [vmem:[#allocation16 + $0x584] sm:$0xf] }
 0xb38   : > { %v4599_v41 = vpop.permute.xlu0 %4598 }
 0xb39   : > { %v4604_v11 = vsel %vm1089_vm1, %v4599_v41, 0 }
 0xb3a   : > { %4613 = vmatpush.bf16.msrb.mxu0 %v4604_v11 }
 0xb3b   : > { %4764 = vmatpush.bf16.msra.mxu3 %v14367_v54  ;;  %v14403_v54 = vld [vmem:[#allocation16 + $0x5c4] sm:$0xf0] }
 0xb3f   : > { %4765 = vmatpush.bf16.msra.mxu3 %v14366_v1  ;;  %v14399_v1 = vld [vmem:[#allocation16 + $0x58c] sm:$0xf] }
 0xb42   : > { %11824 = vmatmul.msk.bf16.vlgmr.msrb.gmra.mxu0 %vm1074_vm2, %v4597_v62 }
 0xb48   : > { %v4650_v13 = vpop.xlane.xlu1 %4649 }
 0xb49   : > { %v4651_v15 = vsub.f32 %v16481_v61, %v4650_v13 }
 0xb4b   : > { %v4652_v16 = vmul.f32 1.442695, %v4651_v15  ;;  %v12085_v15 = vld [vmem:[#allocation16 + $0x780] sm:$0xf] }
 0xb4d   : > { %15210 = vpow2.f32 %v4652_v16  ;;  %v14434_v16 = vld [vmem:[#allocation16 + $0x7bc] sm:$0xf0] }
 0xb53   : > { %v15211_v49 = vpop.eup %15210 }
 0xb54   : > { %v4658_v17 = vpack.c.bf16 %v15211_v49, %v15211_v49  ;;  %v4654_v18 = vsel %vm1074_vm2, %v15211_v49, 0.0  ;;  %v14430_v49 = vld [vmem:[#allocation16 + $0x784] sm:$0xf] }
 0xb55   : > { %4655 = vadd.xlane.f32.xlu1 %v4654_v18  ;;  %v12087_v18 = vld [vmem:[#allocation16 + $0x7c0] sm:$0xf0] }
 0xb56   : > { %11826 = vmatmul.msk.bf16.vlgmr.msrb.gmra.mxu2 %vm1074_vm2, %v4658_v17  ;;  %v12086_v17 = vor.u32 %v14434_v16, %v12085_v15  ;;  %v11927_v16 = vld [vmem:[#allocation16 + $0x540] sm:$0xf0] }
 0xb58   : > { %5209 = vmatpush.bf16.msra.mxu0 %v12086_v17  ;;  %v14395_v17 = vld [vmem:[#allocation16 + $0x544] sm:$0xf0] }
 0xb79   : > { %v4287_v31 = vpop.xlane.xlu0 %4286 }
 0xb7a   : > { %15212 = vrcp.f32 %v4287_v31  ;;  %v12093_v31 = vld [vmem:[#allocation16 + $0x788] sm:$0xf] }
 0xb80   : > { %v15213_v19 = vpop.eup %15212 }
 0xb85   : > { %v4351_v61 = vpop.xlane.xlu2 %4350 }
 0xb89   : > { %v4412_v23 = vpop.xlane.xlu1 %4411 }
 0xb8a   : > { %v4310_v20 = vpop.f32.mrf.mxu2  ;;  %15214 = vrcp.f32 %v4412_v23  ;;  %v14431_v23 = vld [vmem:[#allocation16 + $0x78c] sm:$0xf] }
 0xb8b   : > { %v4314_v22 = vmul.f32 %v15213_v19, %v4310_v20  ;;  %15216 = vrcp.f32 %v4351_v61  ;;  %v14435_v19 = vld [vmem:[#allocation16 + $0x7c4] sm:$0xf0]  ;;  %v12090_v20 = vor.u32 %v14430_v49, %v12087_v18  ;;  %v12053_v61 = vld [vmem:[#allocation16 + $0x700] sm:$0xf]  ;;  %v14391_v18 = vld [vmem:[#allocation16 + $0x50c] sm:$0xf] }
 0xb8c   : > { %v11933_v49 = vld [vmem:[#allocation16 + $0x508] sm:$0xf] }
 0xb8d   : > { %4316 = vrot.lane.b32.xlu1 %v4314_v22, %s15877_s29  ;;  %v12094_v22 = vor.u32 %v14435_v19, %v12093_v31  ;;  %5222 = vmatpush.bf16.msra.mxu1 %v12090_v20  ;;  %v11935_v31 = vld [vmem:[#allocation16 + $0x548] sm:$0xf0] }
 0xb8f   : > { %5235 = vmatpush.bf16.msra.mxu2 %v12094_v22  ;;  %v11934_v22 = vor.u32 %v14395_v17, %v11933_v49  ;;  %v12039_v17 = vld [vmem:[#allocation16 + $0x6d0] sm:$0xf0] }
 0xb90   : > { %v15215_v26 = vpop.eup %15214 }
 0xb91   : > { %v15217_v29 = vpop.eup %15216 }
 0xb92   : > { %v4312_v25 = vpop.f32.mrf.mxu2 }
 0xb93   : > { %v12095_v25 = vld [vmem:[#allocation16 + $0x7c8] sm:$0xf0] }
 0xb95   : > { %v4473_v36 = vpop.xlane.xlu2 %4472 }
 0xb9a   : > { %v4432_v27 = vpop.f32.mrf.mxu2 }
 0xb9b   : > { %v4436_v28 = vmul.f32 %v15215_v26, %v4432_v27  ;;  %v12098_v26 = vor.u32 %v14431_v23, %v12095_v25  ;;  %v14426_v27 = vld [vmem:[#allocation16 + $0x73c] sm:$0xf0] }
 0xb9c   : > { %v11893_v23 = vld [vmem:[#allocation16 + $0x480] sm:$0xf] }
 0xb9d   : > { %4438 = vrot.lane.b32.xlu0 %v4436_v28, %s15875_s26  ;;  %v4534_v35 = vpop.xlane.xlu1 %4533  ;;  %v12055_v28 = vld [vmem:[#allocation16 + $0x740] sm:$0xf0]  ;;  %5248 = vmatpush.bf16.msrb.mxu3 %v12098_v26  ;;  %v14386_v25 = vld [vmem:[#allocation16 + $0x4bc] sm:$0xf0]  ;;  %v11938_v26 = vor.u32 %v14391_v18, %v11935_v31  ;;  %v12045_v18 = vld [vmem:[#allocation16 + $0x698] sm:$0xf] }
 0xb9e   : > { %15218 = vrcp.f32 %v4534_v35  ;;  %v14423_v35 = vld [vmem:[#allocation16 + $0x70c] sm:$0xf]  ;;  %v14421_v31 = vld [vmem:[#allocation16 + $0x6d4] sm:$0xf0] }
 0xb9f   : > { %v4371_v33 = vpop.f32.mrf.mxu0  ;;  %15220 = vrcp.f32 %v4473_v36 }
 0xba0   : > { %v4375_v34 = vmul.f32 %v15217_v29, %v4371_v33  ;;  %v12054_v29 = vor.u32 %v14426_v27, %v12053_v61  ;;  %v14382_v61 = vld [vmem:[#allocation16 + $0x484] sm:$0xf] }
 0xba1   : > { %v11895_v27 = vld [vmem:[#allocation16 + $0x4c0] sm:$0xf0] }
 0xba2   : > { %v4434_v14 = vpop.f32.mrf.mxu2  ;;  %4377 = vrot.lane.b32.xlu2 %v4375_v34, %s15876_s30  ;;  %v12061_v34 = vld [vmem:[#allocation16 + $0x708] sm:$0xf]  ;;  %5210 = vmatpush.bf16.msra.mxu0 %v12054_v29  ;;  %v14383_v29 = vld [vmem:[#allocation16 + $0x48c] sm:$0xf] }
 0xba3   : > { %v14427_v14 = vld [vmem:[#allocation16 + $0x744] sm:$0xf0] }
 0xba4   : > { %v15219_v37 = vpop.eup %15218  ;;  %v12062_v36 = vor.u32 %v14427_v14, %v12061_v34  ;;  %v11894_v34 = vor.u32 %v14386_v25, %v11893_v23  ;;  %v11898_v14 = vor.u32 %v14382_v61, %v11895_v27  ;;  %v12047_v23 = vld [vmem:[#allocation16 + $0x6d8] sm:$0xf0]  ;;  %v12005_v61 = vld [vmem:[#allocation16 + $0x610] sm:$0xf]  ;;  %v14408_v27 = vld [vmem:[#allocation16 + $0x614] sm:$0xf] }
 0xba5   : > { %v15221_v38 = vpop.eup %15220 }
 0xba6   : > { %v4595_v7 = vpop.xlane.xlu2 %4594  ;;  %5236 = vmatpush.bf16.msra.mxu2 %v12062_v36 }
 0xba7   : > { %v4373_v30 = vpop.f32.mrf.mxu0  ;;  %15222 = vrcp.f32 %v4595_v7 }
 0xba8   : > { %v12063_v30 = vld [vmem:[#allocation16 + $0x748] sm:$0xf0] }
 0xbad   : > { %v15223_v43 = vpop.eup %15222 }
 0xbae   : > { %v4554_v12 = vpop.f32.mrf.mxu2 }
 0xbaf   : > { %v4558_v8 = vmul.f32 %v15219_v37, %v4554_v12  ;;  %v4493_v39 = vpop.f32.mrf.mxu0  ;;  %v12021_v37 = vld [vmem:[#allocation16 + $0x680] sm:$0xf] }
 0xbb0   : > { %v4497_v6 = vmul.f32 %v15221_v38, %v4493_v39  ;;  %v14418_v12 = vld [vmem:[#allocation16 + $0x6bc] sm:$0xf0]  ;;  %v12066_v38 = vor.u32 %v14423_v35, %v12063_v30  ;;  %v12023_v39 = vld [vmem:[#allocation16 + $0x6c0] sm:$0xf0] }
 0xbb1   : > { %4560 = vrot.lane.b32.xlu0 %v4558_v8, %s15873_s3  ;;  %v14414_v8 = vld [vmem:[#allocation16 + $0x684] sm:$0xf]  ;;  %v12022_v7 = vor.u32 %v14418_v12, %v12021_v37 }
 0xbb2   : > { %4499 = vrot.lane.b32.xlu1 %v4497_v6, %s15874_s18  ;;  %v12029_v6 = vld [vmem:[#allocation16 + $0x688] sm:$0xf]  ;;  %5249 = vmatpush.bf16.msrb.mxu3 %v12066_v38 }
 0xbb3   : > { %5211 = vmatpush.bf16.msra.mxu0 %v12022_v7 }
 0xbb6   : > { %v4556_v40 = vpop.f32.mrf.mxu2 }
 0xbb7   : > { %v4495_v42 = vpop.f32.mrf.mxu0  ;;  %v14419_v40 = vld [vmem:[#allocation16 + $0x6c4] sm:$0xf0] }
 0xbb8   : > { %v14415_v42 = vld [vmem:[#allocation16 + $0x68c] sm:$0xf] }
 0xbbf   : > { %v4615_v32 = vpop.f32.mrf.mxu0 }
 0xbc0   : > { %v4619_v44 = vmul.f32 %v15223_v43, %v4615_v32  ;;  %v12031_v43 = vld [vmem:[#allocation16 + $0x6c8] sm:$0xf0]  ;;  %v12026_v32 = vor.u32 %v14414_v8, %v12023_v39  ;;  %v11861_v8 = vld [vmem:[#allocation16 + $0x400] sm:$0xf] }
 0xbc1   : > { %v14378_v39 = vld [vmem:[#allocation16 + $0x43c] sm:$0xf0] }
 0xbc2   : > { %4621 = vrot.lane.b32.xlu2 %v4619_v44, %s15872_s25  ;;  %v12030_v44 = vor.u32 %v14419_v40, %v12029_v6  ;;  %v14374_v6 = vld [vmem:[#allocation16 + $0x404] sm:$0xf]  ;;  %v11862_v7 = vor.u32 %v14378_v39, %v11861_v8  ;;  %v14400_v8 = vld [vmem:[#allocation16 + $0x594] sm:$0xf] }
 0xbc3   : > { %v11863_v40 = vld [vmem:[#allocation16 + $0x440] sm:$0xf0] }
 0xbc4   : > { %5237 = vmatpush.bf16.msra.mxu2 %v12030_v44 }
 0xbc7   : > { %v4617_v45 = vpop.f32.mrf.mxu0 }
 0xbc8   : > { %v4656_v46 = vpop.xlane.xlu1 %4655  ;;  %v11989_v45 = vld [vmem:[#allocation16 + $0x600] sm:$0xf] }
 0xbc9   : > { %15224 = vrcp.f32 %v4656_v46  ;;  %v14410_v46 = vld [vmem:[#allocation16 + $0x63c] sm:$0xf0] }
 0xbca   : > { %v11990_v55 = vor.u32 %v14410_v46, %v11989_v45  ;;  %v14375_v45 = vld [vmem:[#allocation16 + $0x40c] sm:$0xf] }
 0xbcb   : > { %v11871_v46 = vld [vmem:[#allocation16 + $0x448] sm:$0xf0] }
 0xbcc   : > { %5212 = vmatpush.bf16.msra.mxu0 %v11990_v55  ;;  %v14437_v55 = vld [vmem:[#allocation16 + $0x7d4] sm:$0xf0] }
 0xbcf   : > { %v15225_v48 = vpop.eup %15224 }
 0xbd9   : > { %v4676_v58 = vpop.f32.mrf.mxu2 }
 0xbda   : > { %v4680_v9 = vmul.f32 %v15225_v48, %v4676_v58  ;;  %v14406_v48 = vld [vmem:[#allocation16 + $0x604] sm:$0xf]  ;;  %v12034_v58 = vor.u32 %v14415_v42, %v12031_v43  ;;  %v11869_v42 = vld [vmem:[#allocation16 + $0x408] sm:$0xf] }
 0xbdb   : > { %v14379_v43 = vld [vmem:[#allocation16 + $0x444] sm:$0xf0] }
 0xbdc   : > { %4682 = vrot.lane.b32.xlu1 %v4680_v9, %s15871_s4  ;;  %v11991_v9 = vld [vmem:[#allocation16 + $0x640] sm:$0xf0]  ;;  %5250 = vmatpush.bf16.msrb.mxu3 %v12034_v58  ;;  %v11870_v44 = vor.u32 %v14379_v43, %v11869_v42  ;;  %v14436_v58 = vld [vmem:[#allocation16 + $0x7cc] sm:$0xf0] }
 0xbdd   : > { %v11994_v56 = vor.u32 %v14406_v48, %v11991_v9  ;;  %v11874_v48 = vor.u32 %v14375_v45, %v11871_v46  ;;  %v14432_v9 = vld [vmem:[#allocation16 + $0x794] sm:$0xf]  ;;  %v11941_v46 = vld [vmem:[#allocation16 + $0x510] sm:$0xf] }
 0xbe1   : > { %v4678_v10 = vpop.f32.mrf.mxu2 }
 0xbe2   : > { %v11997_v10 = vld [vmem:[#allocation16 + $0x608] sm:$0xf] }
 0xbfc   : > { %v4378_v51 = vpop.permute.xlu2 %4377 }
 0xbff   : > { %v4317_v50 = vpop.permute.xlu1 %4316 }
 0xc00   : > { %4319 = vst.msk [vmem:[#allocation2] sm:$0xff] %vm1177_vm3, %v4317_v50  ;;  %v14411_v50 = vld [vmem:[#allocation16 + $0x644] sm:$0xf0] }
 0xc01   : > { %4380 = vst.msk [vmem:[#allocation2] sm:$0xff] %vm1239_vm4, %v4378_v51  ;;  %v14407_v51 = vld [vmem:[#allocation16 + $0x60c] sm:$0xf] }
 0xc0f   : > { %v4439_v57 = vpop.permute.xlu0 %4438 }
 0xc10   : > { %4441 = vst.msk [vmem:[#allocation2] sm:$0xff] %vm1301_vm5, %v4439_v57  ;;  %v11998_v57 = vor.u32 %v14411_v50, %v11997_v10  ;;  %v12103_v10 = vld [vmem:[#allocation16 + $0x7d0] sm:$0xf0] }
 0xc12   : > { %5238 = vmatpush.bf16.msra.mxu2 %v11998_v57 }
 0xc1c   : > { %v4622_v52 = vpop.permute.xlu2 %4621 }
 0xc23   : > { %v4561_v21 = vpop.permute.xlu0 %4560 }
 0xc24   : > { %v4500_v0 = vpop.permute.xlu1 %4499 }
 0xc25   : > { %4502 = vst.msk [vmem:[#allocation2] sm:$0xff] %vm1363_vm6, %v4500_v0  ;;  %v12002_v0 = vor.u32 %v14407_v51, %v11999_v24  ;;  %v12106_v51 = vor.u32 %v14432_v9, %v12103_v10  ;;  %v12109_v24 = vld [vmem:[#allocation16 + $0x798] sm:$0xf]  ;;  %v11943_v9 = vld [vmem:[#allocation16 + $0x550] sm:$0xf0] }
 0xc26   : > { %4563 = vst.msk [vmem:[#allocation2] sm:$0xff] %vm1425_vm7, %v4561_v21  ;;  %v11959_v21 = vld [vmem:[#allocation16 + $0x5c0] sm:$0xf0]  ;;  %v12110_v57 = vor.u32 %v14437_v55, %v12109_v24  ;;  %v11949_v10 = vld [vmem:[#allocation16 + $0x518] sm:$0xf] }
 0xc27   : > { %4624 = vst.msk [vmem:[#allocation2] sm:$0xff] %vm1487_vm8, %v4622_v52  ;;  %v11965_v52 = vld [vmem:[#allocation16 + $0x588] sm:$0xf]  ;;  %5251 = vmatpush.bf16.msrb.mxu3 %v12002_v0  ;;  %v14393_v55 = vld [vmem:[#allocation16 + $0x51c] sm:$0xf] }
 0xc4e   : > { %v4683_v2 = vpop.permute.xlu1 %4682 }
 0xc4f   : > { %4685 = vst.msk [vmem:[#allocation2] sm:$0xff] %vm1549_vm9, %v4683_v2  ;;  %v11967_v2 = vld [vmem:[#allocation16 + $0x5c8] sm:$0xf0] }
 0xc50   : > { %v11970_v15 = vor.u32 %v14399_v1, %v11967_v2  ;;  %v12077_v1 = vld [vmem:[#allocation16 + $0x718] sm:$0xf] }
 0xc52   : > { %5252 = vmatpush.bf16.msrb.mxu3 %v11970_v15  ;;  %v14420_v15 = vld [vmem:[#allocation16 + $0x6cc] sm:$0xf0] }
 0xc56   : > { %v4686_v3 = vld [vmem:[#allocation2] sm:$0xff]  ;;  %5253 = vmatpush.bf16.msrb.mxu3 %v11938_v26 }
 0xc57   : > { %v4687_v4 = vpack.c.bf16 %v4686_v3, %v4686_v3  ;;  %v11958_v3 = vor.u32 %v14402_v60, %v11957_v59  ;;  %v12111_v59 = vld [vmem:[#allocation16 + $0x7d8] sm:$0xf0]  ;;  %v12069_v60 = vld [vmem:[#allocation16 + $0x710] sm:$0xf] }
 0xc58   : > { %v14412_v26 = vld [vmem:[#allocation16 + $0x64c] sm:$0xf0] }
 0xc59   : > { %4766 = vmatmul.bf16.vlgmr.msra.gmra.mxu3 %v4687_v4  ;;  %v11962_v4 = vor.u32 %v14398_v63, %v11959_v21  ;;  %5213 = vmatpush.bf16.msra.mxu0 %v11958_v3  ;;  %v14428_v63 = vld [vmem:[#allocation16 + $0x74c] sm:$0xf0]  ;;  %v14429_v3 = vld [vmem:[#allocation16 + $0x754] sm:$0xf0] }
 0xc5a   : > { %v12070_v21 = vor.u32 %v14428_v63, %v12069_v60  ;;  %v14388_v60 = vld [vmem:[#allocation16 + $0x4cc] sm:$0xf0]  ;;  %v14384_v63 = vld [vmem:[#allocation16 + $0x494] sm:$0xf] }
 0xcdc   : > { %v4767_v41 = vpop.f32.mrf.mxu3 }
 0xcdd   : > { %v4768_v11 = vadd.f32 %v15143_v5, %v4767_v41  ;;  %v11966_v5 = vor.u32 %v14403_v54, %v11965_v52  ;;  %v11925_v41 = vld [vmem:[#allocation16 + $0x500] sm:$0xf]  ;;  %v14424_v52 = vld [vmem:[#allocation16 + $0x714] sm:$0xf] }
 0xcde   : > { %v12071_v54 = vld [vmem:[#allocation16 + $0x750] sm:$0xf0] }
 0xcdf   : > { %v16527_v62 = vadd.f32 %v4768_v11, %v16421_v53  ;;  %v14422_v53 = vld [vmem:[#allocation16 + $0x704] sm:$0xf]  ;;  %v14394_v11 = vld [vmem:[#allocation16 + $0x53c] sm:$0xf0]  ;;  %5239 = vmatpush.bf16.msra.mxu2 %v11966_v5  ;;  %v12074_v2 = vor.u32 %v14424_v52, %v12071_v54  ;;  %v12079_v5 = vld [vmem:[#allocation16 + $0x758] sm:$0xf0] }
 0xce0   : > { %v12058_v33 = vor.u32 %v14422_v53, %v12055_v28  ;;  %v11926_v19 = vor.u32 %v14394_v11, %v11925_v41  ;;  %v11901_v53 = vld [vmem:[#allocation16 + $0x488] sm:$0xf]  ;;  %v12078_v41 = vor.u32 %v14429_v3, %v12077_v1  ;;  %v11917_v52 = vld [vmem:[#allocation16 + $0x498] sm:$0xf]  ;;  %v14385_v3 = vld [vmem:[#allocation16 + $0x49c] sm:$0xf] }
 0xce1   : > { %4776 = vadd.xlane.f32.xlu0 %v16527_v62  ;;  %v14387_v28 = vld [vmem:[#allocation16 + $0x4c4] sm:$0xf0]  ;;  %v14389_v54 = vld [vmem:[#allocation16 + $0x4d4] sm:$0xf0] }
 0xce2   : > { %5223 = vmatpush.bf16.msra.mxu1 %v12058_v33  ;;  %v11903_v33 = vld [vmem:[#allocation16 + $0x4c8] sm:$0xf0]  ;;  %5214 = vmatpush.bf16.msra.mxu0 %v11926_v19  ;;  %v11902_v35 = vor.u32 %v14387_v28, %v11901_v53  ;;  %v12006_v53 = vor.u32 %v14412_v26, %v12005_v61  ;;  %v12007_v28 = vld [vmem:[#allocation16 + $0x650] sm:$0xf0] }
 0xce3   : > { %5240 = vmatpush.bf16.msra.mxu2 %v11934_v22  ;;  %v11906_v30 = vor.u32 %v14383_v29, %v11903_v33  ;;  %v14417_v22 = vld [vmem:[#allocation16 + $0x69c] sm:$0xf]  ;;  %v12013_v29 = vld [vmem:[#allocation16 + $0x618] sm:$0xf] }
 0xce4   : > { %v4769_v13 = vpop.f32.mrf.mxu3  ;;  %v12050_v25 = vor.u32 %v14417_v22, %v12047_v23  ;;  %v14413_v33 = vld [vmem:[#allocation16 + $0x654] sm:$0xf0] }
 0xce5   : > { %v14390_v13 = vld [vmem:[#allocation16 + $0x504] sm:$0xf]  ;;  %5254 = vmatpush.bf16.msrb.mxu3 %v11906_v30 }
 0xce6   : > { %5224 = vmatpush.bf16.msra.mxu1 %v12026_v32  ;;  %v11930_v20 = vor.u32 %v14390_v13, %v11927_v16  ;;  %5215 = vmatpush.bf16.msra.mxu0 %v11894_v34  ;;  %v11866_v32 = vor.u32 %v14374_v6, %v11863_v40  ;;  %v12037_v13 = vld [vmem:[#allocation16 + $0x690] sm:$0xf]  ;;  %v14416_v16 = vld [vmem:[#allocation16 + $0x694] sm:$0xf]  ;;  %v12010_v34 = vor.u32 %v14408_v27, %v12007_v28  ;;  %v14405_v40 = vld [vmem:[#allocation16 + $0x5d4] sm:$0xf0] }
 0xce7   : > { %5241 = vmatpush.bf16.msra.mxu2 %v11902_v35  ;;  %v12038_v49 = vor.u32 %v14420_v15, %v12037_v13  ;;  %v12042_v19 = vor.u32 %v14416_v16, %v12039_v17  ;;  %v14409_v35 = vld [vmem:[#allocation16 + $0x61c] sm:$0xf]  ;;  %v11975_v6 = vld [vmem:[#allocation16 + $0x5d0] sm:$0xf0]  ;;  %v14381_v17 = vld [vmem:[#allocation16 + $0x454] sm:$0xf0] }
 0xce8   : > { %v11978_v42 = vor.u32 %v14400_v8, %v11975_v6  ;;  %v14376_v13 = vld [vmem:[#allocation16 + $0x414] sm:$0xf]  ;;  %v14558_v8 = vld [vmem:[#allocation16 + $0x7a4] sm:$0xf]  ;;  %v12349_v6 = vld [vmem:[#allocation16 + $0x7a8] sm:$0xf] }
 0xce9   : > { %5255 = vmatpush.bf16.msrb.mxu3 %v11874_v48  ;;  %v14392_v48 = vld [vmem:[#allocation16 + $0x514] sm:$0xf] }
 0xcea   : > { %5225 = vmatpush.bf16.msra.mxu1 %v11994_v56  ;;  %5216 = vmatpush.bf16.msra.mxu0 %v11862_v7  ;;  %v14433_v56 = vld [vmem:[#allocation16 + $0x79c] sm:$0xf]  ;;  %v11981_v7 = vld [vmem:[#allocation16 + $0x598] sm:$0xf]  ;;  %v11879_v16 = vld [vmem:[#allocation16 + $0x450] sm:$0xf0] }
 0xceb   : > { %5242 = vmatpush.bf16.msra.mxu2 %v11870_v44  ;;  %v12114_v0 = vor.u32 %v14433_v56, %v12111_v59  ;;  %v11982_v43 = vor.u32 %v14405_v40, %v11981_v7  ;;  %v11983_v44 = vld [vmem:[#allocation16 + $0x5d8] sm:$0xf0]  ;;  %v11909_v59 = vld [vmem:[#allocation16 + $0x490] sm:$0xf]  ;;  %v14563_v40 = vld [vmem:[#allocation16 + $0x7e4] sm:$0xf0] }
 0xcec   : > { %v11951_v56 = vld [vmem:[#allocation16 + $0x558] sm:$0xf0] }
 0xced   : > { %5300 = vmatpush.bf16.msra.mxu3 %v12114_v0  ;;  %v11910_v0 = vor.u32 %v14388_v60, %v11909_v59  ;;  %v14546_v59 = vld [vmem:[#allocation16 + $0x6dc] sm:$0xf0] }
 0xcee   : > { %5226 = vmatpush.bf16.msra.mxu1 %v11962_v4  ;;  %v14425_v4 = vld [vmem:[#allocation16 + $0x71c] sm:$0xf] }
 0xcef   : > { %5287 = vmatpush.bf16.msrb.mxu2 %v12110_v57  ;;  %v12082_v11 = vor.u32 %v14425_v4, %v12079_v5  ;;  %v11954_v57 = vor.u32 %v14393_v55, %v11951_v56  ;;  %v11919_v4 = vld [vmem:[#allocation16 + $0x4d8] sm:$0xf0] }
 0xcf0   : > { %v11922_v5 = vor.u32 %v14385_v3, %v11919_v4 }
 0xcf1   : > { %5301 = vmatpush.bf16.msra.mxu3 %v12082_v11  ;;  %v14380_v11 = vld [vmem:[#allocation16 + $0x44c] sm:$0xf0] }
 0xcf2   : > { %5227 = vmatpush.bf16.msra.mxu1 %v11930_v20  ;;  %v12046_v20 = vor.u32 %v14421_v31, %v12045_v18  ;;  %v11882_v18 = vor.u32 %v14376_v13, %v11879_v16  ;;  %v12247_v16 = vld [vmem:[#allocation16 + $0x660] sm:$0xf0] }
 0xcf3   : > { %5288 = vmatpush.bf16.msrb.mxu2 %v12078_v41  ;;  %v11877_v41 = vld [vmem:[#allocation16 + $0x410] sm:$0xf] }
 0xcf4   : > { %v11878_v15 = vor.u32 %v14380_v11, %v11877_v41  ;;  %v14538_v41 = vld [vmem:[#allocation16 + $0x65c] sm:$0xf0] }
 0xcf5   : > { %5302 = vmatpush.bf16.msra.mxu3 %v12050_v25 }
 0xcf6   : > { %5228 = vmatpush.bf16.msra.mxu1 %v11898_v14  ;;  %v12014_v14 = vor.u32 %v14413_v33, %v12013_v29 }
 0xcf7   : > { %5289 = vmatpush.bf16.msrb.mxu2 %v12046_v20  ;;  %v11887_v20 = vld [vmem:[#allocation16 + $0x458] sm:$0xf0] }
 0xcfa   : > { %5229 = vmatpush.bf16.msra.mxu1 %v11866_v32  ;;  %v14401_v32 = vld [vmem:[#allocation16 + $0x59c] sm:$0xf] }
 0xcfb   : > { %5290 = vmatpush.bf16.msrb.mxu2 %v12014_v14  ;;  %v11986_v45 = vor.u32 %v14401_v32, %v11983_v44 }
 0xcfe   : > { %5274 = vmatpush.bf16.msrb.mxu1 %v12106_v51  ;;  %v11946_v51 = vor.u32 %v14392_v48, %v11943_v9  ;;  %v12311_v9 = vld [vmem:[#allocation16 + $0x760] sm:$0xf0] }
 0xcff   : > { %5291 = vmatpush.bf16.msrb.mxu2 %v11982_v43  ;;  %v12351_v43 = vld [vmem:[#allocation16 + $0x7e8] sm:$0xf0] }
 0xd02   : > { %5275 = vmatpush.bf16.msrb.mxu1 %v12074_v2  ;;  %v11918_v2 = vor.u32 %v14389_v54, %v11917_v52  ;;  %v12285_v52 = vld [vmem:[#allocation16 + $0x6a8] sm:$0xf] }
 0xd03   : > { %v14547_v54 = vld [vmem:[#allocation16 + $0x6e4] sm:$0xf0] }
 0xd04   : > { %v12286_v11 = vor.u32 %v14547_v54, %v12285_v52  ;;  %v14507_v52 = vld [vmem:[#allocation16 + $0x464] sm:$0xf0]  ;;  %v14503_v54 = vld [vmem:[#allocation16 + $0x42c] sm:$0xf] }
 0xd06   : > { %5276 = vmatpush.bf16.msrb.mxu1 %v12042_v19  ;;  %v14377_v19 = vld [vmem:[#allocation16 + $0x41c] sm:$0xf] }
 0xd07   : > { %v11890_v22 = vor.u32 %v14377_v19, %v11887_v20 }
 0xd0a   : > { %5277 = vmatpush.bf16.msrb.mxu1 %v12010_v34  ;;  %v15144_v34 = vld [vmem:[#allocation22 + $0x1] ss:$0 sm:$0xff] }
 0xd0e   : > { %5278 = vmatpush.bf16.msrb.mxu1 %v11978_v42  ;;  %v14559_v42 = vld [vmem:[#allocation16 + $0x7ac] sm:$0xf] }
 0xd0f   : > { %v12354_v48 = vor.u32 %v14559_v42, %v12351_v43  ;;  %v12191_v42 = vld [vmem:[#allocation16 + $0x568] sm:$0xf0] }
 0xd12   : > { %5279 = vmatpush.bf16.msrb.mxu1 %v11946_v51  ;;  %v14551_v51 = vld [vmem:[#allocation16 + $0x72c] sm:$0xf] }
 0xd54   : > { %v4777_v36 = vpop.xlane.xlu0 %4776 }
 0xd55   : > { %v4778_v37 = vmul.f32 %v4777_v36, %v16337_v47  ;;  %v12015_v36 = vld [vmem:[#allocation16 + $0x658] sm:$0xf0] }
 0xd56   : > { %v12018_v30 = vor.u32 %v14409_v35, %v12015_v36  ;;  %v15145_v35 = vld [vmem:[#allocation24 + $0x1] ss:$0 sm:$0xff] }
 0xd57   : > { %v16532_v12 = vsub.f32 %v16527_v62, %v4778_v37  ;;  %v12101_v62 = vld [vmem:[#allocation16 + $0x790] sm:$0xf] }
 0xd58   : > { %v12102_v50 = vor.u32 %v14436_v58, %v12101_v62  ;;  %v11973_v37 = vld [vmem:[#allocation16 + $0x590] sm:$0xf]  ;;  %5303 = vmatpush.bf16.msra.mxu3 %v12018_v30 }
 0xd59   : > { %v4780_v38 = vmul.f32 %v16532_v12, %v16532_v12  ;;  %v14396_v62 = vld [vmem:[#allocation16 + $0x54c] sm:$0xf0] }
 0xd5a   : > { %5261 = vmatpush.bf16.msrb.mxu0 %v12102_v50  ;;  %v11942_v58 = vor.u32 %v14396_v62, %v11941_v46  ;;  %v14397_v50 = vld [vmem:[#allocation16 + $0x554] sm:$0xf0]  ;;  %v12309_v46 = vld [vmem:[#allocation16 + $0x720] sm:$0xf] }
 0xd5b   : > { %4781 = vadd.xlane.f32.xlu2 %v4780_v38  ;;  %v14404_v38 = vld [vmem:[#allocation16 + $0x5cc] sm:$0xf0]  ;;  %v11950_v24 = vor.u32 %v14397_v50, %v11949_v10  ;;  %v14554_v62 = vld [vmem:[#allocation16 + $0x75c] sm:$0xf0]  ;;  %v12317_v10 = vld [vmem:[#allocation16 + $0x728] sm:$0xf] }
 0xd5c   : > { %v11974_v39 = vor.u32 %v14404_v38, %v11973_v37  ;;  %5304 = vmatpush.bf16.msra.mxu3 %v11986_v45  ;;  %v12341_v37 = vld [vmem:[#allocation16 + $0x7a0] sm:$0xf]  ;;  %v14555_v50 = vld [vmem:[#allocation16 + $0x764] sm:$0xf0]  ;;  %v12310_v55 = vor.u32 %v14554_v62, %v12309_v46 }
 0xd5d   : > { %5292 = vmatpush.bf16.msrb.mxu2 %v11950_v24  ;;  %v14562_v38 = vld [vmem:[#allocation16 + $0x7dc] sm:$0xf0]  ;;  %v12319_v24 = vld [vmem:[#allocation16 + $0x768] sm:$0xf0]  ;;  %v12318_v60 = vor.u32 %v14555_v50, %v12317_v10  ;;  %v14515_v10 = vld [vmem:[#allocation16 + $0x4e4] sm:$0xf0] }
 0xd5e   : > { %5262 = vmatpush.bf16.msrb.mxu0 %v12070_v21  ;;  %v11911_v21 = vld [vmem:[#allocation16 + $0x4d0] sm:$0xf0]  ;;  %v12342_v44 = vor.u32 %v14562_v38, %v12341_v37  ;;  %v14518_v38 = vld [vmem:[#allocation16 + $0x524] sm:$0xf]  ;;  %v14514_v46 = vld [vmem:[#allocation16 + $0x4dc] sm:$0xf0] }
 0xd5f   : > { %v11914_v1 = vor.u32 %v14384_v63, %v11911_v21  ;;  %v12322_v63 = vor.u32 %v14551_v51, %v12319_v24  ;;  %v12279_v21 = vld [vmem:[#allocation16 + $0x6e0] sm:$0xf0]  ;;  %v14511_v50 = vld [vmem:[#allocation16 + $0x4ac] sm:$0xf]  ;;  %v12117_v24 = vld [vmem:[#allocation16 + $0x420] sm:$0xf] }
 0xd60   : > { %5305 = vmatpush.bf16.msra.mxu3 %v11954_v57  ;;  %v12277_v57 = vld [vmem:[#allocation16 + $0x6a0] sm:$0xf]  ;;  %v12159_v51 = vld [vmem:[#allocation16 + $0x4e8] sm:$0xf0] }
 0xd61   : > { %5280 = vmatpush.bf16.msrb.mxu1 %v11914_v1  ;;  %5293 = vmatpush.bf16.msrb.mxu2 %v11918_v2  ;;  %v14543_v1 = vld [vmem:[#allocation16 + $0x6ac] sm:$0xf]  ;;  %v12278_v3 = vor.u32 %v14546_v59, %v12277_v57  ;;  %v14506_v57 = vld [vmem:[#allocation16 + $0x45c] sm:$0xf0]  ;;  %v14502_v59 = vld [vmem:[#allocation16 + $0x424] sm:$0xf] }
 0xd62   : > { %5263 = vmatpush.bf16.msrb.mxu0 %v12038_v49  ;;  %v11885_v49 = vld [vmem:[#allocation16 + $0x418] sm:$0xf]  ;;  %v12287_v2 = vld [vmem:[#allocation16 + $0x6e8] sm:$0xf0] }
 0xd63   : > { %v11886_v31 = vor.u32 %v14381_v17, %v11885_v49  ;;  %v12290_v13 = vor.u32 %v14543_v1, %v12287_v2  ;;  %v12253_v49 = vld [vmem:[#allocation16 + $0x628] sm:$0xf]  ;;  %v12127_v1 = vld [vmem:[#allocation16 + $0x468] sm:$0xf0]  ;;  %v12357_v2 = vld [vmem:[#allocation16 + $0x7b0] sm:$0xf] }
 0xd64   : > { %5306 = vmatpush.bf16.msra.mxu3 %v11922_v5  ;;  %v12245_v5 = vld [vmem:[#allocation16 + $0x620] sm:$0xf]  ;;  %v14539_v17 = vld [vmem:[#allocation16 + $0x664] sm:$0xf0] }
 0xd65   : > { %5281 = vmatpush.bf16.msrb.mxu1 %v11882_v18  ;;  %5294 = vmatpush.bf16.msrb.mxu2 %v11886_v31  ;;  %v14535_v18 = vld [vmem:[#allocation16 + $0x62c] sm:$0xf]  ;;  %v12246_v19 = vor.u32 %v14538_v41, %v12245_v5  ;;  %v12359_v5 = vld [vmem:[#allocation16 + $0x7f0] sm:$0xf0]  ;;  %v12365_v41 = vld [vmem:[#allocation16 + $0x7b8] sm:$0xf] }
 0xd66   : > { %5264 = vmatpush.bf16.msrb.mxu0 %v12006_v53  ;;  %v12255_v31 = vld [vmem:[#allocation16 + $0x668] sm:$0xf0] }
 0xd68   : > { %5307 = vmatpush.bf16.msra.mxu3 %v11890_v22  ;;  %v12213_v22 = vld [vmem:[#allocation16 + $0x5a0] sm:$0xf] }
 0xd6a   : > { %5265 = vmatpush.bf16.msrb.mxu0 %v11974_v39  ;;  %v12343_v39 = vld [vmem:[#allocation16 + $0x7e0] sm:$0xf0] }
 0xd6b   : > { %v12346_v45 = vor.u32 %v14558_v8, %v12343_v39  ;;  %v12183_v8 = vld [vmem:[#allocation16 + $0x560] sm:$0xf0]  ;;  %v12189_v39 = vld [vmem:[#allocation16 + $0x528] sm:$0xf] }
 0xd6e   : > { %5266 = vmatpush.bf16.msrb.mxu0 %v11942_v58  ;;  %v14550_v58 = vld [vmem:[#allocation16 + $0x724] sm:$0xf] }
 0xd6f   : > { %v12314_v56 = vor.u32 %v14550_v58, %v12311_v9  ;;  %v12151_v58 = vld [vmem:[#allocation16 + $0x4e0] sm:$0xf0]  ;;  %v12157_v9 = vld [vmem:[#allocation16 + $0x4a8] sm:$0xf] }
 0xd72   : > { %5267 = vmatpush.bf16.msrb.mxu0 %v11910_v0  ;;  %v14542_v0 = vld [vmem:[#allocation16 + $0x6a4] sm:$0xf] }
 0xd73   : > { %v12282_v4 = vor.u32 %v14542_v0, %v12279_v21  ;;  %v12162_v0 = vor.u32 %v14511_v50, %v12159_v51  ;;  %v12125_v21 = vld [vmem:[#allocation16 + $0x428] sm:$0xf]  ;;  %v12271_v50 = vld [vmem:[#allocation16 + $0x678] sm:$0xf0] }
 0xd76   : > { %5268 = vmatpush.bf16.msrb.mxu0 %v11878_v15  ;;  %v14534_v15 = vld [vmem:[#allocation16 + $0x624] sm:$0xf] }
 0xd77   : > { %v12250_v20 = vor.u32 %v14534_v15, %v12247_v16  ;;  %v14565_v15 = vld [vmem:[#allocation16 + $0x7f4] sm:$0xf0]  ;;  %v14561_v16 = vld [vmem:[#allocation16 + $0x7bc] sm:$0xf] }
 0xdce   : > { %v4782_v23 = vpop.xlane.xlu2 %4781 }
 0xdcf   : > { %v4783_v25 = vmul.f32 %v4782_v23, %v16337_v47  ;;  %v14530_v23 = vld [vmem:[#allocation16 + $0x5dc] sm:$0xf0] }
 0xdd1   : > { %v4784_v61 = vadd.f32 1e-05, %v4783_v25  ;;  %v12254_v25 = vor.u32 %v14539_v17, %v12253_v49  ;;  %v12367_v49 = vld [vmem:[#allocation16 + $0x7f8] sm:$0xf0]  ;;  %v12126_v17 = vor.u32 %v14507_v52, %v12125_v21  ;;  %v14533_v21 = vld [vmem:[#allocation16 + $0x5f4] sm:$0xf0] }
 0xdd2   : > { %v14529_v52 = vld [vmem:[#allocation16 + $0x5bc] sm:$0xf] }
 0xdd3   : > { %15226 = vrsqrt.f32 %v4784_v61  ;;  %vm4791_vm12 = vweird.f32 %v4784_v61 }
 0xdd9   : > { %v15227_v26 = vpop.eup %15226 }
 0xdda   : > { %v4786_v27 = vmul.f32 %v15227_v26, %v4784_v61  ;;  %vm4792_vm11 = vweird.f32 %v15227_v26  ;;  %v12258_v61 = vor.u32 %v14535_v18, %v12255_v31  ;;  %v12130_v18 = vor.u32 %v14503_v54, %v12127_v1  ;;  %v12239_v54 = vld [vmem:[#allocation16 + $0x5f8] sm:$0xf0] }
 0xddb   : > { %vm4793_vm13 = vmor %vm4791_vm12, %vm4792_vm11 }
 0xddc   : > { %v4787_v53 = vmul.f32 %v15227_v26, %v4786_v27  ;;  %v12215_v27 = vld [vmem:[#allocation16 + $0x5e0] sm:$0xf0] }
 0xdde   : > { %v4788_v28 = vmul.f32 0.5, %v4787_v53  ;;  %v12221_v53 = vld [vmem:[#allocation16 + $0x5a8] sm:$0xf] }
 0xde0   : > { %v4789_v29 = vsub.f32 1.5, %v4788_v28  ;;  %v14531_v28 = vld [vmem:[#allocation16 + $0x5e4] sm:$0xf0] }
 0xde2   : > { %v4790_v33 = vmul.f32 %v15227_v26, %v4789_v29  ;;  %v14527_v29 = vld [vmem:[#allocation16 + $0x5ac] sm:$0xf] }
 0xde4   : > { %v4794_v14 = vsel %vm4793_vm13, %v15227_v26, %v4790_v33  ;;  %v14526_v26 = vld [vmem:[#allocation16 + $0x5a4] sm:$0xf]  ;;  %v12223_v33 = vld [vmem:[#allocation16 + $0x5e8] sm:$0xf0] }
 0xde5   : > { %v4795_v36 = vmul.f32 %v4794_v14, %v16532_v12  ;;  %v12350_v12 = vor.u32 %v14563_v40, %v12349_v6  ;;  %v12218_v14 = vor.u32 %v14526_v26, %v12215_v27  ;;  %v12226_v37 = vor.u32 %v14527_v29, %v12223_v33  ;;  %v14523_v6 = vld [vmem:[#allocation16 + $0x564] sm:$0xf0]  ;;  %v14519_v40 = vld [vmem:[#allocation16 + $0x52c] sm:$0xf]  ;;  %v12327_v26 = vld [vmem:[#allocation16 + $0x770] sm:$0xf0] }
 0xde6   : > { %v12190_v62 = vor.u32 %v14523_v6, %v12189_v39  ;;  %v12333_v27 = vld [vmem:[#allocation16 + $0x738] sm:$0xf]  ;;  %v12335_v29 = vld [vmem:[#allocation16 + $0x778] sm:$0xf0] }
 0xde7   : > { %v4799_v30 = vmul.f32 %v15144_v34, %v4795_v36  ;;  %v12214_v34 = vor.u32 %v14530_v23, %v12213_v22  ;;  %v14522_v36 = vld [vmem:[#allocation16 + $0x55c] sm:$0xf0]  ;;  %v14556_v22 = vld [vmem:[#allocation16 + $0x76c] sm:$0xf0]  ;;  %v12366_v23 = vor.u32 %v14565_v15, %v12365_v41  ;;  %v14549_v39 = vld [vmem:[#allocation16 + $0x6f4] sm:$0xf0]  ;;  %v12242_v41 = vor.u32 %v14529_v52, %v12239_v54 }
 0xde8   : > { %v14545_v6 = vld [vmem:[#allocation16 + $0x6bc] sm:$0xf]  ;;  %v12205_v15 = vld [vmem:[#allocation16 + $0x538] sm:$0xf]  ;;  %v14585_v52 = vld [vmem:[#allocation19 + $0x698] sm:$0xff] }
 0xde9   : > { %v16538_v7 = vadd.f32 %v15145_v35, %v4799_v30  ;;  %v12181_v35 = vld [vmem:[#allocation16 + $0x520] sm:$0xf]  ;;  %v12222_v30 = vor.u32 %v14531_v28, %v12221_v53  ;;  %v14557_v53 = vld [vmem:[#allocation16 + $0x774] sm:$0xf0]  ;;  %v14553_v28 = vld [vmem:[#allocation16 + $0x73c] sm:$0xf] }
 0xdea   : > { %v12182_v43 = vor.u32 %v14522_v36, %v12181_v35  ;;  %v14548_v35 = vld [vmem:[#allocation16 + $0x6ec] sm:$0xf0]  ;;  %v12334_v36 = vor.u32 %v14557_v53, %v12333_v27  ;;  %v14517_v27 = vld [vmem:[#allocation16 + $0x4f4] sm:$0xf0]  ;;  %v14513_v53 = vld [vmem:[#allocation16 + $0x4bc] sm:$0xf] }
 0xdeb   : > { %v16542_v32 = vpack.c.bf16 %v16538_v7, %v16538_v7  ;;  %v14593_v54 = vld [vmem:[#allocation19 + $0x6d8] sm:$0xff] }
 0xded   : > { %5217 = vmatmul.bf16.vlgmr.msra.gmra.mxu0 %v16542_v32  ;;  %5230 = vmatmul.bf16.vlgmr.msra.gmra.mxu1 %v16542_v32 }
 0xdee   : > { %5243 = vmatmul.bf16.vlgmr.msra.gmra.mxu2 %v16542_v32  ;;  %5256 = vmatmul.bf16.vlgmr.msrb.gmra.mxu3 %v16542_v32 }
 0xdef   : > { %5860 = vmatpush.bf16.msra.mxu0 %v12342_v44  ;;  %5873 = vmatpush.bf16.msra.mxu1 %v12346_v45  ;;  %v12186_v44 = vor.u32 %v14518_v38, %v12183_v8  ;;  %v12149_v45 = vld [vmem:[#allocation16 + $0x4a0] sm:$0xf]  ;;  %v12295_v38 = vld [vmem:[#allocation16 + $0x6f0] sm:$0xf0]  ;;  %v12301_v8 = vld [vmem:[#allocation16 + $0x6b8] sm:$0xf] }
 0xdf0   : > { %5886 = vmatpush.bf16.msra.mxu2 %v12350_v12  ;;  %5899 = vmatpush.bf16.msrb.mxu3 %v12354_v48  ;;  %v12194_v12 = vor.u32 %v14519_v40, %v12191_v42  ;;  %v14510_v48 = vld [vmem:[#allocation16 + $0x4a4] sm:$0xf]  ;;  %v12303_v40 = vld [vmem:[#allocation16 + $0x6f8] sm:$0xf0] }
 0xdf3   : > { %5861 = vmatpush.bf16.msra.mxu0 %v12310_v55  ;;  %5874 = vmatpush.bf16.msra.mxu1 %v12314_v56  ;;  %v12150_v55 = vor.u32 %v14514_v46, %v12149_v45  ;;  %v12154_v56 = vor.u32 %v14510_v48, %v12151_v58  ;;  %v14540_v45 = vld [vmem:[#allocation16 + $0x66c] sm:$0xf0]  ;;  %v12302_v46 = vor.u32 %v14549_v39, %v12301_v8  ;;  %v12263_v48 = vld [vmem:[#allocation16 + $0x670] sm:$0xf0]  ;;  %v12269_v58 = vld [vmem:[#allocation16 + $0x638] sm:$0xf] }
 0xdf4   : > { %5887 = vmatpush.bf16.msra.mxu2 %v12318_v60  ;;  %5900 = vmatpush.bf16.msrb.mxu3 %v12322_v63  ;;  %v12119_v60 = vld [vmem:[#allocation16 + $0x460] sm:$0xf0]  ;;  %v12158_v63 = vor.u32 %v14515_v10, %v12157_v9  ;;  %v14541_v9 = vld [vmem:[#allocation16 + $0x674] sm:$0xf0]  ;;  %v14537_v10 = vld [vmem:[#allocation16 + $0x63c] sm:$0xf] }
 0xdf5   : > { %v14509_v8 = vld [vmem:[#allocation16 + $0x474] sm:$0xf0]  ;;  %v14505_v39 = vld [vmem:[#allocation16 + $0x43c] sm:$0xf] }
 0xdf7   : > { %5862 = vmatpush.bf16.msra.mxu0 %v12278_v3  ;;  %5875 = vmatpush.bf16.msra.mxu1 %v12282_v4  ;;  %v14564_v3 = vld [vmem:[#allocation16 + $0x7ec] sm:$0xf0]  ;;  %v14560_v4 = vld [vmem:[#allocation16 + $0x7b4] sm:$0xf] }
 0xdf8   : > { %5888 = vmatpush.bf16.msra.mxu2 %v12286_v11  ;;  %5901 = vmatpush.bf16.msrb.mxu3 %v12290_v13  ;;  %v12118_v11 = vor.u32 %v14506_v57, %v12117_v24  ;;  %v12122_v13 = vor.u32 %v14502_v59, %v12119_v60  ;;  %v12358_v31 = vor.u32 %v14564_v3, %v12357_v2  ;;  %v14528_v60 = vld [vmem:[#allocation16 + $0x5b4] sm:$0xf]  ;;  %v12197_v3 = vld [vmem:[#allocation16 + $0x530] sm:$0xf] }
 0xdf9   : > { %v12270_v57 = vor.u32 %v14541_v9, %v12269_v58  ;;  %v12274_v59 = vor.u32 %v14537_v10, %v12271_v50  ;;  %v14580_v58 = vld [vmem:[#allocation19 + $0x670] sm:$0xff]  ;;  %v14571_v50 = vld [vmem:[#allocation19 + $0x628] sm:$0xff] }
 0xdfa   : > { %v14588_v9 = vld [vmem:[#allocation19 + $0x6b0] sm:$0xff] }
 0xdfb   : > { %5863 = vmatpush.bf16.msra.mxu0 %v12246_v19  ;;  %5876 = vmatpush.bf16.msra.mxu1 %v12250_v20  ;;  %v12362_v19 = vor.u32 %v14560_v4, %v12359_v5  ;;  %v12325_v20 = vld [vmem:[#allocation16 + $0x730] sm:$0xf]  ;;  %v14596_v10 = vld [vmem:[#allocation19 + $0x6f0] sm:$0xff] }
 0xdfc   : > { %5889 = vmatpush.bf16.msra.mxu2 %v12254_v25  ;;  %5902 = vmatpush.bf16.msrb.mxu3 %v12258_v61  ;;  %v12370_v25 = vor.u32 %v14561_v16, %v12367_v49  ;;  %v14552_v61 = vld [vmem:[#allocation16 + $0x734] sm:$0xf]  ;;  %v12326_v33 = vor.u32 %v14556_v22, %v12325_v20  ;;  %v14524_v4 = vld [vmem:[#allocation16 + $0x56c] sm:$0xf0]  ;;  %v14525_v16 = vld [vmem:[#allocation16 + $0x574] sm:$0xf0] }
 0xdfd   : > { %5269 = vmatmul.bf16.vlgmr.msrb.gmra.mxu0 %v16542_v32  ;;  %5282 = vmatmul.bf16.vlgmr.msrb.gmra.mxu1 %v16542_v32  ;;  %v14521_v49 = vld [vmem:[#allocation16 + $0x53c] sm:$0xf]  ;;  %v14516_v20 = vld [vmem:[#allocation16 + $0x4ec] sm:$0xf0]  ;;  %v12206_v22 = vor.u32 %v14525_v16, %v12205_v15 }
 0xdfe   : > { %5295 = vmatmul.bf16.vlgmr.msrb.gmra.mxu2 %v16542_v32  ;;  %5308 = vmatmul.bf16.vlgmr.msra.gmra.mxu3 %v16542_v32  ;;  %v14583_v15 = vld [vmem:[#allocation19 + $0x688] sm:$0xff] }
 0xdff   : > { %5864 = vmatpush.bf16.msra.mxu0 %v12214_v34  ;;  %5877 = vmatpush.bf16.msra.mxu1 %v12218_v14  ;;  %v12330_v34 = vor.u32 %v14552_v61, %v12327_v26  ;;  %v12293_v14 = vld [vmem:[#allocation16 + $0x6b0] sm:$0xf]  ;;  %v12167_v61 = vld [vmem:[#allocation16 + $0x4f0] sm:$0xf0]  ;;  %v12173_v26 = vld [vmem:[#allocation16 + $0x4b8] sm:$0xf] }
 0xe00   : > { %5890 = vmatpush.bf16.msra.mxu2 %v12222_v30  ;;  %5903 = vmatpush.bf16.msrb.mxu3 %v12226_v37  ;;  %v12338_v30 = vor.u32 %v14553_v28, %v12335_v29  ;;  %v14544_v37 = vld [vmem:[#allocation16 + $0x6b4] sm:$0xf]  ;;  %v12294_v42 = vor.u32 %v14548_v35, %v12293_v14  ;;  %v12175_v28 = vld [vmem:[#allocation16 + $0x4f8] sm:$0xf0]  ;;  %v14508_v14 = vld [vmem:[#allocation16 + $0x46c] sm:$0xf0]  ;;  %v12174_v35 = vor.u32 %v14517_v27, %v12173_v26 }
 0xe01   : > { %v14591_v16 = vld [vmem:[#allocation19 + $0x6c8] sm:$0xff]  ;;  %v14602_v26 = vld [vmem:[#allocation19 + $0x720] sm:$0xff] }
 0xe02   : > { %v14610_v27 = vld [vmem:[#allocation19 + $0x760] sm:$0xff] }
 0xe03   : > { %5865 = vmatpush.bf16.msra.mxu0 %v12182_v43  ;;  %5878 = vmatpush.bf16.msra.mxu1 %v12186_v44  ;;  %v12298_v43 = vor.u32 %v14544_v37, %v12295_v38  ;;  %v12261_v44 = vld [vmem:[#allocation16 + $0x630] sm:$0xf]  ;;  %v12135_v37 = vld [vmem:[#allocation16 + $0x470] sm:$0xf0]  ;;  %v12141_v38 = vld [vmem:[#allocation16 + $0x438] sm:$0xf] }
 0xe04   : > { %5891 = vmatpush.bf16.msra.mxu2 %v12190_v62  ;;  %5904 = vmatpush.bf16.msrb.mxu3 %v12194_v12  ;;  %v12306_v62 = vor.u32 %v14545_v6, %v12303_v40  ;;  %v14536_v12 = vld [vmem:[#allocation16 + $0x634] sm:$0xf]  ;;  %v12262_v51 = vor.u32 %v14540_v45, %v12261_v44  ;;  %v12143_v6 = vld [vmem:[#allocation16 + $0x478] sm:$0xf0]  ;;  %v14573_v45 = vld [vmem:[#allocation19 + $0x638] sm:$0xff] }
 0xe05   : > { %v12266_v24 = vor.u32 %v14536_v12, %v12263_v48  ;;  %v12146_v44 = vor.u32 %v14505_v39, %v12143_v6  ;;  %v14597_v12 = vld [vmem:[#allocation19 + $0x6f8] sm:$0xff]  ;;  %v14572_v48 = vld [vmem:[#allocation19 + $0x630] sm:$0xff]  ;;  %v14599_v39 = vld [vmem:[#allocation19 + $0x708] sm:$0xff] }
 0xe06   : > { %v14607_v6 = vld [vmem:[#allocation19 + $0x748] sm:$0xff] }
 0xe07   : > { %5866 = vmatpush.bf16.msra.mxu0 %v12150_v55  ;;  %5879 = vmatpush.bf16.msra.mxu1 %v12154_v56  ;;  %v12229_v55 = vld [vmem:[#allocation16 + $0x5b0] sm:$0xf] }
 0xe08   : > { %5892 = vmatpush.bf16.msra.mxu2 %v12158_v63  ;;  %5905 = vmatpush.bf16.msrb.mxu3 %v12162_v0  ;;  %v14532_v56 = vld [vmem:[#allocation16 + $0x5ec] sm:$0xf0]  ;;  %v12231_v63 = vld [vmem:[#allocation16 + $0x5f0] sm:$0xf0]  ;;  %v12237_v0 = vld [vmem:[#allocation16 + $0x5b8] sm:$0xf] }
 0xe09   : > { %v12230_v1 = vor.u32 %v14532_v56, %v12229_v55  ;;  %v12234_v2 = vor.u32 %v14528_v60, %v12231_v63  ;;  %v12238_v5 = vor.u32 %v14533_v21, %v12237_v0  ;;  %v14595_v55 = vld [vmem:[#allocation19 + $0x6e8] sm:$0xff]  ;;  %v14570_v56 = vld [vmem:[#allocation19 + $0x620] sm:$0xff]  ;;  %v14569_v60 = vld [vmem:[#allocation19 + $0x618] sm:$0xff] }
 0xe0a   : > { %v14577_v63 = vld [vmem:[#allocation19 + $0x658] sm:$0xff]  ;;  %v14568_v0 = vld [vmem:[#allocation19 + $0x610] sm:$0xff] }
 0xe0b   : > { %5867 = vmatpush.bf16.msra.mxu0 %v12118_v11  ;;  %5880 = vmatpush.bf16.msra.mxu1 %v12122_v13  ;;  %v14520_v11 = vld [vmem:[#allocation16 + $0x534] sm:$0xf]  ;;  %v14576_v21 = vld [vmem:[#allocation19 + $0x650] sm:$0xff] }
 0xe0c   : > { %5893 = vmatpush.bf16.msra.mxu2 %v12126_v17  ;;  %5906 = vmatpush.bf16.msrb.mxu3 %v12130_v18  ;;  %v12199_v13 = vld [vmem:[#allocation16 + $0x570] sm:$0xf0]  ;;  %v12207_v17 = vld [vmem:[#allocation16 + $0x578] sm:$0xf0]  ;;  %v12198_v18 = vor.u32 %v14524_v4, %v12197_v3  ;;  %v14584_v3 = vld [vmem:[#allocation19 + $0x690] sm:$0xff] }
 0xe0d   : > { %v14592_v4 = vld [vmem:[#allocation19 + $0x6d0] sm:$0xff] }
 0xe0e   : > { %5868 = vmatmul.bf16.vlgmr.msra.gmra.mxu0 %v16542_v32  ;;  %5881 = vmatmul.bf16.vlgmr.msra.gmra.mxu1 %v16542_v32 }
 0xe0f   : > { %5912 = vmatpush.bf16.msrb.mxu0 %v12358_v31  ;;  %5925 = vmatpush.bf16.msrb.mxu1 %v12362_v19  ;;  %v12202_v31 = vor.u32 %v14520_v11, %v12199_v13  ;;  %v12165_v19 = vld [vmem:[#allocation16 + $0x4b0] sm:$0xf]  ;;  %v14605_v11 = vld [vmem:[#allocation19 + $0x738] sm:$0xff] }
 0xe10   : > { %5938 = vmatpush.bf16.msrb.mxu2 %v12366_v23  ;;  %5951 = vmatpush.bf16.msra.mxu3 %v12370_v25  ;;  %v12210_v23 = vor.u32 %v14521_v49, %v12207_v17  ;;  %v14512_v25 = vld [vmem:[#allocation16 + $0x4b4] sm:$0xf]  ;;  %v12166_v29 = vor.u32 %v14516_v20, %v12165_v19  ;;  %v14613_v13 = vld [vmem:[#allocation19 + $0x778] sm:$0xff]  ;;  %v14604_v49 = vld [vmem:[#allocation19 + $0x730] sm:$0xff] }
 0xe11   : > { %5894 = vmatmul.bf16.vlgmr.msra.gmra.mxu2 %v16542_v32  ;;  %5907 = vmatmul.bf16.vlgmr.msrb.gmra.mxu3 %v16542_v32  ;;  %v14612_v17 = vld [vmem:[#allocation19 + $0x770] sm:$0xff]  ;;  %v14621_v19 = vld [vmem:[#allocation19 + $0x7b8] sm:$0xff] }
 0xe12   : > { %v14629_v20 = vld [vmem:[#allocation19 + $0x7f8] sm:$0xff] }
 0xe13   : > { %5913 = vmatpush.bf16.msrb.mxu0 %v12326_v33  ;;  %5926 = vmatpush.bf16.msrb.mxu1 %v12330_v34  ;;  %v12170_v33 = vor.u32 %v14512_v25, %v12167_v61  ;;  %v12133_v34 = vld [vmem:[#allocation16 + $0x430] sm:$0xf]  ;;  %v14620_v25 = vld [vmem:[#allocation19 + $0x7b0] sm:$0xff] }
 0xe14   : > { %5939 = vmatpush.bf16.msrb.mxu2 %v12334_v36  ;;  %5952 = vmatpush.bf16.msra.mxu3 %v12338_v30  ;;  %v12178_v36 = vor.u32 %v14513_v53, %v12175_v28  ;;  %v14504_v30 = vld [vmem:[#allocation16 + $0x434] sm:$0xf]  ;;  %v12134_v40 = vor.u32 %v14508_v14, %v12133_v34  ;;  %v14628_v61 = vld [vmem:[#allocation19 + $0x7f0] sm:$0xff]  ;;  %v14619_v53 = vld [vmem:[#allocation19 + $0x7a8] sm:$0xff] }
 0xe15   : > { %v14627_v28 = vld [vmem:[#allocation19 + $0x7e8] sm:$0xff]  ;;  %v14618_v34 = vld [vmem:[#allocation19 + $0x7a0] sm:$0xff] }
 0xe16   : > { %v14626_v14 = vld [vmem:[#allocation19 + $0x7e0] sm:$0xff] }
 0xe17   : > { %5914 = vmatpush.bf16.msrb.mxu0 %v12294_v42  ;;  %5927 = vmatpush.bf16.msrb.mxu1 %v12298_v43  ;;  %v12138_v42 = vor.u32 %v14504_v30, %v12135_v37  ;;  %v12142_v43 = vor.u32 %v14509_v8, %v12141_v38  ;;  %v14617_v38 = vld [vmem:[#allocation19 + $0x798] sm:$0xff] }
 0xe18   : > { %5940 = vmatpush.bf16.msrb.mxu2 %v12302_v46  ;;  %5953 = vmatpush.bf16.msra.mxu3 %v12306_v62  ;;  %v14581_v46 = vld [vmem:[#allocation19 + $0x678] sm:$0xff] }
 0xe19   : > { %v14589_v62 = vld [vmem:[#allocation19 + $0x6b8] sm:$0xff] }
 0xe1a   : > { %v14625_v8 = vld [vmem:[#allocation19 + $0x7d8] sm:$0xff] }
 0xe1b   : > { %5915 = vmatpush.bf16.msrb.mxu0 %v12262_v51  ;;  %5928 = vmatpush.bf16.msrb.mxu1 %v12266_v24  ;;  %v14579_v51 = vld [vmem:[#allocation19 + $0x668] sm:$0xff] }
 0xe1c   : > { %5941 = vmatpush.bf16.msrb.mxu2 %v12270_v57  ;;  %5954 = vmatpush.bf16.msra.mxu3 %v12274_v59  ;;  %v14587_v24 = vld [vmem:[#allocation19 + $0x6a8] sm:$0xff]  ;;  %v14578_v57 = vld [vmem:[#allocation19 + $0x660] sm:$0xff] }
 0xe1d   : > { %v14586_v59 = vld [vmem:[#allocation19 + $0x6a0] sm:$0xff] }
 0xe1f   : > { %5916 = vmatpush.bf16.msrb.mxu0 %v12230_v1  ;;  %5929 = vmatpush.bf16.msrb.mxu1 %v12234_v2  ;;  %v14567_v1 = vld [vmem:[#allocation19 + $0x608] sm:$0xff] }
 0xe20   : > { %5942 = vmatpush.bf16.msrb.mxu2 %v12238_v5  ;;  %5955 = vmatpush.bf16.msra.mxu3 %v12242_v41  ;;  %v14575_v2 = vld [vmem:[#allocation19 + $0x648] sm:$0xff]  ;;  %v14566_v5 = vld [vmem:[#allocation19 + $0x600] sm:$0xff] }
 0xe21   : > { %v14574_v41 = vld [vmem:[#allocation19 + $0x640] sm:$0xff] }
 0xe23   : > { %5917 = vmatpush.bf16.msrb.mxu0 %v12198_v18  ;;  %5930 = vmatpush.bf16.msrb.mxu1 %v12202_v31  ;;  %v14582_v18 = vld [vmem:[#allocation19 + $0x680] sm:$0xff] }
 0xe24   : > { %5943 = vmatpush.bf16.msrb.mxu2 %v12206_v22  ;;  %5956 = vmatpush.bf16.msra.mxu3 %v12210_v23  ;;  %v14590_v31 = vld [vmem:[#allocation19 + $0x6c0] sm:$0xff]  ;;  %v14603_v22 = vld [vmem:[#allocation19 + $0x728] sm:$0xff] }
 0xe25   : > { %v14611_v23 = vld [vmem:[#allocation19 + $0x768] sm:$0xff] }
 0xe27   : > { %5918 = vmatpush.bf16.msrb.mxu0 %v12166_v29  ;;  %5931 = vmatpush.bf16.msrb.mxu1 %v12170_v33  ;;  %v14601_v29 = vld [vmem:[#allocation19 + $0x718] sm:$0xff] }
 0xe28   : > { %5944 = vmatpush.bf16.msrb.mxu2 %v12174_v35  ;;  %5957 = vmatpush.bf16.msra.mxu3 %v12178_v36  ;;  %v14609_v33 = vld [vmem:[#allocation19 + $0x758] sm:$0xff]  ;;  %v14600_v35 = vld [vmem:[#allocation19 + $0x710] sm:$0xff] }
 0xe29   : > { %v14608_v36 = vld [vmem:[#allocation19 + $0x750] sm:$0xff] }
 0xe2b   : > { %5919 = vmatpush.bf16.msrb.mxu0 %v12134_v40  ;;  %5932 = vmatpush.bf16.msrb.mxu1 %v12138_v42  ;;  %v14616_v40 = vld [vmem:[#allocation19 + $0x790] sm:$0xff] }
 0xe2c   : > { %5945 = vmatpush.bf16.msrb.mxu2 %v12142_v43  ;;  %5958 = vmatpush.bf16.msra.mxu3 %v12146_v44  ;;  %v14624_v42 = vld [vmem:[#allocation19 + $0x7d0] sm:$0xff] }
 0xe2e   : > { %5920 = vmatmul.bf16.vlgmr.msrb.gmra.mxu0 %v16542_v32  ;;  %5933 = vmatmul.bf16.vlgmr.msrb.gmra.mxu1 %v16542_v32 }
 0xe2f   : > { %6492 = vmatpush.bf16.msra.mxu0 %v14573_v45  ;;  %6505 = vmatpush.bf16.msra.mxu1 %v14581_v46 }
 0xe30   : > { %5946 = vmatmul.bf16.vlgmr.msrb.gmra.mxu2 %v16542_v32  ;;  %5959 = vmatmul.bf16.vlgmr.msra.gmra.mxu3 %v16542_v32  ;;  %v14594_v32 = vld [vmem:[#allocation19 + $0x6e0] sm:$0xff] }
 0xe31   : > { %6518 = vmatpush.bf16.msra.mxu2 %v14589_v62  ;;  %6531 = vmatpush.bf16.msrb.mxu3 %v14597_v12  ;;  %v14598_v62 = vld [vmem:[#allocation19 + $0x700] sm:$0xff] }
 0xe32   : > { %v14606_v12 = vld [vmem:[#allocation19 + $0x740] sm:$0xff] }
 0xe33   : > { %6493 = vmatpush.bf16.msra.mxu0 %v14572_v48  ;;  %6506 = vmatpush.bf16.msra.mxu1 %v14580_v58  ;;  %v14615_v48 = vld [vmem:[#allocation19 + $0x788] sm:$0xff] }
 0xe34   : > { %v14623_v58 = vld [vmem:[#allocation19 + $0x7c8] sm:$0xff] }
 0xe35   : > { %6519 = vmatpush.bf16.msra.mxu2 %v14588_v9  ;;  %6532 = vmatpush.bf16.msrb.mxu3 %v14596_v10  ;;  %v14614_v9 = vld [vmem:[#allocation19 + $0x780] sm:$0xff] }
 0xe36   : > { %v14622_v10 = vld [vmem:[#allocation19 + $0x7c0] sm:$0xff] }
 0xe37   : > { %6494 = vmatpush.bf16.msra.mxu0 %v14571_v50  ;;  %6507 = vmatpush.bf16.msra.mxu1 %v14579_v51 }
 0xe39   : > { %6520 = vmatpush.bf16.msra.mxu2 %v14587_v24  ;;  %6533 = vmatpush.bf16.msrb.mxu3 %v14595_v55 }
 0xe3b   : > { %6495 = vmatpush.bf16.msra.mxu0 %v14570_v56  ;;  %6508 = vmatpush.bf16.msra.mxu1 %v14578_v57 }
 0xe3d   : > { %6521 = vmatpush.bf16.msra.mxu2 %v14586_v59  ;;  %6534 = vmatpush.bf16.msrb.mxu3 %v14594_v32 }
 0xe3f   : > { %6496 = vmatpush.bf16.msra.mxu0 %v14569_v60  ;;  %6509 = vmatpush.bf16.msra.mxu1 %v14577_v63  ;;  %v16576_v60 = vld [vmem:[#allocation18 + $0x18] sm:$0xff] }
 0xe41   : > { %6522 = vmatpush.bf16.msra.mxu2 %v14585_v52  ;;  %6535 = vmatpush.bf16.msrb.mxu3 %v14593_v54  ;;  %v5525_v52 = vperm.slane %v16576_v60, 1 }
 0xe43   : > { %6497 = vmatpush.bf16.msra.mxu0 %v14568_v0  ;;  %6510 = vmatpush.bf16.msra.mxu1 %v14576_v21  ;;  %v5524_v21 = vperm.slane %v16576_v60, 0 }
 0xe45   : > { %6523 = vmatpush.bf16.msra.mxu2 %v14584_v3  ;;  %6536 = vmatpush.bf16.msrb.mxu3 %v14592_v4 }
 0xe47   : > { %6498 = vmatpush.bf16.msra.mxu0 %v14567_v1  ;;  %6511 = vmatpush.bf16.msra.mxu1 %v14575_v2 }
 0xe49   : > { %6524 = vmatpush.bf16.msra.mxu2 %v14583_v15  ;;  %6537 = vmatpush.bf16.msrb.mxu3 %v14591_v16  ;;  %v14453_v15 = vld [vmem:[#allocation19 + $0x478] sm:$0xff] }
 0xe4b   : > { %6499 = vmatpush.bf16.msra.mxu0 %v14566_v5  ;;  %6512 = vmatpush.bf16.msra.mxu1 %v14574_v41  ;;  %v5526_v41 = vperm.slane %v16576_v60, 2 }
 0xe4d   : > { %6525 = vmatpush.bf16.msra.mxu2 %v14582_v18  ;;  %6538 = vmatpush.bf16.msrb.mxu3 %v14590_v31 }
 0xe4f   : > { %6544 = vmatpush.bf16.msrb.mxu0 %v14605_v11  ;;  %6557 = vmatpush.bf16.msrb.mxu1 %v14613_v13  ;;  %v5527_v11 = vperm.slane %v16576_v60, 3  ;;  %v14445_v13 = vld [vmem:[#allocation19 + $0x438] sm:$0xff] }
 0xe51   : > { %6570 = vmatpush.bf16.msrb.mxu2 %v14621_v19  ;;  %6583 = vmatpush.bf16.msra.mxu3 %v14629_v20 }
 0xe53   : > { %6545 = vmatpush.bf16.msrb.mxu0 %v14604_v49  ;;  %6558 = vmatpush.bf16.msrb.mxu1 %v14612_v17 }
 0xe55   : > { %6571 = vmatpush.bf16.msrb.mxu2 %v14620_v25  ;;  %6584 = vmatpush.bf16.msra.mxu3 %v14628_v61  ;;  %v14452_v25 = vld [vmem:[#allocation19 + $0x470] sm:$0xff] }
 0xe57   : > { %6546 = vmatpush.bf16.msrb.mxu0 %v14603_v22  ;;  %6559 = vmatpush.bf16.msrb.mxu1 %v14611_v23  ;;  %v14444_v23 = vld [vmem:[#allocation19 + $0x430] sm:$0xff] }
 0xe59   : > { %6572 = vmatpush.bf16.msrb.mxu2 %v14619_v53  ;;  %6585 = vmatpush.bf16.msra.mxu3 %v14627_v28  ;;  %v14469_v53 = vld [vmem:[#allocation19 + $0x4f8] sm:$0xff] }
 0xe5b   : > { %6547 = vmatpush.bf16.msrb.mxu0 %v14602_v26  ;;  %6560 = vmatpush.bf16.msrb.mxu1 %v14610_v27  ;;  %v14461_v27 = vld [vmem:[#allocation19 + $0x4b8] sm:$0xff] }
 0xe5d   : > { %6573 = vmatpush.bf16.msrb.mxu2 %v14618_v34  ;;  %6586 = vmatpush.bf16.msra.mxu3 %v14626_v14  ;;  %v14451_v34 = vld [vmem:[#allocation19 + $0x468] sm:$0xff] }
 0xe5f   : > { %6548 = vmatpush.bf16.msrb.mxu0 %v14601_v29  ;;  %6561 = vmatpush.bf16.msrb.mxu1 %v14609_v33  ;;  %v14443_v33 = vld [vmem:[#allocation19 + $0x428] sm:$0xff] }
 0xe61   : > { %6574 = vmatpush.bf16.msrb.mxu2 %v14617_v38  ;;  %6587 = vmatpush.bf16.msra.mxu3 %v14625_v8  ;;  %v14468_v38 = vld [vmem:[#allocation19 + $0x4f0] sm:$0xff]  ;;  %v14442_v8 = vld [vmem:[#allocation19 + $0x420] sm:$0xff] }
 0xe63   : > { %6549 = vmatpush.bf16.msrb.mxu0 %v14600_v35  ;;  %6562 = vmatpush.bf16.msrb.mxu1 %v14608_v36  ;;  %v14460_v36 = vld [vmem:[#allocation19 + $0x4b0] sm:$0xff] }
 0xe65   : > { %6575 = vmatpush.bf16.msrb.mxu2 %v14616_v40  ;;  %6588 = vmatpush.bf16.msra.mxu3 %v14624_v42  ;;  %v14467_v40 = vld [vmem:[#allocation19 + $0x4e8] sm:$0xff]  ;;  %v14441_v42 = vld [vmem:[#allocation19 + $0x418] sm:$0xff] }
 0xe67   : > { %6550 = vmatpush.bf16.msrb.mxu0 %v14599_v39  ;;  %6563 = vmatpush.bf16.msrb.mxu1 %v14607_v6  ;;  %v14450_v39 = vld [vmem:[#allocation19 + $0x460] sm:$0xff]  ;;  %v14459_v6 = vld [vmem:[#allocation19 + $0x4a8] sm:$0xff] }
 0xe69   : > { %6576 = vmatpush.bf16.msrb.mxu2 %v14615_v48  ;;  %6589 = vmatpush.bf16.msra.mxu3 %v14623_v58  ;;  %v14448_v48 = vld [vmem:[#allocation19 + $0x450] sm:$0xff]  ;;  %v5528_v58 = vperm.slane %v16576_v60, 4 }
 0xe6a   : > { %v16560_v30 = vpop.f32.mrf.mxu0  ;;  %v16562_v37 = vpop.f32.mrf.mxu1 }
 0xe6b   : > { %6551 = vmatpush.bf16.msrb.mxu0 %v14598_v62  ;;  %6564 = vmatpush.bf16.msrb.mxu1 %v14606_v12  ;;  %v14466_v62 = vld [vmem:[#allocation19 + $0x4e0] sm:$0xff]  ;;  %v14440_v12 = vld [vmem:[#allocation19 + $0x410] sm:$0xff] }
 0xe6d   : > { %6577 = vmatpush.bf16.msrb.mxu2 %v14614_v9  ;;  %6590 = vmatpush.bf16.msra.mxu3 %v14622_v10  ;;  %v5529_v9 = vperm.slane %v16576_v60, 5  ;;  %v14457_v10 = vld [vmem:[#allocation19 + $0x498] sm:$0xff] }
 0xe71   : > { %v16564_v43 = vpop.f32.mrf.mxu2  ;;  %v16566_v44 = vpop.f32.mrf.mxu3 }
 0xe72   : > { %v5220_v45 = vpop.f32.mrf.mxu0  ;;  %v5233_v46 = vpop.f32.mrf.mxu1 }
 0xe73   : > { %v14449_v45 = vld [vmem:[#allocation19 + $0x458] sm:$0xff]  ;;  %v14458_v46 = vld [vmem:[#allocation19 + $0x4a0] sm:$0xff] }
 0xe79   : > { %v5246_v50 = vpop.f32.mrf.mxu2  ;;  %v5259_v51 = vpop.f32.mrf.mxu3 }
 0xe7a   : > { %v16568_v24 = vpop.f32.mrf.mxu0  ;;  %v16570_v55 = vpop.f32.mrf.mxu1  ;;  %v14465_v50 = vld [vmem:[#allocation19 + $0x4d8] sm:$0xff]  ;;  %v14439_v51 = vld [vmem:[#allocation19 + $0x408] sm:$0xff] }
 0xe81   : > { %v16572_v56 = vpop.f32.mrf.mxu2  ;;  %v16574_v57 = vpop.f32.mrf.mxu3 }
 0xe82   : > { %v5272_v59 = vpop.f32.mrf.mxu0  ;;  %v5285_v32 = vpop.f32.mrf.mxu1 }
 0xe83   : > { %v14447_v59 = vld [vmem:[#allocation19 + $0x448] sm:$0xff] }
 0xe89   : > { %v5298_v63 = vpop.f32.mrf.mxu2  ;;  %v5311_v0 = vpop.f32.mrf.mxu3 }
 0xe8b   : > { %v5869_v54 = vpop.f32.mrf.mxu0  ;;  %v5882_v1 = vpop.f32.mrf.mxu1 }
 0xe8c   : > { %v5870_v2 = vadd.f32 %v5869_v54, %v5524_v21  ;;  %v5883_v3 = vadd.f32 %v5882_v1, %v5525_v52  ;;  %v14456_v52 = vld [vmem:[#allocation19 + $0x490] sm:$0xff] }
 0xe8d   : > { %v14464_v54 = vld [vmem:[#allocation19 + $0x4d0] sm:$0xff] }
 0xe8e   : > { %v5964_v4 = vmax.f32 %v5870_v2, 0.0  ;;  %v5965_v5 = vmax.f32 %v5883_v3, 0.0  ;;  %v5530_v3 = vperm.slane %v16576_v60, 6 }
 0xe90   : > { %v5972_v16 = vpack.c.bf16 %v5964_v4, %v5964_v4  ;;  %v5973_v49 = vpack.c.bf16 %v5965_v5, %v5965_v5  ;;  %v5531_v4 = vperm.slane %v16576_v60, 7  ;;  %v14438_v5 = vld [vmem:[#allocation19 + $0x400] sm:$0xff] }
 0xe92   : > { %6500 = vmatmul.bf16.vlgmr.msra.gmra.mxu0 %v5972_v16  ;;  %6513 = vmatmul.bf16.vlgmr.msra.gmra.mxu1 %v5973_v49  ;;  %v14485_v16 = vld [vmem:[#allocation19 + $0x578] sm:$0xff]  ;;  %v16586_v49 = vld [vmem:[#allocation18 + $0x10] sm:$0xff] }
 0xe93   : > { %6980 = vmatpush.bf16.msra.mxu0 %v14445_v13  ;;  %6993 = vmatpush.bf16.msra.mxu1 %v14453_v15  ;;  %v5871_v20 = vpop.f32.mrf.mxu0  ;;  %v5884_v22 = vpop.f32.mrf.mxu1  ;;  %v14477_v15 = vld [vmem:[#allocation19 + $0x538] sm:$0xff] }
 0xe94   : > { %v5895_v17 = vpop.f32.mrf.mxu2  ;;  %v5908_v18 = vpop.f32.mrf.mxu3 }
 0xe95   : > { %v5896_v31 = vadd.f32 %v5895_v17, %v5526_v41  ;;  %v5909_v19 = vadd.f32 %v5908_v18, %v5527_v11  ;;  %v14446_v41 = vld [vmem:[#allocation19 + $0x440] sm:$0xff]  ;;  %v14455_v17 = vld [vmem:[#allocation19 + $0x488] sm:$0xff] }
 0xe96   : > { %v14463_v18 = vld [vmem:[#allocation19 + $0x4c8] sm:$0xff] }
 0xe97   : > { %v5966_v61 = vmax.f32 %v5896_v31, 0.0  ;;  %v5967_v26 = vmax.f32 %v5909_v19, 0.0  ;;  %6981 = vmatpush.bf16.msra.mxu0 %v14444_v23  ;;  %6994 = vmatpush.bf16.msra.mxu1 %v14452_v25  ;;  %v4873_v25 = vperm.slane %v16586_v49, 0 }
 0xe99   : > { %v5974_v28 = vpack.c.bf16 %v5966_v61, %v5966_v61  ;;  %v5975_v29 = vpack.c.bf16 %v5967_v26, %v5967_v26  ;;  %v4874_v61 = vperm.slane %v16586_v49, 1  ;;  %v14476_v26 = vld [vmem:[#allocation19 + $0x530] sm:$0xff] }
 0xe9b   : > { %6526 = vmatmul.bf16.vlgmr.msra.gmra.mxu2 %v5974_v28  ;;  %6539 = vmatmul.bf16.vlgmr.msrb.gmra.mxu3 %v5975_v29  ;;  %v14454_v29 = vld [vmem:[#allocation19 + $0x480] sm:$0xff] }
 0xe9c   : > { %7006 = vmatpush.bf16.msra.mxu2 %v14461_v27  ;;  %7019 = vmatpush.bf16.msrb.mxu3 %v14469_v53  ;;  %v5897_v14 = vpop.f32.mrf.mxu2  ;;  %v5910_v35 = vpop.f32.mrf.mxu3  ;;  %v14484_v27 = vld [vmem:[#allocation19 + $0x570] sm:$0xff] }
 0xe9d   : > { %6982 = vmatpush.bf16.msra.mxu0 %v14443_v33  ;;  %6995 = vmatpush.bf16.msra.mxu1 %v14451_v34  ;;  %v14462_v33 = vld [vmem:[#allocation19 + $0x4c0] sm:$0xff]  ;;  %v14493_v35 = vld [vmem:[#allocation19 + $0x5b8] sm:$0xff] }
 0xea0   : > { %7007 = vmatpush.bf16.msra.mxu2 %v14460_v36  ;;  %7020 = vmatpush.bf16.msrb.mxu3 %v14468_v38  ;;  %v14501_v36 = vld [vmem:[#allocation19 + $0x5f8] sm:$0xff]  ;;  %v5219_v38 = vadd.f32 %v16560_v30, %v4873_v25  ;;  %v14500_v30 = vld [vmem:[#allocation19 + $0x5f0] sm:$0xff] }
 0xea1   : > { %6983 = vmatpush.bf16.msra.mxu0 %v14442_v8  ;;  %6996 = vmatpush.bf16.msra.mxu1 %v14450_v39  ;;  %v5232_v8 = vadd.f32 %v16562_v37, %v4874_v61  ;;  %v14475_v39 = vld [vmem:[#allocation19 + $0x528] sm:$0xff] }
 0xea2   : > { %v14487_v61 = vld [vmem:[#allocation19 + $0x588] sm:$0xff] }
 0xea3   : > { %v5314_v37 = vmax.f32 %v5232_v8, 0.0 }
 0xea4   : > { %7008 = vmatpush.bf16.msra.mxu2 %v14459_v6  ;;  %7021 = vmatpush.bf16.msrb.mxu3 %v14467_v40  ;;  %v14483_v6 = vld [vmem:[#allocation19 + $0x568] sm:$0xff] }
 0xea5   : > { %6984 = vmatpush.bf16.msra.mxu0 %v14441_v42  ;;  %6997 = vmatpush.bf16.msra.mxu1 %v14449_v45  ;;  %v4875_v45 = vperm.slane %v16586_v49, 2 }
 0xea8   : > { %7009 = vmatpush.bf16.msra.mxu2 %v14458_v46  ;;  %7022 = vmatpush.bf16.msrb.mxu3 %v14466_v62  ;;  %v4876_v46 = vperm.slane %v16586_v49, 3  ;;  %v14492_v62 = vld [vmem:[#allocation19 + $0x5b0] sm:$0xff] }
 0xea9   : > { %6985 = vmatpush.bf16.msra.mxu0 %v14440_v12  ;;  %6998 = vmatpush.bf16.msra.mxu1 %v14448_v48  ;;  %v5313_v12 = vmax.f32 %v5219_v38, 0.0  ;;  %v14474_v48 = vld [vmem:[#allocation19 + $0x520] sm:$0xff] }
 0xeab   : > { %v5921_v32 = vpop.f32.mrf.mxu0  ;;  %v5934_v63 = vpop.f32.mrf.mxu1 }
 0xeac   : > { %v5922_v0 = vadd.f32 %v5921_v32, %v5528_v58  ;;  %v5935_v21 = vadd.f32 %v5934_v63, %v5529_v9  ;;  %7010 = vmatpush.bf16.msra.mxu2 %v14457_v10  ;;  %7023 = vmatpush.bf16.msrb.mxu3 %v14465_v50  ;;  %v14482_v58 = vld [vmem:[#allocation19 + $0x560] sm:$0xff]  ;;  %v5245_v9 = vadd.f32 %v16564_v43, %v4875_v45  ;;  %v14491_v50 = vld [vmem:[#allocation19 + $0x5a8] sm:$0xff]  ;;  %v14473_v63 = vld [vmem:[#allocation19 + $0x518] sm:$0xff] }
 0xead   : > { %6986 = vmatpush.bf16.msra.mxu0 %v14439_v51  ;;  %6999 = vmatpush.bf16.msra.mxu1 %v14447_v59  ;;  %v5258_v10 = vadd.f32 %v16566_v44, %v4876_v46  ;;  %v14499_v51 = vld [vmem:[#allocation19 + $0x5e8] sm:$0xff]  ;;  %v5321_v59 = vpack.c.bf16 %v5313_v12, %v5313_v12  ;;  %v5322_v32 = vpack.c.bf16 %v5314_v37, %v5314_v37  ;;  %v14498_v43 = vld [vmem:[#allocation19 + $0x5e0] sm:$0xff]  ;;  %v14472_v44 = vld [vmem:[#allocation19 + $0x510] sm:$0xff] }
 0xeae   : > { %v5968_v1 = vmax.f32 %v5922_v0, 0.0  ;;  %v5969_v2 = vmax.f32 %v5935_v21, 0.0  ;;  %v14481_v0 = vld [vmem:[#allocation19 + $0x558] sm:$0xff]  ;;  %v5315_v21 = vmax.f32 %v5245_v9, 0.0 }
 0xeb0   : > { %v5976_v11 = vpack.c.bf16 %v5968_v1, %v5968_v1  ;;  %v5977_v13 = vpack.c.bf16 %v5969_v2, %v5969_v2  ;;  %7011 = vmatpush.bf16.msra.mxu2 %v14456_v52  ;;  %7024 = vmatpush.bf16.msrb.mxu3 %v14464_v54  ;;  %v5316_v52 = vmax.f32 %v5258_v10, 0.0  ;;  %v14490_v54 = vld [vmem:[#allocation19 + $0x5a0] sm:$0xff]  ;;  %v14480_v1 = vld [vmem:[#allocation19 + $0x550] sm:$0xff]  ;;  %v4877_v2 = vperm.slane %v16586_v49, 4 }
 0xeb1   : > { %6987 = vmatpush.bf16.msra.mxu0 %v14438_v5  ;;  %7000 = vmatpush.bf16.msra.mxu1 %v14446_v41  ;;  %v14489_v41 = vld [vmem:[#allocation19 + $0x598] sm:$0xff] }
 0xeb2   : > { %6552 = vmatmul.bf16.vlgmr.msrb.gmra.mxu0 %v5976_v11  ;;  %6565 = vmatmul.bf16.vlgmr.msrb.gmra.mxu1 %v5977_v13  ;;  %v5324_v5 = vpack.c.bf16 %v5316_v52, %v5316_v52  ;;  %v14497_v11 = vld [vmem:[#allocation19 + $0x5d8] sm:$0xff]  ;;  %v14471_v13 = vld [vmem:[#allocation19 + $0x508] sm:$0xff] }
 0xeb3   : > { %v5947_v31 = vpop.f32.mrf.mxu2  ;;  %v5960_v19 = vpop.f32.mrf.mxu3 }
 0xeb4   : > { %v5948_v20 = vadd.f32 %v5947_v31, %v5530_v3  ;;  %v5961_v22 = vadd.f32 %v5960_v19, %v5531_v4  ;;  %v5923_v60 = vpop.f32.mrf.mxu0  ;;  %v5936_v23 = vpop.f32.mrf.mxu1  ;;  %7012 = vmatpush.bf16.msra.mxu2 %v14455_v17  ;;  %7025 = vmatpush.bf16.msrb.mxu3 %v14463_v18  ;;  %v4878_v3 = vperm.slane %v16586_v49, 5  ;;  %v5323_v4 = vpack.c.bf16 %v5315_v21, %v5315_v21  ;;  %v14488_v18 = vld [vmem:[#allocation19 + $0x590] sm:$0xff] }
 0xeb5   : > { %7032 = vmatpush.bf16.msrb.mxu0 %v14477_v15  ;;  %7045 = vmatpush.bf16.msrb.mxu1 %v14485_v16  ;;  %v14479_v15 = vld [vmem:[#allocation19 + $0x548] sm:$0xff]  ;;  %v5271_v16 = vadd.f32 %v16568_v24, %v4877_v2  ;;  %v14496_v31 = vld [vmem:[#allocation19 + $0x5d0] sm:$0xff]  ;;  %v4879_v19 = vperm.slane %v16586_v49, 6  ;;  %v14478_v60 = vld [vmem:[#allocation19 + $0x540] sm:$0xff] }
 0xeb6   : > { %v5970_v53 = vmax.f32 %v5948_v20, 0.0  ;;  %v5971_v28 = vmax.f32 %v5961_v22, 0.0  ;;  %v5284_v17 = vadd.f32 %v16570_v55, %v4878_v3  ;;  %v4880_v20 = vperm.slane %v16586_v49, 7  ;;  %v14470_v22 = vld [vmem:[#allocation19 + $0x500] sm:$0xff]  ;;  %v14495_v24 = vld [vmem:[#allocation19 + $0x5c8] sm:$0xff] }
 0xeb7   : > { %v5317_v23 = vmax.f32 %v5271_v16, 0.0  ;;  %v5297_v55 = vadd.f32 %v16572_v56, %v4879_v19  ;;  %v14486_v49 = vld [vmem:[#allocation19 + $0x580] sm:$0xff] }
 0xeb8   : > { %v5978_v34 = vpack.c.bf16 %v5970_v53, %v5970_v53  ;;  %v5979_v14 = vpack.c.bf16 %v5971_v28, %v5971_v28  ;;  %7013 = vmatpush.bf16.msra.mxu2 %v14454_v29  ;;  %7026 = vmatpush.bf16.msrb.mxu3 %v14462_v33  ;;  %v5318_v25 = vmax.f32 %v5284_v17, 0.0  ;;  %v14494_v28 = vld [vmem:[#allocation19 + $0x5c0] sm:$0xff] }
 0xeb9   : > { %7033 = vmatpush.bf16.msrb.mxu0 %v14476_v26  ;;  %7046 = vmatpush.bf16.msrb.mxu1 %v14484_v27  ;;  %v5310_v26 = vadd.f32 %v16574_v57, %v4880_v20  ;;  %v5325_v27 = vpack.c.bf16 %v5317_v23, %v5317_v23  ;;  %v5319_v29 = vmax.f32 %v5297_v55, 0.0  ;;  %v15146_v19 = vld [vmem:[#allocation21 + $0x1] ss:$0 sm:$0xff]  ;;  %v14651_v55 = vld [vmem:[#allocation10 + $0x22c] sm:$0xf] }
 0xeba   : > { %6578 = vmatmul.bf16.vlgmr.msrb.gmra.mxu2 %v5978_v34  ;;  %6591 = vmatmul.bf16.vlgmr.msra.gmra.mxu3 %v5979_v14  ;;  %v5326_v53 = vpack.c.bf16 %v5318_v25, %v5318_v25 }
 0xebb   : > { %v5949_v40 = vpop.f32.mrf.mxu2  ;;  %v5962_v42 = vpop.f32.mrf.mxu3  ;;  %v5320_v33 = vmax.f32 %v5310_v26, 0.0  ;;  %v5327_v34 = vpack.c.bf16 %v5319_v29, %v5319_v29 }
 0xebc   : > { %7058 = vmatpush.bf16.msrb.mxu2 %v14493_v35  ;;  %7071 = vmatpush.bf16.msra.mxu3 %v14501_v36 }
 0xebd   : > { %7034 = vmatpush.bf16.msrb.mxu0 %v14475_v39  ;;  %7047 = vmatpush.bf16.msrb.mxu1 %v14483_v6  ;;  %v5328_v14 = vpack.c.bf16 %v5320_v33, %v5320_v33 }
 0xec0   : > { %7059 = vmatpush.bf16.msrb.mxu2 %v14492_v62  ;;  %7072 = vmatpush.bf16.msra.mxu3 %v14500_v30 }
 0xec1   : > { %7035 = vmatpush.bf16.msrb.mxu0 %v14474_v48  ;;  %7048 = vmatpush.bf16.msrb.mxu1 %v14482_v58 }
 0xec2   : > { %6988 = vmatmul.bf16.vlgmr.msra.gmra.mxu0 %v5321_v59  ;;  %7001 = vmatmul.bf16.vlgmr.msra.gmra.mxu1 %v5322_v32 }
 0xec4   : > { %7060 = vmatpush.bf16.msrb.mxu2 %v14491_v50  ;;  %7073 = vmatpush.bf16.msra.mxu3 %v14499_v51 }
 0xec5   : > { %7036 = vmatpush.bf16.msrb.mxu0 %v14473_v63  ;;  %7049 = vmatpush.bf16.msrb.mxu1 %v14481_v0 }
 0xec8   : > { %7061 = vmatpush.bf16.msrb.mxu2 %v14490_v54  ;;  %7074 = vmatpush.bf16.msra.mxu3 %v14498_v43 }
 0xec9   : > { %7037 = vmatpush.bf16.msrb.mxu0 %v14472_v44  ;;  %7050 = vmatpush.bf16.msrb.mxu1 %v14480_v1 }
 0xeca   : > { %7014 = vmatmul.bf16.vlgmr.msra.gmra.mxu2 %v5323_v4  ;;  %7027 = vmatmul.bf16.vlgmr.msrb.gmra.mxu3 %v5324_v5 }
 0xecc   : > { %7062 = vmatpush.bf16.msrb.mxu2 %v14489_v41  ;;  %7075 = vmatpush.bf16.msra.mxu3 %v14497_v11 }
 0xecd   : > { %7038 = vmatpush.bf16.msrb.mxu0 %v14471_v13  ;;  %7051 = vmatpush.bf16.msrb.mxu1 %v14479_v15 }
 0xed0   : > { %7063 = vmatpush.bf16.msrb.mxu2 %v14488_v18  ;;  %7076 = vmatpush.bf16.msra.mxu3 %v14496_v31 }
 0xed1   : > { %7039 = vmatpush.bf16.msrb.mxu0 %v14470_v22  ;;  %7052 = vmatpush.bf16.msrb.mxu1 %v14478_v60 }
 0xed4   : > { %7064 = vmatpush.bf16.msrb.mxu2 %v14487_v61  ;;  %7077 = vmatpush.bf16.msra.mxu3 %v14495_v24  ;;  %v12969_v61 = vld [vmem:[#allocation10 + $0x228] sm:$0xf]  ;;  %v14652_v24 = vld [vmem:[#allocation10 + $0x230] sm:$0xf0] }
 0xed5   : > { %7040 = vmatmul.bf16.vlgmr.msrb.gmra.mxu0 %v5325_v27  ;;  %7053 = vmatmul.bf16.vlgmr.msrb.gmra.mxu1 %v5326_v53  ;;  %v12970_v26 = vor.u32 %v14652_v24, %v12969_v61  ;;  %v12971_v27 = vld [vmem:[#allocation10 + $0x234] sm:$0xf0]  ;;  %v12977_v53 = vld [vmem:[#allocation10 + $0x230] sm:$0xf]  ;;  %v12905_v61 = vld [vmem:[#allocation10 + $0x1a0] sm:$0xf] }
 0xed6   : > { %v14635_v24 = vld [vmem:[#allocation10 + $0x1a8] sm:$0xf0] }
 0xed7   : > { %7294 = vmatpush.bf16.msra.mxu0 %v12970_v26  ;;  %v12906_v26 = vor.u32 %v14635_v24, %v12905_v61 }
 0xed8   : > { %7065 = vmatpush.bf16.msrb.mxu2 %v14486_v49  ;;  %7078 = vmatpush.bf16.msra.mxu3 %v14494_v28  ;;  %v14653_v49 = vld [vmem:[#allocation10 + $0x238] sm:$0xf0]  ;;  %v12974_v28 = vor.u32 %v14651_v55, %v12971_v27  ;;  %v12885_v27 = vld [vmem:[#allocation10 + $0x180] sm:$0xf] }
 0xed9   : > { %v12978_v29 = vor.u32 %v14653_v49, %v12977_v53  ;;  %v14631_v53 = vld [vmem:[#allocation10 + $0x188] sm:$0xf0]  ;;  %v14630_v49 = vld [vmem:[#allocation10 + $0x184] sm:$0xf] }
 0xeda   : > { %7307 = vmatpush.bf16.msra.mxu1 %v12974_v28  ;;  %v12886_v28 = vor.u32 %v14631_v53, %v12885_v27 }
 0xedb   : > { %7066 = vmatmul.bf16.vlgmr.msrb.gmra.mxu2 %v5327_v34  ;;  %7079 = vmatmul.bf16.vlgmr.msra.gmra.mxu3 %v5328_v14 }
 0xedc   : > { %7320 = vmatpush.bf16.msra.mxu2 %v12978_v29  ;;  %v12887_v29 = vld [vmem:[#allocation10 + $0x18c] sm:$0xf0] }
 0xf0f   : > { %v6501_v56 = vpop.f32.mrf.mxu0  ;;  %v6514_v57 = vpop.f32.mrf.mxu1 }
 0xf10   : > { %v6515_v45 = vadd.f32 %v6514_v57, %v6501_v56  ;;  %v12957_v56 = vld [vmem:[#allocation10 + $0x210] sm:$0xf]  ;;  %v14649_v57 = vld [vmem:[#allocation10 + $0x218] sm:$0xf0] }
 0xf17   : > { %v6503_v35 = vpop.f32.mrf.mxu0  ;;  %v6516_v36 = vpop.f32.mrf.mxu1 }
 0xf18   : > { %v14648_v35 = vld [vmem:[#allocation10 + $0x214] sm:$0xf]  ;;  %v12958_v36 = vor.u32 %v14649_v57, %v12957_v56 }
 0xf1a   : > { %7295 = vmatpush.bf16.msra.mxu0 %v12958_v36 }
 0xf1e   : > { %v6527_v38 = vpop.f32.mrf.mxu2  ;;  %v6540_v8 = vpop.f32.mrf.mxu3 }
 0xf1f   : > { %v6528_v46 = vadd.f32 %v6527_v38, %v6515_v45  ;;  %v12959_v38 = vld [vmem:[#allocation10 + $0x21c] sm:$0xf0]  ;;  %v14646_v45 = vld [vmem:[#allocation10 + $0x200] sm:$0xf0] }
 0xf21   : > { %v6541_v12 = vadd.f32 %v6540_v8, %v6528_v46  ;;  %v12965_v8 = vld [vmem:[#allocation10 + $0x218] sm:$0xf]  ;;  %v14645_v46 = vld [vmem:[#allocation10 + $0x1fc] sm:$0xf] }
 0xf26   : > { %v6529_v39 = vpop.f32.mrf.mxu2  ;;  %v6542_v6 = vpop.f32.mrf.mxu3 }
 0xf27   : > { %v14650_v39 = vld [vmem:[#allocation10 + $0x220] sm:$0xf0]  ;;  %v12962_v6 = vor.u32 %v14648_v35, %v12959_v38 }
 0xf29   : > { %7308 = vmatpush.bf16.msra.mxu1 %v12962_v6 }
 0xf2f   : > { %v6553_v40 = vpop.f32.mrf.mxu0  ;;  %v6566_v42 = vpop.f32.mrf.mxu1 }
 0xf30   : > { %v6554_v37 = vadd.f32 %v6553_v40, %v6541_v12  ;;  %v12966_v40 = vor.u32 %v14650_v39, %v12965_v8  ;;  %v12953_v12 = vld [vmem:[#allocation10 + $0x200] sm:$0xf] }
 0xf32   : > { %v6567_v50 = vadd.f32 %v6566_v42, %v6554_v37  ;;  %7321 = vmatpush.bf16.msra.mxu2 %v12966_v40  ;;  %v12945_v42 = vld [vmem:[#allocation10 + $0x1f8] sm:$0xf]  ;;  %v14647_v37 = vld [vmem:[#allocation10 + $0x208] sm:$0xf0] }
 0xf37   : > { %v6555_v62 = vpop.f32.mrf.mxu0  ;;  %v6568_v30 = vpop.f32.mrf.mxu1 }
 0xf38   : > { %v12946_v62 = vor.u32 %v14646_v45, %v12945_v42  ;;  %v12947_v30 = vld [vmem:[#allocation10 + $0x204] sm:$0xf0] }
 0xf39   : > { %v15147_v45 = vld [vmem:[#allocation25 + $0x1] ss:$0 sm:$0xff] }
 0xf3a   : > { %7296 = vmatpush.bf16.msra.mxu0 %v12946_v62  ;;  %v15148_v62 = vld [vmem:[#allocation27 + $0x1] ss:$0 sm:$0xff] }
 0xf3d   : > { %v6579_v48 = vpop.f32.mrf.mxu2  ;;  %v6592_v58 = vpop.f32.mrf.mxu3 }
 0xf3e   : > { %v6580_v51 = vadd.f32 %v6579_v48, %v6567_v50  ;;  %v12950_v48 = vor.u32 %v14645_v46, %v12947_v30  ;;  %v14642_v50 = vld [vmem:[#allocation10 + $0x1e4] sm:$0xf] }
 0xf3f   : > { %v6989_v9 = vpop.f32.mrf.mxu0  ;;  %v7002_v10 = vpop.f32.mrf.mxu1 }
 0xf40   : > { %v6593_v63 = vadd.f32 %v6592_v58, %v6580_v51  ;;  %v12954_v58 = vor.u32 %v14647_v37, %v12953_v12  ;;  %7309 = vmatpush.bf16.msra.mxu1 %v12950_v48 }
 0xf42   : > { %v6990_v52 = vadd.f32 %v6989_v9, %v6593_v63  ;;  %7322 = vmatpush.bf16.msra.mxu2 %v12954_v58  ;;  %v12933_v9 = vld [vmem:[#allocation10 + $0x1e0] sm:$0xf]  ;;  %v14644_v63 = vld [vmem:[#allocation10 + $0x1f0] sm:$0xf0]  ;;  %v7158_v58 = vld [vmem:[#allocation12 + $0x6] sm:$0x7] }
 0xf44   : > { %v7003_v44 = vadd.f32 %v7002_v10, %v6990_v52  ;;  %v14643_v10 = vld [vmem:[#allocation10 + $0x1e8] sm:$0xf0]  ;;  %v12921_v52 = vld [vmem:[#allocation10 + $0x1c8] sm:$0xf] }
 0xf45   : > { %v6581_v59 = vpop.f32.mrf.mxu2  ;;  %v6594_v32 = vpop.f32.mrf.mxu3  ;;  %v12934_v51 = vor.u32 %v14643_v10, %v12933_v9  ;;  %v7160_v9 = vperm.slane %v7158_v58, 0  ;;  %v7161_v10 = vperm.slane %v7158_v58, 1 }
 0xf46   : > { %v12935_v59 = vld [vmem:[#allocation10 + $0x1ec] sm:$0xf0]  ;;  %v12941_v32 = vld [vmem:[#allocation10 + $0x1e8] sm:$0xf] }
 0xf47   : > { %v6991_v0 = vpop.f32.mrf.mxu0  ;;  %v7004_v21 = vpop.f32.mrf.mxu1  ;;  %7297 = vmatpush.bf16.msra.mxu0 %v12934_v51 }
 0xf48   : > { %v12938_v0 = vor.u32 %v14642_v50, %v12935_v59  ;;  %v12942_v21 = vor.u32 %v14644_v63, %v12941_v32 }
 0xf4a   : > { %7310 = vmatpush.bf16.msra.mxu1 %v12938_v0  ;;  %7323 = vmatpush.bf16.msra.mxu2 %v12942_v21  ;;  %v7162_v21 = vperm.slane %v7158_v58, 2 }
 0xf4d   : > { %v7015_v54 = vpop.f32.mrf.mxu2  ;;  %v7028_v43 = vpop.f32.mrf.mxu3 }
 0xf4e   : > { %v7016_v1 = vadd.f32 %v7015_v54, %v7003_v44  ;;  %v14640_v54 = vld [vmem:[#allocation10 + $0x1d0] sm:$0xf0] }
 0xf4f   : > { %v12922_v44 = vor.u32 %v14640_v54, %v12921_v52 }
 0xf50   : > { %v7029_v4 = vadd.f32 %v7028_v43, %v7016_v1  ;;  %v14639_v43 = vld [vmem:[#allocation10 + $0x1cc] sm:$0xf]  ;;  %v12923_v1 = vld [vmem:[#allocation10 + $0x1d4] sm:$0xf0] }
 0xf51   : > { %7298 = vmatpush.bf16.msra.mxu0 %v12922_v44 }
 0xf52   : > { %v7041_v2 = vpop.f32.mrf.mxu0  ;;  %v7054_v3 = vpop.f32.mrf.mxu1 }
 0xf53   : > { %v7042_v11 = vadd.f32 %v7041_v2, %v7029_v4  ;;  %v12929_v2 = vld [vmem:[#allocation10 + $0x1d0] sm:$0xf]  ;;  %v12926_v4 = vor.u32 %v14639_v43, %v12923_v1 }
 0xf55   : > { %v7017_v5 = vpop.f32.mrf.mxu2  ;;  %v7030_v41 = vpop.f32.mrf.mxu3  ;;  %v7055_v16 = vadd.f32 %v7054_v3, %v7042_v11  ;;  %v14641_v3 = vld [vmem:[#allocation10 + $0x1d8] sm:$0xf0]  ;;  %7311 = vmatpush.bf16.msra.mxu1 %v12926_v4 }
 0xf56   : > { %v12930_v5 = vor.u32 %v14641_v3, %v12929_v2  ;;  %v12909_v41 = vld [vmem:[#allocation10 + $0x1b0] sm:$0xf]  ;;  %v14637_v11 = vld [vmem:[#allocation10 + $0x1b8] sm:$0xf0] }
 0xf58   : > { %7324 = vmatpush.bf16.msra.mxu2 %v12930_v5 }
 0xf5a   : > { %v7043_v13 = vpop.f32.mrf.mxu0  ;;  %v7056_v15 = vpop.f32.mrf.mxu1 }
 0xf5b   : > { %v14636_v13 = vld [vmem:[#allocation10 + $0x1b4] sm:$0xf]  ;;  %v12910_v15 = vor.u32 %v14637_v11, %v12909_v41 }
 0xf5d   : > { %7299 = vmatpush.bf16.msra.mxu0 %v12910_v15 }
 0xf5e   : > { %v7067_v17 = vpop.f32.mrf.mxu2  ;;  %v7080_v18 = vpop.f32.mrf.mxu3 }
 0xf5f   : > { %v7068_v31 = vadd.f32 %v7067_v17, %v7055_v16  ;;  %v12911_v16 = vld [vmem:[#allocation10 + $0x1bc] sm:$0xf0]  ;;  %v12917_v17 = vld [vmem:[#allocation10 + $0x1b8] sm:$0xf] }
 0xf61   : > { %v7081_v20 = vadd.f32 %v7080_v18, %v7068_v31  ;;  %v14638_v18 = vld [vmem:[#allocation10 + $0x1c0] sm:$0xf0]  ;;  %v12914_v31 = vor.u32 %v14636_v13, %v12911_v16 }
 0xf63   : > { %v7089_v22 = vadd.f32 %v15146_v19, %v7081_v20  ;;  %v12918_v19 = vor.u32 %v14638_v18, %v12917_v17  ;;  %7312 = vmatpush.bf16.msra.mxu1 %v12914_v31  ;;  %v12897_v20 = vld [vmem:[#allocation10 + $0x198] sm:$0xf] }
 0xf65   : > { %v7090_v60 = vadd.f32 %v7089_v22, %v16538_v7  ;;  %7325 = vmatpush.bf16.msra.mxu2 %v12918_v19  ;;  %v14634_v22 = vld [vmem:[#allocation10 + $0x1a0] sm:$0xf0] }
 0xf66   : > { %v7069_v23 = vpop.f32.mrf.mxu2  ;;  %v7082_v25 = vpop.f32.mrf.mxu3 }
 0xf67   : > { %7095 = vadd.xlane.f32.xlu1 %v7090_v60  ;;  %v12898_v23 = vor.u32 %v14634_v22, %v12897_v20  ;;  %v12899_v25 = vld [vmem:[#allocation10 + $0x1a4] sm:$0xf0] }
 0xf69   : > { %7300 = vmatpush.bf16.msra.mxu0 %v12898_v23  ;;  %7326 = vmatpush.bf16.msra.mxu2 %v12906_v26 }
 0xf6d   : > { %7301 = vmatpush.bf16.msra.mxu0 %v12886_v28 }
 0xfda   : > { %v7096_v33 = vpop.xlane.xlu1 %7095 }
 0xfdb   : > { %v7097_v34 = vmul.f32 %v7096_v33, %v16337_v47  ;;  %v12893_v33 = vld [vmem:[#allocation10 + $0x188] sm:$0xf] }
 0xfdd   : > { %v16606_v14 = vsub.f32 %v7090_v60, %v7097_v34  ;;  %v14633_v60 = vld [vmem:[#allocation10 + $0x19c] sm:$0xf]  ;;  %v14632_v34 = vld [vmem:[#allocation10 + $0x190] sm:$0xf0] }
 0xfde   : > { %v12902_v55 = vor.u32 %v14633_v60, %v12899_v25  ;;  %v12894_v56 = vor.u32 %v14632_v34, %v12893_v33 }
 0xfdf   : > { %v7099_v7 = vmul.f32 %v16606_v14, %v16606_v14 }
 0xfe0   : > { %7313 = vmatpush.bf16.msra.mxu1 %v12902_v55  ;;  %7327 = vmatpush.bf16.msra.mxu2 %v12894_v56 }
 0xfe1   : > { %7100 = vadd.xlane.f32.xlu0 %v7099_v7  ;;  %v12890_v7 = vor.u32 %v14630_v49, %v12887_v29 }
 0xfe4   : > { %7314 = vmatpush.bf16.msra.mxu1 %v12890_v7 }
0x1054   : > { %v7101_v57 = vpop.xlane.xlu0 %7100 }
0x1055   : > { %v7102_v35 = vmul.f32 %v7101_v57, %v16337_v47 }
0x1057   : > { %v7103_v36 = vadd.f32 1e-05, %v7102_v35 }
0x1059   : > { %15228 = vrsqrt.f32 %v7103_v36  ;;  %vm7110_vm15 = vweird.f32 %v7103_v36 }
0x105f   : > { %v15229_v38 = vpop.eup %15228 }
0x1060   : > { %v7105_v8 = vmul.f32 %v15229_v38, %v7103_v36  ;;  %vm7111_vm14 = vweird.f32 %v15229_v38 }
0x1061   : > { %vm7112_vm10 = vmor %vm7110_vm15, %vm7111_vm14 }
0x1062   : > { %v7106_v39 = vmul.f32 %v15229_v38, %v7105_v8 }
0x1064   : > { %v7107_v6 = vmul.f32 0.5, %v7106_v39 }
0x1066   : > { %v7108_v40 = vsub.f32 1.5, %v7107_v6 }
0x1068   : > { %v7109_v42 = vmul.f32 %v15229_v38, %v7108_v40 }
0x106a   : > { %v7113_v46 = vsel %vm7112_vm10, %v15229_v38, %v7109_v42 }
0x106b   : > { %v7114_v30 = vmul.f32 %v7113_v46, %v16606_v14 }
0x106d   : > { %v7118_v12 = vmul.f32 %v15147_v45, %v7114_v30 }
0x106f   : > { %v16612_v37 = vadd.f32 %v15148_v62, %v7118_v12 }
0x1071   : > { %v7123_v48 = vpack.c.bf16 %v16612_v37, %v16612_v37 }
0x1073   : > { %7302 = vmatmul.bf16.vlgmr.msra.gmra.mxu0 %v7123_v48  ;;  %7315 = vmatmul.bf16.vlgmr.msra.gmra.mxu1 %v7123_v48 }
0x1074   : > { %7328 = vmatmul.bf16.vlgmr.msra.gmra.mxu2 %v7123_v48 }
0x10f0   : > { %v7303_v50 = vpop.f32.mrf.mxu0  ;;  %v7316_v51 = vpop.f32.mrf.mxu1 }
0x10f1   : > { %v7304_v59 = vadd.f32 %v7303_v50, %v7160_v9  ;;  %v7317_v32 = vadd.f32 %v7316_v51, %v7161_v10 }
0x10f3   : > { %v7333_v63 = vmul.f32 0.25, %v7304_v59  ;;  %v7335_v0 = vpack.c.bf16 %v7317_v32, %v7317_v32 }
0x10f5   : > { %v7334_v14 = vpack.c.bf16 %v7333_v63, %v7333_v63  ;;  %v7341_v52 = vsel %vm826_vm0, %v7335_v0, 0  ;;  %v7394_v54 = vunpack.c.l.b16 %v7335_v0 }
0x10f6   : > { %7350 = vmatpush.bf16.xpose.msrb.mxu3 %v7341_v52 }
0x10f7   : > { %v7389_v43 = vunpack.c.l.b16 %v7334_v14  ;;  %v7395_v44 = vpack.c.b16 %v7394_v54, %v7394_v54  ;;  %v7329_v1 = vpop.f32.mrf.mxu2 }
0x10f8   : > { %v7330_v2 = vadd.f32 %v7329_v1, %v7162_v21  ;;  %v7305_v3 = vpop.f32.mrf.mxu0  ;;  %v7318_v4 = vpop.f32.mrf.mxu1 }
0x10f9   : > { %v7390_v5 = vpack.c.b16 %v7389_v43, %v7389_v43  ;;  %7460 = vrot.lane.b32.xlu0 %v7395_v44, %s15872_s25  ;;  %7396 = vrot.lane.b32.xlu2 %v7395_v44, %s15871_s4 }
0x10fa   : > { %v7336_v41 = vpack.c.bf16 %v7330_v2, %v7330_v2 }
0x10fb   : > { %7391 = vrot.lane.b32.xlu1 %v7390_v5, %s15871_s4 }
0x10fc   : > { %v7371_v11 = vsel %vm1089_vm1, %v7336_v41, 0  ;;  %v7429_v15 = vunpack.c.l.b16 %v7336_v41 }
0x10fd   : > { %7380 = vmatpush.bf16.msrb.mxu0 %v7371_v11  ;;  %12979 = vmatmul.msk.bf16.vlgmr.msrb.gmra.mxu3 %vm826_vm0, %v7334_v14 }
0x10fe   : > { %v16633_v16 = vpack.c.b16 %v7429_v15, %v7429_v15 }
0x10ff   : > { %v7331_v13 = vpop.f32.mrf.mxu2 }
0x1101   : > { %7521 = vrot.lane.b32.xlu2 %v7395_v44, %s15873_s3  ;;  %7458 = vrot.lane.b32.xlu0 %v7390_v5, %s15872_s25 }
0x1103   : > { %7519 = vrot.lane.b32.xlu1 %v7390_v5, %s15873_s3 }
0x1109   : > { %7582 = vrot.lane.b32.xlu2 %v7395_v44, %s15874_s18  ;;  %7643 = vrot.lane.b32.xlu0 %v7395_v44, %s15875_s26 }
0x110b   : > { %7580 = vrot.lane.b32.xlu1 %v7390_v5, %s15874_s18 }
0x1111   : > { %7641 = vrot.lane.b32.xlu2 %v7390_v5, %s15875_s26  ;;  %7704 = vrot.lane.b32.xlu0 %v7395_v44, %s15876_s30 }
0x1113   : > { %7765 = vrot.lane.b32.xlu1 %v7395_v44, %s15877_s29 }
0x1119   : > { %7702 = vrot.lane.b32.xlu2 %v7390_v5, %s15876_s30  ;;  %7763 = vrot.lane.b32.xlu0 %v7390_v5, %s15877_s29 }
0x1121   : > { %7553 = vrot.lane.b32.xlu2 %v16633_v16, %s15873_s3  ;;  %7431 = vrot.lane.b32.xlu0 %v16633_v16, %s15871_s4 }
0x1129   : > { %7614 = vrot.lane.b32.xlu0 %v16633_v16, %s15874_s18 }
0x1153   : > { %v7397_v17 = vpop.permute.xlu2 %7396 }
0x1154   : > { %v7402_v18 = vsel %vm826_vm0, %v7397_v17, 0 }
0x1155   : > { %7411 = vmatpush.bf16.xpose.msrb.mxu1 %v7402_v18 }
0x115b   : > { %v7522_v31 = vpop.permute.xlu2 %7521 }
0x115c   : > { %v7527_v19 = vsel %vm826_vm0, %v7522_v31, 0 }
0x115d   : > { %7536 = vmatpush.bf16.xpose.msra.mxu1 %v7527_v19 }
0x1163   : > { %v7583_v20 = vpop.permute.xlu2 %7582 }
0x1164   : > { %v7588_v23 = vsel %vm826_vm0, %v7583_v20, 0 }
0x116b   : > { %v7461_v22 = vpop.permute.xlu0 %7460  ;;  %v7642_v53 = vpop.permute.xlu2 %7641 }
0x116c   : > { %v7466_v60 = vsel %vm826_vm0, %v7461_v22, 0 }
0x116d   : > { %7475 = vmatpush.bf16.xpose.msra.mxu3 %v7466_v60  ;;  %v7392_v25 = vpop.permute.xlu1 %7391 }
0x116e   : > { %12981 = vmatmul.msk.bf16.vlgmr.msrb.gmra.mxu1 %vm826_vm0, %v7392_v25 }
0x1173   : > { %v7459_v61 = vpop.permute.xlu0 %7458  ;;  %v7703_v56 = vpop.permute.xlu2 %7702 }
0x1174   : > { %12983 = vmatmul.msk.bf16.vlgmr.msra.gmra.mxu3 %vm826_vm0, %v7459_v61 }
0x1175   : > { %7597 = vmatpush.bf16.xpose.msrb.mxu3 %v7588_v23  ;;  %v7520_v24 = vpop.permute.xlu1 %7519 }
0x117b   : > { %v7644_v55 = vpop.permute.xlu0 %7643  ;;  %v7554_v36 = vpop.permute.xlu2 %7553 }
0x117c   : > { %v7649_v26 = vsel %vm826_vm0, %v7644_v55, 0  ;;  %v7559_v39 = vsel %vm1089_vm1, %v7554_v36, 0 }
0x117d   : > { %7658 = vmatpush.bf16.xpose.msrb.mxu1 %v7649_v26  ;;  %v7581_v27 = vpop.permute.xlu1 %7580 }
0x117e   : > { %12985 = vmatmul.msk.bf16.vlgmr.msra.gmra.mxu1 %vm826_vm0, %v7520_v24 }
0x1180   : > { %v7352_v49 = vpop.f32.mrf.mxu3 }
0x1181   : > { %v7356_v28 = vsel %vm1074_vm2, %v7352_v49, -inf }
0x1182   : > { %7357 = vmax.xlane.f32.xlu2 %v7356_v28 }
0x1183   : > { %v7705_v29 = vpop.permute.xlu0 %7704 }
0x1184   : > { %v7710_v33 = vsel %vm826_vm0, %v7705_v29, 0  ;;  %12987 = vmatmul.msk.bf16.vlgmr.msrb.gmra.mxu3 %vm826_vm0, %v7581_v27 }
0x1185   : > { %v7766_v34 = vpop.permute.xlu1 %7765  ;;  %7719 = vmatpush.bf16.xpose.msra.mxu3 %v7710_v33 }
0x1186   : > { %v7771_v7 = vsel %vm826_vm0, %v7766_v34, 0 }
0x1187   : > { %7780 = vmatpush.bf16.xpose.msra.mxu1 %v7771_v7 }
0x1188   : > { %v7354_v57 = vpop.f32.mrf.mxu3 }
0x118b   : > { %v7764_v35 = vpop.permute.xlu0 %7763 }
0x118e   : > { %12989 = vmatmul.msk.bf16.vlgmr.msrb.gmra.mxu1 %vm826_vm0, %v7642_v53 }
0x1193   : > { %v7432_v38 = vpop.permute.xlu0 %7431 }
0x1194   : > { %v7437_v8 = vsel %vm1089_vm1, %v7432_v38, 0  ;;  %12991 = vmatmul.msk.bf16.vlgmr.msra.gmra.mxu3 %vm826_vm0, %v7703_v56 }
0x1195   : > { %7446 = vmatpush.bf16.msrb.mxu2 %v7437_v8 }
0x1199   : > { %7568 = vmatpush.bf16.msra.mxu2 %v7559_v39 }
0x119a   : > { %7675 = vrot.lane.b32.xlu2 %v16633_v16, %s15875_s26 }
0x119b   : > { %v7615_v11 = vpop.permute.xlu0 %7614 }
0x119c   : > { %v7620_v56 = vsel %vm1089_vm1, %v7615_v11, 0 }
0x119e   : > { %12993 = vmatmul.msk.bf16.vlgmr.msra.gmra.mxu1 %vm826_vm0, %v7764_v35 }
0x11eb   : > { %v7413_v6 = vpop.f32.mrf.mxu1 }
0x11ec   : > { %v7417_v40 = vsel %vm1074_vm2, %v7413_v6, -inf }
0x11ed   : > { %7418 = vmax.xlane.f32.xlu1 %v7417_v40 }
0x11f3   : > { %v7415_v42 = vpop.f32.mrf.mxu1 }
0x11f5   : > { %v7358_v45 = vpop.xlane.xlu2 %7357 }
0x11f6   : > { %v7359_v46 = vsub.f32 %v7352_v49, %v7358_v45 }
0x11f7   : > { %v7477_v62 = vpop.f32.mrf.mxu3 }
0x11f8   : > { %v7360_v30 = vmul.f32 1.442695, %v7359_v46  ;;  %v7481_v12 = vsel %vm1074_vm2, %v7477_v62, -inf }
0x11f9   : > { %7482 = vmax.xlane.f32.xlu1 %v7481_v12 }
0x11fa   : > { %15230 = vpow2.f32 %v7360_v30 }
0x11fb   : > { %v7538_v48 = vpop.f32.mrf.mxu1 }
0x11fc   : > { %v7542_v58 = vsel %vm1074_vm2, %v7538_v48, -inf }
0x11fd   : > { %7543 = vmax.xlane.f32.xlu0 %v7542_v58  ;;  %v7676_v15 = vpop.permute.xlu2 %7675 }
0x11ff   : > { %v7479_v9 = vpop.f32.mrf.mxu3 }
0x1200   : > { %v15231_v10 = vpop.eup %15230 }
0x1201   : > { %v7366_v50 = vpack.c.bf16 %v15231_v10, %v15231_v10  ;;  %v7362_v3 = vsel %vm1074_vm2, %v15231_v10, 0.0 }
0x1203   : > { %12980 = vmatmul.msk.bf16.vlgmr.msrb.gmra.mxu0 %vm1074_vm2, %v7366_v50  ;;  %v7540_v51 = vpop.f32.mrf.mxu1 }
0x1207   : > { %v7599_v59 = vpop.f32.mrf.mxu3 }
0x1208   : > { %v7603_v32 = vsel %vm1074_vm2, %v7599_v59, -inf }
0x1209   : > { %7604 = vmax.xlane.f32.xlu0 %v7603_v32 }
0x120b   : > { %v7660_v63 = vpop.f32.mrf.mxu1 }
0x120c   : > { %v7664_v21 = vsel %vm1074_vm2, %v7660_v63, -inf }
0x120f   : > { %v7601_v0 = vpop.f32.mrf.mxu3 }
0x1211   : > { %7665 = vmax.xlane.f32.xlu0 %v7664_v21 }
0x1212   : > { %7492 = vrot.lane.b32.xlu1 %v16633_v16, %s15872_s25 }
0x1213   : > { %v7662_v14 = vpop.f32.mrf.mxu1 }
0x1217   : > { %v16668_v52 = vpop.f32.mrf.mxu3 }
0x1218   : > { %v7725_v54 = vsel %vm1074_vm2, %v16668_v52, -inf }
0x1219   : > { %7726 = vmax.xlane.f32.xlu2 %v7725_v54 }
0x121b   : > { %v16672_v43 = vpop.f32.mrf.mxu1 }
0x121c   : > { %v7786_v2 = vsel %vm1074_vm2, %v16672_v43, -inf }
0x121f   : > { %v7723_v44 = vpop.f32.mrf.mxu3 }
0x1223   : > { %v7784_v1 = vpop.f32.mrf.mxu1 }
0x1225   : > { %7797 = vrot.lane.b32.xlu0 %v16633_v16, %s15877_s29 }
0x122d   : > { %7736 = vrot.lane.b32.xlu0 %v16633_v16, %s15876_s30  ;;  %v7681_v16 = vsel %vm1089_vm1, %v7676_v15, 0 }
0x123c   : > { %7787 = vmax.xlane.f32.xlu1 %v7786_v2 }
0x1244   : > { %7363 = vadd.xlane.f32.xlu1 %v7362_v3 }
0x1260   : > { %v7419_v4 = vpop.xlane.xlu1 %7418 }
0x1261   : > { %v7420_v5 = vsub.f32 %v7413_v6, %v7419_v4 }
0x1263   : > { %v7421_v41 = vmul.f32 1.442695, %v7420_v5 }
0x1265   : > { %15232 = vpow2.f32 %v7421_v41 }
0x126b   : > { %v15233_v13 = vpop.eup %15232 }
0x126c   : > { %v7427_v17 = vpack.c.bf16 %v15233_v13, %v15233_v13  ;;  %v7483_v18 = vpop.xlane.xlu1 %7482  ;;  %v7423_v31 = vsel %vm1074_vm2, %v15233_v13, 0.0 }
0x126d   : > { %v7484_v19 = vsub.f32 %v7477_v62, %v7483_v18  ;;  %7424 = vadd.xlane.f32.xlu0 %v7423_v31 }
0x126e   : > { %12982 = vmatmul.msk.bf16.vlgmr.msrb.gmra.mxu2 %vm1074_vm2, %v7427_v17 }
0x126f   : > { %v7485_v20 = vmul.f32 1.442695, %v7484_v19  ;;  %7690 = vmatpush.bf16.msrb.mxu2 %v7681_v16 }
0x1270   : > { %v7544_v22 = vpop.xlane.xlu0 %7543 }
0x1271   : > { %15234 = vpow2.f32 %v7485_v20  ;;  %v7545_v60 = vsub.f32 %v7538_v48, %v7544_v22 }
0x1273   : > { %v7546_v23 = vmul.f32 1.442695, %v7545_v60 }
0x1275   : > { %15236 = vpow2.f32 %v7546_v23 }
0x1277   : > { %v15235_v25 = vpop.eup %15234 }
0x1278   : > { %v7487_v61 = vsel %vm1074_vm2, %v15235_v25, 0.0  ;;  %v7491_v35 = vpack.c.bf16 %v15235_v25, %v15235_v25 }
0x1279   : > { %7488 = vadd.xlane.f32.xlu1 %v7487_v61 }
0x127b   : > { %v15237_v24 = vpop.eup %15236 }
0x127c   : > { %v7552_v55 = vpack.c.bf16 %v15237_v24, %v15237_v24  ;;  %v7605_v26 = vpop.xlane.xlu0 %7604  ;;  %v7548_v27 = vsel %vm1074_vm2, %v15237_v24, 0.0 }
0x127d   : > { %v7606_v53 = vsub.f32 %v7599_v59, %v7605_v26  ;;  %7549 = vadd.xlane.f32.xlu2 %v7548_v27 }
0x127e   : > { %12986 = vmatmul.msk.bf16.vlgmr.msra.gmra.mxu2 %vm1074_vm2, %v7552_v55 }
0x127f   : > { %v7607_v49 = vmul.f32 1.442695, %v7606_v53 }
0x1280   : > { %v7382_v28 = vpop.f32.mrf.mxu0 }
0x1281   : > { %15238 = vpow2.f32 %v7607_v49 }
0x1284   : > { %v7493_v29 = vpop.permute.xlu1 %7492  ;;  %v7666_v33 = vpop.xlane.xlu0 %7665 }
0x1285   : > { %v7498_v34 = vsel %vm1089_vm1, %v7493_v29, 0  ;;  %v7667_v7 = vsub.f32 %v7660_v63, %v7666_v33 }
0x1286   : > { %7507 = vmatpush.bf16.msra.mxu0 %v7498_v34 }
0x1287   : > { %v15239_v57 = vpop.eup %15238  ;;  %v7668_v36 = vmul.f32 1.442695, %v7667_v7 }
0x1288   : > { %v7384_v38 = vpop.f32.mrf.mxu0  ;;  %v7609_v8 = vsel %vm1074_vm2, %v15239_v57, 0.0  ;;  %v7613_v30 = vpack.c.bf16 %v15239_v57, %v15239_v57 }
0x1289   : > { %15240 = vpow2.f32 %v7668_v36  ;;  %12984 = vmatmul.msk.bf16.vlgmr.msra.gmra.mxu0 %vm1074_vm2, %v7491_v35  ;;  %7610 = vadd.xlane.f32.xlu1 %v7609_v8  ;;  %v14661_v36 = vld [vmem:[#allocation13 + $0xb8] sm:$0xff]  ;;  %v14660_v38 = vld [vmem:[#allocation13 + $0xb0] sm:$0xff]  ;;  %v14659_v8 = vld [vmem:[#allocation13 + $0xa8] sm:$0xff] }
0x128a   : > { %7629 = vmatpush.bf16.msrb.mxu0 %v7620_v56  ;;  %7896 = vmatpush.bf16.msrb.mxu3 %v14661_v36  ;;  %v14695_v36 = vld [vmem:[#allocation16 + $0xa0c] sm:$0xf] }
0x128c   : > { %v7727_v39 = vpop.xlane.xlu2 %7726 }
0x128d   : > { %v7728_v6 = vsub.f32 %v16668_v52, %v7727_v39  ;;  %v14658_v39 = vld [vmem:[#allocation13 + $0xa0] sm:$0xff] }
0x128e   : > { %7897 = vmatpush.bf16.msrb.mxu3 %v14660_v38  ;;  %v13167_v38 = vld [vmem:[#allocation16 + $0xa48] sm:$0xf0] }
0x128f   : > { %v15241_v40 = vpop.eup %15240  ;;  %v7729_v42 = vmul.f32 1.442695, %v7728_v6  ;;  %v14657_v6 = vld [vmem:[#allocation13 + $0x98] sm:$0xff] }
0x1290   : > { %v7674_v45 = vpack.c.bf16 %v15241_v40, %v15241_v40  ;;  %v7670_v46 = vsel %vm1074_vm2, %v15241_v40, 0.0 }
0x1291   : > { %15242 = vpow2.f32 %v7729_v42  ;;  %7671 = vadd.xlane.f32.xlu2 %v7670_v46 }
0x1292   : > { %12990 = vmatmul.msk.bf16.vlgmr.msrb.gmra.mxu2 %vm1074_vm2, %v7674_v45  ;;  %7898 = vmatpush.bf16.msrb.mxu3 %v14659_v8  ;;  %v14656_v45 = vld [vmem:[#allocation13 + $0x90] sm:$0xff] }
0x1296   : > { %7899 = vmatpush.bf16.msrb.mxu3 %v14658_v39 }
0x1297   : > { %v15243_v62 = vpop.eup %15242  ;;  %v7798_v12 = vpop.permute.xlu0 %7797 }
0x1298   : > { %v7803_v48 = vsel %vm1089_vm1, %v7798_v12, 0  ;;  %v7731_v58 = vsel %vm1074_vm2, %v15243_v62, 0.0  ;;  %v7735_v50 = vpack.c.bf16 %v15243_v62, %v15243_v62  ;;  %v14655_v62 = vld [vmem:[#allocation13 + $0x88] sm:$0xff] }
0x1299   : > { %12988 = vmatmul.msk.bf16.vlgmr.msrb.gmra.mxu0 %vm1074_vm2, %v7613_v30  ;;  %7812 = vmatpush.bf16.msra.mxu2 %v7803_v48  ;;  %v14654_v30 = vld [vmem:[#allocation13 + $0x80] sm:$0xff] }
0x129a   : > { %7732 = vadd.xlane.f32.xlu1 %v7731_v58  ;;  %7900 = vmatpush.bf16.msrb.mxu3 %v14657_v6 }
0x129e   : > { %7901 = vmatpush.bf16.msrb.mxu3 %v14656_v45  ;;  %v14686_v45 = vld [vmem:[#allocation16 + $0x984] sm:$0xf] }
0x129f   : > { %v7737_v9 = vpop.permute.xlu0 %7736 }
0x12a0   : > { %v7742_v10 = vsel %vm1089_vm1, %v7737_v9, 0 }
0x12a1   : > { %7751 = vmatpush.bf16.msra.mxu0 %v7742_v10 }
0x12a2   : > { %7902 = vmatpush.bf16.msrb.mxu3 %v14655_v62  ;;  %v13127_v62 = vld [vmem:[#allocation16 + $0x9c0] sm:$0xf0] }
0x12a6   : > { %7903 = vmatpush.bf16.msrb.mxu3 %v14654_v30  ;;  %v13133_v30 = vld [vmem:[#allocation16 + $0x988] sm:$0xf] }
0x12a9   : > { %12992 = vmatmul.msk.bf16.vlgmr.msra.gmra.mxu0 %vm1074_vm2, %v7735_v50  ;;  %v15149_v50 = vld [vmem:[#allocation15 + $0x2] ss:$0 sm:$0xff] }
0x12af   : > { %v7788_v51 = vpop.xlane.xlu1 %7787 }
0x12b0   : > { %v7789_v59 = vsub.f32 %v16672_v43, %v7788_v51 }
0x12b2   : > { %v7790_v32 = vmul.f32 1.442695, %v7789_v59 }
0x12b4   : > { %15244 = vpow2.f32 %v7790_v32 }
0x12b7   : > { %v7364_v63 = vpop.xlane.xlu1 %7363 }
0x12b8   : > { %15246 = vrcp.f32 %v7364_v63 }
0x12ba   : > { %v15245_v0 = vpop.eup %15244 }
0x12bb   : > { %v7796_v21 = vpack.c.bf16 %v15245_v0, %v15245_v0  ;;  %v7792_v14 = vsel %vm1074_vm2, %v15245_v0, 0.0  ;;  %v13253_v0 = vld [vmem:[#allocation16 + $0xb80] sm:$0xf] }
0x12bc   : > { %7793 = vadd.xlane.f32.xlu2 %v7792_v14  ;;  %v14718_v14 = vld [vmem:[#allocation16 + $0xb84] sm:$0xf] }
0x12bd   : > { %12994 = vmatmul.msk.bf16.vlgmr.msra.gmra.mxu2 %vm1074_vm2, %v7796_v21  ;;  %v14722_v21 = vld [vmem:[#allocation16 + $0xbbc] sm:$0xf0] }
0x12be   : > { %v15247_v52 = vpop.eup %15246 }
0x12bf   : > { %v7386_v54 = vmul.f32 %v15247_v52, %v7382_v28  ;;  %v13254_v52 = vor.u32 %v14722_v21, %v13253_v0  ;;  %v13095_v21 = vld [vmem:[#allocation16 + $0x940] sm:$0xf0] }
0x12c1   : > { %7387 = vst.msk [vmem:[#allocation2] sm:$0xff] %vm826_vm0, %v7386_v54  ;;  %v13255_v54 = vld [vmem:[#allocation16 + $0xbc0] sm:$0xf0]  ;;  %8347 = vmatpush.bf16.msrb.mxu0 %v13254_v52  ;;  %v14683_v52 = vld [vmem:[#allocation16 + $0x944] sm:$0xf0] }
0x12e0   : > { %v7425_v44 = vpop.xlane.xlu0 %7424 }
0x12e1   : > { %15248 = vrcp.f32 %v7425_v44  ;;  %v13261_v44 = vld [vmem:[#allocation16 + $0xb88] sm:$0xf] }
0x12e7   : > { %v15249_v1 = vpop.eup %15248 }
0x12ec   : > { %v7489_v5 = vpop.xlane.xlu1 %7488 }
0x12f0   : > { %v7550_v3 = vpop.xlane.xlu2 %7549 }
0x12f1   : > { %v7448_v2 = vpop.f32.mrf.mxu2  ;;  %15250 = vrcp.f32 %v7550_v3  ;;  %v14719_v3 = vld [vmem:[#allocation16 + $0xb8c] sm:$0xf] }
0x12f2   : > { %v7452_v43 = vmul.f32 %v15249_v1, %v7448_v2  ;;  %15252 = vrcp.f32 %v7489_v5  ;;  %v14723_v1 = vld [vmem:[#allocation16 + $0xbc4] sm:$0xf0]  ;;  %v13258_v2 = vor.u32 %v14718_v14, %v13255_v54  ;;  %v13221_v5 = vld [vmem:[#allocation16 + $0xb00] sm:$0xf]  ;;  %v14679_v54 = vld [vmem:[#allocation16 + $0x90c] sm:$0xf] }
0x12f3   : > { %v13101_v14 = vld [vmem:[#allocation16 + $0x908] sm:$0xf] }
0x12f4   : > { %7454 = vrot.lane.b32.xlu2 %v7452_v43, %s15877_s29  ;;  %v13262_v43 = vor.u32 %v14723_v1, %v13261_v44  ;;  %8360 = vmatpush.bf16.msrb.mxu1 %v13258_v2  ;;  %v13103_v44 = vld [vmem:[#allocation16 + $0x948] sm:$0xf0] }
0x12f6   : > { %8373 = vmatpush.bf16.msrb.mxu2 %v13262_v43  ;;  %v13102_v43 = vor.u32 %v14683_v52, %v13101_v14  ;;  %v13207_v52 = vld [vmem:[#allocation16 + $0xad0] sm:$0xf0] }
0x12f7   : > { %v15251_v41 = vpop.eup %15250 }
0x12f8   : > { %v15253_v15 = vpop.eup %15252 }
0x12f9   : > { %v7450_v4 = vpop.f32.mrf.mxu2 }
0x12fa   : > { %v13263_v4 = vld [vmem:[#allocation16 + $0xbc8] sm:$0xf0] }
0x12fc   : > { %v7611_v16 = vpop.xlane.xlu1 %7610 }
0x1301   : > { %v7570_v11 = vpop.f32.mrf.mxu2 }
0x1302   : > { %v7574_v13 = vmul.f32 %v15251_v41, %v7570_v11  ;;  %v13266_v41 = vor.u32 %v14719_v3, %v13263_v4  ;;  %v14714_v11 = vld [vmem:[#allocation16 + $0xb3c] sm:$0xf0] }
0x1303   : > { %v13061_v3 = vld [vmem:[#allocation16 + $0x880] sm:$0xf] }
0x1304   : > { %7576 = vrot.lane.b32.xlu0 %v7574_v13, %s15875_s26  ;;  %v7672_v19 = vpop.xlane.xlu2 %7671  ;;  %v13223_v13 = vld [vmem:[#allocation16 + $0xb40] sm:$0xf0]  ;;  %8386 = vmatpush.bf16.msra.mxu3 %v13266_v41  ;;  %v14674_v4 = vld [vmem:[#allocation16 + $0x8bc] sm:$0xf0]  ;;  %v13106_v41 = vor.u32 %v14679_v54, %v13103_v44  ;;  %v13213_v54 = vld [vmem:[#allocation16 + $0xa98] sm:$0xf] }
0x1305   : > { %15254 = vrcp.f32 %v7672_v19  ;;  %v14711_v19 = vld [vmem:[#allocation16 + $0xb0c] sm:$0xf]  ;;  %v14709_v44 = vld [vmem:[#allocation16 + $0xad4] sm:$0xf0] }
0x1306   : > { %v7509_v17 = vpop.f32.mrf.mxu0  ;;  %15256 = vrcp.f32 %v7611_v16 }
0x1307   : > { %v7513_v18 = vmul.f32 %v15253_v15, %v7509_v17  ;;  %v13222_v15 = vor.u32 %v14714_v11, %v13221_v5  ;;  %v14670_v5 = vld [vmem:[#allocation16 + $0x884] sm:$0xf] }
0x1308   : > { %v13063_v11 = vld [vmem:[#allocation16 + $0x8c0] sm:$0xf0] }
0x1309   : > { %v7572_v31 = vpop.f32.mrf.mxu2  ;;  %7515 = vrot.lane.b32.xlu1 %v7513_v18, %s15876_s30  ;;  %v13229_v18 = vld [vmem:[#allocation16 + $0xb08] sm:$0xf]  ;;  %8348 = vmatpush.bf16.msrb.mxu0 %v13222_v15  ;;  %v14671_v15 = vld [vmem:[#allocation16 + $0x88c] sm:$0xf]  ;;  %s15766_s30 = scalar_lea.hbm %s16888_s1, 2 }
0x130a   : > { %v14715_v31 = vld [vmem:[#allocation16 + $0xb44] sm:$0xf0] }
0x130b   : > { %v15255_v22 = vpop.eup %15254  ;;  %v13230_v16 = vor.u32 %v14715_v31, %v13229_v18  ;;  %v13062_v18 = vor.u32 %v14674_v4, %v13061_v3  ;;  %v13066_v31 = vor.u32 %v14670_v5, %v13063_v11  ;;  %v13215_v3 = vld [vmem:[#allocation16 + $0xad8] sm:$0xf0]  ;;  %v13173_v5 = vld [vmem:[#allocation16 + $0xa10] sm:$0xf]  ;;  %v14696_v11 = vld [vmem:[#allocation16 + $0xa14] sm:$0xf] }
0x130c   : > { %v15257_v23 = vpop.eup %15256 }
0x130d   : > { %v7733_v55 = vpop.xlane.xlu1 %7732  ;;  %8374 = vmatpush.bf16.msrb.mxu2 %v13230_v16 }
0x130e   : > { %v7511_v20 = vpop.f32.mrf.mxu0  ;;  %15258 = vrcp.f32 %v7733_v55 }
0x130f   : > { %v13231_v20 = vld [vmem:[#allocation16 + $0xb48] sm:$0xf0] }
0x1314   : > { %v15259_v53 = vpop.eup %15258 }
0x1315   : > { %v7692_v60 = vpop.f32.mrf.mxu2 }
0x1316   : > { %v7696_v25 = vmul.f32 %v15255_v22, %v7692_v60  ;;  %v7631_v61 = vpop.f32.mrf.mxu0  ;;  %v13189_v22 = vld [vmem:[#allocation16 + $0xa80] sm:$0xf] }
0x1317   : > { %v7635_v24 = vmul.f32 %v15257_v23, %v7631_v61  ;;  %v14706_v60 = vld [vmem:[#allocation16 + $0xabc] sm:$0xf0]  ;;  %v13234_v23 = vor.u32 %v14711_v19, %v13231_v20  ;;  %v13191_v61 = vld [vmem:[#allocation16 + $0xac0] sm:$0xf0] }
0x1318   : > { %7698 = vrot.lane.b32.xlu0 %v7696_v25, %s15873_s3  ;;  %v14702_v25 = vld [vmem:[#allocation16 + $0xa84] sm:$0xf]  ;;  %v13190_v55 = vor.u32 %v14706_v60, %v13189_v22 }
0x1319   : > { %7637 = vrot.lane.b32.xlu2 %v7635_v24, %s15874_s18  ;;  %v13197_v24 = vld [vmem:[#allocation16 + $0xa88] sm:$0xf]  ;;  %8387 = vmatpush.bf16.msra.mxu3 %v13234_v23 }
0x131a   : > { %8349 = vmatpush.bf16.msrb.mxu0 %v13190_v55 }
0x131d   : > { %v7694_v26 = vpop.f32.mrf.mxu2 }
0x131e   : > { %v7633_v27 = vpop.f32.mrf.mxu0  ;;  %v14707_v26 = vld [vmem:[#allocation16 + $0xac4] sm:$0xf0] }
0x131f   : > { %v14703_v27 = vld [vmem:[#allocation16 + $0xa8c] sm:$0xf] }
0x1326   : > { %v7753_v49 = vpop.f32.mrf.mxu0 }
0x1327   : > { %v7757_v28 = vmul.f32 %v15259_v53, %v7753_v49  ;;  %v13199_v53 = vld [vmem:[#allocation16 + $0xac8] sm:$0xf0]  ;;  %v13194_v49 = vor.u32 %v14702_v25, %v13191_v61  ;;  %v13029_v25 = vld [vmem:[#allocation16 + $0x800] sm:$0xf] }
0x1328   : > { %v14666_v61 = vld [vmem:[#allocation16 + $0x83c] sm:$0xf0] }
0x1329   : > { %7759 = vrot.lane.b32.xlu1 %v7757_v28, %s15872_s25  ;;  %v13198_v28 = vor.u32 %v14707_v26, %v13197_v24  ;;  %v14662_v24 = vld [vmem:[#allocation16 + $0x804] sm:$0xf]  ;;  %v13030_v55 = vor.u32 %v14666_v61, %v13029_v25  ;;  %v14688_v25 = vld [vmem:[#allocation16 + $0x994] sm:$0xf]  ;;  %s10284_s25 = scalar_lea.sflag [#allocation6], %s16159_s5 }
0x132a   : > { %v13031_v26 = vld [vmem:[#allocation16 + $0x840] sm:$0xf0] }
0x132b   : > { %8375 = vmatpush.bf16.msrb.mxu2 %v13198_v28 }
0x132e   : > { %v7755_v29 = vpop.f32.mrf.mxu0 }
0x132f   : > { %v7794_v33 = vpop.xlane.xlu2 %7793  ;;  %v13157_v29 = vld [vmem:[#allocation16 + $0xa00] sm:$0xf] }
0x1330   : > { %15260 = vrcp.f32 %v7794_v33  ;;  %v14698_v33 = vld [vmem:[#allocation16 + $0xa3c] sm:$0xf0] }
0x1331   : > { %v13158_v8 = vor.u32 %v14698_v33, %v13157_v29  ;;  %v14663_v29 = vld [vmem:[#allocation16 + $0x80c] sm:$0xf] }
0x1332   : > { %v13039_v33 = vld [vmem:[#allocation16 + $0x848] sm:$0xf0] }
0x1333   : > { %8350 = vmatpush.bf16.msrb.mxu0 %v13158_v8  ;;  %v14725_v8 = vld [vmem:[#allocation16 + $0xbd4] sm:$0xf0] }
0x1336   : > { %v15261_v34 = vpop.eup %15260 }
0x1340   : > { %v7814_v7 = vpop.f32.mrf.mxu2 }
0x1341   : > { %v7818_v56 = vmul.f32 %v15261_v34, %v7814_v7  ;;  %v14694_v34 = vld [vmem:[#allocation16 + $0xa04] sm:$0xf]  ;;  %v13202_v7 = vor.u32 %v14703_v27, %v13199_v53  ;;  %v13037_v27 = vld [vmem:[#allocation16 + $0x808] sm:$0xf] }
0x1342   : > { %v14667_v53 = vld [vmem:[#allocation16 + $0x844] sm:$0xf0] }
0x1343   : > { %7820 = vrot.lane.b32.xlu2 %v7818_v56, %s15871_s4  ;;  %v13159_v56 = vld [vmem:[#allocation16 + $0xa40] sm:$0xf0]  ;;  %8388 = vmatpush.bf16.msra.mxu3 %v13202_v7  ;;  %v13038_v28 = vor.u32 %v14667_v53, %v13037_v27  ;;  %v14724_v7 = vld [vmem:[#allocation16 + $0xbcc] sm:$0xf0]  ;;  %s10296_s4 = sshll.u32 %s10292_s24, 4  ;;  %s10297_s4 = int_to_ptr.hbm [resolvable:$true] %s10296_s4 }
0x1344   : > { %v13162_v39 = vor.u32 %v14694_v34, %v13159_v56  ;;  %v13042_v34 = vor.u32 %v14663_v29, %v13039_v33  ;;  %v14720_v56 = vld [vmem:[#allocation16 + $0xb94] sm:$0xf]  ;;  %v13109_v33 = vld [vmem:[#allocation16 + $0x910] sm:$0xf]  ;;  %s15760_s3 = sshra.s32 %s10297_s4, 4  ;;  %s15761_s3 = int_to_ptr.hbm [resolvable:$true] %s15760_s3 }
0x1345   : > { %s15762_s18 = scalar_lea.hbm %s15761_s3, 1  ;;  %p15767_p12 = scmp.lt.s32.totalorder %s15761_s3, %s16888_s1 }
0x1346   : > { %p15763_p1 = scmp.ne.s32.totalorder %s15761_s3, %s15762_s18  ;;  %p15768_p8 = scmp.lt.s32.totalorder %s15766_s30, %s15762_s18 }
0x1348   : > { %v7816_v57 = vpop.f32.mrf.mxu2  ;;  %p15764_p3 = pnand %p15763_p1, %p16128_p13  ;;  %p15769_p7 = por %p15768_p8, %p15767_p12 }
0x1349   : > { %v13165_v57 = vld [vmem:[#allocation16 + $0xa08] sm:$0xf] }
0x134a   : > { %p15765_p5 = pneg %p15764_p3 }
0x134c   : > { %p15770_p9 = pnand %p15769_p7, %p15765_p5 }
0x134e   : > { %v7455_v35 = vpop.permute.xlu2 %7454 }
0x134f   : > { %7457 = vst.msk [vmem:[#allocation2] sm:$0xff] %vm1177_vm3, %v7455_v35  ;;  %v14699_v35 = vld [vmem:[#allocation16 + $0xa44] sm:$0xf0] }
0x1350   : > { %v13166_v6 = vor.u32 %v14699_v35, %v13165_v57  ;;  %v13271_v57 = vld [vmem:[#allocation16 + $0xbd0] sm:$0xf0] }
0x1352   : > { %8376 = vmatpush.bf16.msrb.mxu2 %v13166_v6 }
0x1373   : > { %v7638_v46 = vpop.permute.xlu2 %7637 }
0x1376   : > { %v7577_v42 = vpop.permute.xlu0 %7576 }
0x137b   : > { %v7516_v40 = vpop.permute.xlu1 %7515 }
0x137c   : > { %7518 = vst.msk [vmem:[#allocation2] sm:$0xff] %vm1239_vm4, %v7516_v40  ;;  %v13125_v40 = vld [vmem:[#allocation16 + $0x980] sm:$0xf] }
0x137d   : > { %7579 = vst.msk [vmem:[#allocation2] sm:$0xff] %vm1301_vm5, %v7577_v42  ;;  %v14690_v42 = vld [vmem:[#allocation16 + $0x9bc] sm:$0xf0] }
0x137e   : > { %7640 = vst.msk [vmem:[#allocation2] sm:$0xff] %vm1363_vm6, %v7638_v46  ;;  %v13170_v46 = vor.u32 %v14695_v36, %v13167_v38  ;;  %v13274_v36 = vor.u32 %v14720_v56, %v13271_v57  ;;  %v13277_v38 = vld [vmem:[#allocation16 + $0xb98] sm:$0xf]  ;;  %v13111_v56 = vld [vmem:[#allocation16 + $0x950] sm:$0xf0]  ;;  %vm10281_vm6 = vcmask 57344  }
0x137f   : > { %v13278_v6 = vor.u32 %v14725_v8, %v13277_v38  ;;  %v13117_v57 = vld [vmem:[#allocation16 + $0x918] sm:$0xf]  ;;  %v14681_v8 = vld [vmem:[#allocation16 + $0x91c] sm:$0xf] }
0x1380   : > { %8389 = vmatpush.bf16.msra.mxu3 %v13170_v46 }
0x138a   : > { %v7699_v12 = vpop.permute.xlu0 %7698 }
0x138b   : > { %7701 = vst.msk [vmem:[#allocation2] sm:$0xff] %vm1425_vm7, %v7699_v12  ;;  %v14691_v12 = vld [vmem:[#allocation16 + $0x9c4] sm:$0xf0] }
0x139b   : > { %v7760_v48 = vpop.permute.xlu1 %7759 }
0x139c   : > { %7762 = vst.msk [vmem:[#allocation2] sm:$0xff] %vm1487_vm8, %v7760_v48  ;;  %v14687_v48 = vld [vmem:[#allocation16 + $0x98c] sm:$0xf] }
0x139d   : > { %v7821_v58 = vpop.permute.xlu2 %7820 }
0x139e   : > { %7823 = vst.msk [vmem:[#allocation2] sm:$0xff] %vm1549_vm9, %v7821_v58  ;;  %v13135_v58 = vld [vmem:[#allocation16 + $0x9c8] sm:$0xf0] }
0x139f   : > { %v13138_v0 = vor.u32 %v14687_v48, %v13135_v58  ;;  %v13245_v48 = vld [vmem:[#allocation16 + $0xb18] sm:$0xf] }
0x13a1   : > { %8390 = vmatpush.bf16.msra.mxu3 %v13138_v0  ;;  %v14708_v0 = vld [vmem:[#allocation16 + $0xacc] sm:$0xf0] }
0x13a5   : > { %v7824_v9 = vld [vmem:[#allocation2] sm:$0xff]  ;;  %8391 = vmatpush.bf16.msra.mxu3 %v13106_v41 }
0x13a6   : > { %v7825_v10 = vpack.c.bf16 %v7824_v9, %v7824_v9  ;;  %v13126_v9 = vor.u32 %v14690_v42, %v13125_v40  ;;  %v13279_v40 = vld [vmem:[#allocation16 + $0xbd8] sm:$0xf0]  ;;  %v13237_v42 = vld [vmem:[#allocation16 + $0xb10] sm:$0xf] }
0x13a7   : > { %v14700_v41 = vld [vmem:[#allocation16 + $0xa4c] sm:$0xf0] }
0x13a8   : > { %7904 = vmatmul.bf16.vlgmr.msrb.gmra.mxu3 %v7825_v10  ;;  %v13130_v10 = vor.u32 %v14686_v45, %v13127_v62  ;;  %8351 = vmatpush.bf16.msrb.mxu0 %v13126_v9  ;;  %v14716_v45 = vld [vmem:[#allocation16 + $0xb4c] sm:$0xf0]  ;;  %v14717_v9 = vld [vmem:[#allocation16 + $0xb54] sm:$0xf0] }
0x13a9   : > { %v13238_v62 = vor.u32 %v14716_v45, %v13237_v42  ;;  %v14676_v42 = vld [vmem:[#allocation16 + $0x8cc] sm:$0xf0]  ;;  %v14672_v45 = vld [vmem:[#allocation16 + $0x894] sm:$0xf] }
0x142b   : > { %v7905_v51 = vpop.f32.mrf.mxu3 }
0x142c   : > { %v7906_v59 = vadd.f32 %v15149_v50, %v7905_v51  ;;  %v13134_v50 = vor.u32 %v14691_v12, %v13133_v30  ;;  %v13093_v51 = vld [vmem:[#allocation16 + $0x900] sm:$0xf]  ;;  %v14712_v30 = vld [vmem:[#allocation16 + $0xb14] sm:$0xf] }
0x142d   : > { %v13239_v12 = vld [vmem:[#allocation16 + $0xb50] sm:$0xf0] }
0x142e   : > { %v16718_v32 = vadd.f32 %v7906_v59, %v16612_v37  ;;  %v14710_v37 = vld [vmem:[#allocation16 + $0xb04] sm:$0xf]  ;;  %v14682_v59 = vld [vmem:[#allocation16 + $0x93c] sm:$0xf0]  ;;  %8377 = vmatpush.bf16.msrb.mxu2 %v13134_v50  ;;  %v13242_v58 = vor.u32 %v14712_v30, %v13239_v12  ;;  %v13247_v50 = vld [vmem:[#allocation16 + $0xb58] sm:$0xf0] }
0x142f   : > { %v13226_v17 = vor.u32 %v14710_v37, %v13223_v13  ;;  %v13094_v1 = vor.u32 %v14682_v59, %v13093_v51  ;;  %v13069_v37 = vld [vmem:[#allocation16 + $0x888] sm:$0xf]  ;;  %v13246_v51 = vor.u32 %v14717_v9, %v13245_v48  ;;  %v13085_v30 = vld [vmem:[#allocation16 + $0x898] sm:$0xf]  ;;  %v14673_v9 = vld [vmem:[#allocation16 + $0x89c] sm:$0xf] }
0x1430   : > { %7914 = vadd.xlane.f32.xlu0 %v16718_v32  ;;  %v14675_v13 = vld [vmem:[#allocation16 + $0x8c4] sm:$0xf0]  ;;  %v14677_v12 = vld [vmem:[#allocation16 + $0x8d4] sm:$0xf0] }
0x1431   : > { %8361 = vmatpush.bf16.msrb.mxu1 %v13226_v17  ;;  %v13071_v17 = vld [vmem:[#allocation16 + $0x8c8] sm:$0xf0]  ;;  %8352 = vmatpush.bf16.msrb.mxu0 %v13094_v1  ;;  %v13070_v19 = vor.u32 %v14675_v13, %v13069_v37  ;;  %v13174_v37 = vor.u32 %v14700_v41, %v13173_v5  ;;  %v13175_v13 = vld [vmem:[#allocation16 + $0xa50] sm:$0xf0] }
0x1432   : > { %8378 = vmatpush.bf16.msrb.mxu2 %v13102_v43  ;;  %v13074_v20 = vor.u32 %v14671_v15, %v13071_v17  ;;  %v14705_v43 = vld [vmem:[#allocation16 + $0xa9c] sm:$0xf]  ;;  %v13181_v15 = vld [vmem:[#allocation16 + $0xa18] sm:$0xf] }
0x1433   : > { %v7907_v63 = vpop.f32.mrf.mxu3  ;;  %v13218_v4 = vor.u32 %v14705_v43, %v13215_v3  ;;  %v14701_v17 = vld [vmem:[#allocation16 + $0xa54] sm:$0xf0] }
0x1434   : > { %v14678_v63 = vld [vmem:[#allocation16 + $0x904] sm:$0xf]  ;;  %8392 = vmatpush.bf16.msra.mxu3 %v13074_v20 }
0x1435   : > { %8362 = vmatpush.bf16.msrb.mxu1 %v13194_v49  ;;  %v13098_v2 = vor.u32 %v14678_v63, %v13095_v21  ;;  %8353 = vmatpush.bf16.msrb.mxu0 %v13062_v18  ;;  %v13034_v49 = vor.u32 %v14662_v24, %v13031_v26  ;;  %v13205_v63 = vld [vmem:[#allocation16 + $0xa90] sm:$0xf]  ;;  %v14704_v21 = vld [vmem:[#allocation16 + $0xa94] sm:$0xf]  ;;  %v13178_v18 = vor.u32 %v14696_v11, %v13175_v13  ;;  %v14693_v26 = vld [vmem:[#allocation16 + $0x9d4] sm:$0xf0] }
0x1436   : > { %8379 = vmatpush.bf16.msrb.mxu2 %v13070_v19  ;;  %v13206_v14 = vor.u32 %v14708_v0, %v13205_v63  ;;  %v13210_v1 = vor.u32 %v14704_v21, %v13207_v52  ;;  %v14697_v19 = vld [vmem:[#allocation16 + $0xa1c] sm:$0xf]  ;;  %v13143_v24 = vld [vmem:[#allocation16 + $0x9d0] sm:$0xf0]  ;;  %v14669_v52 = vld [vmem:[#allocation16 + $0x854] sm:$0xf0] }
0x1437   : > { %v13146_v27 = vor.u32 %v14688_v25, %v13143_v24  ;;  %v14664_v63 = vld [vmem:[#allocation16 + $0x814] sm:$0xf]  ;;  %v14846_v25 = vld [vmem:[#allocation16 + $0xba4] sm:$0xf]  ;;  %v13517_v24 = vld [vmem:[#allocation16 + $0xba8] sm:$0xf] }
0x1438   : > { %8393 = vmatpush.bf16.msra.mxu3 %v13042_v34  ;;  %v14680_v34 = vld [vmem:[#allocation16 + $0x914] sm:$0xf] }
0x1439   : > { %8363 = vmatpush.bf16.msrb.mxu1 %v13162_v39  ;;  %8354 = vmatpush.bf16.msrb.mxu0 %v13030_v55  ;;  %v14721_v39 = vld [vmem:[#allocation16 + $0xb9c] sm:$0xf]  ;;  %v13149_v55 = vld [vmem:[#allocation16 + $0x998] sm:$0xf]  ;;  %v13047_v21 = vld [vmem:[#allocation16 + $0x850] sm:$0xf0] }
0x143a   : > { %8380 = vmatpush.bf16.msrb.mxu2 %v13038_v28  ;;  %v13282_v46 = vor.u32 %v14721_v39, %v13279_v40  ;;  %v13150_v53 = vor.u32 %v14693_v26, %v13149_v55  ;;  %v13151_v28 = vld [vmem:[#allocation16 + $0x9d8] sm:$0xf0]  ;;  %v13077_v40 = vld [vmem:[#allocation16 + $0x890] sm:$0xf]  ;;  %v14851_v26 = vld [vmem:[#allocation16 + $0xbe4] sm:$0xf0] }
0x143b   : > { %v13119_v39 = vld [vmem:[#allocation16 + $0x958] sm:$0xf0] }
0x143c   : > { %8438 = vmatpush.bf16.msrb.mxu3 %v13282_v46  ;;  %v13078_v46 = vor.u32 %v14676_v42, %v13077_v40  ;;  %v14834_v40 = vld [vmem:[#allocation16 + $0xadc] sm:$0xf0] }
0x143d   : > { %8364 = vmatpush.bf16.msrb.mxu1 %v13130_v10  ;;  %v14713_v10 = vld [vmem:[#allocation16 + $0xb1c] sm:$0xf] }
0x143e   : > { %8425 = vmatpush.bf16.msra.mxu2 %v13278_v6  ;;  %v13250_v59 = vor.u32 %v14713_v10, %v13247_v50  ;;  %v13122_v6 = vor.u32 %v14681_v8, %v13119_v39  ;;  %v13087_v10 = vld [vmem:[#allocation16 + $0x8d8] sm:$0xf0] }
0x143f   : > { %v13090_v50 = vor.u32 %v14673_v9, %v13087_v10 }
0x1440   : > { %8439 = vmatpush.bf16.msrb.mxu3 %v13250_v59  ;;  %v14668_v59 = vld [vmem:[#allocation16 + $0x84c] sm:$0xf0] }
0x1441   : > { %8365 = vmatpush.bf16.msrb.mxu1 %v13098_v2  ;;  %v13214_v2 = vor.u32 %v14709_v44, %v13213_v54  ;;  %v13050_v54 = vor.u32 %v14664_v63, %v13047_v21  ;;  %v13415_v21 = vld [vmem:[#allocation16 + $0xa60] sm:$0xf0] }
0x1442   : > { %8426 = vmatpush.bf16.msra.mxu2 %v13246_v51  ;;  %v13045_v51 = vld [vmem:[#allocation16 + $0x810] sm:$0xf] }
0x1443   : > { %v13046_v0 = vor.u32 %v14668_v59, %v13045_v51  ;;  %v14826_v51 = vld [vmem:[#allocation16 + $0xa5c] sm:$0xf0] }
0x1444   : > { %8440 = vmatpush.bf16.msrb.mxu3 %v13218_v4 }
0x1445   : > { %8366 = vmatpush.bf16.msrb.mxu1 %v13066_v31  ;;  %v13182_v31 = vor.u32 %v14701_v17, %v13181_v15 }
0x1446   : > { %8427 = vmatpush.bf16.msra.mxu2 %v13214_v2  ;;  %v13055_v2 = vld [vmem:[#allocation16 + $0x858] sm:$0xf0] }
0x1449   : > { %8367 = vmatpush.bf16.msrb.mxu1 %v13034_v49  ;;  %v14689_v49 = vld [vmem:[#allocation16 + $0x99c] sm:$0xf] }
0x144a   : > { %8428 = vmatpush.bf16.msra.mxu2 %v13182_v31  ;;  %v13154_v29 = vor.u32 %v14689_v49, %v13151_v28 }
0x144d   : > { %8412 = vmatpush.bf16.msra.mxu1 %v13274_v36  ;;  %v13114_v36 = vor.u32 %v14680_v34, %v13111_v56  ;;  %v13479_v56 = vld [vmem:[#allocation16 + $0xb60] sm:$0xf0] }
0x144e   : > { %8429 = vmatpush.bf16.msra.mxu2 %v13150_v53  ;;  %v13519_v53 = vld [vmem:[#allocation16 + $0xbe8] sm:$0xf0] }
0x1451   : > { %8413 = vmatpush.bf16.msra.mxu1 %v13242_v58  ;;  %v13086_v58 = vor.u32 %v14677_v12, %v13085_v30  ;;  %v13453_v30 = vld [vmem:[#allocation16 + $0xaa8] sm:$0xf] }
0x1452   : > { %v14835_v12 = vld [vmem:[#allocation16 + $0xae4] sm:$0xf0] }
0x1453   : > { %v13454_v59 = vor.u32 %v14835_v12, %v13453_v30  ;;  %v14795_v30 = vld [vmem:[#allocation16 + $0x864] sm:$0xf0]  ;;  %v14791_v12 = vld [vmem:[#allocation16 + $0x82c] sm:$0xf] }
0x1455   : > { %8414 = vmatpush.bf16.msra.mxu1 %v13210_v1  ;;  %v14665_v1 = vld [vmem:[#allocation16 + $0x81c] sm:$0xf] }
0x1456   : > { %v13058_v43 = vor.u32 %v14665_v1, %v13055_v2 }
0x1459   : > { %8415 = vmatpush.bf16.msra.mxu1 %v13178_v18  ;;  %v15150_v18 = vld [vmem:[#allocation22 + $0x2] ss:$0 sm:$0xff] }
0x145d   : > { %8416 = vmatpush.bf16.msra.mxu1 %v13146_v27  ;;  %v14847_v27 = vld [vmem:[#allocation16 + $0xbac] sm:$0xf] }
0x145e   : > { %v13522_v34 = vor.u32 %v14847_v27, %v13519_v53  ;;  %v13359_v27 = vld [vmem:[#allocation16 + $0x968] sm:$0xf0] }
0x1461   : > { %8417 = vmatpush.bf16.msra.mxu1 %v13114_v36  ;;  %v14839_v36 = vld [vmem:[#allocation16 + $0xb2c] sm:$0xf] }
0x14a3   : > { %v7915_v16 = vpop.xlane.xlu0 %7914 }
0x14a4   : > { %v7916_v22 = vmul.f32 %v7915_v16, %v16337_v47  ;;  %v13183_v16 = vld [vmem:[#allocation16 + $0xa58] sm:$0xf0] }
0x14a5   : > { %v13186_v20 = vor.u32 %v14697_v19, %v13183_v16  ;;  %v15151_v19 = vld [vmem:[#allocation24 + $0x2] ss:$0 sm:$0xff] }
0x14a6   : > { %v16723_v60 = vsub.f32 %v16718_v32, %v7916_v22  ;;  %v13269_v32 = vld [vmem:[#allocation16 + $0xb90] sm:$0xf] }
0x14a7   : > { %v13270_v35 = vor.u32 %v14724_v7, %v13269_v32  ;;  %v13141_v22 = vld [vmem:[#allocation16 + $0x990] sm:$0xf]  ;;  %8441 = vmatpush.bf16.msrb.mxu3 %v13186_v20 }
0x14a8   : > { %v7918_v23 = vmul.f32 %v16723_v60, %v16723_v60  ;;  %v14684_v32 = vld [vmem:[#allocation16 + $0x94c] sm:$0xf0] }
0x14a9   : > { %8399 = vmatpush.bf16.msra.mxu0 %v13270_v35  ;;  %v13110_v7 = vor.u32 %v14684_v32, %v13109_v33  ;;  %v14685_v35 = vld [vmem:[#allocation16 + $0x954] sm:$0xf0]  ;;  %v13477_v33 = vld [vmem:[#allocation16 + $0xb20] sm:$0xf] }
0x14aa   : > { %7919 = vadd.xlane.f32.xlu1 %v7918_v23  ;;  %v14692_v23 = vld [vmem:[#allocation16 + $0x9cc] sm:$0xf0]  ;;  %v13118_v38 = vor.u32 %v14685_v35, %v13117_v57  ;;  %v14842_v32 = vld [vmem:[#allocation16 + $0xb5c] sm:$0xf0]  ;;  %v13485_v57 = vld [vmem:[#allocation16 + $0xb28] sm:$0xf] }
0x14ab   : > { %v13142_v61 = vor.u32 %v14692_v23, %v13141_v22  ;;  %8442 = vmatpush.bf16.msrb.mxu3 %v13154_v29  ;;  %v13509_v22 = vld [vmem:[#allocation16 + $0xba0] sm:$0xf]  ;;  %v14843_v35 = vld [vmem:[#allocation16 + $0xb64] sm:$0xf0]  ;;  %v13478_v8 = vor.u32 %v14842_v32, %v13477_v33 }
0x14ac   : > { %8430 = vmatpush.bf16.msra.mxu2 %v13118_v38  ;;  %v14850_v23 = vld [vmem:[#allocation16 + $0xbdc] sm:$0xf0]  ;;  %v13487_v38 = vld [vmem:[#allocation16 + $0xb68] sm:$0xf0]  ;;  %v13486_v42 = vor.u32 %v14843_v35, %v13485_v57  ;;  %v14803_v57 = vld [vmem:[#allocation16 + $0x8e4] sm:$0xf0] }
0x14ad   : > { %8400 = vmatpush.bf16.msra.mxu0 %v13238_v62  ;;  %v13079_v62 = vld [vmem:[#allocation16 + $0x8d0] sm:$0xf0]  ;;  %v13510_v28 = vor.u32 %v14850_v23, %v13509_v22  ;;  %v14806_v23 = vld [vmem:[#allocation16 + $0x924] sm:$0xf]  ;;  %v14802_v33 = vld [vmem:[#allocation16 + $0x8dc] sm:$0xf0] }
0x14ae   : > { %v13082_v48 = vor.u32 %v14672_v45, %v13079_v62  ;;  %v13490_v45 = vor.u32 %v14839_v36, %v13487_v38  ;;  %v13447_v62 = vld [vmem:[#allocation16 + $0xae0] sm:$0xf0]  ;;  %v14799_v35 = vld [vmem:[#allocation16 + $0x8ac] sm:$0xf]  ;;  %v13285_v38 = vld [vmem:[#allocation16 + $0x820] sm:$0xf] }
0x14af   : > { %8443 = vmatpush.bf16.msrb.mxu3 %v13122_v6  ;;  %v13445_v6 = vld [vmem:[#allocation16 + $0xaa0] sm:$0xf]  ;;  %v13327_v36 = vld [vmem:[#allocation16 + $0x8e8] sm:$0xf0] }
0x14b0   : > { %8418 = vmatpush.bf16.msra.mxu1 %v13082_v48  ;;  %8431 = vmatpush.bf16.msra.mxu2 %v13086_v58  ;;  %v14831_v48 = vld [vmem:[#allocation16 + $0xaac] sm:$0xf]  ;;  %v13446_v9 = vor.u32 %v14834_v40, %v13445_v6  ;;  %v14794_v6 = vld [vmem:[#allocation16 + $0x85c] sm:$0xf0]  ;;  %v14790_v40 = vld [vmem:[#allocation16 + $0x824] sm:$0xf] }
0x14b1   : > { %8401 = vmatpush.bf16.msra.mxu0 %v13206_v14  ;;  %v13053_v14 = vld [vmem:[#allocation16 + $0x818] sm:$0xf]  ;;  %v13455_v58 = vld [vmem:[#allocation16 + $0xae8] sm:$0xf0] }
0x14b2   : > { %v13054_v44 = vor.u32 %v14669_v52, %v13053_v14  ;;  %v13458_v63 = vor.u32 %v14831_v48, %v13455_v58  ;;  %v13421_v14 = vld [vmem:[#allocation16 + $0xa28] sm:$0xf]  ;;  %v13295_v48 = vld [vmem:[#allocation16 + $0x868] sm:$0xf0]  ;;  %v13525_v58 = vld [vmem:[#allocation16 + $0xbb0] sm:$0xf] }
0x14b3   : > { %8444 = vmatpush.bf16.msrb.mxu3 %v13090_v50  ;;  %v13413_v50 = vld [vmem:[#allocation16 + $0xa20] sm:$0xf]  ;;  %v14827_v52 = vld [vmem:[#allocation16 + $0xa64] sm:$0xf0] }
0x14b4   : > { %8419 = vmatpush.bf16.msra.mxu1 %v13050_v54  ;;  %8432 = vmatpush.bf16.msra.mxu2 %v13054_v44  ;;  %v14823_v54 = vld [vmem:[#allocation16 + $0xa2c] sm:$0xf]  ;;  %v13414_v1 = vor.u32 %v14826_v51, %v13413_v50  ;;  %v13527_v50 = vld [vmem:[#allocation16 + $0xbf0] sm:$0xf0]  ;;  %v13533_v51 = vld [vmem:[#allocation16 + $0xbb8] sm:$0xf] }
0x14b5   : > { %8402 = vmatpush.bf16.msra.mxu0 %v13174_v37  ;;  %v13423_v44 = vld [vmem:[#allocation16 + $0xa68] sm:$0xf0] }
0x14b7   : > { %8445 = vmatpush.bf16.msrb.mxu3 %v13058_v43  ;;  %v13381_v43 = vld [vmem:[#allocation16 + $0x9a0] sm:$0xf] }
0x14b9   : > { %8403 = vmatpush.bf16.msra.mxu0 %v13142_v61  ;;  %v13511_v61 = vld [vmem:[#allocation16 + $0xbe0] sm:$0xf0] }
0x14ba   : > { %v13514_v29 = vor.u32 %v14846_v25, %v13511_v61  ;;  %v13351_v25 = vld [vmem:[#allocation16 + $0x960] sm:$0xf0]  ;;  %v13357_v61 = vld [vmem:[#allocation16 + $0x928] sm:$0xf] }
0x14bd   : > { %8404 = vmatpush.bf16.msra.mxu0 %v13110_v7  ;;  %v14838_v7 = vld [vmem:[#allocation16 + $0xb24] sm:$0xf] }
0x14be   : > { %v13482_v39 = vor.u32 %v14838_v7, %v13479_v56  ;;  %v13319_v7 = vld [vmem:[#allocation16 + $0x8e0] sm:$0xf0]  ;;  %v13325_v56 = vld [vmem:[#allocation16 + $0x8a8] sm:$0xf] }
0x14c1   : > { %8405 = vmatpush.bf16.msra.mxu0 %v13078_v46  ;;  %v14830_v46 = vld [vmem:[#allocation16 + $0xaa4] sm:$0xf] }
0x14c2   : > { %v13450_v10 = vor.u32 %v14830_v46, %v13447_v62  ;;  %v13330_v46 = vor.u32 %v14799_v35, %v13327_v36  ;;  %v13293_v62 = vld [vmem:[#allocation16 + $0x828] sm:$0xf]  ;;  %v13439_v35 = vld [vmem:[#allocation16 + $0xa78] sm:$0xf0] }
0x14c5   : > { %8406 = vmatpush.bf16.msra.mxu0 %v13046_v0  ;;  %v14822_v0 = vld [vmem:[#allocation16 + $0xa24] sm:$0xf] }
0x14c6   : > { %v13418_v2 = vor.u32 %v14822_v0, %v13415_v21  ;;  %v14853_v0 = vld [vmem:[#allocation16 + $0xbf4] sm:$0xf0]  ;;  %v14849_v21 = vld [vmem:[#allocation16 + $0xbbc] sm:$0xf] }
0x151d   : > { %v7920_v3 = vpop.xlane.xlu1 %7919 }
0x151e   : > { %v7921_v4 = vmul.f32 %v7920_v3, %v16337_v47  ;;  %v14818_v3 = vld [vmem:[#allocation16 + $0x9dc] sm:$0xf0] }
0x1520   : > { %v7922_v5 = vadd.f32 1e-05, %v7921_v4  ;;  %v13422_v4 = vor.u32 %v14827_v52, %v13421_v14  ;;  %v13535_v14 = vld [vmem:[#allocation16 + $0xbf8] sm:$0xf0]  ;;  %v13294_v52 = vor.u32 %v14795_v30, %v13293_v62  ;;  %v14821_v62 = vld [vmem:[#allocation16 + $0x9f4] sm:$0xf0] }
0x1521   : > { %v14817_v30 = vld [vmem:[#allocation16 + $0x9bc] sm:$0xf] }
0x1522   : > { %15262 = vrsqrt.f32 %v7922_v5  ;;  %vm7929_vm1 = vweird.f32 %v7922_v5 }
0x1528   : > { %v15263_v41 = vpop.eup %15262 }
0x1529   : > { %v7924_v11 = vmul.f32 %v15263_v41, %v7922_v5  ;;  %vm7930_vm0 = vweird.f32 %v15263_v41  ;;  %v13426_v5 = vor.u32 %v14823_v54, %v13423_v44  ;;  %v13298_v54 = vor.u32 %v14791_v12, %v13295_v48  ;;  %v13407_v12 = vld [vmem:[#allocation16 + $0x9f8] sm:$0xf0] }
0x152a   : > { %vm7931_vm2 = vmor %vm7929_vm1, %vm7930_vm0 }
0x152b   : > { %v7925_v37 = vmul.f32 %v15263_v41, %v7924_v11  ;;  %v13383_v11 = vld [vmem:[#allocation16 + $0x9e0] sm:$0xf0] }
0x152d   : > { %v7926_v13 = vmul.f32 0.5, %v7925_v37  ;;  %v13389_v37 = vld [vmem:[#allocation16 + $0x9a8] sm:$0xf] }
0x152f   : > { %v7927_v15 = vsub.f32 1.5, %v7926_v13  ;;  %v14819_v13 = vld [vmem:[#allocation16 + $0x9e4] sm:$0xf0] }
0x1531   : > { %v7928_v17 = vmul.f32 %v15263_v41, %v7927_v15  ;;  %v14815_v15 = vld [vmem:[#allocation16 + $0x9ac] sm:$0xf] }
0x1533   : > { %v7932_v31 = vsel %vm7931_vm2, %v15263_v41, %v7928_v17  ;;  %v14814_v41 = vld [vmem:[#allocation16 + $0x9a4] sm:$0xf]  ;;  %v13391_v17 = vld [vmem:[#allocation16 + $0x9e8] sm:$0xf0] }
0x1534   : > { %v7933_v16 = vmul.f32 %v7932_v31, %v16723_v60  ;;  %v13518_v60 = vor.u32 %v14851_v26, %v13517_v24  ;;  %v13386_v31 = vor.u32 %v14814_v41, %v13383_v11  ;;  %v13394_v22 = vor.u32 %v14815_v15, %v13391_v17  ;;  %v14811_v24 = vld [vmem:[#allocation16 + $0x964] sm:$0xf0]  ;;  %v14807_v26 = vld [vmem:[#allocation16 + $0x92c] sm:$0xf]  ;;  %v13495_v41 = vld [vmem:[#allocation16 + $0xb70] sm:$0xf0] }
0x1535   : > { %v13358_v32 = vor.u32 %v14811_v24, %v13357_v61  ;;  %v13501_v11 = vld [vmem:[#allocation16 + $0xb38] sm:$0xf]  ;;  %v13503_v15 = vld [vmem:[#allocation16 + $0xb78] sm:$0xf0] }
0x1536   : > { %v7937_v20 = vmul.f32 %v15150_v18, %v7933_v16  ;;  %v13382_v18 = vor.u32 %v14818_v3, %v13381_v43  ;;  %v14810_v16 = vld [vmem:[#allocation16 + $0x95c] sm:$0xf0]  ;;  %v14844_v43 = vld [vmem:[#allocation16 + $0xb6c] sm:$0xf0]  ;;  %v13534_v3 = vor.u32 %v14853_v0, %v13533_v51  ;;  %v14837_v61 = vld [vmem:[#allocation16 + $0xaf4] sm:$0xf0]  ;;  %v13410_v51 = vor.u32 %v14817_v30, %v13407_v12 }
0x1537   : > { %v14833_v24 = vld [vmem:[#allocation16 + $0xabc] sm:$0xf]  ;;  %v13373_v0 = vld [vmem:[#allocation16 + $0x938] sm:$0xf]  ;;  %v14873_v30 = vld [vmem:[#allocation19 + $0xa98] sm:$0xff] }
0x1538   : > { %v16729_v55 = vadd.f32 %v15151_v19, %v7937_v20  ;;  %v13349_v19 = vld [vmem:[#allocation16 + $0x920] sm:$0xf]  ;;  %v13390_v20 = vor.u32 %v14819_v13, %v13389_v37  ;;  %v14845_v37 = vld [vmem:[#allocation16 + $0xb74] sm:$0xf0]  ;;  %v14841_v13 = vld [vmem:[#allocation16 + $0xb3c] sm:$0xf] }
0x1539   : > { %v13350_v53 = vor.u32 %v14810_v16, %v13349_v19  ;;  %v14836_v19 = vld [vmem:[#allocation16 + $0xaec] sm:$0xf0]  ;;  %v13502_v16 = vor.u32 %v14845_v37, %v13501_v11  ;;  %v14805_v11 = vld [vmem:[#allocation16 + $0x8f4] sm:$0xf0]  ;;  %v14801_v37 = vld [vmem:[#allocation16 + $0x8bc] sm:$0xf] }
0x153a   : > { %v16733_v49 = vpack.c.bf16 %v16729_v55, %v16729_v55  ;;  %v14881_v12 = vld [vmem:[#allocation19 + $0xad8] sm:$0xff] }
0x153c   : > { %8355 = vmatmul.bf16.vlgmr.msrb.gmra.mxu0 %v16733_v49  ;;  %8368 = vmatmul.bf16.vlgmr.msrb.gmra.mxu1 %v16733_v49 }
0x153d   : > { %8381 = vmatmul.bf16.vlgmr.msrb.gmra.mxu2 %v16733_v49  ;;  %8394 = vmatmul.bf16.vlgmr.msra.gmra.mxu3 %v16733_v49 }
0x153e   : > { %8998 = vmatpush.bf16.msrb.mxu0 %v13510_v28  ;;  %9011 = vmatpush.bf16.msrb.mxu1 %v13514_v29  ;;  %v13354_v28 = vor.u32 %v14806_v23, %v13351_v25  ;;  %v13317_v29 = vld [vmem:[#allocation16 + $0x8a0] sm:$0xf]  ;;  %v13463_v23 = vld [vmem:[#allocation16 + $0xaf0] sm:$0xf0]  ;;  %v13469_v25 = vld [vmem:[#allocation16 + $0xab8] sm:$0xf] }
0x153f   : > { %9024 = vmatpush.bf16.msrb.mxu2 %v13518_v60  ;;  %9037 = vmatpush.bf16.msra.mxu3 %v13522_v34  ;;  %v13362_v60 = vor.u32 %v14807_v26, %v13359_v27  ;;  %v14798_v34 = vld [vmem:[#allocation16 + $0x8a4] sm:$0xf]  ;;  %v13471_v26 = vld [vmem:[#allocation16 + $0xaf8] sm:$0xf0] }
0x1542   : > { %8999 = vmatpush.bf16.msrb.mxu0 %v13478_v8  ;;  %9012 = vmatpush.bf16.msrb.mxu1 %v13482_v39  ;;  %v13318_v8 = vor.u32 %v14802_v33, %v13317_v29  ;;  %v13322_v39 = vor.u32 %v14798_v34, %v13319_v7  ;;  %v14828_v29 = vld [vmem:[#allocation16 + $0xa6c] sm:$0xf0]  ;;  %v13470_v33 = vor.u32 %v14837_v61, %v13469_v25  ;;  %v13431_v34 = vld [vmem:[#allocation16 + $0xa70] sm:$0xf0]  ;;  %v13437_v7 = vld [vmem:[#allocation16 + $0xa38] sm:$0xf] }
0x1543   : > { %9025 = vmatpush.bf16.msrb.mxu2 %v13486_v42  ;;  %9038 = vmatpush.bf16.msra.mxu3 %v13490_v45  ;;  %v13287_v42 = vld [vmem:[#allocation16 + $0x860] sm:$0xf0]  ;;  %v13326_v45 = vor.u32 %v14803_v57, %v13325_v56  ;;  %v14829_v56 = vld [vmem:[#allocation16 + $0xa74] sm:$0xf0]  ;;  %v14825_v57 = vld [vmem:[#allocation16 + $0xa3c] sm:$0xf] }
0x1544   : > { %v14797_v25 = vld [vmem:[#allocation16 + $0x874] sm:$0xf0]  ;;  %v14793_v61 = vld [vmem:[#allocation16 + $0x83c] sm:$0xf] }
0x1546   : > { %9000 = vmatpush.bf16.msrb.mxu0 %v13446_v9  ;;  %9013 = vmatpush.bf16.msrb.mxu1 %v13450_v10  ;;  %v14852_v9 = vld [vmem:[#allocation16 + $0xbec] sm:$0xf0]  ;;  %v14848_v10 = vld [vmem:[#allocation16 + $0xbb4] sm:$0xf] }
0x1547   : > { %9026 = vmatpush.bf16.msrb.mxu2 %v13454_v59  ;;  %9039 = vmatpush.bf16.msra.mxu3 %v13458_v63  ;;  %v13286_v59 = vor.u32 %v14794_v6, %v13285_v38  ;;  %v13290_v63 = vor.u32 %v14790_v40, %v13287_v42  ;;  %v13526_v44 = vor.u32 %v14852_v9, %v13525_v58  ;;  %v14816_v42 = vld [vmem:[#allocation16 + $0x9b4] sm:$0xf]  ;;  %v13365_v9 = vld [vmem:[#allocation16 + $0x930] sm:$0xf] }
0x1548   : > { %v13438_v6 = vor.u32 %v14829_v56, %v13437_v7  ;;  %v13442_v40 = vor.u32 %v14825_v57, %v13439_v35  ;;  %v14868_v7 = vld [vmem:[#allocation19 + $0xa70] sm:$0xff]  ;;  %v14859_v35 = vld [vmem:[#allocation19 + $0xa28] sm:$0xff] }
0x1549   : > { %v14876_v56 = vld [vmem:[#allocation19 + $0xab0] sm:$0xff] }
0x154a   : > { %9001 = vmatpush.bf16.msrb.mxu0 %v13414_v1  ;;  %9014 = vmatpush.bf16.msrb.mxu1 %v13418_v2  ;;  %v13530_v1 = vor.u32 %v14848_v10, %v13527_v50  ;;  %v13493_v2 = vld [vmem:[#allocation16 + $0xb30] sm:$0xf]  ;;  %v14884_v57 = vld [vmem:[#allocation19 + $0xaf0] sm:$0xff] }
0x154b   : > { %9027 = vmatpush.bf16.msrb.mxu2 %v13422_v4  ;;  %9040 = vmatpush.bf16.msra.mxu3 %v13426_v5  ;;  %v13538_v4 = vor.u32 %v14849_v21, %v13535_v14  ;;  %v14840_v5 = vld [vmem:[#allocation16 + $0xb34] sm:$0xf]  ;;  %v13494_v17 = vor.u32 %v14844_v43, %v13493_v2  ;;  %v14812_v10 = vld [vmem:[#allocation16 + $0x96c] sm:$0xf0]  ;;  %v14813_v21 = vld [vmem:[#allocation16 + $0x974] sm:$0xf0] }
0x154c   : > { %8407 = vmatmul.bf16.vlgmr.msra.gmra.mxu0 %v16733_v49  ;;  %8420 = vmatmul.bf16.vlgmr.msra.gmra.mxu1 %v16733_v49  ;;  %v14809_v14 = vld [vmem:[#allocation16 + $0x93c] sm:$0xf]  ;;  %v14804_v2 = vld [vmem:[#allocation16 + $0x8ec] sm:$0xf0]  ;;  %v13374_v43 = vor.u32 %v14813_v21, %v13373_v0 }
0x154d   : > { %8433 = vmatmul.bf16.vlgmr.msra.gmra.mxu2 %v16733_v49  ;;  %8446 = vmatmul.bf16.vlgmr.msrb.gmra.mxu3 %v16733_v49  ;;  %v14871_v0 = vld [vmem:[#allocation19 + $0xa88] sm:$0xff] }
0x154e   : > { %9002 = vmatpush.bf16.msrb.mxu0 %v13382_v18  ;;  %9015 = vmatpush.bf16.msrb.mxu1 %v13386_v31  ;;  %v13498_v18 = vor.u32 %v14840_v5, %v13495_v41  ;;  %v13461_v31 = vld [vmem:[#allocation16 + $0xab0] sm:$0xf]  ;;  %v13335_v5 = vld [vmem:[#allocation16 + $0x8f0] sm:$0xf0]  ;;  %v13341_v41 = vld [vmem:[#allocation16 + $0x8b8] sm:$0xf] }
0x154f   : > { %9028 = vmatpush.bf16.msrb.mxu2 %v13390_v20  ;;  %9041 = vmatpush.bf16.msra.mxu3 %v13394_v22  ;;  %v13506_v20 = vor.u32 %v14841_v13, %v13503_v15  ;;  %v14832_v22 = vld [vmem:[#allocation16 + $0xab4] sm:$0xf]  ;;  %v13462_v27 = vor.u32 %v14836_v19, %v13461_v31  ;;  %v13343_v13 = vld [vmem:[#allocation16 + $0x8f8] sm:$0xf0]  ;;  %v14796_v31 = vld [vmem:[#allocation16 + $0x86c] sm:$0xf0]  ;;  %v13342_v19 = vor.u32 %v14805_v11, %v13341_v41 }
0x1550   : > { %v14879_v21 = vld [vmem:[#allocation19 + $0xac8] sm:$0xff]  ;;  %v14890_v41 = vld [vmem:[#allocation19 + $0xb20] sm:$0xff] }
0x1551   : > { %v14898_v11 = vld [vmem:[#allocation19 + $0xb60] sm:$0xff] }
0x1552   : > { %9003 = vmatpush.bf16.msrb.mxu0 %v13350_v53  ;;  %9016 = vmatpush.bf16.msrb.mxu1 %v13354_v28  ;;  %v13466_v53 = vor.u32 %v14832_v22, %v13463_v23  ;;  %v13429_v28 = vld [vmem:[#allocation16 + $0xa30] sm:$0xf]  ;;  %v13303_v22 = vld [vmem:[#allocation16 + $0x870] sm:$0xf0]  ;;  %v13309_v23 = vld [vmem:[#allocation16 + $0x838] sm:$0xf] }
0x1553   : > { %9029 = vmatpush.bf16.msrb.mxu2 %v13358_v32  ;;  %9042 = vmatpush.bf16.msra.mxu3 %v13362_v60  ;;  %v13474_v32 = vor.u32 %v14833_v24, %v13471_v26  ;;  %v14824_v60 = vld [vmem:[#allocation16 + $0xa34] sm:$0xf]  ;;  %v13430_v36 = vor.u32 %v14828_v29, %v13429_v28  ;;  %v13311_v24 = vld [vmem:[#allocation16 + $0x878] sm:$0xf0]  ;;  %v14861_v29 = vld [vmem:[#allocation19 + $0xa38] sm:$0xff] }
0x1554   : > { %v13434_v38 = vor.u32 %v14824_v60, %v13431_v34  ;;  %v13314_v28 = vor.u32 %v14793_v61, %v13311_v24  ;;  %v14885_v60 = vld [vmem:[#allocation19 + $0xaf8] sm:$0xff]  ;;  %v14860_v34 = vld [vmem:[#allocation19 + $0xa30] sm:$0xff]  ;;  %v14887_v61 = vld [vmem:[#allocation19 + $0xb08] sm:$0xff] }
0x1555   : > { %v14895_v24 = vld [vmem:[#allocation19 + $0xb48] sm:$0xff] }
0x1556   : > { %9004 = vmatpush.bf16.msrb.mxu0 %v13318_v8  ;;  %9017 = vmatpush.bf16.msrb.mxu1 %v13322_v39  ;;  %v13397_v8 = vld [vmem:[#allocation16 + $0x9b0] sm:$0xf] }
0x1557   : > { %9030 = vmatpush.bf16.msrb.mxu2 %v13326_v45  ;;  %9043 = vmatpush.bf16.msra.mxu3 %v13330_v46  ;;  %v14820_v39 = vld [vmem:[#allocation16 + $0x9ec] sm:$0xf0]  ;;  %v13399_v45 = vld [vmem:[#allocation16 + $0x9f0] sm:$0xf0]  ;;  %v13405_v46 = vld [vmem:[#allocation16 + $0x9b8] sm:$0xf] }
0x1558   : > { %v13398_v48 = vor.u32 %v14820_v39, %v13397_v8  ;;  %v13402_v58 = vor.u32 %v14816_v42, %v13399_v45  ;;  %v13406_v50 = vor.u32 %v14821_v62, %v13405_v46  ;;  %v14883_v8 = vld [vmem:[#allocation19 + $0xae8] sm:$0xff]  ;;  %v14858_v39 = vld [vmem:[#allocation19 + $0xa20] sm:$0xff]  ;;  %v14857_v42 = vld [vmem:[#allocation19 + $0xa18] sm:$0xff] }
0x1559   : > { %v14865_v45 = vld [vmem:[#allocation19 + $0xa58] sm:$0xff]  ;;  %v14856_v46 = vld [vmem:[#allocation19 + $0xa10] sm:$0xff] }
0x155a   : > { %9005 = vmatpush.bf16.msrb.mxu0 %v13286_v59  ;;  %9018 = vmatpush.bf16.msrb.mxu1 %v13290_v63  ;;  %v14808_v59 = vld [vmem:[#allocation16 + $0x934] sm:$0xf]  ;;  %v14864_v62 = vld [vmem:[#allocation19 + $0xa50] sm:$0xff] }
0x155b   : > { %9031 = vmatpush.bf16.msrb.mxu2 %v13294_v52  ;;  %9044 = vmatpush.bf16.msra.mxu3 %v13298_v54  ;;  %v13367_v63 = vld [vmem:[#allocation16 + $0x970] sm:$0xf0]  ;;  %v13375_v52 = vld [vmem:[#allocation16 + $0x978] sm:$0xf0]  ;;  %v13366_v54 = vor.u32 %v14812_v10, %v13365_v9  ;;  %v14872_v9 = vld [vmem:[#allocation19 + $0xa90] sm:$0xff] }
0x155c   : > { %v14880_v10 = vld [vmem:[#allocation19 + $0xad0] sm:$0xff] }
0x155d   : > { %9006 = vmatmul.bf16.vlgmr.msrb.gmra.mxu0 %v16733_v49  ;;  %9019 = vmatmul.bf16.vlgmr.msrb.gmra.mxu1 %v16733_v49 }
0x155e   : > { %9050 = vmatpush.bf16.msra.mxu0 %v13526_v44  ;;  %9063 = vmatpush.bf16.msra.mxu1 %v13530_v1  ;;  %v13370_v44 = vor.u32 %v14808_v59, %v13367_v63  ;;  %v13333_v1 = vld [vmem:[#allocation16 + $0x8b0] sm:$0xf]  ;;  %v14893_v59 = vld [vmem:[#allocation19 + $0xb38] sm:$0xff] }
0x155f   : > { %9076 = vmatpush.bf16.msra.mxu2 %v13534_v3  ;;  %9089 = vmatpush.bf16.msrb.mxu3 %v13538_v4  ;;  %v13378_v3 = vor.u32 %v14809_v14, %v13375_v52  ;;  %v14800_v4 = vld [vmem:[#allocation16 + $0x8b4] sm:$0xf]  ;;  %v13334_v15 = vor.u32 %v14804_v2, %v13333_v1  ;;  %v14901_v63 = vld [vmem:[#allocation19 + $0xb78] sm:$0xff]  ;;  %v14892_v14 = vld [vmem:[#allocation19 + $0xb30] sm:$0xff] }
0x1560   : > { %9032 = vmatmul.bf16.vlgmr.msrb.gmra.mxu2 %v16733_v49  ;;  %9045 = vmatmul.bf16.vlgmr.msra.gmra.mxu3 %v16733_v49  ;;  %v14900_v52 = vld [vmem:[#allocation19 + $0xb70] sm:$0xff]  ;;  %v14909_v1 = vld [vmem:[#allocation19 + $0xbb8] sm:$0xff] }
0x1561   : > { %v14917_v2 = vld [vmem:[#allocation19 + $0xbf8] sm:$0xff] }
0x1562   : > { %9051 = vmatpush.bf16.msra.mxu0 %v13494_v17  ;;  %9064 = vmatpush.bf16.msra.mxu1 %v13498_v18  ;;  %v13338_v17 = vor.u32 %v14800_v4, %v13335_v5  ;;  %v13301_v18 = vld [vmem:[#allocation16 + $0x830] sm:$0xf]  ;;  %v14908_v4 = vld [vmem:[#allocation19 + $0xbb0] sm:$0xff] }
0x1563   : > { %9077 = vmatpush.bf16.msra.mxu2 %v13502_v16  ;;  %9090 = vmatpush.bf16.msrb.mxu3 %v13506_v20  ;;  %v13346_v16 = vor.u32 %v14801_v37, %v13343_v13  ;;  %v14792_v20 = vld [vmem:[#allocation16 + $0x834] sm:$0xf]  ;;  %v13302_v26 = vor.u32 %v14796_v31, %v13301_v18  ;;  %v14916_v5 = vld [vmem:[#allocation19 + $0xbf0] sm:$0xff]  ;;  %v14907_v37 = vld [vmem:[#allocation19 + $0xba8] sm:$0xff] }
0x1564   : > { %v14915_v13 = vld [vmem:[#allocation19 + $0xbe8] sm:$0xff]  ;;  %v14906_v18 = vld [vmem:[#allocation19 + $0xba0] sm:$0xff] }
0x1565   : > { %v14914_v31 = vld [vmem:[#allocation19 + $0xbe0] sm:$0xff] }
0x1566   : > { %9052 = vmatpush.bf16.msra.mxu0 %v13462_v27  ;;  %9065 = vmatpush.bf16.msra.mxu1 %v13466_v53  ;;  %v13306_v27 = vor.u32 %v14792_v20, %v13303_v22  ;;  %v13310_v53 = vor.u32 %v14797_v25, %v13309_v23  ;;  %v14905_v23 = vld [vmem:[#allocation19 + $0xb98] sm:$0xff] }
0x1567   : > { %9078 = vmatpush.bf16.msra.mxu2 %v13470_v33  ;;  %9091 = vmatpush.bf16.msrb.mxu3 %v13474_v32  ;;  %v14869_v33 = vld [vmem:[#allocation19 + $0xa78] sm:$0xff] }
0x1568   : > { %v14877_v32 = vld [vmem:[#allocation19 + $0xab8] sm:$0xff] }
0x1569   : > { %v14913_v25 = vld [vmem:[#allocation19 + $0xbd8] sm:$0xff] }
0x156a   : > { %9053 = vmatpush.bf16.msra.mxu0 %v13430_v36  ;;  %9066 = vmatpush.bf16.msra.mxu1 %v13434_v38  ;;  %v14867_v36 = vld [vmem:[#allocation19 + $0xa68] sm:$0xff] }
0x156b   : > { %9079 = vmatpush.bf16.msra.mxu2 %v13438_v6  ;;  %9092 = vmatpush.bf16.msrb.mxu3 %v13442_v40  ;;  %v14875_v38 = vld [vmem:[#allocation19 + $0xaa8] sm:$0xff]  ;;  %v14866_v6 = vld [vmem:[#allocation19 + $0xa60] sm:$0xff] }
0x156c   : > { %v14874_v40 = vld [vmem:[#allocation19 + $0xaa0] sm:$0xff] }
0x156e   : > { %9054 = vmatpush.bf16.msra.mxu0 %v13398_v48  ;;  %9067 = vmatpush.bf16.msra.mxu1 %v13402_v58  ;;  %v14855_v48 = vld [vmem:[#allocation19 + $0xa08] sm:$0xff] }
0x156f   : > { %9080 = vmatpush.bf16.msra.mxu2 %v13406_v50  ;;  %9093 = vmatpush.bf16.msrb.mxu3 %v13410_v51  ;;  %v14863_v58 = vld [vmem:[#allocation19 + $0xa48] sm:$0xff]  ;;  %v14854_v50 = vld [vmem:[#allocation19 + $0xa00] sm:$0xff] }
0x1570   : > { %v14862_v51 = vld [vmem:[#allocation19 + $0xa40] sm:$0xff] }
0x1572   : > { %9055 = vmatpush.bf16.msra.mxu0 %v13366_v54  ;;  %9068 = vmatpush.bf16.msra.mxu1 %v13370_v44  ;;  %v14870_v54 = vld [vmem:[#allocation19 + $0xa80] sm:$0xff] }
0x1573   : > { %9081 = vmatpush.bf16.msra.mxu2 %v13374_v43  ;;  %9094 = vmatpush.bf16.msrb.mxu3 %v13378_v3  ;;  %v14878_v44 = vld [vmem:[#allocation19 + $0xac0] sm:$0xff]  ;;  %v14891_v43 = vld [vmem:[#allocation19 + $0xb28] sm:$0xff] }
0x1574   : > { %v14899_v3 = vld [vmem:[#allocation19 + $0xb68] sm:$0xff] }
0x1576   : > { %9056 = vmatpush.bf16.msra.mxu0 %v13334_v15  ;;  %9069 = vmatpush.bf16.msra.mxu1 %v13338_v17  ;;  %v14889_v15 = vld [vmem:[#allocation19 + $0xb18] sm:$0xff] }
0x1577   : > { %9082 = vmatpush.bf16.msra.mxu2 %v13342_v19  ;;  %9095 = vmatpush.bf16.msrb.mxu3 %v13346_v16  ;;  %v14897_v17 = vld [vmem:[#allocation19 + $0xb58] sm:$0xff]  ;;  %v14888_v19 = vld [vmem:[#allocation19 + $0xb10] sm:$0xff] }
0x1578   : > { %v14896_v16 = vld [vmem:[#allocation19 + $0xb50] sm:$0xff] }
0x157a   : > { %9057 = vmatpush.bf16.msra.mxu0 %v13302_v26  ;;  %9070 = vmatpush.bf16.msra.mxu1 %v13306_v27  ;;  %v14904_v26 = vld [vmem:[#allocation19 + $0xb90] sm:$0xff] }
0x157b   : > { %9083 = vmatpush.bf16.msra.mxu2 %v13310_v53  ;;  %9096 = vmatpush.bf16.msrb.mxu3 %v13314_v28  ;;  %v14912_v27 = vld [vmem:[#allocation19 + $0xbd0] sm:$0xff] }
0x157d   : > { %9058 = vmatmul.bf16.vlgmr.msra.gmra.mxu0 %v16733_v49  ;;  %9071 = vmatmul.bf16.vlgmr.msra.gmra.mxu1 %v16733_v49 }
0x157e   : > { %9630 = vmatpush.bf16.msrb.mxu0 %v14861_v29  ;;  %9643 = vmatpush.bf16.msrb.mxu1 %v14869_v33 }
0x157f   : > { %9084 = vmatmul.bf16.vlgmr.msra.gmra.mxu2 %v16733_v49  ;;  %9097 = vmatmul.bf16.vlgmr.msrb.gmra.mxu3 %v16733_v49  ;;  %v14882_v49 = vld [vmem:[#allocation19 + $0xae0] sm:$0xff] }
0x1580   : > { %9656 = vmatpush.bf16.msrb.mxu2 %v14877_v32  ;;  %9669 = vmatpush.bf16.msra.mxu3 %v14885_v60  ;;  %v14886_v32 = vld [vmem:[#allocation19 + $0xb00] sm:$0xff] }
0x1581   : > { %v14894_v60 = vld [vmem:[#allocation19 + $0xb40] sm:$0xff] }
0x1582   : > { %9631 = vmatpush.bf16.msrb.mxu0 %v14860_v34  ;;  %9644 = vmatpush.bf16.msrb.mxu1 %v14868_v7  ;;  %v14903_v34 = vld [vmem:[#allocation19 + $0xb88] sm:$0xff] }
0x1583   : > { %v14911_v7 = vld [vmem:[#allocation19 + $0xbc8] sm:$0xff] }
0x1584   : > { %9657 = vmatpush.bf16.msrb.mxu2 %v14876_v56  ;;  %9670 = vmatpush.bf16.msra.mxu3 %v14884_v57  ;;  %v14902_v56 = vld [vmem:[#allocation19 + $0xb80] sm:$0xff] }
0x1585   : > { %v14910_v57 = vld [vmem:[#allocation19 + $0xbc0] sm:$0xff] }
0x1586   : > { %9632 = vmatpush.bf16.msrb.mxu0 %v14859_v35  ;;  %9645 = vmatpush.bf16.msrb.mxu1 %v14867_v36 }
0x1588   : > { %9658 = vmatpush.bf16.msrb.mxu2 %v14875_v38  ;;  %9671 = vmatpush.bf16.msra.mxu3 %v14883_v8 }
0x158a   : > { %9633 = vmatpush.bf16.msrb.mxu0 %v14858_v39  ;;  %9646 = vmatpush.bf16.msrb.mxu1 %v14866_v6 }
0x158c   : > { %9659 = vmatpush.bf16.msrb.mxu2 %v14874_v40  ;;  %9672 = vmatpush.bf16.msra.mxu3 %v14882_v49 }
0x158e   : > { %9634 = vmatpush.bf16.msrb.mxu0 %v14857_v42  ;;  %9647 = vmatpush.bf16.msrb.mxu1 %v14865_v45  ;;  %v16767_v42 = vld [vmem:[#allocation18 + $0x28] sm:$0xff] }
0x1590   : > { %9660 = vmatpush.bf16.msrb.mxu2 %v14873_v30  ;;  %9673 = vmatpush.bf16.msra.mxu3 %v14881_v12  ;;  %v8663_v30 = vperm.slane %v16767_v42, 1 }
0x1592   : > { %9635 = vmatpush.bf16.msrb.mxu0 %v14856_v46  ;;  %9648 = vmatpush.bf16.msrb.mxu1 %v14864_v62  ;;  %v8662_v62 = vperm.slane %v16767_v42, 0 }
0x1594   : > { %9661 = vmatpush.bf16.msrb.mxu2 %v14872_v9  ;;  %9674 = vmatpush.bf16.msra.mxu3 %v14880_v10 }
0x1596   : > { %9636 = vmatpush.bf16.msrb.mxu0 %v14855_v48  ;;  %9649 = vmatpush.bf16.msrb.mxu1 %v14863_v58 }
0x1598   : > { %9662 = vmatpush.bf16.msrb.mxu2 %v14871_v0  ;;  %9675 = vmatpush.bf16.msra.mxu3 %v14879_v21  ;;  %v14741_v0 = vld [vmem:[#allocation19 + $0x878] sm:$0xff] }
0x159a   : > { %9637 = vmatpush.bf16.msrb.mxu0 %v14854_v50  ;;  %9650 = vmatpush.bf16.msrb.mxu1 %v14862_v51  ;;  %v8664_v51 = vperm.slane %v16767_v42, 2 }
0x159c   : > { %9663 = vmatpush.bf16.msrb.mxu2 %v14870_v54  ;;  %9676 = vmatpush.bf16.msra.mxu3 %v14878_v44 }
0x159e   : > { %9682 = vmatpush.bf16.msra.mxu0 %v14893_v59  ;;  %9695 = vmatpush.bf16.msra.mxu1 %v14901_v63  ;;  %v8665_v59 = vperm.slane %v16767_v42, 3  ;;  %v14733_v63 = vld [vmem:[#allocation19 + $0x838] sm:$0xff] }
0x15a0   : > { %9708 = vmatpush.bf16.msra.mxu2 %v14909_v1  ;;  %9721 = vmatpush.bf16.msrb.mxu3 %v14917_v2 }
0x15a2   : > { %9683 = vmatpush.bf16.msra.mxu0 %v14892_v14  ;;  %9696 = vmatpush.bf16.msra.mxu1 %v14900_v52 }
0x15a4   : > { %9709 = vmatpush.bf16.msra.mxu2 %v14908_v4  ;;  %9722 = vmatpush.bf16.msrb.mxu3 %v14916_v5  ;;  %v14740_v4 = vld [vmem:[#allocation19 + $0x870] sm:$0xff] }
0x15a6   : > { %9684 = vmatpush.bf16.msra.mxu0 %v14891_v43  ;;  %9697 = vmatpush.bf16.msra.mxu1 %v14899_v3  ;;  %v14732_v3 = vld [vmem:[#allocation19 + $0x830] sm:$0xff] }
0x15a8   : > { %9710 = vmatpush.bf16.msra.mxu2 %v14907_v37  ;;  %9723 = vmatpush.bf16.msrb.mxu3 %v14915_v13  ;;  %v14757_v37 = vld [vmem:[#allocation19 + $0x8f8] sm:$0xff] }
0x15aa   : > { %9685 = vmatpush.bf16.msra.mxu0 %v14890_v41  ;;  %9698 = vmatpush.bf16.msra.mxu1 %v14898_v11  ;;  %v14749_v11 = vld [vmem:[#allocation19 + $0x8b8] sm:$0xff] }
0x15ac   : > { %9711 = vmatpush.bf16.msra.mxu2 %v14906_v18  ;;  %9724 = vmatpush.bf16.msrb.mxu3 %v14914_v31  ;;  %v14739_v18 = vld [vmem:[#allocation19 + $0x868] sm:$0xff] }
0x15ae   : > { %9686 = vmatpush.bf16.msra.mxu0 %v14889_v15  ;;  %9699 = vmatpush.bf16.msra.mxu1 %v14897_v17  ;;  %v14731_v17 = vld [vmem:[#allocation19 + $0x828] sm:$0xff] }
0x15b0   : > { %9712 = vmatpush.bf16.msra.mxu2 %v14905_v23  ;;  %9725 = vmatpush.bf16.msrb.mxu3 %v14913_v25  ;;  %v14756_v23 = vld [vmem:[#allocation19 + $0x8f0] sm:$0xff]  ;;  %v14730_v25 = vld [vmem:[#allocation19 + $0x820] sm:$0xff] }
0x15b2   : > { %9687 = vmatpush.bf16.msra.mxu0 %v14888_v19  ;;  %9700 = vmatpush.bf16.msra.mxu1 %v14896_v16  ;;  %v14748_v16 = vld [vmem:[#allocation19 + $0x8b0] sm:$0xff] }
0x15b4   : > { %9713 = vmatpush.bf16.msra.mxu2 %v14904_v26  ;;  %9726 = vmatpush.bf16.msrb.mxu3 %v14912_v27  ;;  %v14755_v26 = vld [vmem:[#allocation19 + $0x8e8] sm:$0xff]  ;;  %v14729_v27 = vld [vmem:[#allocation19 + $0x818] sm:$0xff] }
0x15b6   : > { %9688 = vmatpush.bf16.msra.mxu0 %v14887_v61  ;;  %9701 = vmatpush.bf16.msra.mxu1 %v14895_v24  ;;  %v14738_v61 = vld [vmem:[#allocation19 + $0x860] sm:$0xff]  ;;  %v14747_v24 = vld [vmem:[#allocation19 + $0x8a8] sm:$0xff] }
0x15b8   : > { %9714 = vmatpush.bf16.msra.mxu2 %v14903_v34  ;;  %9727 = vmatpush.bf16.msrb.mxu3 %v14911_v7  ;;  %v14736_v34 = vld [vmem:[#allocation19 + $0x850] sm:$0xff]  ;;  %v8666_v7 = vperm.slane %v16767_v42, 4 }
0x15b9   : > { %v16751_v20 = vpop.f32.mrf.mxu0  ;;  %v16753_v22 = vpop.f32.mrf.mxu1 }
0x15ba   : > { %9689 = vmatpush.bf16.msra.mxu0 %v14886_v32  ;;  %9702 = vmatpush.bf16.msra.mxu1 %v14894_v60  ;;  %v14754_v32 = vld [vmem:[#allocation19 + $0x8e0] sm:$0xff]  ;;  %v14728_v60 = vld [vmem:[#allocation19 + $0x810] sm:$0xff] }
0x15bc   : > { %9715 = vmatpush.bf16.msra.mxu2 %v14902_v56  ;;  %9728 = vmatpush.bf16.msrb.mxu3 %v14910_v57  ;;  %v8667_v56 = vperm.slane %v16767_v42, 5  ;;  %v14745_v57 = vld [vmem:[#allocation19 + $0x898] sm:$0xff] }
0x15c0   : > { %v16755_v53 = vpop.f32.mrf.mxu2  ;;  %v16757_v28 = vpop.f32.mrf.mxu3 }
0x15c1   : > { %v8358_v29 = vpop.f32.mrf.mxu0  ;;  %v8371_v33 = vpop.f32.mrf.mxu1 }
0x15c2   : > { %v14737_v29 = vld [vmem:[#allocation19 + $0x858] sm:$0xff]  ;;  %v14746_v33 = vld [vmem:[#allocation19 + $0x8a0] sm:$0xff] }
0x15c8   : > { %v8384_v35 = vpop.f32.mrf.mxu2  ;;  %v8397_v36 = vpop.f32.mrf.mxu3 }
0x15c9   : > { %v16759_v38 = vpop.f32.mrf.mxu0  ;;  %v16761_v8 = vpop.f32.mrf.mxu1  ;;  %v14753_v35 = vld [vmem:[#allocation19 + $0x8d8] sm:$0xff]  ;;  %v14727_v36 = vld [vmem:[#allocation19 + $0x808] sm:$0xff] }
0x15d0   : > { %v16763_v39 = vpop.f32.mrf.mxu2  ;;  %v16765_v6 = vpop.f32.mrf.mxu3 }
0x15d1   : > { %v8410_v40 = vpop.f32.mrf.mxu0  ;;  %v8423_v49 = vpop.f32.mrf.mxu1 }
0x15d2   : > { %v14735_v40 = vld [vmem:[#allocation19 + $0x848] sm:$0xff] }
0x15d8   : > { %v8436_v45 = vpop.f32.mrf.mxu2  ;;  %v8449_v46 = vpop.f32.mrf.mxu3 }
0x15da   : > { %v9007_v12 = vpop.f32.mrf.mxu0  ;;  %v9020_v48 = vpop.f32.mrf.mxu1 }
0x15db   : > { %v9008_v58 = vadd.f32 %v9007_v12, %v8662_v62  ;;  %v9021_v9 = vadd.f32 %v9020_v48, %v8663_v30  ;;  %v14744_v30 = vld [vmem:[#allocation19 + $0x890] sm:$0xff] }
0x15dc   : > { %v14752_v12 = vld [vmem:[#allocation19 + $0x8d0] sm:$0xff] }
0x15dd   : > { %v9102_v10 = vmax.f32 %v9008_v58, 0.0  ;;  %v9103_v50 = vmax.f32 %v9021_v9, 0.0  ;;  %v8668_v9 = vperm.slane %v16767_v42, 6 }
0x15df   : > { %v9110_v21 = vpack.c.bf16 %v9102_v10, %v9102_v10  ;;  %v9111_v14 = vpack.c.bf16 %v9103_v50, %v9103_v50  ;;  %v8669_v10 = vperm.slane %v16767_v42, 7  ;;  %v14726_v50 = vld [vmem:[#allocation19 + $0x800] sm:$0xff] }
0x15e1   : > { %9638 = vmatmul.bf16.vlgmr.msrb.gmra.mxu0 %v9110_v21  ;;  %9651 = vmatmul.bf16.vlgmr.msrb.gmra.mxu1 %v9111_v14  ;;  %v14773_v21 = vld [vmem:[#allocation19 + $0x978] sm:$0xff]  ;;  %v16777_v14 = vld [vmem:[#allocation18 + $0x20] sm:$0xff] }
0x15e2   : > { %10118 = vmatpush.bf16.msrb.mxu0 %v14733_v63  ;;  %10131 = vmatpush.bf16.msrb.mxu1 %v14741_v0  ;;  %v9009_v2 = vpop.f32.mrf.mxu0  ;;  %v9022_v43 = vpop.f32.mrf.mxu1  ;;  %v14765_v0 = vld [vmem:[#allocation19 + $0x938] sm:$0xff] }
0x15e3   : > { %v9033_v52 = vpop.f32.mrf.mxu2  ;;  %v9046_v54 = vpop.f32.mrf.mxu3 }
0x15e4   : > { %v9034_v44 = vadd.f32 %v9033_v52, %v8664_v51  ;;  %v9047_v1 = vadd.f32 %v9046_v54, %v8665_v59  ;;  %v14734_v51 = vld [vmem:[#allocation19 + $0x840] sm:$0xff]  ;;  %v14743_v52 = vld [vmem:[#allocation19 + $0x888] sm:$0xff] }
0x15e5   : > { %v14751_v54 = vld [vmem:[#allocation19 + $0x8c8] sm:$0xff] }
0x15e6   : > { %v9104_v5 = vmax.f32 %v9034_v44, 0.0  ;;  %v9105_v41 = vmax.f32 %v9047_v1, 0.0  ;;  %10119 = vmatpush.bf16.msrb.mxu0 %v14732_v3  ;;  %10132 = vmatpush.bf16.msrb.mxu1 %v14740_v4  ;;  %v8011_v4 = vperm.slane %v16777_v14, 0 }
0x15e8   : > { %v9112_v13 = vpack.c.bf16 %v9104_v5, %v9104_v5  ;;  %v9113_v15 = vpack.c.bf16 %v9105_v41, %v9105_v41  ;;  %v8012_v5 = vperm.slane %v16777_v14, 1  ;;  %v14764_v41 = vld [vmem:[#allocation19 + $0x930] sm:$0xff] }
0x15ea   : > { %9664 = vmatmul.bf16.vlgmr.msrb.gmra.mxu2 %v9112_v13  ;;  %9677 = vmatmul.bf16.vlgmr.msra.gmra.mxu3 %v9113_v15  ;;  %v14742_v15 = vld [vmem:[#allocation19 + $0x880] sm:$0xff] }
0x15eb   : > { %10144 = vmatpush.bf16.msrb.mxu2 %v14749_v11  ;;  %10157 = vmatpush.bf16.msra.mxu3 %v14757_v37  ;;  %v9035_v31 = vpop.f32.mrf.mxu2  ;;  %v9048_v19 = vpop.f32.mrf.mxu3  ;;  %v14772_v11 = vld [vmem:[#allocation19 + $0x970] sm:$0xff] }
0x15ec   : > { %10120 = vmatpush.bf16.msrb.mxu0 %v14731_v17  ;;  %10133 = vmatpush.bf16.msrb.mxu1 %v14739_v18  ;;  %v14750_v17 = vld [vmem:[#allocation19 + $0x8c0] sm:$0xff]  ;;  %v14781_v19 = vld [vmem:[#allocation19 + $0x9b8] sm:$0xff] }
0x15ef   : > { %10145 = vmatpush.bf16.msrb.mxu2 %v14748_v16  ;;  %10158 = vmatpush.bf16.msra.mxu3 %v14756_v23  ;;  %v14789_v16 = vld [vmem:[#allocation19 + $0x9f8] sm:$0xff]  ;;  %v8357_v23 = vadd.f32 %v16751_v20, %v8011_v4  ;;  %v14788_v20 = vld [vmem:[#allocation19 + $0x9f0] sm:$0xff] }
0x15f0   : > { %10121 = vmatpush.bf16.msrb.mxu0 %v14730_v25  ;;  %10134 = vmatpush.bf16.msrb.mxu1 %v14738_v61  ;;  %v8370_v25 = vadd.f32 %v16753_v22, %v8012_v5  ;;  %v14763_v61 = vld [vmem:[#allocation19 + $0x928] sm:$0xff] }
0x15f1   : > { %v14775_v5 = vld [vmem:[#allocation19 + $0x988] sm:$0xff] }
0x15f2   : > { %v8452_v22 = vmax.f32 %v8370_v25, 0.0 }
0x15f3   : > { %10146 = vmatpush.bf16.msrb.mxu2 %v14747_v24  ;;  %10159 = vmatpush.bf16.msra.mxu3 %v14755_v26  ;;  %v14771_v24 = vld [vmem:[#allocation19 + $0x968] sm:$0xff] }
0x15f4   : > { %10122 = vmatpush.bf16.msrb.mxu0 %v14729_v27  ;;  %10135 = vmatpush.bf16.msrb.mxu1 %v14737_v29  ;;  %v8013_v29 = vperm.slane %v16777_v14, 2 }
0x15f7   : > { %10147 = vmatpush.bf16.msrb.mxu2 %v14746_v33  ;;  %10160 = vmatpush.bf16.msra.mxu3 %v14754_v32  ;;  %v8014_v33 = vperm.slane %v16777_v14, 3  ;;  %v14780_v32 = vld [vmem:[#allocation19 + $0x9b0] sm:$0xff] }
0x15f8   : > { %10123 = vmatpush.bf16.msrb.mxu0 %v14728_v60  ;;  %10136 = vmatpush.bf16.msrb.mxu1 %v14736_v34  ;;  %v8451_v60 = vmax.f32 %v8357_v23, 0.0  ;;  %v14762_v34 = vld [vmem:[#allocation19 + $0x920] sm:$0xff] }
0x15fa   : > { %v9059_v49 = vpop.f32.mrf.mxu0  ;;  %v9072_v45 = vpop.f32.mrf.mxu1 }
0x15fb   : > { %v9060_v46 = vadd.f32 %v9059_v49, %v8666_v7  ;;  %v9073_v62 = vadd.f32 %v9072_v45, %v8667_v56  ;;  %10148 = vmatpush.bf16.msrb.mxu2 %v14745_v57  ;;  %10161 = vmatpush.bf16.msra.mxu3 %v14753_v35  ;;  %v14770_v7 = vld [vmem:[#allocation19 + $0x960] sm:$0xff]  ;;  %v8383_v56 = vadd.f32 %v16755_v53, %v8013_v29  ;;  %v14779_v35 = vld [vmem:[#allocation19 + $0x9a8] sm:$0xff]  ;;  %v14761_v45 = vld [vmem:[#allocation19 + $0x918] sm:$0xff] }
0x15fc   : > { %10124 = vmatpush.bf16.msrb.mxu0 %v14727_v36  ;;  %10137 = vmatpush.bf16.msrb.mxu1 %v14735_v40  ;;  %v8396_v57 = vadd.f32 %v16757_v28, %v8014_v33  ;;  %v14787_v36 = vld [vmem:[#allocation19 + $0x9e8] sm:$0xff]  ;;  %v8459_v40 = vpack.c.bf16 %v8451_v60, %v8451_v60  ;;  %v8460_v49 = vpack.c.bf16 %v8452_v22, %v8452_v22  ;;  %v14786_v53 = vld [vmem:[#allocation19 + $0x9e0] sm:$0xff]  ;;  %v14760_v28 = vld [vmem:[#allocation19 + $0x910] sm:$0xff] }
0x15fd   : > { %v9106_v48 = vmax.f32 %v9060_v46, 0.0  ;;  %v9107_v58 = vmax.f32 %v9073_v62, 0.0  ;;  %v14769_v46 = vld [vmem:[#allocation19 + $0x958] sm:$0xff]  ;;  %v8453_v62 = vmax.f32 %v8383_v56, 0.0 }
0x15ff   : > { %v9114_v59 = vpack.c.bf16 %v9106_v48, %v9106_v48  ;;  %v9115_v63 = vpack.c.bf16 %v9107_v58, %v9107_v58  ;;  %10149 = vmatpush.bf16.msrb.mxu2 %v14744_v30  ;;  %10162 = vmatpush.bf16.msra.mxu3 %v14752_v12  ;;  %v8454_v30 = vmax.f32 %v8396_v57, 0.0  ;;  %v14778_v12 = vld [vmem:[#allocation19 + $0x9a0] sm:$0xff]  ;;  %v14768_v48 = vld [vmem:[#allocation19 + $0x950] sm:$0xff]  ;;  %v8015_v58 = vperm.slane %v16777_v14, 4 }
0x1600   : > { %10125 = vmatpush.bf16.msrb.mxu0 %v14726_v50  ;;  %10138 = vmatpush.bf16.msrb.mxu1 %v14734_v51  ;;  %v14777_v51 = vld [vmem:[#allocation19 + $0x998] sm:$0xff] }
0x1601   : > { %9690 = vmatmul.bf16.vlgmr.msra.gmra.mxu0 %v9114_v59  ;;  %9703 = vmatmul.bf16.vlgmr.msra.gmra.mxu1 %v9115_v63  ;;  %v8462_v50 = vpack.c.bf16 %v8454_v30, %v8454_v30  ;;  %v14785_v59 = vld [vmem:[#allocation19 + $0x9d8] sm:$0xff]  ;;  %v14759_v63 = vld [vmem:[#allocation19 + $0x908] sm:$0xff] }
0x1602   : > { %v9085_v44 = vpop.f32.mrf.mxu2  ;;  %v9098_v1 = vpop.f32.mrf.mxu3 }
0x1603   : > { %v9086_v2 = vadd.f32 %v9085_v44, %v8668_v9  ;;  %v9099_v43 = vadd.f32 %v9098_v1, %v8669_v10  ;;  %v9061_v42 = vpop.f32.mrf.mxu0  ;;  %v9074_v3 = vpop.f32.mrf.mxu1  ;;  %10150 = vmatpush.bf16.msrb.mxu2 %v14743_v52  ;;  %10163 = vmatpush.bf16.msra.mxu3 %v14751_v54  ;;  %v8016_v9 = vperm.slane %v16777_v14, 5  ;;  %v8461_v10 = vpack.c.bf16 %v8453_v62, %v8453_v62  ;;  %v14776_v54 = vld [vmem:[#allocation19 + $0x990] sm:$0xff] }
0x1604   : > { %10170 = vmatpush.bf16.msra.mxu0 %v14765_v0  ;;  %10183 = vmatpush.bf16.msra.mxu1 %v14773_v21  ;;  %v14767_v0 = vld [vmem:[#allocation19 + $0x948] sm:$0xff]  ;;  %v8409_v21 = vadd.f32 %v16759_v38, %v8015_v58  ;;  %v14784_v44 = vld [vmem:[#allocation19 + $0x9d0] sm:$0xff]  ;;  %v8017_v1 = vperm.slane %v16777_v14, 6  ;;  %v14766_v42 = vld [vmem:[#allocation19 + $0x940] sm:$0xff] }
0x1605   : > { %v9108_v37 = vmax.f32 %v9086_v2, 0.0  ;;  %v9109_v13 = vmax.f32 %v9099_v43, 0.0  ;;  %v8422_v52 = vadd.f32 %v16761_v8, %v8016_v9  ;;  %v8018_v2 = vperm.slane %v16777_v14, 7  ;;  %v14758_v43 = vld [vmem:[#allocation19 + $0x900] sm:$0xff]  ;;  %v14783_v38 = vld [vmem:[#allocation19 + $0x9c8] sm:$0xff] }
0x1606   : > { %v8455_v3 = vmax.f32 %v8409_v21, 0.0  ;;  %v8435_v8 = vadd.f32 %v16763_v39, %v8017_v1  ;;  %v14774_v14 = vld [vmem:[#allocation19 + $0x980] sm:$0xff] }
0x1607   : > { %v9116_v18 = vpack.c.bf16 %v9108_v37, %v9108_v37  ;;  %v9117_v31 = vpack.c.bf16 %v9109_v13, %v9109_v13  ;;  %10151 = vmatpush.bf16.msrb.mxu2 %v14742_v15  ;;  %10164 = vmatpush.bf16.msra.mxu3 %v14750_v17  ;;  %v8456_v4 = vmax.f32 %v8422_v52, 0.0  ;;  %v14782_v13 = vld [vmem:[#allocation19 + $0x9c0] sm:$0xff] }
0x1608   : > { %10171 = vmatpush.bf16.msra.mxu0 %v14764_v41  ;;  %10184 = vmatpush.bf16.msra.mxu1 %v14772_v11  ;;  %v8448_v41 = vadd.f32 %v16765_v6, %v8018_v2  ;;  %v8463_v11 = vpack.c.bf16 %v8455_v3, %v8455_v3  ;;  %v8457_v15 = vmax.f32 %v8435_v8, 0.0  ;;  %v15152_v1 = vld [vmem:[#allocation21 + $0x2] ss:$0 sm:$0xff] }
0x1609   : > { %9716 = vmatmul.bf16.vlgmr.msra.gmra.mxu2 %v9116_v18  ;;  %9729 = vmatmul.bf16.vlgmr.msrb.gmra.mxu3 %v9117_v31  ;;  %v8464_v37 = vpack.c.bf16 %v8456_v4, %v8456_v4 }
0x160a   : > { %v9087_v26 = vpop.f32.mrf.mxu2  ;;  %v9100_v27 = vpop.f32.mrf.mxu3  ;;  %v8458_v17 = vmax.f32 %v8448_v41, 0.0  ;;  %v8465_v18 = vpack.c.bf16 %v8457_v15, %v8457_v15 }
0x160b   : > { %10196 = vmatpush.bf16.msra.mxu2 %v14781_v19  ;;  %10209 = vmatpush.bf16.msrb.mxu3 %v14789_v16 }
0x160c   : > { %10172 = vmatpush.bf16.msra.mxu0 %v14763_v61  ;;  %10185 = vmatpush.bf16.msra.mxu1 %v14771_v24  ;;  %v8466_v31 = vpack.c.bf16 %v8458_v17, %v8458_v17 }
0x160f   : > { %10197 = vmatpush.bf16.msra.mxu2 %v14780_v32  ;;  %10210 = vmatpush.bf16.msrb.mxu3 %v14788_v20 }
0x1610   : > { %10173 = vmatpush.bf16.msra.mxu0 %v14762_v34  ;;  %10186 = vmatpush.bf16.msra.mxu1 %v14770_v7 }
0x1611   : > { %10126 = vmatmul.bf16.vlgmr.msrb.gmra.mxu0 %v8459_v40  ;;  %10139 = vmatmul.bf16.vlgmr.msrb.gmra.mxu1 %v8460_v49 }
0x1613   : > { %10198 = vmatpush.bf16.msra.mxu2 %v14779_v35  ;;  %10211 = vmatpush.bf16.msrb.mxu3 %v14787_v36 }
0x1614   : > { %10174 = vmatpush.bf16.msra.mxu0 %v14761_v45  ;;  %10187 = vmatpush.bf16.msra.mxu1 %v14769_v46 }
0x1617   : > { %10199 = vmatpush.bf16.msra.mxu2 %v14778_v12  ;;  %10212 = vmatpush.bf16.msrb.mxu3 %v14786_v53 }
0x1618   : > { %10175 = vmatpush.bf16.msra.mxu0 %v14760_v28  ;;  %10188 = vmatpush.bf16.msra.mxu1 %v14768_v48 }
0x1619   : > { %10152 = vmatmul.bf16.vlgmr.msrb.gmra.mxu2 %v8461_v10  ;;  %10165 = vmatmul.bf16.vlgmr.msra.gmra.mxu3 %v8462_v50 }
0x161b   : > { %10200 = vmatpush.bf16.msra.mxu2 %v14777_v51  ;;  %10213 = vmatpush.bf16.msrb.mxu3 %v14785_v59 }
0x161c   : > { %10176 = vmatpush.bf16.msra.mxu0 %v14759_v63  ;;  %10189 = vmatpush.bf16.msra.mxu1 %v14767_v0 }
0x161f   : > { %10201 = vmatpush.bf16.msra.mxu2 %v14776_v54  ;;  %10214 = vmatpush.bf16.msrb.mxu3 %v14784_v44 }
0x1620   : > { %10177 = vmatpush.bf16.msra.mxu0 %v14758_v43  ;;  %10190 = vmatpush.bf16.msra.mxu1 %v14766_v42 }
0x1623   : > { %10202 = vmatpush.bf16.msra.mxu2 %v14775_v5  ;;  %10215 = vmatpush.bf16.msrb.mxu3 %v14783_v38 }
0x1624   : > { %10178 = vmatmul.bf16.vlgmr.msra.gmra.mxu0 %v8463_v11  ;;  %10191 = vmatmul.bf16.vlgmr.msra.gmra.mxu1 %v8464_v37  ;;  %v10268_v11 = vld [vmem:[#allocation3] sm:$0x1]  ;;  %v15879_v37 = vmov 0  }
0x1625   : > { %15134 = vset.pattern.permute.xlu1 %v15879_v37  ;;  %15135 = vset.pattern.permute.xlu0 %v15879_v37 }
0x1626   : > { %10271 = vperm.xlu1 %15134, %v10268_v11  }
0x1627   : > { %10203 = vmatpush.bf16.msra.mxu2 %v14774_v14  ;;  %10216 = vmatpush.bf16.msrb.mxu3 %v14782_v13 }
0x162a   : > { %10204 = vmatmul.bf16.vlgmr.msra.gmra.mxu2 %v8465_v18  ;;  %10217 = vmatmul.bf16.vlgmr.msrb.gmra.mxu3 %v8466_v31 }
0x165e   : > { %v9639_v39 = vpop.f32.mrf.mxu0  ;;  %v9652_v6 = vpop.f32.mrf.mxu1 }
0x165f   : > { %v9653_v29 = vadd.f32 %v9652_v6, %v9639_v39 }
0x1666   : > { %v9641_v19 = vpop.f32.mrf.mxu0  ;;  %v9654_v16 = vpop.f32.mrf.mxu1 }
0x1667   : > { %v15153_v19 = vld [vmem:[#allocation25 + $0x2] ss:$0 sm:$0xff] }
0x166d   : > { %v9665_v23 = vpop.f32.mrf.mxu2  ;;  %v9678_v25 = vpop.f32.mrf.mxu3 }
0x166e   : > { %v9666_v33 = vadd.f32 %v9665_v23, %v9653_v29  ;;  %v10277_v29 = vlaneseq }
0x1670   : > { %v9679_v60 = vadd.f32 %v9678_v25, %v9666_v33  ;;  %v15154_v25 = vld [vmem:[#allocation27 + $0x2] ss:$0 sm:$0xff] }
0x1675   : > { %v9667_v61 = vpop.f32.mrf.mxu2  ;;  %v9680_v24 = vpop.f32.mrf.mxu3 }
0x1676   : > { %v15155_v24 = vld [vmem:[#allocation28] ss:$0 sm:$0xff] }
0x167e   : > { %v9691_v26 = vpop.f32.mrf.mxu0  ;;  %v9704_v27 = vpop.f32.mrf.mxu1 }
0x167f   : > { %v9692_v22 = vadd.f32 %v9691_v26, %v9679_v60 }
0x1681   : > { %v9705_v35 = vadd.f32 %v9704_v27, %v9692_v22 }
0x1686   : > { %v9693_v32 = vpop.f32.mrf.mxu0  ;;  %v9706_v20 = vpop.f32.mrf.mxu1 }
0x1687   : > { %v10278_v32 = vand.u32 127, %v10277_v29 }
0x168c   : > { %v9717_v34 = vpop.f32.mrf.mxu2  ;;  %v9730_v7 = vpop.f32.mrf.mxu3 }
0x168d   : > { %v9718_v36 = vadd.f32 %v9717_v34, %v9705_v35 }
0x168e   : > { %v10127_v56 = vpop.f32.mrf.mxu0  ;;  %v10140_v57 = vpop.f32.mrf.mxu1 }
0x168f   : > { %v9731_v45 = vadd.f32 %v9730_v7, %v9718_v36 }
0x1691   : > { %v10128_v30 = vadd.f32 %v10127_v56, %v9731_v45 }
0x1693   : > { %v10141_v28 = vadd.f32 %v10140_v57, %v10128_v30 }
0x1694   : > { %v9719_v40 = vpop.f32.mrf.mxu2  ;;  %v9732_v49 = vpop.f32.mrf.mxu3 }
0x1696   : > { %v10129_v46 = vpop.f32.mrf.mxu0  ;;  %v10142_v62 = vpop.f32.mrf.mxu1 }
0x1698   : > { %v10272_v27 = vpop.permute.xlu1 %10271 }
0x1699   : > { %v10274_v33 = vperm.slane %v10272_v27, 0 }
0x169c   : > { %v10153_v12 = vpop.f32.mrf.mxu2  ;;  %v10166_v53 = vpop.f32.mrf.mxu3 }
0x169d   : > { %v10154_v48 = vadd.f32 %v10153_v12, %v10141_v28 }
0x169f   : > { %v10167_v10 = vadd.f32 %v10166_v53, %v10154_v48 }
0x16a1   : > { %v10179_v58 = vpop.f32.mrf.mxu0  ;;  %v10192_v9 = vpop.f32.mrf.mxu1 }
0x16a2   : > { %v10180_v59 = vadd.f32 %v10179_v58, %v10167_v10 }
0x16a4   : > { %v10155_v50 = vpop.f32.mrf.mxu2  ;;  %v10168_v51 = vpop.f32.mrf.mxu3  ;;  %v10193_v21 = vadd.f32 %v10192_v9, %v10180_v59 }
0x16a9   : > { %v10181_v63 = vpop.f32.mrf.mxu0  ;;  %v10194_v0 = vpop.f32.mrf.mxu1 }
0x16ad   : > { %v10205_v52 = vpop.f32.mrf.mxu2  ;;  %v10218_v54 = vpop.f32.mrf.mxu3 }
0x16ae   : > { %v10206_v44 = vadd.f32 %v10205_v52, %v10193_v21 }
0x16b0   : > { %v10219_v2 = vadd.f32 %v10218_v54, %v10206_v44 }
0x16b2   : > { %v10227_v43 = vadd.f32 %v15152_v1, %v10219_v2 }
0x16b4   : > { %v10228_v42 = vadd.f32 %v10227_v43, %v16729_v55 }
0x16b5   : > { %v10207_v3 = vpop.f32.mrf.mxu2  ;;  %v10220_v4 = vpop.f32.mrf.mxu3 }
0x16b6   : > { %10233 = vadd.xlane.f32.xlu2 %v10228_v42 }
0x1729   : > { %v10234_v5 = vpop.xlane.xlu2 %10233 }
0x172a   : > { %v10235_v38 = vmul.f32 %v10234_v5, %v16337_v47 }
0x172c   : > { %v10236_v8 = vsub.f32 %v10228_v42, %v10235_v38 }
0x172e   : > { %v10237_v41 = vmul.f32 %v10236_v8, %v10236_v8 }
0x1730   : > { %10238 = vadd.xlane.f32.xlu0 %v10237_v41 }
0x17a3   : > { %v10239_v14 = vpop.xlane.xlu0 %10238 }
0x17a4   : > { %v10240_v13 = vmul.f32 %v10239_v14, %v16337_v47 }
0x17a6   : > { %v10241_v15 = vadd.f32 1e-05, %v10240_v13 }
0x17a8   : > { %15264 = vrsqrt.f32 %v10241_v15  ;;  %vm10248_vm4 = vweird.f32 %v10241_v15 }
0x17ae   : > { %v15265_v55 = vpop.eup %15264 }
0x17af   : > { %v10243_v17 = vmul.f32 %v15265_v55, %v10241_v15  ;;  %vm10249_vm3 = vweird.f32 %v15265_v55 }
0x17b0   : > { %vm10250_vm5 = vmor %vm10248_vm4, %vm10249_vm3 }
0x17b1   : > { %v10244_v18 = vmul.f32 %v15265_v55, %v10243_v17 }
0x17b3   : > { %v10245_v31 = vmul.f32 0.5, %v10244_v18 }
0x17b5   : > { %v10246_v39 = vsub.f32 1.5, %v10245_v31 }
0x17b7   : > { %v10247_v6 = vmul.f32 %v15265_v55, %v10246_v39 }
0x17b9   : > { %v10251_v16 = vsel %vm10250_vm5, %v15265_v55, %v10247_v6 }
0x17ba   : > { %v10252_v23 = vmul.f32 %v10251_v16, %v10236_v8 }
0x17bc   : > { %v10256_v61 = vmul.f32 %v15153_v19, %v10252_v23 }
0x17be   : > { %v10260_v47 = vadd.f32 %v15154_v25, %v10256_v61 }
0x17c0   : > { %v10265_v26 = vmul.f32 %v15155_v24, %v10260_v47 }
0x17c2   : > { %10266 = vadd.xlane.f32.xlu2 %v10265_v26 }
0x1835   : > { %v10267_v20 = vpop.xlane.xlu2 %10266 }
0x1836   : > { %v10275_v60 = vadd.f32 %v10274_v33, %v10267_v20 }
0x1838   : > { %v10279_v22 = vperm.slane %v10275_v60, %v10278_v32 }
0x183a   : > { %10282 = vst.msk [vmem:[%s810_s20] sm:$0x1] %vm10281_vm6, %v10279_v22 }
0x183b   : > { %15773 = shalt.err (!%p15770_p9)
}
0x183c   : > { %14980 = dma.vmem_to_hbm [thread:$0]  (%p16128_p13), %s10295_s0, 16, %s10297_s4, %s10284_s25  }
0x183d PF: > { %s16889_s5 = sld [smem:[#allocation41_spill]]  ;;  %p16890_p10 = scmp.ge.s32.totalorder %s15844_s16, 2 }
0x183f   : > { %p15033_p11 = pnand %p16890_p10, %p16133_p4 }
0x1841   : > { %p15034_p0 = pneg %p15033_p11 }
0x1843   : > { %s10308_s19 = sand.u32 1, %s16889_s5  }
0x1844   : > { %s10309_s24 = scalar_lea.sflag [#allocation6], %s10308_s19 }
0x1845   : > { %15827 = dma.done.wait (%p15034_p0), %s10309_s24, 16  }
0x1846   : > { %15829 = vsyncadd (%p15034_p0), %s10309_s24, 4294967280  ;;  %s16891_s26 = sld [smem:[#allocation42_spill]]  ;;  %s16892_s20 = smov %s16120_s27 }
0x1847   : > { %p40_p2 = scmp.ge.s32.totalorder %s16108_s23, 4   ;;  %s16893_s27 = smov %s15840_s28 }
0x1848   : > { %s16894_s28 = smov %s16892_s20  ;;  %s16895_s16 = smov %s16108_s23 }
0x1849   :  { %42 = sbr.rel (!%p40_p2) target bundleno = 22 (0x16), region = 217 }
0x184e   :  { %10314 = vsyncpa [#allocation5], 1 }
0x184f   :  { %10316 = vsyncpa [#allocation5 + $0x1], 1 }
0x1850   :  { %10317 = vsyncpa [#allocation8], 1 }
0x1851   :  { %10318 = vsyncpa [#allocation11], 1 }
0x1852   :  { %10319 = vsyncpa [#allocation14], 1 }
0x1853   :  { %10320 = vsyncpa [#allocation17], 1 }
0x1854   :  { %10321 = vsyncpa [#allocation20], 1 }
0x1855   :  { %10322 = vsyncpa [#allocation23], 1 }
0x1856   :  { %10323 = vsyncpa [#allocation26], 1 }
0x1857   :  { %10324 = vsyncpa [#allocation29], 1 }
0x1858   :  { %10325 = vsyncpa [#allocation6], 1 }
0x1859   :  { %10327 = vsyncpa [#allocation6 + $0x1], 1 }

</bundles_post_ra>
